<compile_context>
chip_gen: v7x
topology: tpu7x:2x2x1
jax: 0.10.0
libtpu: 0.0.40
codegen_flags: <defaults>
</compile_context>

<pallas_src>
import functools

import jax
import jax.numpy as jnp
from jax.experimental import pallas as pl
from jax.experimental.pallas import tpu as pltpu


# ----------------------------------------------------------------------------
# Static network configuration (Python constants, never traced).
#
# conv1 is stored with the grayscale repeat(1,3,1,1) folded in: summing the
# torchvision-shaped (64,3,11,11) weight over its input-channel axis is
# mathematically identical to convolving the tiled 3-channel input; it removes
# the 3x input copy and shrinks conv1's im2col K from 363 to 121.
# ----------------------------------------------------------------------------
CONV_CFG = [  # (in_ch_after_fold, out_ch, kernel, stride, pad)
    (1, 64, 11, 4, 2),
    (64, 192, 5, 1, 2),
    (192, 384, 3, 1, 1),
    (384, 256, 3, 1, 1),
    (256, 256, 3, 1, 1),
]
FC_CFG = [(256 * 6 * 6, 4096), (4096, 4096), (4096, 15)]
POOL_AFTER = (0, 1, 4)        # MaxPool2d(3,2) follows conv1, conv2, conv5

# Tile caps shared by every layer.  Worst-case per-call VMEM with these caps
# (x 1 MiB + w 2 MiB, double-buffered, + out/acc) is ~8 MiB, well under the
# 48 MiB limit and safe on v7x's 64 MiB/TC; on v5e/v6e (128 MiB) this leaves
# plenty of compiler headroom.  tn=512 gives the 4096-wide FC layers 8 j-blocks
# so the N axis can be sharded across v7x's two TensorCores.
_TM_CAP, _TM_UNIT = 256, 16      # bf16 packs 2 rows/sublane -> M unit 16
_TK_CAP, _TK_UNIT = 2048, 128
_TN_CAP, _TN_UNIT = 512, 128
_VMEM_LIMIT = 48 * 1024 * 1024


def _round_up(x, m):
    return ((x + m - 1) // m) * m


def _pick_tile(dim, unit, cap):
    """MXU-friendly tile for a pad-to-tile (pl.cdiv) grid.

    If the whole rounded-up dim fits under `cap`, use it as a single block.
    Otherwise scan multiples of `unit` in [cap//2, cap] and take the one that
    minimizes zero padding.  The >= cap//2 floor means awkward dims (e.g.
    M = 6050 with its prime factor 757) get a few padded rows instead of the
    old behaviour of collapsing the tile to 8 and exploding the grid.
    """
    dp_min = _round_up(dim, unit)
    if dp_min <= cap:
        return dp_min
    floor = max(unit, cap // 2)
    best_t, best_pad = cap, _round_up(dim, cap) - dim
    t = cap
    while t - unit >= floor:
        t -= unit
        pad = _round_up(dim, t) - dim
        if pad < best_pad:
            best_t, best_pad = t, pad
    return best_t


# ----------------------------------------------------------------------------
# Pallas kernel: tiled matmul (bf16 in, f32 accumulate) + fused bias / ReLU
# ----------------------------------------------------------------------------
def _matmul_bias_kernel(x_ref, w_ref, b_ref, o_ref, acc_ref, *, apply_relu):
    k = pl.program_id(2)                       # reduction axis is last

    @pl.when(k == 0)
    def _():
        acc_ref[...] = jnp.zeros_like(acc_ref)

    acc_ref[...] += jnp.dot(x_ref[...], w_ref[...],
                            preferred_element_type=jnp.float32)

    @pl.when(k == pl.num_programs(2) - 1)
    def _():
        r = acc_ref[...] + b_ref[...]          # f32 bias broadcast over rows
        if apply_relu:
            r = jnp.maximum(r, 0.0)
        o_ref[...] = r.astype(o_ref.dtype)     # bf16 for conv/fc1/fc2, f32 fc3


def pallas_linear(x, w_p, b_p, *, n_out, relu, out_dtype=jnp.float32):
    """y = relu?(x @ w + b) with one Pallas TPU matmul kernel.

    x:    (M, K)   logical activations (any float dtype; fed to the MXU as bf16)
    w_p:  (Kp, Np) weight, already bf16 and zero-padded at init to the tile grid
    b_p:  (1, Np)  f32 bias, already zero-padded at init
    n_out:         logical output width (<= Np)
    """
    M, K = x.shape
    tm = _pick_tile(M, _TM_UNIT, _TM_CAP)
    tk = _pick_tile(K, _TK_UNIT, _TK_CAP)
    tn = _pick_tile(n_out, _TN_UNIT, _TN_CAP)
    Mp, Kp, Np = _round_up(M, tm), _round_up(K, tk), _round_up(n_out, tn)
    assert w_p.shape == (Kp, Np), (w_p.shape, (Kp, Np))
    assert b_p.shape == (1, Np), (b_p.shape, (1, Np))

    xp = x.astype(jnp.bfloat16)
    if (Mp, Kp) != (M, K):
        xp = jnp.pad(xp, ((0, Mp - M), (0, Kp - K)))   # zero rows/cols: exact

    grid = (Mp // tm, Np // tn, Kp // tk)              # reduction (K) axis last

    out = pl.pallas_call(
        functools.partial(_matmul_bias_kernel, apply_relu=relu),
        out_shape=jax.ShapeDtypeStruct((Mp, Np), out_dtype),
        grid_spec=pltpu.PrefetchScalarGridSpec(
            num_scalar_prefetch=0,
            grid=grid,
            in_specs=[
                pl.BlockSpec((tm, tk), lambda i, j, k: (i, k)),
                pl.BlockSpec((tk, tn), lambda i, j, k: (k, j)),
                pl.BlockSpec((1, tn), lambda i, j, k: (0, j)),
            ],
            out_specs=pl.BlockSpec((tm, tn), lambda i, j, k: (i, j)),
            scratch_shapes=[pltpu.VMEM((tm, tn), jnp.float32)],
        ),
        compiler_params=pltpu.CompilerParams(
            dimension_semantics=("parallel", "parallel", "arbitrary"),
            vmem_limit_bytes=_VMEM_LIMIT,
        ),
    )(xp, w_p, b_p)

    if (Mp, Np) == (M, n_out):
        return out                             # no trailing slice when aligned
    return out[:M, :n_out]


# ----------------------------------------------------------------------------
# Conv / pooling helpers (glue around the Pallas matmul kernel)
# ----------------------------------------------------------------------------
def _im2col(x_nhwc, kh, kw, stride, pad):
    """Extract conv patches -> (N*OH*OW, KH*KW*C), ordering (kh, kw, c)."""
    # TODO(synk): fold (kh,kw) patch extraction into the kernel's K grid axis
    # (direct conv via offset index_maps / manual DMA) to remove the kh*kw
    # HBM read amplification; kept as an explicit bf16 im2col for now.
    x = jnp.pad(x_nhwc, ((0, 0), (pad, pad), (pad, pad), (0, 0)))
    n, h, w, c = x.shape
    oh = (h - kh) // stride + 1
    ow = (w - kw) // stride + 1
    cols = []
    for i in range(kh):
        for j in range(kw):
            cols.append(x[:, i:i + stride * oh:stride,
                            j:j + stride * ow:stride, :])   # (N, OH, OW, C)
    cols = jnp.stack(cols, axis=3)                           # (N,OH,OW,KH*KW,C)
    return cols.reshape(n * oh * ow, kh * kw * c), oh, ow


def conv2d_relu(x_nhwc, w_p, b_p, *, oc, kh, kw, stride, pad):
    """Conv2d + ReLU via im2col + Pallas matmul.  Output activations in bf16
    (immediately re-consumed in bf16 downstream -> halves HBM writeback)."""
    n = x_nhwc.shape[0]
    cols, oh, ow = _im2col(x_nhwc.astype(jnp.bfloat16), kh, kw, stride, pad)
    y = pallas_linear(cols, w_p, b_p, n_out=oc, relu=True,
                      out_dtype=jnp.bfloat16)
    return y.reshape(n, oh, ow, oc)


def maxpool_nhwc(x, k, s):
    # PyTorch MaxPool2d(kernel_size=k, stride=s), no padding, floor mode.
    # Runs on bf16 activations (half the HBM round-trip of the old f32 path).
    # TODO(synk): could be fused into the conv epilogue to avoid the round-trip.
    init = jnp.array(-jnp.inf, dtype=x.dtype)
    return jax.lax.reduce_window(
        x, init, jax.lax.max, (1, k, k, 1), (1, s, s, 1), "VALID")


def adaptive_avg_pool_nhwc(x, out_h, out_w):
    # Matches torch.nn.AdaptiveAvgPool2d((out_h, out_w)); accumulate in f32.
    n, h, w, c = x.shape
    rows = []
    for i in range(out_h):
        hs, he = (i * h) // out_h, -((-(i + 1) * h) // out_h)
        cols = []
        for j in range(out_w):
            ws, we = (j * w) // out_w, -((-(j + 1) * w) // out_w)
            cols.append(jnp.mean(x[:, hs:he, ws:we, :].astype(jnp.float32),
                                 axis=(1, 2)))
        rows.append(jnp.stack(cols, axis=1))                 # (N, out_w, C)
    return jnp.stack(rows, axis=1)                           # (N,out_h,out_w,C)


# ----------------------------------------------------------------------------
# Deterministic synthetic AlexNet parameters, stored in kernel-ready layout:
#   conv weights: (Kp, Np) bf16  (im2col matmul layout, repeat folded, padded)
#   fc   weights: (Kp, Np) bf16  (pre-transposed to (in,out), padded)
#   biases:       (1, Np)  f32   (padded)
# All casting / transposing / tile-grid padding happens ONCE here, not in the
# traced forward.
# ----------------------------------------------------------------------------
def _pad_linear_params(w_t, b):
    """w_t: (K, N) f32, b: (N,) f32 -> bf16 (Kp,Np) weight + f32 (1,Np) bias,
    zero-padded to the exact tile grid pallas_linear will use."""
    K, N = w_t.shape
    tk = _pick_tile(K, _TK_UNIT, _TK_CAP)
    tn = _pick_tile(N, _TN_UNIT, _TN_CAP)
    Kp, Np = _round_up(K, tk), _round_up(N, tn)
    w_p = jnp.pad(w_t, ((0, Kp - K), (0, Np - N))).astype(jnp.bfloat16)
    b_p = jnp.pad(b.astype(jnp.float32), (0, Np - N)).reshape(1, Np)
    return w_p, b_p


def init_params(seed=42):
    keys = jax.random.split(jax.random.PRNGKey(seed), len(CONV_CFG) + len(FC_CFG))
    params = {}
    for idx, (ic, oc, k, s, p) in enumerate(CONV_CFG):
        if idx == 0:
            # Draw the torchvision-shaped (64, 3, 11, 11) weight, then fold the
            # grayscale repeat(1,3,1,1) by summing over the input-channel axis.
            fan_in = 3 * k * k
            w = jax.random.normal(keys[idx], (oc, 3, k, k), jnp.float32)
            w = (w * jnp.sqrt(2.0 / fan_in)).sum(axis=1, keepdims=True)
        else:
            fan_in = ic * k * k
            w = jax.random.normal(keys[idx], (oc, ic, k, k), jnp.float32)
            w = w * jnp.sqrt(2.0 / fan_in)
        # (OC, IC, KH, KW) -> (KH, KW, IC, OC) -> (KH*KW*IC, OC)  (im2col order)
        w = jnp.transpose(w, (2, 3, 1, 0)).reshape(k * k * ic, oc)
        b = jnp.zeros((oc,), jnp.float32)
        params[f"conv{idx + 1}_w"], params[f"conv{idx + 1}_b"] = \
            _pad_linear_params(w, b)
    for idx, (fi, fo) in enumerate(FC_CFG):
        w = jax.random.normal(keys[len(CONV_CFG) + idx], (fo, fi), jnp.float32)
        w = (w * jnp.sqrt(2.0 / fi)).T        # torch (out,in) -> stored (in,out)
        b = jnp.zeros((fo,), jnp.float32)
        params[f"fc{idx + 1}_w"], params[f"fc{idx + 1}_b"] = \
            _pad_linear_params(w, b)
    return params


# ----------------------------------------------------------------------------
# Forward pass (mirrors MyAlexNet.forward)
# ----------------------------------------------------------------------------
def my_alexnet_forward(x_nchw, params):
    # x.repeat(1, 3, 1, 1) is folded into conv1's weight (see init_params).
    x = jnp.transpose(x_nchw, (0, 2, 3, 1))               # NCHW -> NHWC (C = 1)

    # cnn_layers (AlexNet features) — bf16 activations throughout
    for idx, (_, oc, k, s, p) in enumerate(CONV_CFG):
        x = conv2d_relu(x, params[f"conv{idx + 1}_w"], params[f"conv{idx + 1}_b"],
                        oc=oc, kh=k, kw=k, stride=s, pad=p)
        if idx in POOL_AFTER:
            x = maxpool_nhwc(x, 3, 2)

    # avgpool + flatten (match torch NCHW flatten order -> 256*6*6 = 9216)
    x = adaptive_avg_pool_nhwc(x, 6, 6)
    x = jnp.transpose(x, (0, 3, 1, 2)).reshape(x.shape[0], -1)

    # fc_layers: Dropout is identity in eval mode; weights pre-stored (in, out).
    x = pallas_linear(x, params["fc1_w"], params["fc1_b"], n_out=FC_CFG[0][1],
                      relu=True, out_dtype=jnp.bfloat16)
    x = pallas_linear(x, params["fc2_w"], params["fc2_b"], n_out=FC_CFG[1][1],
                      relu=True, out_dtype=jnp.bfloat16)
    y = pallas_linear(x, params["fc3_w"], params["fc3_b"], n_out=FC_CFG[2][1],
                      relu=False, out_dtype=jnp.float32)
    return y                                               # (N, 15) raw scores

# TODO(synk): loss_criterion (nn.CrossEntropyLoss(reduction='sum')) and the
# pretrained-weight loading / layer freezing are training-time concerns with
# no forward-pass Pallas equivalent; only forward() is implemented here.


# ----------------------------------------------------------------------------
if __name__ == "__main__":
    params = init_params(seed=42)

    # Grayscale input (the forward's repeat(1,3,1,1) implies C == 1).
    # 64x64 is the smallest spatial size that exercises every layer.
    x = jax.random.normal(jax.random.PRNGKey(0), (2, 1, 64, 64), jnp.float32)

    fwd = jax.jit(my_alexnet_forward)
    y = jax.block_until_ready(fwd(x, params))

    assert y.shape == (2, 15), y.shape
    assert y.dtype == jnp.float32
    assert bool(jnp.all(jnp.isfinite(y)))
    print("KERNEL_OK")
</pallas_src>

<mosaic_0001>
module attributes {stable_mosaic.version = 11 : i64} {
  func.func @_matmul_bias_kernel(%arg0: i32, %arg1: i32, %arg2: i32, %arg3: memref<240x128xbf16, #tpu.memory_space<vmem>>, %arg4: memref<128x128xbf16, #tpu.memory_space<vmem>>, %arg5: memref<1x128xf32, #tpu.memory_space<vmem>>, %arg6: memref<240x128xbf16, #tpu.memory_space<vmem>>, %arg7: memref<240x128xf32, #tpu.memory_space<vmem>>) attributes {dimension_semantics = [#tpu.dimension_semantics<parallel>, #tpu.dimension_semantics<parallel>, #tpu.dimension_semantics<arbitrary>], iteration_bounds = array<i64: 2, 1, 1>, scalar_prefetch = 0 : i64, scratch_operands = 1 : i64, tpu.core_type = #tpu.core_type<tc>, window_params = [{transform_indices = @transform_0, window_bounds = array<i64: 240, 128>}, {transform_indices = @transform_1, window_bounds = array<i64: 128, 128>}, {transform_indices = @transform_2, window_bounds = array<i64: 1, 128>}, {transform_indices = @transform_3, window_bounds = array<i64: 240, 128>}]} {
    %c0_i32 = arith.constant 0 : i32
    %0 = arith.cmpi eq, %arg2, %c0_i32 : i32
    %1 = arith.extui %0 : i1 to i32
    %c0_i32_0 = arith.constant 0 : i32
    %2 = arith.cmpi ne, %1, %c0_i32_0 : i32
    scf.if %2 {
      %cst_10 = arith.constant 0.000000e+00 : f32
      %12 = vector.broadcast %cst_10 : f32 to vector<240x128xf32>
      %c0_11 = arith.constant 0 : index
      %c0_12 = arith.constant 0 : index
      %13 = vector.load %arg7[%c0_11, %c0_12] : memref<240x128xf32, #tpu.memory_space<vmem>>, vector<240x128xf32>
      tpu.vector_store %arg7[%c0_11, %c0_12], %12 {strides = array<i32>} : memref<240x128xf32, #tpu.memory_space<vmem>>, vector<240x128xf32>,
    } else {
    }
    %c0 = arith.constant 0 : index
    %c0_1 = arith.constant 0 : index
    %3 = vector.load %arg7[%c0, %c0_1] : memref<240x128xf32, #tpu.memory_space<vmem>>, vector<240x128xf32>
    %c0_2 = arith.constant 0 : index
    %c0_3 = arith.constant 0 : index
    %4 = vector.load %arg3[%c0_2, %c0_3] : memref<240x128xbf16, #tpu.memory_space<vmem>>, vector<240x128xbf16>
    %c0_4 = arith.constant 0 : index
    %c0_5 = arith.constant 0 : index
    %5 = vector.load %arg4[%c0_4, %c0_5] : memref<128x128xbf16, #tpu.memory_space<vmem>>, vector<128x128xbf16>
    %cst = arith.constant dense<0.000000e+00> : vector<240x128xf32>
    %6 = tpu.matmul %4, %5, %cst {dimension_numbers = #tpu.dot_dimension_numbers<[1], [0], [0], [1], [0, 0, 1, 1], [], []>} : vector<240x128xbf16>, vector<128x128xbf16>, vector<240x128xf32> -> vector<240x128xf32>
    %7 = arith.addf %3, %6 : vector<240x128xf32>
    %c0_6 = arith.constant 0 : index
    %c0_7 = arith.constant 0 : index
    %8 = vector.load %arg7[%c0_6, %c0_7] : memref<240x128xf32, #tpu.memory_space<vmem>>, vector<240x128xf32>
    tpu.vector_store %arg7[%c0_6, %c0_7], %7 {strides = array<i32>} : memref<240x128xf32, #tpu.memory_space<vmem>>, vector<240x128xf32>,
    %c0_i32_8 = arith.constant 0 : i32
    %9 = arith.cmpi eq, %arg2, %c0_i32_8 : i32
    %10 = arith.extui %9 : i1 to i32
    %c0_i32_9 = arith.constant 0 : i32
    %11 = arith.cmpi ne, %10, %c0_i32_9 : i32
    scf.if %11 {
      %c0_10 = arith.constant 0 : index
      %c0_11 = arith.constant 0 : index
      %12 = vector.load %arg7[%c0_10, %c0_11] : memref<240x128xf32, #tpu.memory_space<vmem>>, vector<240x128xf32>
      %c0_12 = arith.constant 0 : index
      %c0_13 = arith.constant 0 : index
      %13 = vector.load %arg5[%c0_12, %c0_13] : memref<1x128xf32, #tpu.memory_space<vmem>>, vector<1x128xf32>
      %14 = vector.broadcast %13 : vector<1x128xf32> to vector<240x128xf32>
      %15 = arith.addf %12, %14 : vector<240x128xf32>
      %cst_14 = arith.constant 0.000000e+00 : f32
      %16 = vector.broadcast %cst_14 : f32 to vector<240x128xf32>
      %17 = arith.maximumf %15, %16 : vector<240x128xf32>
      %18 = arith.truncf %17 : vector<240x128xf32> to vector<240x128xbf16>
      %c0_15 = arith.constant 0 : index
      %c0_16 = arith.constant 0 : index
      %19 = vector.load %arg6[%c0_15, %c0_16] : memref<240x128xbf16, #tpu.memory_space<vmem>>, vector<240x128xbf16>
      tpu.vector_store %arg6[%c0_15, %c0_16], %18 {strides = array<i32>} : memref<240x128xbf16, #tpu.memory_space<vmem>>, vector<240x128xbf16>,
    } else {
    }
    return
  }
  func.func @transform_0(%arg0: i32, %arg1: i32, %arg2: i32) -> (i32, i32) {
    %c0_i32 = arith.constant 0 : i32
    return %arg0, %arg2 : i32, i32
  }
  func.func @transform_1(%arg0: i32, %arg1: i32, %arg2: i32) -> (i32, i32) {
    %c0_i32 = arith.constant 0 : i32
    return %arg2, %arg1 : i32, i32
  }
  func.func @transform_2(%arg0: i32, %arg1: i32, %arg2: i32) -> (i32, i32) {
    %c0_i32 = arith.constant 0 : i32
    %c0_i32_0 = arith.constant 0 : i32
    return %c0_i32, %arg1 : i32, i32
  }
  func.func @transform_3(%arg0: i32, %arg1: i32, %arg2: i32) -> (i32, i32) {
    %c0_i32 = arith.constant 0 : i32
    return %arg0, %arg1 : i32, i32
  }
}

module attributes {stable_mosaic.version = 11 : i64} {
  func.func @_matmul_bias_kernel(%arg0: i32, %arg1: i32, %arg2: i32, %arg3: memref<112x1664xbf16, #tpu.memory_space<vmem>>, %arg4: memref<1664x256xbf16, #tpu.memory_space<vmem>>, %arg5: memref<1x256xf32, #tpu.memory_space<vmem>>, %arg6: memref<112x256xbf16, #tpu.memory_space<vmem>>, %arg7: memref<112x256xf32, #tpu.memory_space<vmem>>) attributes {dimension_semantics = [#tpu.dimension_semantics<parallel>, #tpu.dimension_semantics<parallel>, #tpu.dimension_semantics<arbitrary>], iteration_bounds = array<i64: 1, 1, 1>, scalar_prefetch = 0 : i64, scratch_operands = 1 : i64, tpu.core_type = #tpu.core_type<tc>, window_params = [{transform_indices = @transform_0, window_bounds = array<i64: 112, 1664>}, {transform_indices = @transform_1, window_bounds = array<i64: 1664, 256>}, {transform_indices = @transform_2, window_bounds = array<i64: 1, 256>}, {transform_indices = @transform_3, window_bounds = array<i64: 112, 256>}]} {
    %c0_i32 = arith.constant 0 : i32
    %0 = arith.cmpi eq, %arg2, %c0_i32 : i32
    %1 = arith.extui %0 : i1 to i32
    %c0_i32_0 = arith.constant 0 : i32
    %2 = arith.cmpi ne, %1, %c0_i32_0 : i32
    scf.if %2 {
      %cst_10 = arith.constant 0.000000e+00 : f32
      %12 = vector.broadcast %cst_10 : f32 to vector<112x256xf32>
      %c0_11 = arith.constant 0 : index
      %c0_12 = arith.constant 0 : index
      %13 = vector.load %arg7[%c0_11, %c0_12] : memref<112x256xf32, #tpu.memory_space<vmem>>, vector<112x256xf32>
      tpu.vector_store %arg7[%c0_11, %c0_12], %12 {strides = array<i32>} : memref<112x256xf32, #tpu.memory_space<vmem>>, vector<112x256xf32>,
    } else {
    }
    %c0 = arith.constant 0 : index
    %c0_1 = arith.constant 0 : index
    %3 = vector.load %arg7[%c0, %c0_1] : memref<112x256xf32, #tpu.memory_space<vmem>>, vector<112x256xf32>
    %c0_2 = arith.constant 0 : index
    %c0_3 = arith.constant 0 : index
    %4 = vector.load %arg3[%c0_2, %c0_3] : memref<112x1664xbf16, #tpu.memory_space<vmem>>, vector<112x1664xbf16>
    %c0_4 = arith.constant 0 : index
    %c0_5 = arith.constant 0 : index
    %5 = vector.load %arg4[%c0_4, %c0_5] : memref<1664x256xbf16, #tpu.memory_space<vmem>>, vector<1664x256xbf16>
    %cst = arith.constant dense<0.000000e+00> : vector<112x256xf32>
    %6 = tpu.matmul %4, %5, %cst {dimension_numbers = #tpu.dot_dimension_numbers<[1], [0], [0], [1], [0, 0, 1, 1], [], []>} : vector<112x1664xbf16>, vector<1664x256xbf16>, vector<112x256xf32> -> vector<112x256xf32>
    %7 = arith.addf %3, %6 : vector<112x256xf32>
    %c0_6 = arith.constant 0 : index
    %c0_7 = arith.constant 0 : index
    %8 = vector.load %arg7[%c0_6, %c0_7] : memref<112x256xf32, #tpu.memory_space<vmem>>, vector<112x256xf32>
    tpu.vector_store %arg7[%c0_6, %c0_7], %7 {strides = array<i32>} : memref<112x256xf32, #tpu.memory_space<vmem>>, vector<112x256xf32>,
    %c0_i32_8 = arith.constant 0 : i32
    %9 = arith.cmpi eq, %arg2, %c0_i32_8 : i32
    %10 = arith.extui %9 : i1 to i32
    %c0_i32_9 = arith.constant 0 : i32
    %11 = arith.cmpi ne, %10, %c0_i32_9 : i32
    scf.if %11 {
      %c0_10 = arith.constant 0 : index
      %c0_11 = arith.constant 0 : index
      %12 = vector.load %arg7[%c0_10, %c0_11] : memref<112x256xf32, #tpu.memory_space<vmem>>, vector<112x256xf32>
      %c0_12 = arith.constant 0 : index
      %c0_13 = arith.constant 0 : index
      %13 = vector.load %arg5[%c0_12, %c0_13] : memref<1x256xf32, #tpu.memory_space<vmem>>, vector<1x256xf32>
      %14 = vector.broadcast %13 : vector<1x256xf32> to vector<112x256xf32>
      %15 = arith.addf %12, %14 : vector<112x256xf32>
      %cst_14 = arith.constant 0.000000e+00 : f32
      %16 = vector.broadcast %cst_14 : f32 to vector<112x256xf32>
      %17 = arith.maximumf %15, %16 : vector<112x256xf32>
      %18 = arith.truncf %17 : vector<112x256xf32> to vector<112x256xbf16>
      %c0_15 = arith.constant 0 : index
      %c0_16 = arith.constant 0 : index
      %19 = vector.load %arg6[%c0_15, %c0_16] : memref<112x256xbf16, #tpu.memory_space<vmem>>, vector<112x256xbf16>
      tpu.vector_store %arg6[%c0_15, %c0_16], %18 {strides = array<i32>} : memref<112x256xbf16, #tpu.memory_space<vmem>>, vector<112x256xbf16>,
    } else {
    }
    return
  }
  func.func @transform_0(%arg0: i32, %arg1: i32, %arg2: i32) -> (i32, i32) {
    %c0_i32 = arith.constant 0 : i32
    return %arg0, %arg2 : i32, i32
  }
  func.func @transform_1(%arg0: i32, %arg1: i32, %arg2: i32) -> (i32, i32) {
    %c0_i32 = arith.constant 0 : i32
    return %arg2, %arg1 : i32, i32
  }
  func.func @transform_2(%arg0: i32, %arg1: i32, %arg2: i32) -> (i32, i32) {
    %c0_i32 = arith.constant 0 : i32
    %c0_i32_0 = arith.constant 0 : i32
    return %c0_i32, %arg1 : i32, i32
  }
  func.func @transform_3(%arg0: i32, %arg1: i32, %arg2: i32) -> (i32, i32) {
    %c0_i32 = arith.constant 0 : i32
    return %arg0, %arg1 : i32, i32
  }
}

module attributes {stable_mosaic.version = 11 : i64} {
  func.func @_matmul_bias_kernel(%arg0: i32, %arg1: i32, %arg2: i32, %arg3: memref<32x1792xbf16, #tpu.memory_space<vmem>>, %arg4: memref<1792x384xbf16, #tpu.memory_space<vmem>>, %arg5: memref<1x384xf32, #tpu.memory_space<vmem>>, %arg6: memref<32x384xbf16, #tpu.memory_space<vmem>>, %arg7: memref<32x384xf32, #tpu.memory_space<vmem>>) attributes {dimension_semantics = [#tpu.dimension_semantics<parallel>, #tpu.dimension_semantics<parallel>, #tpu.dimension_semantics<arbitrary>], iteration_bounds = array<i64: 1, 1, 1>, scalar_prefetch = 0 : i64, scratch_operands = 1 : i64, tpu.core_type = #tpu.core_type<tc>, window_params = [{transform_indices = @transform_0, window_bounds = array<i64: 32, 1792>}, {transform_indices = @transform_1, window_bounds = array<i64: 1792, 384>}, {transform_indices = @transform_2, window_bounds = array<i64: 1, 384>}, {transform_indices = @transform_3, window_bounds = array<i64: 32, 384>}]} {
    %c0_i32 = arith.constant 0 : i32
    %0 = arith.cmpi eq, %arg2, %c0_i32 : i32
    %1 = arith.extui %0 : i1 to i32
    %c0_i32_0 = arith.constant 0 : i32
    %2 = arith.cmpi ne, %1, %c0_i32_0 : i32
    scf.if %2 {
      %cst_10 = arith.constant 0.000000e+00 : f32
      %12 = vector.broadcast %cst_10 : f32 to vector<32x384xf32>
      %c0_11 = arith.constant 0 : index
      %c0_12 = arith.constant 0 : index
      %13 = vector.load %arg7[%c0_11, %c0_12] : memref<32x384xf32, #tpu.memory_space<vmem>>, vector<32x384xf32>
      tpu.vector_store %arg7[%c0_11, %c0_12], %12 {strides = array<i32>} : memref<32x384xf32, #tpu.memory_space<vmem>>, vector<32x384xf32>,
    } else {
    }
    %c0 = arith.constant 0 : index
    %c0_1 = arith.constant 0 : index
    %3 = vector.load %arg7[%c0, %c0_1] : memref<32x384xf32, #tpu.memory_space<vmem>>, vector<32x384xf32>
    %c0_2 = arith.constant 0 : index
    %c0_3 = arith.constant 0 : index
    %4 = vector.load %arg3[%c0_2, %c0_3] : memref<32x1792xbf16, #tpu.memory_space<vmem>>, vector<32x1792xbf16>
    %c0_4 = arith.constant 0 : index
    %c0_5 = arith.constant 0 : index
    %5 = vector.load %arg4[%c0_4, %c0_5] : memref<1792x384xbf16, #tpu.memory_space<vmem>>, vector<1792x384xbf16>
    %cst = arith.constant dense<0.000000e+00> : vector<32x384xf32>
    %6 = tpu.matmul %4, %5, %cst {dimension_numbers = #tpu.dot_dimension_numbers<[1], [0], [0], [1], [0, 0, 1, 1], [], []>} : vector<32x1792xbf16>, vector<1792x384xbf16>, vector<32x384xf32> -> vector<32x384xf32>
    %7 = arith.addf %3, %6 : vector<32x384xf32>
    %c0_6 = arith.constant 0 : index
    %c0_7 = arith.constant 0 : index
    %8 = vector.load %arg7[%c0_6, %c0_7] : memref<32x384xf32, #tpu.memory_space<vmem>>, vector<32x384xf32>
    tpu.vector_store %arg7[%c0_6, %c0_7], %7 {strides = array<i32>} : memref<32x384xf32, #tpu.memory_space<vmem>>, vector<32x384xf32>,
    %c0_i32_8 = arith.constant 0 : i32
    %9 = arith.cmpi eq, %arg2, %c0_i32_8 : i32
    %10 = arith.extui %9 : i1 to i32
    %c0_i32_9 = arith.constant 0 : i32
    %11 = arith.cmpi ne, %10, %c0_i32_9 : i32
    scf.if %11 {
      %c0_10 = arith.constant 0 : index
      %c0_11 = arith.constant 0 : index
      %12 = vector.load %arg7[%c0_10, %c0_11] : memref<32x384xf32, #tpu.memory_space<vmem>>, vector<32x384xf32>
      %c0_12 = arith.constant 0 : index
      %c0_13 = arith.constant 0 : index
      %13 = vector.load %arg5[%c0_12, %c0_13] : memref<1x384xf32, #tpu.memory_space<vmem>>, vector<1x384xf32>
      %14 = vector.broadcast %13 : vector<1x384xf32> to vector<32x384xf32>
      %15 = arith.addf %12, %14 : vector<32x384xf32>
      %cst_14 = arith.constant 0.000000e+00 : f32
      %16 = vector.broadcast %cst_14 : f32 to vector<32x384xf32>
      %17 = arith.maximumf %15, %16 : vector<32x384xf32>
      %18 = arith.truncf %17 : vector<32x384xf32> to vector<32x384xbf16>
      %c0_15 = arith.constant 0 : index
      %c0_16 = arith.constant 0 : index
      %19 = vector.load %arg6[%c0_15, %c0_16] : memref<32x384xbf16, #tpu.memory_space<vmem>>, vector<32x384xbf16>
      tpu.vector_store %arg6[%c0_15, %c0_16], %18 {strides = array<i32>} : memref<32x384xbf16, #tpu.memory_space<vmem>>, vector<32x384xbf16>,
    } else {
    }
    return
  }
  func.func @transform_0(%arg0: i32, %arg1: i32, %arg2: i32) -> (i32, i32) {
    %c0_i32 = arith.constant 0 : i32
    return %arg0, %arg2 : i32, i32
  }
  func.func @transform_1(%arg0: i32, %arg1: i32, %arg2: i32) -> (i32, i32) {
    %c0_i32 = arith.constant 0 : i32
    return %arg2, %arg1 : i32, i32
  }
  func.func @transform_2(%arg0: i32, %arg1: i32, %arg2: i32) -> (i32, i32) {
    %c0_i32 = arith.constant 0 : i32
    %c0_i32_0 = arith.constant 0 : i32
    return %c0_i32, %arg1 : i32, i32
  }
  func.func @transform_3(%arg0: i32, %arg1: i32, %arg2: i32) -> (i32, i32) {
    %c0_i32 = arith.constant 0 : i32
    return %arg0, %arg1 : i32, i32
  }
}

module attributes {stable_mosaic.version = 11 : i64} {
  func.func @_matmul_bias_kernel(%arg0: i32, %arg1: i32, %arg2: i32, %arg3: memref<32x1152xbf16, #tpu.memory_space<vmem>>, %arg4: memref<1152x256xbf16, #tpu.memory_space<vmem>>, %arg5: memref<1x256xf32, #tpu.memory_space<vmem>>, %arg6: memref<32x256xbf16, #tpu.memory_space<vmem>>, %arg7: memref<32x256xf32, #tpu.memory_space<vmem>>) attributes {dimension_semantics = [#tpu.dimension_semantics<parallel>, #tpu.dimension_semantics<parallel>, #tpu.dimension_semantics<arbitrary>], iteration_bounds = array<i64: 1, 1, 3>, scalar_prefetch = 0 : i64, scratch_operands = 1 : i64, tpu.core_type = #tpu.core_type<tc>, window_params = [{transform_indices = @transform_0, window_bounds = array<i64: 32, 1152>}, {transform_indices = @transform_1, window_bounds = array<i64: 1152, 256>}, {transform_indices = @transform_2, window_bounds = array<i64: 1, 256>}, {transform_indices = @transform_3, window_bounds = array<i64: 32, 256>}]} {
    %c0_i32 = arith.constant 0 : i32
    %0 = arith.cmpi eq, %arg2, %c0_i32 : i32
    %1 = arith.extui %0 : i1 to i32
    %c0_i32_0 = arith.constant 0 : i32
    %2 = arith.cmpi ne, %1, %c0_i32_0 : i32
    scf.if %2 {
      %cst_9 = arith.constant 0.000000e+00 : f32
      %12 = vector.broadcast %cst_9 : f32 to vector<32x256xf32>
      %c0_10 = arith.constant 0 : index
      %c0_11 = arith.constant 0 : index
      %13 = vector.load %arg7[%c0_10, %c0_11] : memref<32x256xf32, #tpu.memory_space<vmem>>, vector<32x256xf32>
      tpu.vector_store %arg7[%c0_10, %c0_11], %12 {strides = array<i32>} : memref<32x256xf32, #tpu.memory_space<vmem>>, vector<32x256xf32>,
    } else {
    }
    %c0 = arith.constant 0 : index
    %c0_1 = arith.constant 0 : index
    %3 = vector.load %arg7[%c0, %c0_1] : memref<32x256xf32, #tpu.memory_space<vmem>>, vector<32x256xf32>
    %c0_2 = arith.constant 0 : index
    %c0_3 = arith.constant 0 : index
    %4 = vector.load %arg3[%c0_2, %c0_3] : memref<32x1152xbf16, #tpu.memory_space<vmem>>, vector<32x1152xbf16>
    %c0_4 = arith.constant 0 : index
    %c0_5 = arith.constant 0 : index
    %5 = vector.load %arg4[%c0_4, %c0_5] : memref<1152x256xbf16, #tpu.memory_space<vmem>>, vector<1152x256xbf16>
    %cst = arith.constant dense<0.000000e+00> : vector<32x256xf32>
    %6 = tpu.matmul %4, %5, %cst {dimension_numbers = #tpu.dot_dimension_numbers<[1], [0], [0], [1], [0, 0, 1, 1], [], []>} : vector<32x1152xbf16>, vector<1152x256xbf16>, vector<32x256xf32> -> vector<32x256xf32>
    %7 = arith.addf %3, %6 : vector<32x256xf32>
    %c0_6 = arith.constant 0 : index
    %c0_7 = arith.constant 0 : index
    %8 = vector.load %arg7[%c0_6, %c0_7] : memref<32x256xf32, #tpu.memory_space<vmem>>, vector<32x256xf32>
    tpu.vector_store %arg7[%c0_6, %c0_7], %7 {strides = array<i32>} : memref<32x256xf32, #tpu.memory_space<vmem>>, vector<32x256xf32>,
    %c2_i32 = arith.constant 2 : i32
    %9 = arith.cmpi eq, %arg2, %c2_i32 : i32
    %10 = arith.extui %9 : i1 to i32
    %c0_i32_8 = arith.constant 0 : i32
    %11 = arith.cmpi ne, %10, %c0_i32_8 : i32
    scf.if %11 {
      %c0_9 = arith.constant 0 : index
      %c0_10 = arith.constant 0 : index
      %12 = vector.load %arg7[%c0_9, %c0_10] : memref<32x256xf32, #tpu.memory_space<vmem>>, vector<32x256xf32>
      %c0_11 = arith.constant 0 : index
      %c0_12 = arith.constant 0 : index
      %13 = vector.load %arg5[%c0_11, %c0_12] : memref<1x256xf32, #tpu.memory_space<vmem>>, vector<1x256xf32>
      %14 = vector.broadcast %13 : vector<1x256xf32> to vector<32x256xf32>
      %15 = arith.addf %12, %14 : vector<32x256xf32>
      %cst_13 = arith.constant 0.000000e+00 : f32
      %16 = vector.broadcast %cst_13 : f32 to vector<32x256xf32>
      %17 = arith.maximumf %15, %16 : vector<32x256xf32>
      %18 = arith.truncf %17 : vector<32x256xf32> to vector<32x256xbf16>
      %c0_14 = arith.constant 0 : index
      %c0_15 = arith.constant 0 : index
      %19 = vector.load %arg6[%c0_14, %c0_15] : memref<32x256xbf16, #tpu.memory_space<vmem>>, vector<32x256xbf16>
      tpu.vector_store %arg6[%c0_14, %c0_15], %18 {strides = array<i32>} : memref<32x256xbf16, #tpu.memory_space<vmem>>, vector<32x256xbf16>,
    } else {
    }
    return
  }
  func.func @transform_0(%arg0: i32, %arg1: i32, %arg2: i32) -> (i32, i32) {
    %c0_i32 = arith.constant 0 : i32
    return %arg0, %arg2 : i32, i32
  }
  func.func @transform_1(%arg0: i32, %arg1: i32, %arg2: i32) -> (i32, i32) {
    %c0_i32 = arith.constant 0 : i32
    return %arg2, %arg1 : i32, i32
  }
  func.func @transform_2(%arg0: i32, %arg1: i32, %arg2: i32) -> (i32, i32) {
    %c0_i32 = arith.constant 0 : i32
    %c0_i32_0 = arith.constant 0 : i32
    return %c0_i32, %arg1 : i32, i32
  }
  func.func @transform_3(%arg0: i32, %arg1: i32, %arg2: i32) -> (i32, i32) {
    %c0_i32 = arith.constant 0 : i32
    return %arg0, %arg1 : i32, i32
  }
}

module attributes {stable_mosaic.version = 11 : i64} {
  func.func @_matmul_bias_kernel(%arg0: i32, %arg1: i32, %arg2: i32, %arg3: memref<32x1152xbf16, #tpu.memory_space<vmem>>, %arg4: memref<1152x256xbf16, #tpu.memory_space<vmem>>, %arg5: memref<1x256xf32, #tpu.memory_space<vmem>>, %arg6: memref<32x256xbf16, #tpu.memory_space<vmem>>, %arg7: memref<32x256xf32, #tpu.memory_space<vmem>>) attributes {dimension_semantics = [#tpu.dimension_semantics<parallel>, #tpu.dimension_semantics<parallel>, #tpu.dimension_semantics<arbitrary>], iteration_bounds = array<i64: 1, 1, 2>, scalar_prefetch = 0 : i64, scratch_operands = 1 : i64, tpu.core_type = #tpu.core_type<tc>, window_params = [{transform_indices = @transform_0, window_bounds = array<i64: 32, 1152>}, {transform_indices = @transform_1, window_bounds = array<i64: 1152, 256>}, {transform_indices = @transform_2, window_bounds = array<i64: 1, 256>}, {transform_indices = @transform_3, window_bounds = array<i64: 32, 256>}]} {
    %c0_i32 = arith.constant 0 : i32
    %0 = arith.cmpi eq, %arg2, %c0_i32 : i32
    %1 = arith.extui %0 : i1 to i32
    %c0_i32_0 = arith.constant 0 : i32
    %2 = arith.cmpi ne, %1, %c0_i32_0 : i32
    scf.if %2 {
      %cst_9 = arith.constant 0.000000e+00 : f32
      %12 = vector.broadcast %cst_9 : f32 to vector<32x256xf32>
      %c0_10 = arith.constant 0 : index
      %c0_11 = arith.constant 0 : index
      %13 = vector.load %arg7[%c0_10, %c0_11] : memref<32x256xf32, #tpu.memory_space<vmem>>, vector<32x256xf32>
      tpu.vector_store %arg7[%c0_10, %c0_11], %12 {strides = array<i32>} : memref<32x256xf32, #tpu.memory_space<vmem>>, vector<32x256xf32>,
    } else {
    }
    %c0 = arith.constant 0 : index
    %c0_1 = arith.constant 0 : index
    %3 = vector.load %arg7[%c0, %c0_1] : memref<32x256xf32, #tpu.memory_space<vmem>>, vector<32x256xf32>
    %c0_2 = arith.constant 0 : index
    %c0_3 = arith.constant 0 : index
    %4 = vector.load %arg3[%c0_2, %c0_3] : memref<32x1152xbf16, #tpu.memory_space<vmem>>, vector<32x1152xbf16>
    %c0_4 = arith.constant 0 : index
    %c0_5 = arith.constant 0 : index
    %5 = vector.load %arg4[%c0_4, %c0_5] : memref<1152x256xbf16, #tpu.memory_space<vmem>>, vector<1152x256xbf16>
    %cst = arith.constant dense<0.000000e+00> : vector<32x256xf32>
    %6 = tpu.matmul %4, %5, %cst {dimension_numbers = #tpu.dot_dimension_numbers<[1], [0], [0], [1], [0, 0, 1, 1], [], []>} : vector<32x1152xbf16>, vector<1152x256xbf16>, vector<32x256xf32> -> vector<32x256xf32>
    %7 = arith.addf %3, %6 : vector<32x256xf32>
    %c0_6 = arith.constant 0 : index
    %c0_7 = arith.constant 0 : index
    %8 = vector.load %arg7[%c0_6, %c0_7] : memref<32x256xf32, #tpu.memory_space<vmem>>, vector<32x256xf32>
    tpu.vector_store %arg7[%c0_6, %c0_7], %7 {strides = array<i32>} : memref<32x256xf32, #tpu.memory_space<vmem>>, vector<32x256xf32>,
    %c1_i32 = arith.constant 1 : i32
    %9 = arith.cmpi eq, %arg2, %c1_i32 : i32
    %10 = arith.extui %9 : i1 to i32
    %c0_i32_8 = arith.constant 0 : i32
    %11 = arith.cmpi ne, %10, %c0_i32_8 : i32
    scf.if %11 {
      %c0_9 = arith.constant 0 : index
      %c0_10 = arith.constant 0 : index
      %12 = vector.load %arg7[%c0_9, %c0_10] : memref<32x256xf32, #tpu.memory_space<vmem>>, vector<32x256xf32>
      %c0_11 = arith.constant 0 : index
      %c0_12 = arith.constant 0 : index
      %13 = vector.load %arg5[%c0_11, %c0_12] : memref<1x256xf32, #tpu.memory_space<vmem>>, vector<1x256xf32>
      %14 = vector.broadcast %13 : vector<1x256xf32> to vector<32x256xf32>
      %15 = arith.addf %12, %14 : vector<32x256xf32>
      %cst_13 = arith.constant 0.000000e+00 : f32
      %16 = vector.broadcast %cst_13 : f32 to vector<32x256xf32>
      %17 = arith.maximumf %15, %16 : vector<32x256xf32>
      %18 = arith.truncf %17 : vector<32x256xf32> to vector<32x256xbf16>
      %c0_14 = arith.constant 0 : index
      %c0_15 = arith.constant 0 : index
      %19 = vector.load %arg6[%c0_14, %c0_15] : memref<32x256xbf16, #tpu.memory_space<vmem>>, vector<32x256xbf16>
      tpu.vector_store %arg6[%c0_14, %c0_15], %18 {strides = array<i32>} : memref<32x256xbf16, #tpu.memory_space<vmem>>, vector<32x256xbf16>,
    } else {
    }
    return
  }
  func.func @transform_0(%arg0: i32, %arg1: i32, %arg2: i32) -> (i32, i32) {
    %c0_i32 = arith.constant 0 : i32
    return %arg0, %arg2 : i32, i32
  }
  func.func @transform_1(%arg0: i32, %arg1: i32, %arg2: i32) -> (i32, i32) {
    %c0_i32 = arith.constant 0 : i32
    return %arg2, %arg1 : i32, i32
  }
  func.func @transform_2(%arg0: i32, %arg1: i32, %arg2: i32) -> (i32, i32) {
    %c0_i32 = arith.constant 0 : i32
    %c0_i32_0 = arith.constant 0 : i32
    return %c0_i32, %arg1 : i32, i32
  }
  func.func @transform_3(%arg0: i32, %arg1: i32, %arg2: i32) -> (i32, i32) {
    %c0_i32 = arith.constant 0 : i32
    return %arg0, %arg1 : i32, i32
  }
}

module attributes {stable_mosaic.version = 11 : i64} {
  func.func @_matmul_bias_kernel(%arg0: i32, %arg1: i32, %arg2: i32, %arg3: memref<16x1536xbf16, #tpu.memory_space<vmem>>, %arg4: memref<1536x512xbf16, #tpu.memory_space<vmem>>, %arg5: memref<1x512xf32, #tpu.memory_space<vmem>>, %arg6: memref<16x512xbf16, #tpu.memory_space<vmem>>, %arg7: memref<16x512xf32, #tpu.memory_space<vmem>>) attributes {dimension_semantics = [#tpu.dimension_semantics<parallel>, #tpu.dimension_semantics<parallel>, #tpu.dimension_semantics<arbitrary>], iteration_bounds = array<i64: 1, 8, 6>, scalar_prefetch = 0 : i64, scratch_operands = 1 : i64, tpu.core_type = #tpu.core_type<tc>, window_params = [{transform_indices = @transform_0, window_bounds = array<i64: 16, 1536>}, {transform_indices = @transform_1, window_bounds = array<i64: 1536, 512>}, {transform_indices = @transform_2, window_bounds = array<i64: 1, 512>}, {transform_indices = @transform_3, window_bounds = array<i64: 16, 512>}]} {
    %c0_i32 = arith.constant 0 : i32
    %0 = arith.cmpi eq, %arg2, %c0_i32 : i32
    %1 = arith.extui %0 : i1 to i32
    %c0_i32_0 = arith.constant 0 : i32
    %2 = arith.cmpi ne, %1, %c0_i32_0 : i32
    scf.if %2 {
      %cst_9 = arith.constant 0.000000e+00 : f32
      %12 = vector.broadcast %cst_9 : f32 to vector<16x512xf32>
      %c0_10 = arith.constant 0 : index
      %c0_11 = arith.constant 0 : index
      %13 = vector.load %arg7[%c0_10, %c0_11] : memref<16x512xf32, #tpu.memory_space<vmem>>, vector<16x512xf32>
      tpu.vector_store %arg7[%c0_10, %c0_11], %12 {strides = array<i32>} : memref<16x512xf32, #tpu.memory_space<vmem>>, vector<16x512xf32>,
    } else {
    }
    %c0 = arith.constant 0 : index
    %c0_1 = arith.constant 0 : index
    %3 = vector.load %arg7[%c0, %c0_1] : memref<16x512xf32, #tpu.memory_space<vmem>>, vector<16x512xf32>
    %c0_2 = arith.constant 0 : index
    %c0_3 = arith.constant 0 : index
    %4 = vector.load %arg3[%c0_2, %c0_3] : memref<16x1536xbf16, #tpu.memory_space<vmem>>, vector<16x1536xbf16>
    %c0_4 = arith.constant 0 : index
    %c0_5 = arith.constant 0 : index
    %5 = vector.load %arg4[%c0_4, %c0_5] : memref<1536x512xbf16, #tpu.memory_space<vmem>>, vector<1536x512xbf16>
    %cst = arith.constant dense<0.000000e+00> : vector<16x512xf32>
    %6 = tpu.matmul %4, %5, %cst {dimension_numbers = #tpu.dot_dimension_numbers<[1], [0], [0], [1], [0, 0, 1, 1], [], []>} : vector<16x1536xbf16>, vector<1536x512xbf16>, vector<16x512xf32> -> vector<16x512xf32>
    %7 = arith.addf %3, %6 : vector<16x512xf32>
    %c0_6 = arith.constant 0 : index
    %c0_7 = arith.constant 0 : index
    %8 = vector.load %arg7[%c0_6, %c0_7] : memref<16x512xf32, #tpu.memory_space<vmem>>, vector<16x512xf32>
    tpu.vector_store %arg7[%c0_6, %c0_7], %7 {strides = array<i32>} : memref<16x512xf32, #tpu.memory_space<vmem>>, vector<16x512xf32>,
    %c5_i32 = arith.constant 5 : i32
    %9 = arith.cmpi eq, %arg2, %c5_i32 : i32
    %10 = arith.extui %9 : i1 to i32
    %c0_i32_8 = arith.constant 0 : i32
    %11 = arith.cmpi ne, %10, %c0_i32_8 : i32
    scf.if %11 {
      %c0_9 = arith.constant 0 : index
      %c0_10 = arith.constant 0 : index
      %12 = vector.load %arg7[%c0_9, %c0_10] : memref<16x512xf32, #tpu.memory_space<vmem>>, vector<16x512xf32>
      %c0_11 = arith.constant 0 : index
      %c0_12 = arith.constant 0 : index
      %13 = vector.load %arg5[%c0_11, %c0_12] : memref<1x512xf32, #tpu.memory_space<vmem>>, vector<1x512xf32>
      %14 = vector.broadcast %13 : vector<1x512xf32> to vector<16x512xf32>
      %15 = arith.addf %12, %14 : vector<16x512xf32>
      %cst_13 = arith.constant 0.000000e+00 : f32
      %16 = vector.broadcast %cst_13 : f32 to vector<16x512xf32>
      %17 = arith.maximumf %15, %16 : vector<16x512xf32>
      %18 = arith.truncf %17 : vector<16x512xf32> to vector<16x512xbf16>
      %c0_14 = arith.constant 0 : index
      %c0_15 = arith.constant 0 : index
      %19 = vector.load %arg6[%c0_14, %c0_15] : memref<16x512xbf16, #tpu.memory_space<vmem>>, vector<16x512xbf16>
      tpu.vector_store %arg6[%c0_14, %c0_15], %18 {strides = array<i32>} : memref<16x512xbf16, #tpu.memory_space<vmem>>, vector<16x512xbf16>,
    } else {
    }
    return
  }
  func.func @transform_0(%arg0: i32, %arg1: i32, %arg2: i32) -> (i32, i32) {
    %c0_i32 = arith.constant 0 : i32
    return %arg0, %arg2 : i32, i32
  }
  func.func @transform_1(%arg0: i32, %arg1: i32, %arg2: i32) -> (i32, i32) {
    %c0_i32 = arith.constant 0 : i32
    return %arg2, %arg1 : i32, i32
  }
  func.func @transform_2(%arg0: i32, %arg1: i32, %arg2: i32) -> (i32, i32) {
    %c0_i32 = arith.constant 0 : i32
    %c0_i32_0 = arith.constant 0 : i32
    return %c0_i32, %arg1 : i32, i32
  }
  func.func @transform_3(%arg0: i32, %arg1: i32, %arg2: i32) -> (i32, i32) {
    %c0_i32 = arith.constant 0 : i32
    return %arg0, %arg1 : i32, i32
  }
}

module attributes {stable_mosaic.version = 11 : i64} {
  func.func @_matmul_bias_kernel(%arg0: i32, %arg1: i32, %arg2: i32, %arg3: memref<16x2048xbf16, #tpu.memory_space<vmem>>, %arg4: memref<2048x512xbf16, #tpu.memory_space<vmem>>, %arg5: memref<1x512xf32, #tpu.memory_space<vmem>>, %arg6: memref<16x512xbf16, #tpu.memory_space<vmem>>, %arg7: memref<16x512xf32, #tpu.memory_space<vmem>>) attributes {dimension_semantics = [#tpu.dimension_semantics<parallel>, #tpu.dimension_semantics<parallel>, #tpu.dimension_semantics<arbitrary>], iteration_bounds = array<i64: 1, 8, 2>, scalar_prefetch = 0 : i64, scratch_operands = 1 : i64, tpu.core_type = #tpu.core_type<tc>, window_params = [{transform_indices = @transform_0, window_bounds = array<i64: 16, 2048>}, {transform_indices = @transform_1, window_bounds = array<i64: 2048, 512>}, {transform_indices = @transform_2, window_bounds = array<i64: 1, 512>}, {transform_indices = @transform_3, window_bounds = array<i64: 16, 512>}]} {
    %c0_i32 = arith.constant 0 : i32
    %0 = arith.cmpi eq, %arg2, %c0_i32 : i32
    %1 = arith.extui %0 : i1 to i32
    %c0_i32_0 = arith.constant 0 : i32
    %2 = arith.cmpi ne, %1, %c0_i32_0 : i32
    scf.if %2 {
      %cst_9 = arith.constant 0.000000e+00 : f32
      %12 = vector.broadcast %cst_9 : f32 to vector<16x512xf32>
      %c0_10 = arith.constant 0 : index
      %c0_11 = arith.constant 0 : index
      %13 = vector.load %arg7[%c0_10, %c0_11] : memref<16x512xf32, #tpu.memory_space<vmem>>, vector<16x512xf32>
      tpu.vector_store %arg7[%c0_10, %c0_11], %12 {strides = array<i32>} : memref<16x512xf32, #tpu.memory_space<vmem>>, vector<16x512xf32>,
    } else {
    }
    %c0 = arith.constant 0 : index
    %c0_1 = arith.constant 0 : index
    %3 = vector.load %arg7[%c0, %c0_1] : memref<16x512xf32, #tpu.memory_space<vmem>>, vector<16x512xf32>
    %c0_2 = arith.constant 0 : index
    %c0_3 = arith.constant 0 : index
    %4 = vector.load %arg3[%c0_2, %c0_3] : memref<16x2048xbf16, #tpu.memory_space<vmem>>, vector<16x2048xbf16>
    %c0_4 = arith.constant 0 : index
    %c0_5 = arith.constant 0 : index
    %5 = vector.load %arg4[%c0_4, %c0_5] : memref<2048x512xbf16, #tpu.memory_space<vmem>>, vector<2048x512xbf16>
    %cst = arith.constant dense<0.000000e+00> : vector<16x512xf32>
    %6 = tpu.matmul %4, %5, %cst {dimension_numbers = #tpu.dot_dimension_numbers<[1], [0], [0], [1], [0, 0, 1, 1], [], []>} : vector<16x2048xbf16>, vector<2048x512xbf16>, vector<16x512xf32> -> vector<16x512xf32>
    %7 = arith.addf %3, %6 : vector<16x512xf32>
    %c0_6 = arith.constant 0 : index
    %c0_7 = arith.constant 0 : index
    %8 = vector.load %arg7[%c0_6, %c0_7] : memref<16x512xf32, #tpu.memory_space<vmem>>, vector<16x512xf32>
    tpu.vector_store %arg7[%c0_6, %c0_7], %7 {strides = array<i32>} : memref<16x512xf32, #tpu.memory_space<vmem>>, vector<16x512xf32>,
    %c1_i32 = arith.constant 1 : i32
    %9 = arith.cmpi eq, %arg2, %c1_i32 : i32
    %10 = arith.extui %9 : i1 to i32
    %c0_i32_8 = arith.constant 0 : i32
    %11 = arith.cmpi ne, %10, %c0_i32_8 : i32
    scf.if %11 {
      %c0_9 = arith.constant 0 : index
      %c0_10 = arith.constant 0 : index
      %12 = vector.load %arg7[%c0_9, %c0_10] : memref<16x512xf32, #tpu.memory_space<vmem>>, vector<16x512xf32>
      %c0_11 = arith.constant 0 : index
      %c0_12 = arith.constant 0 : index
      %13 = vector.load %arg5[%c0_11, %c0_12] : memref<1x512xf32, #tpu.memory_space<vmem>>, vector<1x512xf32>
      %14 = vector.broadcast %13 : vector<1x512xf32> to vector<16x512xf32>
      %15 = arith.addf %12, %14 : vector<16x512xf32>
      %cst_13 = arith.constant 0.000000e+00 : f32
      %16 = vector.broadcast %cst_13 : f32 to vector<16x512xf32>
      %17 = arith.maximumf %15, %16 : vector<16x512xf32>
      %18 = arith.truncf %17 : vector<16x512xf32> to vector<16x512xbf16>
      %c0_14 = arith.constant 0 : index
      %c0_15 = arith.constant 0 : index
      %19 = vector.load %arg6[%c0_14, %c0_15] : memref<16x512xbf16, #tpu.memory_space<vmem>>, vector<16x512xbf16>
      tpu.vector_store %arg6[%c0_14, %c0_15], %18 {strides = array<i32>} : memref<16x512xbf16, #tpu.memory_space<vmem>>, vector<16x512xbf16>,
    } else {
    }
    return
  }
  func.func @transform_0(%arg0: i32, %arg1: i32, %arg2: i32) -> (i32, i32) {
    %c0_i32 = arith.constant 0 : i32
    return %arg0, %arg2 : i32, i32
  }
  func.func @transform_1(%arg0: i32, %arg1: i32, %arg2: i32) -> (i32, i32) {
    %c0_i32 = arith.constant 0 : i32
    return %arg2, %arg1 : i32, i32
  }
  func.func @transform_2(%arg0: i32, %arg1: i32, %arg2: i32) -> (i32, i32) {
    %c0_i32 = arith.constant 0 : i32
    %c0_i32_0 = arith.constant 0 : i32
    return %c0_i32, %arg1 : i32, i32
  }
  func.func @transform_3(%arg0: i32, %arg1: i32, %arg2: i32) -> (i32, i32) {
    %c0_i32 = arith.constant 0 : i32
    return %arg0, %arg1 : i32, i32
  }
}

module attributes {stable_mosaic.version = 11 : i64} {
  func.func @_matmul_bias_kernel(%arg0: i32, %arg1: i32, %arg2: i32, %arg3: memref<16x2048xbf16, #tpu.memory_space<vmem>>, %arg4: memref<2048x128xbf16, #tpu.memory_space<vmem>>, %arg5: memref<1x128xf32, #tpu.memory_space<vmem>>, %arg6: memref<16x128xf32, #tpu.memory_space<vmem>>, %arg7: memref<16x128xf32, #tpu.memory_space<vmem>>) attributes {dimension_semantics = [#tpu.dimension_semantics<parallel>, #tpu.dimension_semantics<parallel>, #tpu.dimension_semantics<arbitrary>], iteration_bounds = array<i64: 1, 1, 2>, scalar_prefetch = 0 : i64, scratch_operands = 1 : i64, tpu.core_type = #tpu.core_type<tc>, window_params = [{transform_indices = @transform_0, window_bounds = array<i64: 16, 2048>}, {transform_indices = @transform_1, window_bounds = array<i64: 2048, 128>}, {transform_indices = @transform_2, window_bounds = array<i64: 1, 128>}, {transform_indices = @transform_3, window_bounds = array<i64: 16, 128>}]} {
    %c0_i32 = arith.constant 0 : i32
    %0 = arith.cmpi eq, %arg2, %c0_i32 : i32
    %1 = arith.extui %0 : i1 to i32
    %c0_i32_0 = arith.constant 0 : i32
    %2 = arith.cmpi ne, %1, %c0_i32_0 : i32
    scf.if %2 {
      %cst_9 = arith.constant 0.000000e+00 : f32
      %12 = vector.broadcast %cst_9 : f32 to vector<16x128xf32>
      %c0_10 = arith.constant 0 : index
      %c0_11 = arith.constant 0 : index
      %13 = vector.load %arg7[%c0_10, %c0_11] : memref<16x128xf32, #tpu.memory_space<vmem>>, vector<16x128xf32>
      tpu.vector_store %arg7[%c0_10, %c0_11], %12 {strides = array<i32>} : memref<16x128xf32, #tpu.memory_space<vmem>>, vector<16x128xf32>,
    } else {
    }
    %c0 = arith.constant 0 : index
    %c0_1 = arith.constant 0 : index
    %3 = vector.load %arg7[%c0, %c0_1] : memref<16x128xf32, #tpu.memory_space<vmem>>, vector<16x128xf32>
    %c0_2 = arith.constant 0 : index
    %c0_3 = arith.constant 0 : index
    %4 = vector.load %arg3[%c0_2, %c0_3] : memref<16x2048xbf16, #tpu.memory_space<vmem>>, vector<16x2048xbf16>
    %c0_4 = arith.constant 0 : index
    %c0_5 = arith.constant 0 : index
    %5 = vector.load %arg4[%c0_4, %c0_5] : memref<2048x128xbf16, #tpu.memory_space<vmem>>, vector<2048x128xbf16>
    %cst = arith.constant dense<0.000000e+00> : vector<16x128xf32>
    %6 = tpu.matmul %4, %5, %cst {dimension_numbers = #tpu.dot_dimension_numbers<[1], [0], [0], [1], [0, 0, 1, 1], [], []>} : vector<16x2048xbf16>, vector<2048x128xbf16>, vector<16x128xf32> -> vector<16x128xf32>
    %7 = arith.addf %3, %6 : vector<16x128xf32>
    %c0_6 = arith.constant 0 : index
    %c0_7 = arith.constant 0 : index
    %8 = vector.load %arg7[%c0_6, %c0_7] : memref<16x128xf32, #tpu.memory_space<vmem>>, vector<16x128xf32>
    tpu.vector_store %arg7[%c0_6, %c0_7], %7 {strides = array<i32>} : memref<16x128xf32, #tpu.memory_space<vmem>>, vector<16x128xf32>,
    %c1_i32 = arith.constant 1 : i32
    %9 = arith.cmpi eq, %arg2, %c1_i32 : i32
    %10 = arith.extui %9 : i1 to i32
    %c0_i32_8 = arith.constant 0 : i32
    %11 = arith.cmpi ne, %10, %c0_i32_8 : i32
    scf.if %11 {
      %c0_9 = arith.constant 0 : index
      %c0_10 = arith.constant 0 : index
      %12 = vector.load %arg7[%c0_9, %c0_10] : memref<16x128xf32, #tpu.memory_space<vmem>>, vector<16x128xf32>
      %c0_11 = arith.constant 0 : index
      %c0_12 = arith.constant 0 : index
      %13 = vector.load %arg5[%c0_11, %c0_12] : memref<1x128xf32, #tpu.memory_space<vmem>>, vector<1x128xf32>
      %14 = vector.broadcast %13 : vector<1x128xf32> to vector<16x128xf32>
      %15 = arith.addf %12, %14 : vector<16x128xf32>
      %c0_13 = arith.constant 0 : index
      %c0_14 = arith.constant 0 : index
      %16 = vector.load %arg6[%c0_13, %c0_14] : memref<16x128xf32, #tpu.memory_space<vmem>>, vector<16x128xf32>
      tpu.vector_store %arg6[%c0_13, %c0_14], %15 {strides = array<i32>} : memref<16x128xf32, #tpu.memory_space<vmem>>, vector<16x128xf32>,
    } else {
    }
    return
  }
  func.func @transform_0(%arg0: i32, %arg1: i32, %arg2: i32) -> (i32, i32) {
    %c0_i32 = arith.constant 0 : i32
    return %arg0, %arg2 : i32, i32
  }
  func.func @transform_1(%arg0: i32, %arg1: i32, %arg2: i32) -> (i32, i32) {
    %c0_i32 = arith.constant 0 : i32
    return %arg2, %arg1 : i32, i32
  }
  func.func @transform_2(%arg0: i32, %arg1: i32, %arg2: i32) -> (i32, i32) {
    %c0_i32 = arith.constant 0 : i32
    %c0_i32_0 = arith.constant 0 : i32
    return %c0_i32, %arg1 : i32, i32
  }
  func.func @transform_3(%arg0: i32, %arg1: i32, %arg2: i32) -> (i32, i32) {
    %c0_i32 = arith.constant 0 : i32
    return %arg0, %arg1 : i32, i32
  }
}

</mosaic_0001>

<bundles_post_ra>
// kernel: my_alexnet_forward.8
= control target key start
LH: loop header
LB: loop body
LE: loop exit
PB: predicated region body
PF: predicated region fallthrough
CT: control target
= control target key end

     0   :  { %s1476_s12 = smov 0   ;;  %s1478_s13 = smov 0   ;;  %s1655_s0 = inlined_call_operand.vmem [shape: bf16[480,128], index: 0, kind: input, shape index: {}]   ;;  %s1656_s1 = inlined_call_operand.vmem [shape: bf16[128,128], index: 1, kind: input, shape index: {}]   ;;  %s1657_s2 = inlined_call_operand.vmem [shape: f32[1,128], index: 2, kind: input, shape index: {}]   ;;  %s1658_s3 = inlined_call_operand.vmem [shape: bf16[480,128], index: 3, kind: output, shape index: {}]  }
   0x1   :  { %s1480_s14 = smov 0  }
   0x2 LB: > { %s32_s15 = sadd.s32 1, %s1448_s13  ;;  %p1088_p0 = scmp.ge.s32.totalorder %s1452_s14, 1  ;;  %s1452_s14 = sphi %s1480_s14, %s13_s14   ;;  %s1448_s13 = sphi %s1478_s13, %s1660_s13   ;;  %s1444_s12 = sphi %s1476_s12, %s1659_s12  }
   0x3   : > { %p34_p1 = scmp.ge.s32.totalorder %s32_s15, 2  ;;  %p188_p2 = scmp.lt.s32.totalorder %s1452_s14, 3 }
   0x5   : > { %s1662_s15 = smov (%p34_p1, %s32_s15), 0  ;;  %p189_p3 = pnand %p1088_p0, %p188_p2 }
   0x6   : > { %v1407_v0 = vld [vmem:[%s1656_s1] sm:$0xff] (!%p189_p3)   ;;  %v1454_v1 = vmov (!%p189_p3), 0.0   ;;  %v1408_v2 = vld [vmem:[%s1656_s1 + $0x8] sm:$0xff] (!%p189_p3)   ;;  %s229_s20 = smul.u32 (!%p189_p3), 30, %s1444_s12  ;;  %vm1455_vm0 = vmmov (!%p189_p3), 0   ;;  %v1409_v3 = vld [vmem:[%s1656_s1 + $0x10] sm:$0xff] (!%p189_p3)  }
   0x7   : > { %192 = sbr.rel (%p189_p3) target bundleno = 316 (0x13c), region = 32  ;;  %1289 = vmatprep.subr.bf16.mxu0 (!%p189_p3), %v1454_v1  ;;  %1365 = vmatprep.subr.bf16.mxu1 (!%p189_p3), %v1454_v1  ;;  %v1410_v4 = vld [vmem:[%s1656_s1 + $0x18] sm:$0xff] (!%p189_p3)   ;;  %v1411_v5 = vld [vmem:[%s1656_s1 + $0x20] sm:$0xff] (!%p189_p3)   ;;  %v1412_v6 = vld [vmem:[%s1656_s1 + $0x28] sm:$0xff] (!%p189_p3)  }
   0x8   : > { %1290 = vmatpush3.bf16.msra.mxu0 (!%p189_p3), %v1407_v0  ;;  %1373 = vmatpush3.bf16.msra.mxu1 (!%p189_p3), %v1407_v0  ;;  %p230_p4 = scmp.lt.s32.totalorder (!%p189_p3), %s229_s20, 59  ;;  %v1413_v7 = vld [vmem:[%s1656_s1 + $0x30] sm:$0xff] (!%p189_p3)   ;;  %v1414_v8 = vld [vmem:[%s1656_s1 + $0x38] sm:$0xff] (!%p189_p3)   ;;  %v1592_v24 = vld [vmem:[%s1657_s2] ss:$0 sm:$0xff] (!%p189_p3) }
   0x9   : > { %1291 = vmatprep.subr.bf16.mxu0 (!%p189_p3), %v1454_v1  ;;  %1366 = vmatprep.subr.bf16.mxu1 (!%p189_p3), %v1454_v1 }
   0xa   : > { %1305 = vmatprep.mubr.msk.bf16.mxu0 (!%p189_p3), %vm1455_vm0, %v1454_v1  ;;  %1337 = vmatprep.mubr.msk.bf16.mxu1 (!%p189_p3), %vm1455_vm0, %v1454_v1 }
   0xc   : > { %1292 = vmatpush3.bf16.msra.mxu0 (!%p189_p3), %v1408_v2  ;;  %1374 = vmatpush3.bf16.msra.mxu1 (!%p189_p3), %v1408_v2 }
   0xd   : > { %1293 = vmatprep.subr.bf16.mxu0 (!%p189_p3), %v1454_v1  ;;  %1367 = vmatprep.subr.bf16.mxu1 (!%p189_p3), %v1454_v1 }
   0xe   : > { %s1664_s20 = smov (!%p230_p4, %s229_s20), 59 }
   0xf   : > { %s1089_s23 = sshll.u32 %s1664_s20, 2 }
  0x10   : > { %s1521_s26 = scalar_lea.vmem %s1655_s0, %s1089_s23  ;;  %1294 = vmatpush3.bf16.msra.mxu0 %v1409_v3  ;;  %1375 = vmatpush3.bf16.msra.mxu1 %v1409_v3  ;;  %s1603_s17 = scalar_lea.vmem %s1658_s3, %s1089_s23 }
  0x11   : > { %1295 = vmatprep.subr.bf16.mxu0 %v1454_v1  ;;  %1368 = vmatprep.subr.bf16.mxu1 %v1454_v1  ;;  %v1415_v9 = vld [vmem:[%s1521_s26] sm:$0xff]   ;;  %v1417_v11 = vld [vmem:[%s1521_s26 + $0x8] sm:$0xff]   ;;  %v1419_v13 = vld [vmem:[%s1521_s26 + $0x10] sm:$0xff]  }
  0x12   : > { %v1416_v10 = vld [vmem:[%s1521_s26 + $0x40] sm:$0xff]   ;;  %v1418_v12 = vld [vmem:[%s1521_s26 + $0x48] sm:$0xff]   ;;  %v1420_v14 = vld [vmem:[%s1521_s26 + $0x50] sm:$0xff]  }
  0x13   : > { %v1421_v15 = vld [vmem:[%s1521_s26 + $0x18] sm:$0xff]   ;;  %v1423_v17 = vld [vmem:[%s1521_s26 + $0x20] sm:$0xff]   ;;  %v1425_v19 = vld [vmem:[%s1521_s26 + $0x28] sm:$0xff]  }
  0x14   : > { %1296 = vmatpush3.bf16.msra.mxu0 %v1410_v4  ;;  %1376 = vmatpush3.bf16.msra.mxu1 %v1410_v4  ;;  %v1422_v16 = vld [vmem:[%s1521_s26 + $0x58] sm:$0xff]   ;;  %v1424_v18 = vld [vmem:[%s1521_s26 + $0x60] sm:$0xff]   ;;  %v1426_v20 = vld [vmem:[%s1521_s26 + $0x68] sm:$0xff]  }
  0x15   : > { %1297 = vmatprep.subr.bf16.mxu0 %v1454_v1  ;;  %1369 = vmatprep.subr.bf16.mxu1 %v1454_v1  ;;  %v1427_v21 = vld [vmem:[%s1521_s26 + $0x30] sm:$0xff]   ;;  %v1429_v23 = vld [vmem:[%s1521_s26 + $0x38] sm:$0xff]  }
  0x16   : > { %v1428_v22 = vld [vmem:[%s1521_s26 + $0x70] sm:$0xff]  }
  0x18   : > { %1298 = vmatpush3.bf16.msra.mxu0 %v1411_v5  ;;  %1377 = vmatpush3.bf16.msra.mxu1 %v1411_v5 }
  0x19   : > { %1299 = vmatprep.subr.bf16.mxu0 %v1454_v1  ;;  %1370 = vmatprep.subr.bf16.mxu1 %v1454_v1 }
  0x1c   : > { %1300 = vmatpush3.bf16.msra.mxu0 %v1412_v6  ;;  %1378 = vmatpush3.bf16.msra.mxu1 %v1412_v6 }
  0x1d   : > { %1301 = vmatprep.subr.bf16.mxu0 %v1454_v1  ;;  %1371 = vmatprep.subr.bf16.mxu1 %v1454_v1 }
  0x20   : > { %1302 = vmatpush3.bf16.msra.mxu0 %v1413_v7  ;;  %1379 = vmatpush3.bf16.msra.mxu1 %v1413_v7 }
  0x21   : > { %1303 = vmatprep.subr.bf16.mxu0 %v1454_v1  ;;  %1372 = vmatprep.subr.bf16.mxu1 %v1454_v1 }
  0x24   : > { %1304 = vmatpush3.bf16.msra.mxu0 %v1414_v8  ;;  %1380 = vmatpush3.bf16.msra.mxu1 %v1414_v8 }
  0x27   : > { %1306 = vmatmul.mubr.bf16.vlgmr.msra.gmra.mrb[0].mxu0 %v1415_v9  ;;  %1338 = vmatmul.mubr.bf16.vlgmr.msra.gmra.mrb[0].mxu1 %v1416_v10 }
  0x28   : > { %1309 = vmatprep.mubr.msk.bf16.mxu0 %vm1455_vm0, %v1454_v1  ;;  %1341 = vmatprep.mubr.msk.bf16.mxu1 %vm1455_vm0, %v1454_v1 }
  0x2f   : > { %1310 = vmatmul.mubr.bf16.gmra.mrb[4].mxu0 %v1417_v11  ;;  %1342 = vmatmul.mubr.bf16.gmra.mrb[4].mxu1 %v1418_v12 }
  0x30   : > { %1313 = vmatprep.mubr.msk.bf16.mxu0 %vm1455_vm0, %v1454_v1  ;;  %1345 = vmatprep.mubr.msk.bf16.mxu1 %vm1455_vm0, %v1454_v1 }
  0x37   : > { %1314 = vmatmul.mubr.bf16.gmra.mrb[8].mxu0 %v1419_v13  ;;  %1346 = vmatmul.mubr.bf16.gmra.mrb[8].mxu1 %v1420_v14 }
  0x38   : > { %1317 = vmatprep.mubr.msk.bf16.mxu0 %vm1455_vm0, %v1454_v1  ;;  %1349 = vmatprep.mubr.msk.bf16.mxu1 %vm1455_vm0, %v1454_v1 }
  0x3f   : > { %1318 = vmatmul.mubr.bf16.gmra.mrb[12].mxu0 %v1421_v15  ;;  %1350 = vmatmul.mubr.bf16.gmra.mrb[12].mxu1 %v1422_v16 }
  0x40   : > { %1321 = vmatprep.mubr.msk.bf16.mxu0 %vm1455_vm0, %v1454_v1  ;;  %1353 = vmatprep.mubr.msk.bf16.mxu1 %vm1455_vm0, %v1454_v1 }
  0x47   : > { %1322 = vmatmul.mubr.bf16.gmra.mrb[16].mxu0 %v1423_v17  ;;  %1354 = vmatmul.mubr.bf16.gmra.mrb[16].mxu1 %v1424_v18 }
  0x48   : > { %1325 = vmatprep.mubr.msk.bf16.mxu0 %vm1455_vm0, %v1454_v1  ;;  %1357 = vmatprep.mubr.msk.bf16.mxu1 %vm1455_vm0, %v1454_v1 }
  0x4f   : > { %1326 = vmatmul.mubr.bf16.gmra.mrb[20].mxu0 %v1425_v19  ;;  %1358 = vmatmul.mubr.bf16.gmra.mrb[20].mxu1 %v1426_v20 }
  0x50   : > { %1329 = vmatprep.mubr.msk.bf16.mxu0 %vm1455_vm0, %v1454_v1  ;;  %1361 = vmatprep.mubr.msk.bf16.mxu1 %vm1455_vm0, %v1454_v1 }
  0x57   : > { %1330 = vmatmul.mubr.bf16.gmra.mrb[24].mxu0 %v1427_v21  ;;  %1362 = vmatmul.mubr.bf16.gmra.mrb[24].mxu1 %v1428_v22 }
  0x58   : > { %1333 = vmatprep.mubr.msk.bf16.mxu0 %vm1455_vm0, %v1454_v1 }
  0x5f   : > { %1334 = vmatmul.mubr.bf16.gmra.mrb[28].mxu0 %v1429_v23 }
  0xfa   : > { %v542_v25 = vpop.f32.mrb[0].mxu0  ;;  %v606_v26 = vpop.f32.mrb[0].mxu1 }
  0xfb   : > { %v761_v27 = vadd.f32 %v1592_v24, %v542_v25  ;;  %v1307_v28 = vpop.f32.mrb[1].mxu0  ;;  %v777_v29 = vadd.f32 %v1592_v24, %v606_v26  ;;  %v1339_v30 = vpop.f32.mrb[1].mxu1 }
  0xfc   : > { %v545_v31 = vpop.f32.mrb[2].mxu0  ;;  %v609_v32 = vpop.f32.mrb[2].mxu1 }
  0xfd   : > { %v762_v33 = vadd.f32 %v1592_v24, %v545_v31  ;;  %v1308_v34 = vpop.f32.mrb[3].mxu0  ;;  %v807_v35 = vmax.f32 %v777_v29, 0.0  ;;  %v778_v36 = vadd.f32 %v1592_v24, %v609_v32  ;;  %v1340_v37 = vpop.f32.mrb[3].mxu1  ;;  %v791_v38 = vmax.f32 %v761_v27, 0.0 }
  0xff   : > { %v792_v39 = vmax.f32 %v762_v33, 0.0  ;;  %v808_v40 = vmax.f32 %v778_v36, 0.0 }
 0x101   : > { %v1180_v41 = vpack.c.bf16 %v792_v39, %v791_v38  ;;  %v1220_v42 = vpack.c.bf16 %v808_v40, %v807_v35 }
 0x102   : > { %v550_v43 = vpop.f32.mrb[4].mxu0  ;;  %v614_v44 = vpop.f32.mrb[4].mxu1 }
 0x103   : > { %1181 = vst [vmem:[%s1603_s17] sm:$0xff] %v1180_v41   ;;  %1259 = vst [vmem:[%s1603_s17 + $0x40] sm:$0xff] %v1220_v42   ;;  %v763_v45 = vadd.f32 %v1592_v24, %v550_v43  ;;  %v1311_v46 = vpop.f32.mrb[5].mxu0  ;;  %v779_v47 = vadd.f32 %v1592_v24, %v614_v44  ;;  %v1343_v48 = vpop.f32.mrb[5].mxu1 }
 0x104   : > { %v553_v49 = vpop.f32.mrb[6].mxu0  ;;  %v617_v50 = vpop.f32.mrb[6].mxu1 }
 0x105   : > { %v764_v51 = vadd.f32 %v1592_v24, %v553_v49  ;;  %v1312_v52 = vpop.f32.mrb[7].mxu0  ;;  %v809_v53 = vmax.f32 %v779_v47, 0.0  ;;  %v780_v54 = vadd.f32 %v1592_v24, %v617_v50  ;;  %v1344_v55 = vpop.f32.mrb[7].mxu1  ;;  %v793_v56 = vmax.f32 %v763_v45, 0.0 }
 0x107   : > { %v794_v57 = vmax.f32 %v764_v51, 0.0  ;;  %v810_v58 = vmax.f32 %v780_v54, 0.0 }
 0x109   : > { %v1185_v59 = vpack.c.bf16 %v794_v57, %v793_v56  ;;  %v1225_v60 = vpack.c.bf16 %v810_v58, %v809_v53 }
 0x10a   : > { %v558_v61 = vpop.f32.mrb[8].mxu0  ;;  %v622_v62 = vpop.f32.mrb[8].mxu1 }
 0x10b   : > { %1252 = vst [vmem:[%s1603_s17 + $0x8] sm:$0xff] %v1185_v59   ;;  %1260 = vst [vmem:[%s1603_s17 + $0x48] sm:$0xff] %v1225_v60   ;;  %v765_v63 = vadd.f32 %v1592_v24, %v558_v61  ;;  %v1315_v0 = vpop.f32.mrb[9].mxu0  ;;  %v781_v1 = vadd.f32 %v1592_v24, %v622_v62  ;;  %v1347_v2 = vpop.f32.mrb[9].mxu1 }
 0x10c   : > { %v561_v3 = vpop.f32.mrb[10].mxu0  ;;  %v625_v4 = vpop.f32.mrb[10].mxu1 }
 0x10d   : > { %v766_v5 = vadd.f32 %v1592_v24, %v561_v3  ;;  %v1316_v6 = vpop.f32.mrb[11].mxu0  ;;  %v811_v7 = vmax.f32 %v781_v1, 0.0  ;;  %v782_v8 = vadd.f32 %v1592_v24, %v625_v4  ;;  %v1348_v9 = vpop.f32.mrb[11].mxu1  ;;  %v795_v10 = vmax.f32 %v765_v63, 0.0 }
 0x10f   : > { %v796_v11 = vmax.f32 %v766_v5, 0.0  ;;  %v812_v12 = vmax.f32 %v782_v8, 0.0 }
 0x111   : > { %v1190_v13 = vpack.c.bf16 %v796_v11, %v795_v10  ;;  %v1230_v14 = vpack.c.bf16 %v812_v12, %v811_v7 }
 0x112   : > { %v566_v15 = vpop.f32.mrb[12].mxu0  ;;  %v630_v16 = vpop.f32.mrb[12].mxu1 }
 0x113   : > { %1253 = vst [vmem:[%s1603_s17 + $0x10] sm:$0xff] %v1190_v13   ;;  %1261 = vst [vmem:[%s1603_s17 + $0x50] sm:$0xff] %v1230_v14   ;;  %v767_v17 = vadd.f32 %v1592_v24, %v566_v15  ;;  %v1319_v18 = vpop.f32.mrb[13].mxu0  ;;  %v783_v19 = vadd.f32 %v1592_v24, %v630_v16  ;;  %v1351_v20 = vpop.f32.mrb[13].mxu1 }
 0x114   : > { %v569_v21 = vpop.f32.mrb[14].mxu0  ;;  %v633_v22 = vpop.f32.mrb[14].mxu1 }
 0x115   : > { %v768_v23 = vadd.f32 %v1592_v24, %v569_v21  ;;  %v1320_v25 = vpop.f32.mrb[15].mxu0  ;;  %v813_v26 = vmax.f32 %v783_v19, 0.0  ;;  %v784_v27 = vadd.f32 %v1592_v24, %v633_v22  ;;  %v1352_v28 = vpop.f32.mrb[15].mxu1  ;;  %v797_v29 = vmax.f32 %v767_v17, 0.0 }
 0x117   : > { %v798_v30 = vmax.f32 %v768_v23, 0.0  ;;  %v814_v31 = vmax.f32 %v784_v27, 0.0 }
 0x119   : > { %v1195_v32 = vpack.c.bf16 %v798_v30, %v797_v29  ;;  %v1235_v33 = vpack.c.bf16 %v814_v31, %v813_v26 }
 0x11a   : > { %v574_v34 = vpop.f32.mrb[16].mxu0  ;;  %v638_v35 = vpop.f32.mrb[16].mxu1 }
 0x11b   : > { %1254 = vst [vmem:[%s1603_s17 + $0x18] sm:$0xff] %v1195_v32   ;;  %1262 = vst [vmem:[%s1603_s17 + $0x58] sm:$0xff] %v1235_v33   ;;  %v769_v36 = vadd.f32 %v1592_v24, %v574_v34  ;;  %v1323_v37 = vpop.f32.mrb[17].mxu0  ;;  %v785_v38 = vadd.f32 %v1592_v24, %v638_v35  ;;  %v1355_v39 = vpop.f32.mrb[17].mxu1 }
 0x11c   : > { %v577_v40 = vpop.f32.mrb[18].mxu0  ;;  %v641_v41 = vpop.f32.mrb[18].mxu1 }
 0x11d   : > { %v770_v42 = vadd.f32 %v1592_v24, %v577_v40  ;;  %v1324_v43 = vpop.f32.mrb[19].mxu0  ;;  %v815_v44 = vmax.f32 %v785_v38, 0.0  ;;  %v786_v45 = vadd.f32 %v1592_v24, %v641_v41  ;;  %v1356_v46 = vpop.f32.mrb[19].mxu1  ;;  %v799_v47 = vmax.f32 %v769_v36, 0.0 }
 0x11f   : > { %v800_v48 = vmax.f32 %v770_v42, 0.0  ;;  %v816_v49 = vmax.f32 %v786_v45, 0.0 }
 0x121   : > { %v1200_v50 = vpack.c.bf16 %v800_v48, %v799_v47  ;;  %v1240_v51 = vpack.c.bf16 %v816_v49, %v815_v44 }
 0x122   : > { %v582_v52 = vpop.f32.mrb[20].mxu0  ;;  %v646_v53 = vpop.f32.mrb[20].mxu1 }
 0x123   : > { %1255 = vst [vmem:[%s1603_s17 + $0x20] sm:$0xff] %v1200_v50   ;;  %1263 = vst [vmem:[%s1603_s17 + $0x60] sm:$0xff] %v1240_v51   ;;  %v771_v54 = vadd.f32 %v1592_v24, %v582_v52  ;;  %v1327_v55 = vpop.f32.mrb[21].mxu0  ;;  %v787_v56 = vadd.f32 %v1592_v24, %v646_v53  ;;  %v1359_v57 = vpop.f32.mrb[21].mxu1 }
 0x124   : > { %v585_v58 = vpop.f32.mrb[22].mxu0  ;;  %v649_v59 = vpop.f32.mrb[22].mxu1 }
 0x125   : > { %v772_v60 = vadd.f32 %v1592_v24, %v585_v58  ;;  %v1328_v61 = vpop.f32.mrb[23].mxu0  ;;  %v817_v62 = vmax.f32 %v787_v56, 0.0  ;;  %v788_v63 = vadd.f32 %v1592_v24, %v649_v59  ;;  %v1360_v0 = vpop.f32.mrb[23].mxu1  ;;  %v801_v1 = vmax.f32 %v771_v54, 0.0 }
 0x127   : > { %v802_v2 = vmax.f32 %v772_v60, 0.0  ;;  %v818_v3 = vmax.f32 %v788_v63, 0.0 }
 0x129   : > { %v1205_v4 = vpack.c.bf16 %v802_v2, %v801_v1  ;;  %v1245_v5 = vpack.c.bf16 %v818_v3, %v817_v62 }
 0x12a   : > { %v590_v6 = vpop.f32.mrb[24].mxu0  ;;  %v654_v7 = vpop.f32.mrb[24].mxu1 }
 0x12b   : > { %1256 = vst [vmem:[%s1603_s17 + $0x28] sm:$0xff] %v1205_v4   ;;  %1264 = vst [vmem:[%s1603_s17 + $0x68] sm:$0xff] %v1245_v5   ;;  %v773_v8 = vadd.f32 %v1592_v24, %v590_v6  ;;  %v1331_v9 = vpop.f32.mrb[25].mxu0  ;;  %v789_v10 = vadd.f32 %v1592_v24, %v654_v7  ;;  %v1363_v11 = vpop.f32.mrb[25].mxu1 }
 0x12c   : > { %v593_v12 = vpop.f32.mrb[26].mxu0  ;;  %v657_v13 = vpop.f32.mrb[26].mxu1 }
 0x12d   : > { %v774_v14 = vadd.f32 %v1592_v24, %v593_v12  ;;  %v1332_v15 = vpop.f32.mrb[27].mxu0  ;;  %v819_v16 = vmax.f32 %v789_v10, 0.0  ;;  %v790_v17 = vadd.f32 %v1592_v24, %v657_v13  ;;  %v1364_v18 = vpop.f32.mrb[27].mxu1  ;;  %v803_v19 = vmax.f32 %v773_v8, 0.0 }
 0x12f   : > { %v804_v20 = vmax.f32 %v774_v14, 0.0  ;;  %v820_v21 = vmax.f32 %v790_v17, 0.0 }
 0x131   : > { %v1210_v22 = vpack.c.bf16 %v804_v20, %v803_v19  ;;  %v1250_v23 = vpack.c.bf16 %v820_v21, %v819_v16 }
 0x132   : > { %v598_v25 = vpop.f32.mrb[28].mxu0 }
 0x133   : > { %1257 = vst [vmem:[%s1603_s17 + $0x30] sm:$0xff] %v1210_v22   ;;  %1265 = vst [vmem:[%s1603_s17 + $0x70] sm:$0xff] %v1250_v23   ;;  %v775_v26 = vadd.f32 %v1592_v24, %v598_v25  ;;  %v1335_v27 = vpop.f32.mrb[29].mxu0 }
 0x134   : > { %v601_v28 = vpop.f32.mrb[30].mxu0 }
 0x135   : > { %v776_v29 = vadd.f32 %v1592_v24, %v601_v28  ;;  %v1336_v30 = vpop.f32.mrb[31].mxu0  ;;  %v805_v31 = vmax.f32 %v775_v26, 0.0 }
 0x137   : > { %v806_v32 = vmax.f32 %v776_v29, 0.0 }
 0x139   : > { %v1215_v33 = vpack.c.bf16 %v806_v32, %v805_v31 }
 0x13b   : > { %1258 = vst [vmem:[%s1603_s17 + $0x38] sm:$0xff] %v1215_v33  }
 0x13c PF: > { %s13_s14 = sadd.s32 1, %s1452_s14   ;;  %s1659_s12 = smov %s1448_s13 }
 0x13d   : > { %p10_p5 = scmp.ge.s32.totalorder %s13_s14, 4   ;;  %s1660_s13 = smov %s1662_s15 }
 0x13f   :  { %12 = sbr.rel (!%p10_p5) target bundleno = 2 (0x2), region = 76 }

// kernel: my_alexnet_forward.9
= control target key start
LH: loop header
LB: loop body
LE: loop exit
PB: predicated region body
PF: predicated region fallthrough
CT: control target
= control target key end

     0   :  { %s5041_s1 = inlined_call_operand.vmem [shape: bf16[1664,256], index: 1, kind: input, shape index: {}]   ;;  %s5042_s0 = inlined_call_operand.vmem [shape: bf16[112,1664], index: 0, kind: input, shape index: {}]   ;;  %s5043_s2 = inlined_call_operand.vmem [shape: f32[1,256], index: 2, kind: input, shape index: {}]   ;;  %s5044_s3 = inlined_call_operand.vmem [shape: bf16[112,256], index: 3, kind: output, shape index: {}]  }
   0x1   :  { %v3389_v0 = vld [vmem:[%s5041_s1 + $0x4] ss:$8 sps:$4 sm:$0xff]   ;;  %v3393_v2 = vld [vmem:[%s5041_s1] ss:$8 sps:$4 sm:$0xff]   ;;  %v3395_v4 = vld [vmem:[%s5041_s1 + $0x14] ss:$8 sps:$4 sm:$0xff]  }
   0x2   :  { %v3391_v1 = vld [vmem:[%s5041_s1 + $0x304] ss:$8 sps:$4 sm:$0xff]   ;;  %1883 = vmatprep.subr.bf16.mxu1 %v3389_v0  ;;  %v3394_v3 = vld [vmem:[%s5041_s1 + $0x300] ss:$8 sps:$4 sm:$0xff]   ;;  %v3397_v5 = vld [vmem:[%s5041_s1 + $0x314] ss:$8 sps:$4 sm:$0xff]  }
   0x3   :  { %2192 = vmatprep.subr.bf16.mxu0 %v3391_v1  ;;  %1884 = vmatpush1.bf16.msra.mxu1 %v3393_v2  ;;  %v3399_v6 = vld [vmem:[%s5041_s1 + $0x10] ss:$8 sps:$4 sm:$0xff]   ;;  %v3401_v8 = vld [vmem:[%s5041_s1 + $0x24] ss:$8 sps:$4 sm:$0xff]   ;;  %v3405_v10 = vld [vmem:[%s5041_s1 + $0x20] ss:$8 sps:$4 sm:$0xff]  }
   0x4   :  { %2193 = vmatpush1.bf16.msra.mxu0 %v3394_v3  ;;  %1885 = vmatprep.subr.bf16.mxu1 %v3395_v4  ;;  %v3400_v7 = vld [vmem:[%s5041_s1 + $0x310] ss:$8 sps:$4 sm:$0xff]   ;;  %v3403_v9 = vld [vmem:[%s5041_s1 + $0x324] ss:$8 sps:$4 sm:$0xff]   ;;  %v3406_v11 = vld [vmem:[%s5041_s1 + $0x320] ss:$8 sps:$4 sm:$0xff]  }
   0x5   :  { %2194 = vmatprep.subr.bf16.mxu0 %v3397_v5  ;;  %v3407_v12 = vld [vmem:[%s5041_s1 + $0x34] ss:$8 sps:$4 sm:$0xff]   ;;  %v3411_v14 = vld [vmem:[%s5041_s1 + $0x30] ss:$8 sps:$4 sm:$0xff]   ;;  %v3413_v16 = vld [vmem:[%s5041_s1 + $0x44] ss:$8 sps:$4 sm:$0xff]  }
   0x6   :  { %v3409_v13 = vld [vmem:[%s5041_s1 + $0x334] ss:$8 sps:$4 sm:$0xff]   ;;  %v3412_v15 = vld [vmem:[%s5041_s1 + $0x330] ss:$8 sps:$4 sm:$0xff]   ;;  %v3415_v17 = vld [vmem:[%s5041_s1 + $0x344] ss:$8 sps:$4 sm:$0xff]  }
   0x7   :  { %1886 = vmatpush1.bf16.msra.mxu1 %v3399_v6  ;;  %v3417_v18 = vld [vmem:[%s5041_s1 + $0x40] ss:$8 sps:$4 sm:$0xff]   ;;  %v3419_v20 = vld [vmem:[%s5041_s1 + $0x54] ss:$8 sps:$4 sm:$0xff]   ;;  %v3423_v22 = vld [vmem:[%s5041_s1 + $0x50] ss:$8 sps:$4 sm:$0xff]  }
   0x8   :  { %2195 = vmatpush1.bf16.msra.mxu0 %v3400_v7  ;;  %1887 = vmatprep.subr.bf16.mxu1 %v3401_v8  ;;  %v3418_v19 = vld [vmem:[%s5041_s1 + $0x340] ss:$8 sps:$4 sm:$0xff]   ;;  %v3421_v21 = vld [vmem:[%s5041_s1 + $0x354] ss:$8 sps:$4 sm:$0xff]   ;;  %v3424_v23 = vld [vmem:[%s5041_s1 + $0x350] ss:$8 sps:$4 sm:$0xff]  }
   0x9   :  { %2196 = vmatprep.subr.bf16.mxu0 %v3403_v9  ;;  %v3425_v24 = vld [vmem:[%s5041_s1 + $0x64] ss:$8 sps:$4 sm:$0xff]   ;;  %v3429_v26 = vld [vmem:[%s5041_s1 + $0x60] ss:$8 sps:$4 sm:$0xff]   ;;  %v3431_v28 = vld [vmem:[%s5041_s1 + $0x74] ss:$8 sps:$4 sm:$0xff]  }
   0xa   :  { %v3427_v25 = vld [vmem:[%s5041_s1 + $0x364] ss:$8 sps:$4 sm:$0xff]   ;;  %v3430_v27 = vld [vmem:[%s5041_s1 + $0x360] ss:$8 sps:$4 sm:$0xff]   ;;  %v3433_v29 = vld [vmem:[%s5041_s1 + $0x374] ss:$8 sps:$4 sm:$0xff]  }
   0xb   :  { %1888 = vmatpush1.bf16.msra.mxu1 %v3405_v10  ;;  %v3435_v30 = vld [vmem:[%s5041_s1 + $0x70] ss:$8 sps:$4 sm:$0xff]   ;;  %v3437_v32 = vld [vmem:[%s5041_s1 + $0x84] ss:$8 sps:$4 sm:$0xff]   ;;  %v3441_v34 = vld [vmem:[%s5041_s1 + $0x80] ss:$8 sps:$4 sm:$0xff]  }
   0xc   :  { %2197 = vmatpush1.bf16.msra.mxu0 %v3406_v11  ;;  %1889 = vmatprep.subr.bf16.mxu1 %v3407_v12  ;;  %v3436_v31 = vld [vmem:[%s5041_s1 + $0x370] ss:$8 sps:$4 sm:$0xff]   ;;  %v3439_v33 = vld [vmem:[%s5041_s1 + $0x384] ss:$8 sps:$4 sm:$0xff]   ;;  %v3442_v35 = vld [vmem:[%s5041_s1 + $0x380] ss:$8 sps:$4 sm:$0xff]  }
   0xd   :  { %2198 = vmatprep.subr.bf16.mxu0 %v3409_v13  ;;  %v3443_v36 = vld [vmem:[%s5041_s1 + $0x94] ss:$8 sps:$4 sm:$0xff]   ;;  %v3447_v38 = vld [vmem:[%s5041_s1 + $0x90] ss:$8 sps:$4 sm:$0xff]   ;;  %v3449_v40 = vld [vmem:[%s5041_s1 + $0xa4] ss:$8 sps:$4 sm:$0xff]  }
   0xe   :  { %v3445_v37 = vld [vmem:[%s5041_s1 + $0x394] ss:$8 sps:$4 sm:$0xff]   ;;  %v3448_v39 = vld [vmem:[%s5041_s1 + $0x390] ss:$8 sps:$4 sm:$0xff]   ;;  %v3451_v41 = vld [vmem:[%s5041_s1 + $0x3a4] ss:$8 sps:$4 sm:$0xff]  }
   0xf   :  { %1890 = vmatpush1.bf16.msra.mxu1 %v3411_v14  ;;  %v3453_v42 = vld [vmem:[%s5041_s1 + $0xa0] ss:$8 sps:$4 sm:$0xff]   ;;  %v3455_v44 = vld [vmem:[%s5041_s1 + $0xb4] ss:$8 sps:$4 sm:$0xff]   ;;  %v3459_v46 = vld [vmem:[%s5041_s1 + $0xb0] ss:$8 sps:$4 sm:$0xff]  }
  0x10   :  { %2199 = vmatpush1.bf16.msra.mxu0 %v3412_v15  ;;  %1891 = vmatprep.subr.bf16.mxu1 %v3413_v16  ;;  %v3454_v43 = vld [vmem:[%s5041_s1 + $0x3a0] ss:$8 sps:$4 sm:$0xff]   ;;  %v3457_v45 = vld [vmem:[%s5041_s1 + $0x3b4] ss:$8 sps:$4 sm:$0xff]   ;;  %v3460_v47 = vld [vmem:[%s5041_s1 + $0x3b0] ss:$8 sps:$4 sm:$0xff]  }
  0x11   :  { %2200 = vmatprep.subr.bf16.mxu0 %v3415_v17  ;;  %v3487_v48 = vld [vmem:[%s5042_s0 + $0x4] ss:$52 sps:$4 sm:$0xff]   ;;  %v3493_v51 = vld [vmem:[%s5042_s0 + $0x1c] ss:$52 sps:$4 sm:$0xff]   ;;  %v3465_v52 = vld [vmem:[%s5041_s1 + $0xc0] ss:$8 sps:$4 sm:$0xff]  }
  0x12   :  { %v3461_v49 = vld [vmem:[%s5041_s1 + $0xc4] ss:$8 sps:$4 sm:$0xff]   ;;  %1915 = vmatprep.mubr.bf16.mxu1 %v3487_v48  ;;  %v3466_v53 = vld [vmem:[%s5041_s1 + $0x3c0] ss:$8 sps:$4 sm:$0xff]   ;;  %v3467_v54 = vld [vmem:[%s5041_s1 + $0xd4] ss:$8 sps:$4 sm:$0xff]   ;;  %2224 = vmatprep.mubr.bf16.mxu0 %v3493_v51 }
  0x13   :  { %1892 = vmatpush1.bf16.msra.mxu1 %v3417_v18  ;;  %v3463_v50 = vld [vmem:[%s5041_s1 + $0x3c4] ss:$8 sps:$4 sm:$0xff]   ;;  %v3469_v55 = vld [vmem:[%s5041_s1 + $0x3d4] ss:$8 sps:$4 sm:$0xff]   ;;  %v3471_v56 = vld [vmem:[%s5041_s1 + $0xd0] ss:$8 sps:$4 sm:$0xff]  }
  0x14   :  { %2201 = vmatpush1.bf16.msra.mxu0 %v3418_v19  ;;  %1893 = vmatprep.subr.bf16.mxu1 %v3419_v20  ;;  %v3472_v57 = vld [vmem:[%s5041_s1 + $0x3d0] ss:$8 sps:$4 sm:$0xff]   ;;  %v3473_v58 = vld [vmem:[%s5041_s1 + $0xe4] ss:$8 sps:$4 sm:$0xff]   ;;  %v3477_v60 = vld [vmem:[%s5041_s1 + $0xe0] ss:$8 sps:$4 sm:$0xff]  }
  0x15   :  { %2202 = vmatprep.subr.bf16.mxu0 %v3421_v21  ;;  %v3475_v59 = vld [vmem:[%s5041_s1 + $0x3e4] ss:$8 sps:$4 sm:$0xff]   ;;  %v3478_v61 = vld [vmem:[%s5041_s1 + $0x3e0] ss:$8 sps:$4 sm:$0xff]   ;;  %v3479_v62 = vld [vmem:[%s5041_s1 + $0xf4] ss:$8 sps:$4 sm:$0xff]  }
  0x16   :  { %v3481_v63 = vld [vmem:[%s5041_s1 + $0x3f4] ss:$8 sps:$4 sm:$0xff]   ;;  %v3483_v0 = vld [vmem:[%s5041_s1 + $0xf0] ss:$8 sps:$4 sm:$0xff]   ;;  %v3490_v2 = vld [vmem:[%s5041_s1 + $0x104] ss:$8 sps:$4 sm:$0xff]  }
  0x17   :  { %1894 = vmatpush1.bf16.msra.mxu1 %v3423_v22  ;;  %v3484_v1 = vld [vmem:[%s5041_s1 + $0x3f0] ss:$8 sps:$4 sm:$0xff]   ;;  %v3485_v3 = vld [vmem:[%s5042_s0] ss:$52 sps:$4 sm:$0xff]   ;;  %v3496_v4 = vld [vmem:[%s5041_s1 + $0x404] ss:$8 sps:$4 sm:$0xff]  }
  0x18   :  { %2203 = vmatpush1.bf16.msra.mxu0 %v3424_v23  ;;  %1895 = vmatprep.subr.bf16.mxu1 %v3425_v24  ;;  %v3488_v5 = vld [vmem:[%s5041_s1 + $0x100] ss:$8 sps:$4 sm:$0xff]   ;;  %v3491_v6 = vld [vmem:[%s5042_s0 + $0x18] ss:$52 sps:$4 sm:$0xff]   ;;  %v3499_v8 = vld [vmem:[%s5041_s1 + $0x114] ss:$8 sps:$4 sm:$0xff]  }
  0x19   :  { %2204 = vmatprep.subr.bf16.mxu0 %v3427_v25  ;;  %v3494_v7 = vld [vmem:[%s5041_s1 + $0x400] ss:$8 sps:$4 sm:$0xff]   ;;  %v3502_v9 = vld [vmem:[%s5041_s1 + $0x414] ss:$8 sps:$4 sm:$0xff]   ;;  %v3515_v10 = vld [vmem:[%s5042_s0 + $0x84] ss:$52 sps:$4 sm:$0xff]  }
  0x1a   :  { %v3517_v11 = vld [vmem:[%s5042_s0 + $0x6c] ss:$52 sps:$4 sm:$0xff]   ;;  %v3497_v12 = vld [vmem:[%s5041_s1 + $0x110] ss:$8 sps:$4 sm:$0xff]   ;;  %v3511_v18 = vld [vmem:[%s5041_s1 + $0x134] ss:$8 sps:$4 sm:$0xff]  }
  0x1b   :  { %1896 = vmatpush1.bf16.msra.mxu1 %v3429_v26  ;;  %v3500_v13 = vld [vmem:[%s5041_s1 + $0x410] ss:$8 sps:$4 sm:$0xff]   ;;  %v3505_v14 = vld [vmem:[%s5041_s1 + $0x124] ss:$8 sps:$4 sm:$0xff]   ;;  %v3503_v16 = vld [vmem:[%s5041_s1 + $0x120] ss:$8 sps:$4 sm:$0xff]  }
  0x1c   :  { %2205 = vmatpush1.bf16.msra.mxu0 %v3430_v27  ;;  %1897 = vmatprep.subr.bf16.mxu1 %v3431_v28  ;;  %v3508_v15 = vld [vmem:[%s5041_s1 + $0x424] ss:$8 sps:$4 sm:$0xff]   ;;  %v3506_v17 = vld [vmem:[%s5041_s1 + $0x420] ss:$8 sps:$4 sm:$0xff]   ;;  %v3514_v21 = vld [vmem:[%s5041_s1 + $0x434] ss:$8 sps:$4 sm:$0xff]  }
  0x1d   :  { %2206 = vmatprep.subr.bf16.mxu0 %v3433_v29  ;;  %v3522_v19 = vld [vmem:[%s5042_s0 + $0x80] ss:$52 sps:$4 sm:$0xff]   ;;  %v3526_v20 = vld [vmem:[%s5042_s0 + $0x68] ss:$52 sps:$4 sm:$0xff]   ;;  %v3509_v24 = vld [vmem:[%s5041_s1 + $0x130] ss:$8 sps:$4 sm:$0xff]  }
  0x1e   :  { %v3533_v22 = vld [vmem:[%s5042_s0 + $0xec] ss:$52 sps:$4 sm:$0xff]   ;;  %v3535_v23 = vld [vmem:[%s5042_s0 + $0xd4] ss:$52 sps:$4 sm:$0xff]   ;;  %v3512_v25 = vld [vmem:[%s5041_s1 + $0x430] ss:$8 sps:$4 sm:$0xff]  }
  0x1f   :  { %1898 = vmatpush1.bf16.msra.mxu1 %v3435_v30  ;;  %v3521_v26 = vld [vmem:[%s5041_s1 + $0x144] ss:$8 sps:$4 sm:$0xff]   ;;  %v3519_v28 = vld [vmem:[%s5041_s1 + $0x140] ss:$8 sps:$4 sm:$0xff]   ;;  %v3529_v30 = vld [vmem:[%s5041_s1 + $0x154] ss:$8 sps:$4 sm:$0xff]  }
  0x20   :  { %2207 = vmatpush1.bf16.msra.mxu0 %v3436_v31  ;;  %1899 = vmatprep.subr.bf16.mxu1 %v3437_v32  ;;  %v3525_v27 = vld [vmem:[%s5041_s1 + $0x444] ss:$8 sps:$4 sm:$0xff]   ;;  %v3523_v29 = vld [vmem:[%s5041_s1 + $0x440] ss:$8 sps:$4 sm:$0xff]   ;;  %v3545_v48 = vld [vmem:[%s5041_s1 + $0x170] ss:$8 sps:$4 sm:$0xff]  }
  0x21   :  { %2208 = vmatprep.subr.bf16.mxu0 %v3439_v33  ;;  %v3540_v31 = vld [vmem:[%s5042_s0 + $0xe8] ss:$52 sps:$4 sm:$0xff]   ;;  %v3544_v32 = vld [vmem:[%s5042_s0 + $0xd0] ss:$52 sps:$4 sm:$0xff]  }
  0x22   :  { %v3532_v33 = vld [vmem:[%s5041_s1 + $0x454] ss:$8 sps:$4 sm:$0xff]   ;;  %v3561_v51 = vld [vmem:[%s5041_s1 + $0x484] ss:$8 sps:$4 sm:$0xff]  }
  0x23   :  { %1900 = vmatpush1.bf16.msra.mxu1 %v3441_v34  ;;  %v3551_v34 = vld [vmem:[%s5042_s0 + $0x154] ss:$52 sps:$4 sm:$0xff]  }
  0x24   :  { %2209 = vmatpush1.bf16.msra.mxu0 %v3442_v35  ;;  %1901 = vmatprep.subr.bf16.mxu1 %v3443_v36  ;;  %v3553_v35 = vld [vmem:[%s5042_s0 + $0x13c] ss:$52 sps:$4 sm:$0xff]  }
  0x25   :  { %2210 = vmatprep.subr.bf16.mxu0 %v3445_v37  ;;  %v3527_v36 = vld [vmem:[%s5041_s1 + $0x150] ss:$8 sps:$4 sm:$0xff]  }
  0x26   :  { %v3530_v37 = vld [vmem:[%s5041_s1 + $0x450] ss:$8 sps:$4 sm:$0xff]  }
  0x27   :  { %1902 = vmatpush1.bf16.msra.mxu1 %v3447_v38  ;;  %v3539_v38 = vld [vmem:[%s5041_s1 + $0x164] ss:$8 sps:$4 sm:$0xff]  }
  0x28   :  { %2211 = vmatpush1.bf16.msra.mxu0 %v3448_v39  ;;  %1903 = vmatprep.subr.bf16.mxu1 %v3449_v40  ;;  %v3543_v39 = vld [vmem:[%s5041_s1 + $0x464] ss:$8 sps:$4 sm:$0xff]   ;;  %v3537_v40 = vld [vmem:[%s5041_s1 + $0x160] ss:$8 sps:$4 sm:$0xff]  }
  0x29   :  { %2212 = vmatprep.subr.bf16.mxu0 %v3451_v41  ;;  %v3541_v41 = vld [vmem:[%s5041_s1 + $0x460] ss:$8 sps:$4 sm:$0xff]  }
  0x2b   :  { %1904 = vmatpush1.bf16.msra.mxu1 %v3453_v42  ;;  %v3547_v42 = vld [vmem:[%s5041_s1 + $0x174] ss:$8 sps:$4 sm:$0xff]  }
  0x2c   :  { %2213 = vmatpush1.bf16.msra.mxu0 %v3454_v43  ;;  %1905 = vmatprep.subr.bf16.mxu1 %v3455_v44  ;;  %v3558_v43 = vld [vmem:[%s5042_s0 + $0x150] ss:$52 sps:$4 sm:$0xff]   ;;  %v3562_v44 = vld [vmem:[%s5042_s0 + $0x138] ss:$52 sps:$4 sm:$0xff]  }
  0x2d   :  { %2214 = vmatprep.subr.bf16.mxu0 %v3457_v45  ;;  %v3550_v45 = vld [vmem:[%s5041_s1 + $0x474] ss:$8 sps:$4 sm:$0xff]  }
  0x2f   :  { %1906 = vmatpush1.bf16.msra.mxu1 %v3459_v46  ;;  %v3569_v46 = vld [vmem:[%s5042_s0 + $0x1bc] ss:$52 sps:$4 sm:$0xff]  }
  0x30   :  { %2215 = vmatpush1.bf16.msra.mxu0 %v3460_v47  ;;  %1907 = vmatprep.subr.bf16.mxu1 %v3461_v49  ;;  %v3571_v47 = vld [vmem:[%s5042_s0 + $0x1a4] ss:$52 sps:$4 sm:$0xff]  }
  0x31   :  { %2216 = vmatprep.subr.bf16.mxu0 %v3463_v50  ;;  %v3548_v49 = vld [vmem:[%s5041_s1 + $0x470] ss:$8 sps:$4 sm:$0xff]   ;;  %v3557_v50 = vld [vmem:[%s5041_s1 + $0x184] ss:$8 sps:$4 sm:$0xff]  }
  0x33   :  { %1908 = vmatpush1.bf16.msra.mxu1 %v3465_v52  ;;  %v3555_v52 = vld [vmem:[%s5041_s1 + $0x180] ss:$8 sps:$4 sm:$0xff]  }
  0x34   :  { %2217 = vmatpush1.bf16.msra.mxu0 %v3466_v53  ;;  %1909 = vmatprep.subr.bf16.mxu1 %v3467_v54  ;;  %v3559_v53 = vld [vmem:[%s5041_s1 + $0x480] ss:$8 sps:$4 sm:$0xff]   ;;  %v3565_v54 = vld [vmem:[%s5041_s1 + $0x194] ss:$8 sps:$4 sm:$0xff]  }
  0x35   :  { %2218 = vmatprep.subr.bf16.mxu0 %v3469_v55  ;;  %v3576_v55 = vld [vmem:[%s5042_s0 + $0x1b8] ss:$52 sps:$4 sm:$0xff]  }
  0x37   :  { %1910 = vmatpush1.bf16.msra.mxu1 %v3471_v56  ;;  %v3580_v56 = vld [vmem:[%s5042_s0 + $0x1a0] ss:$52 sps:$4 sm:$0xff]  }
  0x38   :  { %2219 = vmatpush1.bf16.msra.mxu0 %v3472_v57  ;;  %1911 = vmatprep.subr.bf16.mxu1 %v3473_v58  ;;  %v3568_v57 = vld [vmem:[%s5041_s1 + $0x494] ss:$8 sps:$4 sm:$0xff]   ;;  %v3587_v58 = vld [vmem:[%s5042_s0 + $0x224] ss:$52 sps:$4 sm:$0xff]  }
  0x39   :  { %2220 = vmatprep.subr.bf16.mxu0 %v3475_v59  ;;  %v3589_v59 = vld [vmem:[%s5042_s0 + $0x20c] ss:$52 sps:$4 sm:$0xff]  }
  0x3b   :  { %1912 = vmatpush1.bf16.msra.mxu1 %v3477_v60  ;;  %v3563_v60 = vld [vmem:[%s5041_s1 + $0x190] ss:$8 sps:$4 sm:$0xff]  }
  0x3c   :  { %2221 = vmatpush1.bf16.msra.mxu0 %v3478_v61  ;;  %1913 = vmatprep.subr.bf16.mxu1 %v3479_v62  ;;  %v3566_v61 = vld [vmem:[%s5041_s1 + $0x490] ss:$8 sps:$4 sm:$0xff]   ;;  %v3575_v62 = vld [vmem:[%s5041_s1 + $0x1a4] ss:$8 sps:$4 sm:$0xff]  }
  0x3d   :  { %2222 = vmatprep.subr.bf16.mxu0 %v3481_v63  ;;  %v3579_v63 = vld [vmem:[%s5041_s1 + $0x4a4] ss:$8 sps:$4 sm:$0xff]  }
  0x3f   :  { %1914 = vmatpush1.bf16.msra.mxu1 %v3483_v0  ;;  %v3573_v0 = vld [vmem:[%s5041_s1 + $0x1a0] ss:$8 sps:$4 sm:$0xff]  }
  0x40   :  { %2223 = vmatpush1.bf16.msra.mxu0 %v3484_v1  ;;  %1986 = vmatprep.subr.bf16.mxu1 %v3490_v2  ;;  %v3577_v1 = vld [vmem:[%s5041_s1 + $0x4a0] ss:$8 sps:$4 sm:$0xff]  }
  0x41   :  { %2295 = vmatprep.subr.bf16.mxu0 %v3496_v4  ;;  %v3594_v2 = vld [vmem:[%s5042_s0 + $0x220] ss:$52 sps:$4 sm:$0xff]  }
  0x42   :  { %1916 = vmatmul.mubr.bf16.vlgmr.msra.gmra.mrb[0].mxu1 %v3485_v3  ;;  %v3598_v3 = vld [vmem:[%s5042_s0 + $0x208] ss:$52 sps:$4 sm:$0xff]  }
  0x43   :  { %2225 = vmatmul.mubr.bf16.vlgmr.msra.gmra.mrb[0].mxu0 %v3491_v6  ;;  %1987 = vmatpush1.bf16.msra.mxu1 %v3488_v5  ;;  %v3583_v4 = vld [vmem:[%s5041_s1 + $0x1b4] ss:$8 sps:$4 sm:$0xff]   ;;  %v3605_v6 = vld [vmem:[%s5042_s0 + $0x28c] ss:$52 sps:$4 sm:$0xff]  }
  0x44   :  { %2296 = vmatpush1.bf16.msra.mxu0 %v3494_v7  ;;  %1988 = vmatprep.subr.bf16.mxu1 %v3499_v8  ;;  %v3586_v5 = vld [vmem:[%s5041_s1 + $0x4b4] ss:$8 sps:$4 sm:$0xff]   ;;  %v3581_v8 = vld [vmem:[%s5041_s1 + $0x1b0] ss:$8 sps:$4 sm:$0xff]  }
  0x45   :  { %2297 = vmatprep.subr.bf16.mxu0 %v3502_v9  ;;  %2234 = vmatprep.mubr.bf16.mxu0 %v3515_v10  ;;  %v3607_v7 = vld [vmem:[%s5042_s0 + $0x274] ss:$52 sps:$4 sm:$0xff]   ;;  %v3584_v9 = vld [vmem:[%s5041_s1 + $0x4b0] ss:$8 sps:$4 sm:$0xff]   ;;  %v3593_v10 = vld [vmem:[%s5041_s1 + $0x1c4] ss:$8 sps:$4 sm:$0xff]  }
  0x46   :  { %1925 = vmatprep.mubr.bf16.mxu1 %v3517_v11  ;;  %v3597_v11 = vld [vmem:[%s5041_s1 + $0x4c4] ss:$8 sps:$4 sm:$0xff]  }
  0x47   :  { %1989 = vmatpush1.bf16.msra.mxu1 %v3497_v12  ;;  %v3591_v12 = vld [vmem:[%s5041_s1 + $0x1c0] ss:$8 sps:$4 sm:$0xff]  }
  0x48   :  { %2298 = vmatpush1.bf16.msra.mxu0 %v3500_v13  ;;  %1990 = vmatprep.subr.bf16.mxu1 %v3505_v14  ;;  %v3595_v13 = vld [vmem:[%s5041_s1 + $0x4c0] ss:$8 sps:$4 sm:$0xff]  }
  0x49   :  { %2299 = vmatprep.subr.bf16.mxu0 %v3508_v15  ;;  %v3612_v14 = vld [vmem:[%s5042_s0 + $0x288] ss:$52 sps:$4 sm:$0xff]   ;;  %v3616_v15 = vld [vmem:[%s5042_s0 + $0x270] ss:$52 sps:$4 sm:$0xff]  }
  0x4a   :  { %1926 = vmatmul.mubr.bf16.gmra.mrb[4].mxu1 %v3526_v20  ;;  %v3599_v20 = vld [vmem:[%s5041_s1 + $0x1d0] ss:$8 sps:$4 sm:$0xff]  }
  0x4b   :  { %2235 = vmatmul.mubr.bf16.gmra.mrb[4].mxu0 %v3522_v19  ;;  %1991 = vmatpush1.bf16.msra.mxu1 %v3503_v16  ;;  %v3601_v16 = vld [vmem:[%s5041_s1 + $0x1d4] ss:$8 sps:$4 sm:$0xff]   ;;  %v3628_v19 = vld [vmem:[%s5042_s0 + $0xc] ss:$52 sps:$4 sm:$0xff]  }
  0x4c   :  { %2300 = vmatpush1.bf16.msra.mxu0 %v3506_v17  ;;  %1992 = vmatprep.subr.bf16.mxu1 %v3511_v18  ;;  %v3604_v17 = vld [vmem:[%s5041_s1 + $0x4d4] ss:$8 sps:$4 sm:$0xff]   ;;  %v3625_v18 = vld [vmem:[%s5042_s0 + $0x24] ss:$52 sps:$4 sm:$0xff]  }
  0x4d   :  { %2301 = vmatprep.subr.bf16.mxu0 %v3514_v21  ;;  %2244 = vmatprep.mubr.bf16.mxu0 %v3533_v22  ;;  %v3602_v21 = vld [vmem:[%s5041_s1 + $0x4d0] ss:$8 sps:$4 sm:$0xff]   ;;  %v3611_v22 = vld [vmem:[%s5041_s1 + $0x1e4] ss:$8 sps:$4 sm:$0xff]  }
  0x4e   :  { %1935 = vmatprep.mubr.bf16.mxu1 %v3535_v23  ;;  %v3615_v23 = vld [vmem:[%s5041_s1 + $0x4e4] ss:$8 sps:$4 sm:$0xff]  }
  0x4f   :  { %1993 = vmatpush1.bf16.msra.mxu1 %v3509_v24  ;;  %v3609_v24 = vld [vmem:[%s5041_s1 + $0x1e0] ss:$8 sps:$4 sm:$0xff]  }
  0x50   :  { %2302 = vmatpush1.bf16.msra.mxu0 %v3512_v25  ;;  %1994 = vmatprep.subr.bf16.mxu1 %v3521_v26  ;;  %v3613_v25 = vld [vmem:[%s5041_s1 + $0x4e0] ss:$8 sps:$4 sm:$0xff]   ;;  %v3619_v26 = vld [vmem:[%s5041_s1 + $0x1f4] ss:$8 sps:$4 sm:$0xff]  }
  0x51   :  { %2303 = vmatprep.subr.bf16.mxu0 %v3525_v27  ;;  %v3622_v27 = vld [vmem:[%s5041_s1 + $0x4f4] ss:$8 sps:$4 sm:$0xff]  }
  0x52   :  { %1936 = vmatmul.mubr.bf16.gmra.mrb[8].mxu1 %v3544_v32  ;;  %v3623_v32 = vld [vmem:[%s5042_s0 + $0x20] ss:$52 sps:$4 sm:$0xff]  }
  0x53   :  { %2245 = vmatmul.mubr.bf16.gmra.mrb[8].mxu0 %v3540_v31  ;;  %1995 = vmatpush1.bf16.msra.mxu1 %v3519_v28  ;;  %v3617_v28 = vld [vmem:[%s5041_s1 + $0x1f0] ss:$8 sps:$4 sm:$0xff]   ;;  %v4335_v31 = vld [vmem:[%s5041_s1 + $0x504] ss:$8 sps:$4 sm:$0xff]  }
  0x54   :  { %2304 = vmatpush1.bf16.msra.mxu0 %v3523_v29  ;;  %1996 = vmatprep.subr.bf16.mxu1 %v3529_v30  ;;  %v3620_v29 = vld [vmem:[%s5041_s1 + $0x4f0] ss:$8 sps:$4 sm:$0xff]   ;;  %v3631_v30 = vld [vmem:[%s5041_s1 + $0x204] ss:$8 sps:$4 sm:$0xff]  }
  0x55   :  { %2305 = vmatprep.subr.bf16.mxu0 %v3532_v33  ;;  %2254 = vmatprep.mubr.bf16.mxu0 %v3551_v34  ;;  %v3626_v33 = vld [vmem:[%s5042_s0 + $0x8] ss:$52 sps:$4 sm:$0xff]  }
  0x56   :  { %1945 = vmatprep.mubr.bf16.mxu1 %v3553_v35  ;;  %v3629_v34 = vld [vmem:[%s5041_s1 + $0x200] ss:$8 sps:$4 sm:$0xff]  }
  0x57   :  { %1997 = vmatpush1.bf16.msra.mxu1 %v3527_v36  ;;  %v4349_v35 = vld [vmem:[%s5041_s1 + $0x500] ss:$8 sps:$4 sm:$0xff]   ;;  %v3637_v36 = vld [vmem:[%s5041_s1 + $0x214] ss:$8 sps:$4 sm:$0xff]  }
  0x58   :  { %2306 = vmatpush1.bf16.msra.mxu0 %v3530_v37  ;;  %1998 = vmatprep.subr.bf16.mxu1 %v3539_v38  ;;  %v4358_v37 = vld [vmem:[%s5041_s1 + $0x514] ss:$8 sps:$4 sm:$0xff]   ;;  %v3641_v38 = vld [vmem:[%s5042_s0 + $0x8c] ss:$52 sps:$4 sm:$0xff]  }
  0x59   :  { %2307 = vmatprep.subr.bf16.mxu0 %v3543_v39  ;;  %v3656_v39 = vld [vmem:[%s5042_s0 + $0x74] ss:$52 sps:$4 sm:$0xff]  }
  0x5a   :  { %1946 = vmatmul.mubr.bf16.gmra.mrb[12].mxu1 %v3562_v44  ;;  %v3643_v44 = vld [vmem:[%s5041_s1 + $0x220] ss:$8 sps:$4 sm:$0xff]  }
  0x5b   :  { %2255 = vmatmul.mubr.bf16.gmra.mrb[12].mxu0 %v3558_v43  ;;  %1999 = vmatpush1.bf16.msra.mxu1 %v3537_v40  ;;  %v3635_v40 = vld [vmem:[%s5041_s1 + $0x210] ss:$8 sps:$4 sm:$0xff]   ;;  %v4382_v43 = vld [vmem:[%s5041_s1 + $0x524] ss:$8 sps:$4 sm:$0xff]  }
  0x5c   :  { %2308 = vmatpush1.bf16.msra.mxu0 %v3541_v41  ;;  %2000 = vmatprep.subr.bf16.mxu1 %v3547_v42  ;;  %v4372_v41 = vld [vmem:[%s5041_s1 + $0x510] ss:$8 sps:$4 sm:$0xff]   ;;  %v3645_v42 = vld [vmem:[%s5041_s1 + $0x224] ss:$8 sps:$4 sm:$0xff]  }
  0x5d   :  { %2309 = vmatprep.subr.bf16.mxu0 %v3550_v45  ;;  %2264 = vmatprep.mubr.bf16.mxu0 %v3569_v46  ;;  %v3646_v45 = vld [vmem:[%s5042_s0 + $0x88] ss:$52 sps:$4 sm:$0xff]   ;;  %v3660_v46 = vld [vmem:[%s5042_s0 + $0x70] ss:$52 sps:$4 sm:$0xff]  }
  0x5e   :  { %1955 = vmatprep.mubr.bf16.mxu1 %v3571_v47  ;;  %v4397_v47 = vld [vmem:[%s5041_s1 + $0x520] ss:$8 sps:$4 sm:$0xff]  }
  0x5f   :  { %2001 = vmatpush1.bf16.msra.mxu1 %v3545_v48  ;;  %v3652_v48 = vld [vmem:[%s5041_s1 + $0x234] ss:$8 sps:$4 sm:$0xff]  }
  0x60   :  { %2310 = vmatpush1.bf16.msra.mxu0 %v3548_v49  ;;  %2002 = vmatprep.subr.bf16.mxu1 %v3557_v50  ;;  %v4406_v49 = vld [vmem:[%s5041_s1 + $0x534] ss:$8 sps:$4 sm:$0xff]  }
  0x61   :  { %2311 = vmatprep.subr.bf16.mxu0 %v3561_v51  ;;  %v3658_v50 = vld [vmem:[%s5042_s0 + $0xf4] ss:$52 sps:$4 sm:$0xff]   ;;  %v3674_v51 = vld [vmem:[%s5042_s0 + $0xdc] ss:$52 sps:$4 sm:$0xff]  }
  0x62   :  { %1956 = vmatmul.mubr.bf16.gmra.mrb[16].mxu1 %v3580_v56  ;;  %v3661_v56 = vld [vmem:[%s5041_s1 + $0x240] ss:$8 sps:$4 sm:$0xff]  }
  0x63   :  { %2265 = vmatmul.mubr.bf16.gmra.mrb[16].mxu0 %v3576_v55  ;;  %2003 = vmatpush1.bf16.msra.mxu1 %v3555_v52  ;;  %v3650_v52 = vld [vmem:[%s5041_s1 + $0x230] ss:$8 sps:$4 sm:$0xff]   ;;  %v4430_v55 = vld [vmem:[%s5041_s1 + $0x544] ss:$8 sps:$4 sm:$0xff]  }
  0x64   :  { %2312 = vmatpush1.bf16.msra.mxu0 %v3559_v53  ;;  %2004 = vmatprep.subr.bf16.mxu1 %v3565_v54  ;;  %v4420_v53 = vld [vmem:[%s5041_s1 + $0x530] ss:$8 sps:$4 sm:$0xff]   ;;  %v3663_v54 = vld [vmem:[%s5041_s1 + $0x244] ss:$8 sps:$4 sm:$0xff]  }
  0x65   :  { %2313 = vmatprep.subr.bf16.mxu0 %v3568_v57  ;;  %2274 = vmatprep.mubr.bf16.mxu0 %v3587_v58  ;;  %v3664_v57 = vld [vmem:[%s5042_s0 + $0xf0] ss:$52 sps:$4 sm:$0xff]   ;;  %v3678_v58 = vld [vmem:[%s5042_s0 + $0xd8] ss:$52 sps:$4 sm:$0xff]  }
  0x66   :  { %1965 = vmatprep.mubr.bf16.mxu1 %v3589_v59  ;;  %v4445_v59 = vld [vmem:[%s5041_s1 + $0x540] ss:$8 sps:$4 sm:$0xff]  }
  0x67   :  { %2005 = vmatpush1.bf16.msra.mxu1 %v3563_v60  ;;  %v3670_v60 = vld [vmem:[%s5041_s1 + $0x254] ss:$8 sps:$4 sm:$0xff]  }
  0x68   :  { %2314 = vmatpush1.bf16.msra.mxu0 %v3566_v61  ;;  %2006 = vmatprep.subr.bf16.mxu1 %v3575_v62  ;;  %v4454_v61 = vld [vmem:[%s5041_s1 + $0x554] ss:$8 sps:$4 sm:$0xff]  }
  0x69   :  { %2315 = vmatprep.subr.bf16.mxu0 %v3579_v63  ;;  %v3676_v62 = vld [vmem:[%s5042_s0 + $0x15c] ss:$52 sps:$4 sm:$0xff]   ;;  %v3692_v63 = vld [vmem:[%s5042_s0 + $0x144] ss:$52 sps:$4 sm:$0xff]  }
  0x6a   :  { %1966 = vmatmul.mubr.bf16.gmra.mrb[20].mxu1 %v3598_v3  ;;  %v4478_v3 = vld [vmem:[%s5041_s1 + $0x564] ss:$8 sps:$4 sm:$0xff]  }
  0x6b   :  { %2275 = vmatmul.mubr.bf16.gmra.mrb[20].mxu0 %v3594_v2  ;;  %2007 = vmatpush1.bf16.msra.mxu1 %v3573_v0  ;;  %v3668_v0 = vld [vmem:[%s5041_s1 + $0x250] ss:$8 sps:$4 sm:$0xff]   ;;  %v3681_v2 = vld [vmem:[%s5041_s1 + $0x264] ss:$8 sps:$4 sm:$0xff]  }
  0x6c   :  { %2316 = vmatpush1.bf16.msra.mxu0 %v3577_v1  ;;  %2008 = vmatprep.subr.bf16.mxu1 %v3583_v4  ;;  %v4468_v1 = vld [vmem:[%s5041_s1 + $0x550] ss:$8 sps:$4 sm:$0xff]   ;;  %v3679_v4 = vld [vmem:[%s5041_s1 + $0x260] ss:$8 sps:$4 sm:$0xff]  }
  0x6d   :  { %2317 = vmatprep.subr.bf16.mxu0 %v3586_v5  ;;  %2284 = vmatprep.mubr.bf16.mxu0 %v3605_v6  ;;  %v3682_v5 = vld [vmem:[%s5042_s0 + $0x158] ss:$52 sps:$4 sm:$0xff]   ;;  %v3696_v6 = vld [vmem:[%s5042_s0 + $0x140] ss:$52 sps:$4 sm:$0xff]  }
  0x6e   :  { %1975 = vmatprep.mubr.bf16.mxu1 %v3607_v7  ;;  %v4493_v7 = vld [vmem:[%s5041_s1 + $0x560] ss:$8 sps:$4 sm:$0xff]  }
  0x6f   :  { %2009 = vmatpush1.bf16.msra.mxu1 %v3581_v8  ;;  %v3688_v8 = vld [vmem:[%s5041_s1 + $0x274] ss:$8 sps:$4 sm:$0xff]  }
  0x70   :  { %2318 = vmatpush1.bf16.msra.mxu0 %v3584_v9  ;;  %2010 = vmatprep.subr.bf16.mxu1 %v3593_v10  ;;  %v4502_v9 = vld [vmem:[%s5041_s1 + $0x574] ss:$8 sps:$4 sm:$0xff]   ;;  %v3694_v10 = vld [vmem:[%s5042_s0 + $0x1c4] ss:$52 sps:$4 sm:$0xff]  }
  0x71   :  { %2319 = vmatprep.subr.bf16.mxu0 %v3597_v11  ;;  %v3710_v11 = vld [vmem:[%s5042_s0 + $0x1ac] ss:$52 sps:$4 sm:$0xff]  }
  0x72   :  { %1976 = vmatmul.mubr.bf16.gmra.mrb[24].mxu1 %v3616_v15  ;;  %v4526_v15 = vld [vmem:[%s5041_s1 + $0x584] ss:$8 sps:$4 sm:$0xff]  }
  0x73   :  { %2285 = vmatmul.mubr.bf16.gmra.mrb[24].mxu0 %v3612_v14  ;;  %2011 = vmatpush1.bf16.msra.mxu1 %v3591_v12  ;;  %v3686_v12 = vld [vmem:[%s5041_s1 + $0x270] ss:$8 sps:$4 sm:$0xff]   ;;  %v3699_v14 = vld [vmem:[%s5041_s1 + $0x284] ss:$8 sps:$4 sm:$0xff]  }
  0x74   :  { %2320 = vmatpush1.bf16.msra.mxu0 %v3595_v13  ;;  %2012 = vmatprep.subr.bf16.mxu1 %v3601_v16  ;;  %v4516_v13 = vld [vmem:[%s5041_s1 + $0x570] ss:$8 sps:$4 sm:$0xff]   ;;  %v3697_v16 = vld [vmem:[%s5041_s1 + $0x280] ss:$8 sps:$4 sm:$0xff]  }
  0x75   :  { %2321 = vmatprep.subr.bf16.mxu0 %v3604_v17  ;;  %2327 = vmatprep.mubr.bf16.mxu0 %v3625_v18  ;;  %v3700_v17 = vld [vmem:[%s5042_s0 + $0x1c0] ss:$52 sps:$4 sm:$0xff]  }
  0x76   :  { %2018 = vmatprep.mubr.bf16.mxu1 %v3628_v19  ;;  %v4537_v18 = vld [vmem:[%s5041_s1 + $0x580] ss:$8 sps:$4 sm:$0xff]  }
  0x77   :  { %2013 = vmatpush1.bf16.msra.mxu1 %v3599_v20  ;;  %v3714_v19 = vld [vmem:[%s5042_s0 + $0x1a8] ss:$52 sps:$4 sm:$0xff]  }
  0x78   :  { %2322 = vmatpush1.bf16.msra.mxu0 %v3602_v21  ;;  %2014 = vmatprep.subr.bf16.mxu1 %v3611_v22  ;;  %v3706_v20 = vld [vmem:[%s5041_s1 + $0x294] ss:$8 sps:$4 sm:$0xff]   ;;  %v3712_v22 = vld [vmem:[%s5042_s0 + $0x22c] ss:$52 sps:$4 sm:$0xff]  }
  0x79   :  { %2323 = vmatprep.subr.bf16.mxu0 %v3615_v23  ;;  %v4550_v21 = vld [vmem:[%s5041_s1 + $0x594] ss:$8 sps:$4 sm:$0xff]  }
  0x7a   :  { %v3728_v23 = vld [vmem:[%s5042_s0 + $0x214] ss:$52 sps:$4 sm:$0xff]  }
  0x7b   :  { %2015 = vmatpush1.bf16.msra.mxu1 %v3609_v24  ;;  %v3704_v24 = vld [vmem:[%s5041_s1 + $0x290] ss:$8 sps:$4 sm:$0xff]  }
  0x7c   :  { %2324 = vmatpush1.bf16.msra.mxu0 %v3613_v25  ;;  %2016 = vmatprep.subr.bf16.mxu1 %v3619_v26  ;;  %v4564_v25 = vld [vmem:[%s5041_s1 + $0x590] ss:$8 sps:$4 sm:$0xff]   ;;  %v3717_v26 = vld [vmem:[%s5041_s1 + $0x2a4] ss:$8 sps:$4 sm:$0xff]  }
  0x7d   :  { %2325 = vmatprep.subr.bf16.mxu0 %v3622_v27  ;;  %v4574_v27 = vld [vmem:[%s5041_s1 + $0x5a4] ss:$8 sps:$4 sm:$0xff]  }
  0x7f   :  { %2017 = vmatpush1.bf16.msra.mxu1 %v3617_v28  ;;  %v3715_v28 = vld [vmem:[%s5041_s1 + $0x2a0] ss:$8 sps:$4 sm:$0xff]  }
  0x80   :  { %2326 = vmatpush1.bf16.msra.mxu0 %v3620_v29  ;;  %2089 = vmatprep.subr.bf16.mxu1 %v3631_v30  ;;  %v3718_v29 = vld [vmem:[%s5042_s0 + $0x228] ss:$52 sps:$4 sm:$0xff]  }
  0x81   :  { %2398 = vmatprep.subr.bf16.mxu0 %v4335_v31  ;;  %v4585_v30 = vld [vmem:[%s5041_s1 + $0x5a0] ss:$8 sps:$4 sm:$0xff]  }
  0x82   :  { %2019 = vmatmul.mubr.bf16.vlgmr.msra.gmra.mrb[0].mxu1 %v3626_v33  ;;  %v3724_v33 = vld [vmem:[%s5041_s1 + $0x2b4] ss:$8 sps:$4 sm:$0xff]  }
  0x83   :  { %2328 = vmatmul.mubr.bf16.vlgmr.msra.gmra.mrb[0].mxu0 %v3623_v32  ;;  %2090 = vmatpush1.bf16.msra.mxu1 %v3629_v34  ;;  %v3732_v32 = vld [vmem:[%s5042_s0 + $0x210] ss:$52 sps:$4 sm:$0xff]   ;;  %v4598_v34 = vld [vmem:[%s5041_s1 + $0x5b4] ss:$8 sps:$4 sm:$0xff]  }
  0x84   :  { %2399 = vmatpush1.bf16.msra.mxu0 %v4349_v35  ;;  %2091 = vmatprep.subr.bf16.mxu1 %v3637_v36  ;;  %v3730_v36 = vld [vmem:[%s5042_s0 + $0x294] ss:$52 sps:$4 sm:$0xff]  }
  0x85   :  { %2400 = vmatprep.subr.bf16.mxu0 %v4358_v37  ;;  %2337 = vmatprep.mubr.bf16.mxu0 %v3641_v38  ;;  %v3746_v38 = vld [vmem:[%s5042_s0 + $0x27c] ss:$52 sps:$4 sm:$0xff]  }
  0x86   :  { %2028 = vmatprep.mubr.bf16.mxu1 %v3656_v39  ;;  %v3722_v39 = vld [vmem:[%s5041_s1 + $0x2b0] ss:$8 sps:$4 sm:$0xff]  }
  0x87   :  { %2092 = vmatpush1.bf16.msra.mxu1 %v3635_v40  ;;  %v4613_v40 = vld [vmem:[%s5041_s1 + $0x5b0] ss:$8 sps:$4 sm:$0xff]  }
  0x88   :  { %2401 = vmatpush1.bf16.msra.mxu0 %v4372_v41  ;;  %2093 = vmatprep.subr.bf16.mxu1 %v3645_v42  ;;  %v3735_v42 = vld [vmem:[%s5041_s1 + $0x2c4] ss:$8 sps:$4 sm:$0xff]  }
  0x89   :  { %2402 = vmatprep.subr.bf16.mxu0 %v4382_v43 }
  0x8a   :  { %2029 = vmatmul.mubr.bf16.gmra.mrb[4].mxu1 %v3660_v46  ;;  %v3736_v46 = vld [vmem:[%s5042_s0 + $0x290] ss:$52 sps:$4 sm:$0xff]  }
  0x8b   :  { %2338 = vmatmul.mubr.bf16.gmra.mrb[4].mxu0 %v3646_v45  ;;  %2094 = vmatpush1.bf16.msra.mxu1 %v3643_v44  ;;  %v4622_v44 = vld [vmem:[%s5041_s1 + $0x5c4] ss:$8 sps:$4 sm:$0xff]   ;;  %v3733_v45 = vld [vmem:[%s5041_s1 + $0x2c0] ss:$8 sps:$4 sm:$0xff]  }
  0x8c   :  { %2403 = vmatpush1.bf16.msra.mxu0 %v4397_v47  ;;  %2095 = vmatprep.subr.bf16.mxu1 %v3652_v48  ;;  %v4633_v48 = vld [vmem:[%s5041_s1 + $0x5c0] ss:$8 sps:$4 sm:$0xff]  }
  0x8d   :  { %2404 = vmatprep.subr.bf16.mxu0 %v4406_v49  ;;  %2347 = vmatprep.mubr.bf16.mxu0 %v3658_v50  ;;  %v3748_v50 = vld [vmem:[%s5042_s0 + $0x278] ss:$52 sps:$4 sm:$0xff]  }
  0x8e   :  { %2038 = vmatprep.mubr.bf16.mxu1 %v3674_v51  ;;  %v3742_v51 = vld [vmem:[%s5041_s1 + $0x2d4] ss:$8 sps:$4 sm:$0xff]  }
  0x8f   :  { %2096 = vmatpush1.bf16.msra.mxu1 %v3650_v52  ;;  %v4646_v52 = vld [vmem:[%s5041_s1 + $0x5d4] ss:$8 sps:$4 sm:$0xff]  }
  0x90   :  { %2405 = vmatpush1.bf16.msra.mxu0 %v4420_v53  ;;  %2097 = vmatprep.subr.bf16.mxu1 %v3663_v54  ;;  %v3763_v54 = vld [vmem:[%s5042_s0 + $0x14] ss:$52 sps:$4 sm:$0xff]  }
  0x91   :  { %2406 = vmatprep.subr.bf16.mxu0 %v4430_v55 }
  0x92   :  { %2039 = vmatmul.mubr.bf16.gmra.mrb[8].mxu1 %v3678_v58  ;;  %v4660_v58 = vld [vmem:[%s5041_s1 + $0x5d0] ss:$8 sps:$4 sm:$0xff]  }
  0x93   :  { %2348 = vmatmul.mubr.bf16.gmra.mrb[8].mxu0 %v3664_v57  ;;  %2098 = vmatpush1.bf16.msra.mxu1 %v3661_v56  ;;  %v3766_v56 = vld [vmem:[%s5042_s0 + $0x2c] ss:$52 sps:$4 sm:$0xff]   ;;  %v3740_v57 = vld [vmem:[%s5041_s1 + $0x2d0] ss:$8 sps:$4 sm:$0xff]  }
  0x94   :  { %2407 = vmatpush1.bf16.msra.mxu0 %v4445_v59  ;;  %2099 = vmatprep.subr.bf16.mxu1 %v3670_v60  ;;  %v3751_v60 = vld [vmem:[%s5041_s1 + $0x2e4] ss:$8 sps:$4 sm:$0xff]  }
  0x95   :  { %2408 = vmatprep.subr.bf16.mxu0 %v4454_v61  ;;  %2357 = vmatprep.mubr.bf16.mxu0 %v3676_v62  ;;  %v4670_v62 = vld [vmem:[%s5041_s1 + $0x5e4] ss:$8 sps:$4 sm:$0xff]  }
  0x96   :  { %2048 = vmatprep.mubr.bf16.mxu1 %v3692_v63  ;;  %v3749_v63 = vld [vmem:[%s5041_s1 + $0x2e0] ss:$8 sps:$4 sm:$0xff]  }
  0x97   :  { %2100 = vmatpush1.bf16.msra.mxu1 %v3668_v0  ;;  %v4678_v0 = vld [vmem:[%s5041_s1 + $0x5e0] ss:$8 sps:$4 sm:$0xff]  }
  0x98   :  { %2409 = vmatpush1.bf16.msra.mxu0 %v4468_v1  ;;  %2101 = vmatprep.subr.bf16.mxu1 %v3681_v2  ;;  %v3757_v2 = vld [vmem:[%s5041_s1 + $0x2f4] ss:$8 sps:$4 sm:$0xff]  }
  0x99   :  { %2410 = vmatprep.subr.bf16.mxu0 %v4478_v3 }
  0x9a   :  { %2049 = vmatmul.mubr.bf16.gmra.mrb[12].mxu1 %v3696_v6  ;;  %v4697_v6 = vld [vmem:[%s5041_s1 + $0x5f0] ss:$8 sps:$4 sm:$0xff]  }
  0x9b   :  { %2358 = vmatmul.mubr.bf16.gmra.mrb[12].mxu0 %v3682_v5  ;;  %2102 = vmatpush1.bf16.msra.mxu1 %v3679_v4  ;;  %v4688_v4 = vld [vmem:[%s5041_s1 + $0x5f4] ss:$8 sps:$4 sm:$0xff]   ;;  %v3755_v5 = vld [vmem:[%s5041_s1 + $0x2f0] ss:$8 sps:$4 sm:$0xff]  }
  0x9c   :  { %2411 = vmatpush1.bf16.msra.mxu0 %v4493_v7  ;;  %2103 = vmatprep.subr.bf16.mxu1 %v3688_v8  ;;  %v3769_v8 = vld [vmem:[%s5041_s1 + $0x604] ss:$8 sps:$4 sm:$0xff]  }
  0x9d   :  { %2412 = vmatprep.subr.bf16.mxu0 %v4502_v9  ;;  %2367 = vmatprep.mubr.bf16.mxu0 %v3694_v10  ;;  %v3761_v10 = vld [vmem:[%s5042_s0 + $0x10] ss:$52 sps:$4 sm:$0xff]  }
  0x9e   :  { %2058 = vmatprep.mubr.bf16.mxu1 %v3710_v11  ;;  %v3764_v11 = vld [vmem:[%s5042_s0 + $0x28] ss:$52 sps:$4 sm:$0xff]  }
  0x9f   :  { %2104 = vmatpush1.bf16.msra.mxu1 %v3686_v12  ;;  %v3767_v12 = vld [vmem:[%s5041_s1 + $0x600] ss:$8 sps:$4 sm:$0xff]  }
  0xa0   :  { %2413 = vmatpush1.bf16.msra.mxu0 %v4516_v13  ;;  %2105 = vmatprep.subr.bf16.mxu1 %v3699_v14  ;;  %v3772_v14 = vld [vmem:[%s5041_s1 + $0x614] ss:$8 sps:$4 sm:$0xff]  }
  0xa1   :  { %2414 = vmatprep.subr.bf16.mxu0 %v4526_v15 }
  0xa2   :  { %2059 = vmatmul.mubr.bf16.gmra.mrb[16].mxu1 %v3714_v19  ;;  %v3770_v19 = vld [vmem:[%s5041_s1 + $0x610] ss:$8 sps:$4 sm:$0xff]  }
  0xa3   :  { %2368 = vmatmul.mubr.bf16.gmra.mrb[16].mxu0 %v3700_v17  ;;  %2106 = vmatpush1.bf16.msra.mxu1 %v3697_v16  ;;  %v3773_v16 = vld [vmem:[%s5042_s0 + $0x7c] ss:$52 sps:$4 sm:$0xff]   ;;  %v3775_v17 = vld [vmem:[%s5042_s0 + $0x94] ss:$52 sps:$4 sm:$0xff]  }
  0xa4   :  { %2415 = vmatpush1.bf16.msra.mxu0 %v4537_v18  ;;  %2107 = vmatprep.subr.bf16.mxu1 %v3706_v20  ;;  %v3777_v20 = vld [vmem:[%s5042_s0 + $0x78] ss:$52 sps:$4 sm:$0xff]  }
  0xa5   :  { %2416 = vmatprep.subr.bf16.mxu0 %v4550_v21  ;;  %2377 = vmatprep.mubr.bf16.mxu0 %v3712_v22  ;;  %v3784_v22 = vld [vmem:[%s5041_s1 + $0x634] ss:$8 sps:$4 sm:$0xff]  }
  0xa6   :  { %2068 = vmatprep.mubr.bf16.mxu1 %v3728_v23  ;;  %v3785_v23 = vld [vmem:[%s5042_s0 + $0xe4] ss:$52 sps:$4 sm:$0xff]  }
  0xa7   :  { %2108 = vmatpush1.bf16.msra.mxu1 %v3704_v24  ;;  %v3793_v24 = vld [vmem:[%s5041_s1 + $0x644] ss:$8 sps:$4 sm:$0xff]  }
  0xa8   :  { %2417 = vmatpush1.bf16.msra.mxu0 %v4564_v25  ;;  %2109 = vmatprep.subr.bf16.mxu1 %v3717_v26  ;;  %v3789_v26 = vld [vmem:[%s5042_s0 + $0xe0] ss:$52 sps:$4 sm:$0xff]  }
  0xa9   :  { %2418 = vmatprep.subr.bf16.mxu0 %v4574_v27 }
  0xaa   :  { %2069 = vmatmul.mubr.bf16.gmra.mrb[20].mxu1 %v3732_v32  ;;  %v3805_v32 = vld [vmem:[%s5041_s1 + $0x664] ss:$8 sps:$4 sm:$0xff]  }
  0xab   :  { %2378 = vmatmul.mubr.bf16.gmra.mrb[20].mxu0 %v3718_v29  ;;  %2110 = vmatpush1.bf16.msra.mxu1 %v3715_v28  ;;  %v3796_v28 = vld [vmem:[%s5041_s1 + $0x654] ss:$8 sps:$4 sm:$0xff]   ;;  %v3797_v29 = vld [vmem:[%s5042_s0 + $0x14c] ss:$52 sps:$4 sm:$0xff]  }
  0xac   :  { %2419 = vmatpush1.bf16.msra.mxu0 %v4585_v30  ;;  %2111 = vmatprep.subr.bf16.mxu1 %v3724_v33  ;;  %v3801_v33 = vld [vmem:[%s5042_s0 + $0x148] ss:$52 sps:$4 sm:$0xff]  }
  0xad   :  { %2420 = vmatprep.subr.bf16.mxu0 %v4598_v34  ;;  %2387 = vmatprep.mubr.bf16.mxu0 %v3730_v36  ;;  %v3808_v36 = vld [vmem:[%s5041_s1 + $0x674] ss:$8 sps:$4 sm:$0xff]  }
  0xae   :  { %2078 = vmatprep.mubr.bf16.mxu1 %v3746_v38  ;;  %v3809_v38 = vld [vmem:[%s5042_s0 + $0x1b4] ss:$52 sps:$4 sm:$0xff]  }
  0xaf   :  { %2112 = vmatpush1.bf16.msra.mxu1 %v3722_v39  ;;  %v3811_v39 = vld [vmem:[%s5042_s0 + $0x1b0] ss:$52 sps:$4 sm:$0xff]  }
  0xb0   :  { %2421 = vmatpush1.bf16.msra.mxu0 %v4613_v40  ;;  %2113 = vmatprep.subr.bf16.mxu1 %v3735_v42  ;;  %v3812_v42 = vld [vmem:[%s5042_s0 + $0x30] ss:$52 sps:$4 sm:$0xff]  }
  0xb1   :  { %2422 = vmatprep.subr.bf16.mxu0 %v4622_v44 }
  0xb2   :  { %2079 = vmatmul.mubr.bf16.gmra.mrb[24].mxu1 %v3748_v50  ;;  %v3833_v50 = vld [vmem:[%s5042_s0 + $0x2a0] ss:$52 sps:$4 sm:$0xff]  }
  0xb3   :  { %2388 = vmatmul.mubr.bf16.gmra.mrb[24].mxu0 %v3736_v46  ;;  %2114 = vmatpush1.bf16.msra.mxu1 %v3733_v45  ;;  %v3829_v45 = vld [vmem:[%s5042_s0 + $0x238] ss:$52 sps:$4 sm:$0xff]   ;;  %v3830_v46 = vld [vmem:[%s5042_s0 + $0x29c] ss:$52 sps:$4 sm:$0xff]  }
  0xb4   :  { %2423 = vmatpush1.bf16.msra.mxu0 %v4633_v48  ;;  %2115 = vmatprep.subr.bf16.mxu1 %v3742_v51 }
  0xb5   :  { %2424 = vmatprep.subr.bf16.mxu0 %v4646_v52  ;;  %2121 = vmatprep.mubr.bf16.mxu1 %v3763_v54 }
  0xb6   :  { %2430 = vmatprep.mubr.bf16.mxu0 %v3766_v56 }
  0xb7   :  { %2116 = vmatpush1.bf16.msra.mxu1 %v3740_v57 }
  0xb8   :  { %2425 = vmatpush1.bf16.msra.mxu0 %v4660_v58  ;;  %2117 = vmatprep.subr.bf16.mxu1 %v3751_v60 }
  0xb9   :  { %2426 = vmatprep.subr.bf16.mxu0 %v4670_v62 }
  0xbb   :  { %2118 = vmatpush1.bf16.msra.mxu1 %v3749_v63 }
  0xbc   :  { %2427 = vmatpush1.bf16.msra.mxu0 %v4678_v0  ;;  %2119 = vmatprep.subr.bf16.mxu1 %v3757_v2 }
  0xbd   :  { %2428 = vmatprep.subr.bf16.mxu0 %v4688_v4 }
  0xbf   :  { %2120 = vmatpush1.bf16.msra.mxu1 %v3755_v5 }
  0xc0   :  { %2429 = vmatpush1.bf16.msra.mxu0 %v4697_v6  ;;  %3188 = vmatprep.subr.bf16.mxu1 %v4335_v31  ;;  %v3781_v31 = vld [vmem:[%s5041_s1 + $0x624] ss:$8 sps:$4 sm:$0xff]  }
  0xc1   :  { %2501 = vmatprep.subr.bf16.mxu0 %v3769_v8 }
  0xc2   :  { %2122 = vmatmul.mubr.bf16.vlgmr.msra.gmra.mrb[0].mxu1 %v3761_v10 }
  0xc3   :  { %2431 = vmatmul.mubr.bf16.vlgmr.msra.gmra.mrb[0].mxu0 %v3764_v11  ;;  %3204 = vmatpush1.bf16.msra.mxu1 %v4349_v35  ;;  %v3778_v35 = vld [vmem:[%s5042_s0 + $0x90] ss:$52 sps:$4 sm:$0xff]  }
  0xc4   :  { %2502 = vmatpush1.bf16.msra.mxu0 %v3767_v12  ;;  %3189 = vmatprep.subr.bf16.mxu1 %v4358_v37  ;;  %v3779_v37 = vld [vmem:[%s5041_s1 + $0x620] ss:$8 sps:$4 sm:$0xff]  }
  0xc5   :  { %2503 = vmatprep.subr.bf16.mxu0 %v3772_v14  ;;  %2131 = vmatprep.mubr.bf16.mxu1 %v3773_v16 }
  0xc6   :  { %2440 = vmatprep.mubr.bf16.mxu0 %v3775_v17 }
  0xc7   :  { %3205 = vmatpush1.bf16.msra.mxu1 %v4372_v41  ;;  %v3787_v41 = vld [vmem:[%s5042_s0 + $0xfc] ss:$52 sps:$4 sm:$0xff]  }
  0xc8   :  { %2504 = vmatpush1.bf16.msra.mxu0 %v3770_v19  ;;  %3190 = vmatprep.subr.bf16.mxu1 %v4382_v43  ;;  %v3782_v43 = vld [vmem:[%s5041_s1 + $0x630] ss:$8 sps:$4 sm:$0xff]  }
  0xc9   :  { %2505 = vmatprep.subr.bf16.mxu0 %v3781_v31 }
  0xca   :  { %2132 = vmatmul.mubr.bf16.gmra.mrb[4].mxu1 %v3777_v20 }
  0xcb   :  { %2441 = vmatmul.mubr.bf16.gmra.mrb[4].mxu0 %v3778_v35  ;;  %3206 = vmatpush1.bf16.msra.mxu1 %v4397_v47  ;;  %v3790_v47 = vld [vmem:[%s5042_s0 + $0xf8] ss:$52 sps:$4 sm:$0xff]   ;;  %v2693_v35 = vlaneseq }
  0xcc   :  { %2506 = vmatpush1.bf16.msra.mxu0 %v3779_v37  ;;  %3191 = vmatprep.subr.bf16.mxu1 %v4406_v49  ;;  %v3791_v49 = vld [vmem:[%s5041_s1 + $0x640] ss:$8 sps:$4 sm:$0xff]  }
  0xcd   :  { %2507 = vmatprep.subr.bf16.mxu0 %v3784_v22  ;;  %2141 = vmatprep.mubr.bf16.mxu1 %v3785_v23  ;;  %v2694_v37 = vshrl.u32 %v2693_v35, 7 }
  0xce   :  { %2450 = vmatprep.mubr.bf16.mxu0 %v3787_v41 }
  0xcf   :  { %3207 = vmatpush1.bf16.msra.mxu1 %v4420_v53  ;;  %v3799_v53 = vld [vmem:[%s5042_s0 + $0x164] ss:$52 sps:$4 sm:$0xff]  }
  0xd0   :  { %2508 = vmatpush1.bf16.msra.mxu0 %v3782_v43  ;;  %3192 = vmatprep.subr.bf16.mxu1 %v4430_v55  ;;  %v3794_v55 = vld [vmem:[%s5041_s1 + $0x650] ss:$8 sps:$4 sm:$0xff]  }
  0xd1   :  { %2509 = vmatprep.subr.bf16.mxu0 %v3793_v24  ;;  %v2695_v24 = vsub.s32 0, %v2694_v37 }
  0xd2   :  { %2142 = vmatmul.mubr.bf16.gmra.mrb[8].mxu1 %v3789_v26  ;;  %v2691_v26 = vld [vmem:[%s5043_s2] sm:$0x3] }
  0xd3   :  { %2451 = vmatmul.mubr.bf16.gmra.mrb[8].mxu0 %v3790_v47  ;;  %3208 = vmatpush1.bf16.msra.mxu1 %v4445_v59  ;;  %v3802_v59 = vld [vmem:[%s5042_s0 + $0x160] ss:$52 sps:$4 sm:$0xff]   ;;  %v2699_v47 = vsub.s32 1, %v2694_v37 }
  0xd4   :  { %2510 = vmatpush1.bf16.msra.mxu0 %v3791_v49  ;;  %3193 = vmatprep.subr.bf16.mxu1 %v4454_v61  ;;  %v3803_v61 = vld [vmem:[%s5041_s1 + $0x660] ss:$8 sps:$4 sm:$0xff]   ;;  %v4915_v49 = vrot.slane %v2691_v26, %v2695_v24 }
  0xd5   :  { %2511 = vmatprep.subr.bf16.mxu0 %v3796_v28  ;;  %2151 = vmatprep.mubr.bf16.mxu1 %v3797_v29 }
  0xd6   :  { %2460 = vmatprep.mubr.bf16.mxu0 %v3799_v53  ;;  %v4917_v53 = vrot.slane %v2691_v26, %v2699_v47 }
  0xd7   :  { %3209 = vmatpush1.bf16.msra.mxu1 %v4468_v1  ;;  %v3806_v1 = vld [vmem:[%s5041_s1 + $0x670] ss:$8 sps:$4 sm:$0xff]  }
  0xd8   :  { %2512 = vmatpush1.bf16.msra.mxu0 %v3794_v55  ;;  %3194 = vmatprep.subr.bf16.mxu1 %v4478_v3  ;;  %v3834_v3 = vmov 0  }
  0xd9   :  { %2513 = vmatprep.subr.bf16.mxu0 %v3805_v32 }
  0xda   :  { %2152 = vmatmul.mubr.bf16.gmra.mrb[12].mxu1 %v3801_v33 }
  0xdb   :  { %2461 = vmatmul.mubr.bf16.gmra.mrb[12].mxu0 %v3802_v59  ;;  %3210 = vmatpush1.bf16.msra.mxu1 %v4493_v7  ;;  %v3813_v7 = vld [vmem:[%s5042_s0 + $0x21c] ss:$52 sps:$4 sm:$0xff]  }
  0xdc   :  { %2514 = vmatpush1.bf16.msra.mxu0 %v3803_v61  ;;  %3195 = vmatprep.subr.bf16.mxu1 %v4502_v9  ;;  %v3815_v9 = vld [vmem:[%s5042_s0 + $0x218] ss:$52 sps:$4 sm:$0xff]  }
  0xdd   :  { %2515 = vmatprep.subr.bf16.mxu0 %v3808_v36  ;;  %2161 = vmatprep.mubr.bf16.mxu1 %v3809_v38 }
  0xde   :  { %2533 = vmatprep.mubr.bf16.mxu0 %v3834_v3 }
  0xdf   :  { %3211 = vmatpush1.bf16.msra.mxu1 %v4516_v13  ;;  %v3816_v13 = vld [vmem:[%s5042_s0 + $0x98] ss:$52 sps:$4 sm:$0xff]  }
  0xe0   :  { %2516 = vmatpush1.bf16.msra.mxu0 %v3806_v1  ;;  %3196 = vmatprep.subr.bf16.mxu1 %v4526_v15  ;;  %v3817_v15 = vld [vmem:[%s5042_s0 + $0x284] ss:$52 sps:$4 sm:$0xff]  }
  0xe2   :  { %2162 = vmatmul.mubr.bf16.gmra.mrb[16].mxu1 %v3811_v39 }
  0xe3   :  { %2534 = vmatmul.mubr.bf16.vlgmr.msra.gmra.mrb[0].mxu0 %v3812_v42  ;;  %3212 = vmatpush1.bf16.msra.mxu1 %v4537_v18  ;;  %v3819_v18 = vld [vmem:[%s5042_s0 + $0x280] ss:$52 sps:$4 sm:$0xff]  }
  0xe4   :  { %2171 = vmatprep.mubr.bf16.mxu1 %v3813_v7  ;;  %3197 = vmatprep.subr.bf16.mxu1 %v4550_v21  ;;  %v3820_v21 = vld [vmem:[%s5042_s0 + $0x100] ss:$52 sps:$4 sm:$0xff]  }
  0xe5   :  { %2543 = vmatprep.mubr.bf16.mxu0 %v3834_v3 }
  0xe7   :  { %3213 = vmatpush1.bf16.msra.mxu1 %v4564_v25  ;;  %v3824_v25 = vld [vmem:[%s5042_s0 + $0x1cc] ss:$52 sps:$4 sm:$0xff]  }
  0xe8   :  { %3198 = vmatprep.subr.bf16.mxu1 %v4574_v27  ;;  %v3821_v27 = vld [vmem:[%s5042_s0 + $0x168] ss:$52 sps:$4 sm:$0xff]  }
  0xea   :  { %2172 = vmatmul.mubr.bf16.gmra.mrb[20].mxu1 %v3815_v9 }
  0xeb   :  { %2544 = vmatmul.mubr.bf16.gmra.mrb[4].mxu0 %v3816_v13  ;;  %3214 = vmatpush1.bf16.msra.mxu1 %v4585_v30  ;;  %v3822_v30 = vld [vmem:[%s5042_s0 + $0x1c8] ss:$52 sps:$4 sm:$0xff]  }
  0xec   :  { %2181 = vmatprep.mubr.bf16.mxu1 %v3817_v15  ;;  %3199 = vmatprep.subr.bf16.mxu1 %v4598_v34  ;;  %v3825_v34 = vld [vmem:[%s5042_s0 + $0x1d0] ss:$52 sps:$4 sm:$0xff]  }
  0xed   :  { %2553 = vmatprep.mubr.bf16.mxu0 %v3834_v3 }
  0xef   :  { %3215 = vmatpush1.bf16.msra.mxu1 %v4613_v40  ;;  %v3826_v40 = vld [vmem:[%s5042_s0 + $0x234] ss:$52 sps:$4 sm:$0xff]  }
  0xf0   :  { %3200 = vmatprep.subr.bf16.mxu1 %v4622_v44  ;;  %v3828_v44 = vld [vmem:[%s5042_s0 + $0x230] ss:$52 sps:$4 sm:$0xff]  }
  0xf2   :  { %2182 = vmatmul.mubr.bf16.gmra.mrb[24].mxu1 %v3819_v18 }
  0xf3   :  { %2554 = vmatmul.mubr.bf16.gmra.mrb[8].mxu0 %v3820_v21  ;;  %3216 = vmatpush1.bf16.msra.mxu1 %v4633_v48  ;;  %v3832_v48 = vld [vmem:[%s5042_s0 + $0x298] ss:$52 sps:$4 sm:$0xff]  }
  0xf4   :  { %2563 = vmatprep.mubr.bf16.mxu0 %v3834_v3  ;;  %3201 = vmatprep.subr.bf16.mxu1 %v4646_v52 }
  0xf5   :  { %2470 = vmatprep.mubr.bf16.mxu1 %v3824_v25 }
  0xf7   :  { %3217 = vmatpush1.bf16.msra.mxu1 %v4660_v58 }
  0xf8   :  { %3202 = vmatprep.subr.bf16.mxu1 %v4670_v62 }
  0xfb   :  { %2564 = vmatmul.mubr.bf16.gmra.mrb[12].mxu0 %v3821_v27  ;;  %3218 = vmatpush1.bf16.msra.mxu1 %v4678_v0 }
  0xfc   :  { %2573 = vmatprep.mubr.bf16.mxu0 %v3834_v3  ;;  %3203 = vmatprep.subr.bf16.mxu1 %v4688_v4 }
  0xff   :  { %3219 = vmatpush1.bf16.msra.mxu1 %v4697_v6 }
 0x102   :  { %2471 = vmatmul.mubr.bf16.vlgmr.msra.gmra.mrb[28].mxu1 %v3822_v30 }
 0x103   :  { %2574 = vmatmul.mubr.bf16.gmra.mrb[28].mxu0 %v3825_v34  ;;  %2480 = vmatprep.mubr.bf16.mxu1 %v3826_v40 }
 0x104   :  { %2583 = vmatprep.mubr.bf16.mxu0 %v3834_v3 }
 0x10a   :  { %2481 = vmatmul.mubr.bf16.gmra.mrb[32].mxu1 %v3828_v44 }
 0x10b   :  { %2584 = vmatmul.mubr.bf16.gmra.mrb[32].mxu0 %v3829_v45  ;;  %2490 = vmatprep.mubr.bf16.mxu1 %v3830_v46 }
 0x10c   :  { %2593 = vmatprep.mubr.bf16.mxu0 %v3834_v3 }
 0x112   :  { %2491 = vmatmul.mubr.bf16.gmra.mrb[36].mxu1 %v3832_v48 }
 0x113   :  { %2594 = vmatmul.mubr.bf16.gmra.mrb[36].mxu0 %v3833_v50 }
 0x176   :  { %v2369_v51 = vpop.f32.mrb[16].mxu0 }
 0x177   :  { %v2371_v52 = vpop.f32.mrb[17].mxu0 }
 0x178   :  { %v2373_v54 = vpop.f32.mrb[18].mxu0 }
 0x179   :  { %v2375_v56 = vpop.f32.mrb[19].mxu0 }
 0x17e   :  { %v2379_v57 = vpop.f32.mrb[20].mxu0 }
 0x17f   :  { %v4880_v58 = vpop.f32.mrb[21].mxu0 }
 0x180   :  { %v4882_v60 = vpop.f32.mrb[22].mxu0 }
 0x181   :  { %v4884_v62 = vpop.f32.mrb[23].mxu0 }
 0x186   :  { %v4886_v63 = vpop.f32.mrb[24].mxu0 }
 0x187   :  { %v4888_v0 = vpop.f32.mrb[25].mxu0 }
 0x188   :  { %v4890_v2 = vpop.f32.mrb[26].mxu0 }
 0x189   :  { %v4892_v4 = vpop.f32.mrb[27].mxu0 }
 0x195   :  { %v2123_v5 = vpop.f32.mrb[0].mxu1 }
 0x196   :  { %v2125_v6 = vpop.f32.mrb[1].mxu1 }
 0x197   :  { %v2127_v8 = vpop.f32.mrb[2].mxu1 }
 0x198   :  { %v2129_v10 = vpop.f32.mrb[3].mxu1 }
 0x19d   :  { %v2133_v11 = vpop.f32.mrb[4].mxu1 }
 0x19e   :  { %v2135_v12 = vpop.f32.mrb[5].mxu1 }
 0x19f   :  { %v2137_v14 = vpop.f32.mrb[6].mxu1 }
 0x1a0   :  { %v4894_v16 = vpop.f32.mrb[7].mxu1 }
 0x1a5   :  { %v4896_v17 = vpop.f32.mrb[8].mxu1 }
 0x1a6   :  { %v4898_v19 = vpop.f32.mrb[9].mxu1 }
 0x1a7   :  { %v4900_v31 = vpop.f32.mrb[10].mxu1 }
 0x1a8   :  { %v4902_v20 = vpop.f32.mrb[11].mxu1 }
 0x1ad   :  { %v4904_v22 = vpop.f32.mrb[12].mxu1 }
 0x1ae   :  { %v4906_v23 = vpop.f32.mrb[13].mxu1 }
 0x1af   :  { %v4908_v41 = vpop.f32.mrb[14].mxu1 }
 0x1b0   :  { %v4910_v43 = vpop.f32.mrb[15].mxu1 }
 0x1b5   :  { %v2163_v28 = vpop.f32.mrb[16].mxu1 }
 0x1b6   :  { %v2535_v29 = vpop.f32.mrb[0].mxu0  ;;  %v4919_v55 = vadd.f32 %v2369_v51, %v2163_v28  ;;  %v2165_v33 = vpop.f32.mrb[17].mxu1 }
 0x1b7   :  { %v3220_v32 = vadd.f32 %v2535_v29, %v2123_v5  ;;  %v2537_v59 = vpop.f32.mrb[1].mxu0  ;;  %v4921_v61 = vadd.f32 %v2371_v52, %v2165_v33  ;;  %v2167_v38 = vpop.f32.mrb[18].mxu1 }
 0x1b8   :  { %v3221_v36 = vadd.f32 %v2537_v59, %v2125_v6  ;;  %v2539_v1 = vpop.f32.mrb[2].mxu0  ;;  %v4924_v39 = vadd.f32 %v2373_v54, %v2167_v38  ;;  %v2169_v7 = vpop.f32.mrb[19].mxu1 }
 0x1b9   :  { %v2703_v3 = vadd.f32 %v3220_v32, %v4915_v49  ;;  %v3222_v42 = vadd.f32 %v2539_v1, %v2127_v8  ;;  %v2541_v9 = vpop.f32.mrb[3].mxu0  ;;  %v4927_v15 = vadd.f32 %v2375_v56, %v2169_v7 }
 0x1ba   :  { %v2704_v13 = vadd.f32 %v3221_v36, %v4917_v53  ;;  %v3223_v18 = vadd.f32 %v2541_v9, %v2129_v10 }
 0x1bb   :  { %v2731_v21 = vmax.f32 %v2703_v3, 0.0  ;;  %v2705_v25 = vadd.f32 %v3222_v42, %v4915_v49 }
 0x1bc   :  { %v2732_v27 = vmax.f32 %v2704_v13, 0.0  ;;  %v2706_v30 = vadd.f32 %v3223_v18, %v4917_v53 }
 0x1bd   :  { %v2733_v34 = vmax.f32 %v2705_v25, 0.0  ;;  %v2173_v45 = vpop.f32.mrb[20].mxu1 }
 0x1be   :  { %v3174_v40 = vpack.c.bf16 %v2732_v27, %v2731_v21  ;;  %v2734_v44 = vmax.f32 %v2706_v30, 0.0  ;;  %v2545_v46 = vpop.f32.mrb[4].mxu0  ;;  %v4931_v48 = vadd.f32 %v2379_v57, %v2173_v45  ;;  %v2175_v51 = vpop.f32.mrb[21].mxu1 }
 0x1bf   :  { %v3224_v50 = vadd.f32 %v2545_v46, %v2133_v11  ;;  %v2547_v52 = vpop.f32.mrb[5].mxu0  ;;  %v4937_v56 = vadd.f32 %v4880_v58, %v2175_v51  ;;  %v2177_v6 = vpop.f32.mrb[22].mxu1 }
 0x1c0   :  { %2843 = vst [vmem:[%s5044_s3] sm:$0xff] %v3174_v40  ;;  %v3175_v54 = vpack.c.bf16 %v2734_v44, %v2733_v34  ;;  %v3225_v5 = vadd.f32 %v2547_v52, %v2135_v12  ;;  %v2549_v8 = vpop.f32.mrb[6].mxu0  ;;  %v4941_v35 = vadd.f32 %v4882_v60, %v2177_v6  ;;  %v2179_v11 = vpop.f32.mrb[23].mxu1 }
 0x1c1   :  { %v2707_v10 = vadd.f32 %v3224_v50, %v4915_v49  ;;  %v3226_v57 = vadd.f32 %v2549_v8, %v2137_v14  ;;  %v2551_v37 = vpop.f32.mrb[7].mxu0  ;;  %v4948_v58 = vadd.f32 %v4884_v62, %v2179_v11 }
 0x1c2   :  { %2844 = vst [vmem:[%s5044_s3 + $0x8] sm:$0xff] %v3175_v54  ;;  %v2708_v24 = vadd.f32 %v3225_v5, %v4917_v53  ;;  %v3227_v12 = vadd.f32 %v2551_v37, %v4894_v16 }
 0x1c3   :  { %v2735_v26 = vmax.f32 %v2707_v10, 0.0  ;;  %v2709_v47 = vadd.f32 %v3226_v57, %v4915_v49 }
 0x1c4   :  { %v2736_v28 = vmax.f32 %v2708_v24, 0.0  ;;  %v2710_v60 = vadd.f32 %v3227_v12, %v4917_v53 }
 0x1c5   :  { %v2737_v14 = vmax.f32 %v2709_v47, 0.0  ;;  %v2183_v33 = vpop.f32.mrb[24].mxu1 }
 0x1c6   :  { %v3176_v29 = vpack.c.bf16 %v2736_v28, %v2735_v26  ;;  %v2738_v32 = vmax.f32 %v2710_v60, 0.0  ;;  %v2555_v59 = vpop.f32.mrb[8].mxu0  ;;  %v4954_v36 = vadd.f32 %v4886_v63, %v2183_v33  ;;  %v2185_v62 = vpop.f32.mrb[25].mxu1 }
 0x1c7   :  { %v3228_v38 = vadd.f32 %v2555_v59, %v4896_v17  ;;  %v2557_v1 = vpop.f32.mrb[9].mxu0  ;;  %v4961_v3 = vadd.f32 %v4888_v0, %v2185_v62  ;;  %v2187_v7 = vpop.f32.mrb[26].mxu1 }
 0x1c8   :  { %2845 = vst [vmem:[%s5044_s3 + $0x10] sm:$0xff] %v3176_v29  ;;  %v3177_v16 = vpack.c.bf16 %v2738_v32, %v2737_v14  ;;  %v3229_v42 = vadd.f32 %v2557_v1, %v4898_v19  ;;  %v2559_v9 = vpop.f32.mrb[10].mxu0  ;;  %v4966_v63 = vadd.f32 %v4890_v2, %v2187_v7  ;;  %v2189_v18 = vpop.f32.mrb[27].mxu1 }
 0x1c9   :  { %v2711_v13 = vadd.f32 %v3228_v38, %v4915_v49  ;;  %v3230_v17 = vadd.f32 %v2559_v9, %v4900_v31  ;;  %v2561_v21 = vpop.f32.mrb[11].mxu0  ;;  %v4974_v25 = vadd.f32 %v4892_v4, %v2189_v18 }
 0x1ca   :  { %2846 = vst [vmem:[%s5044_s3 + $0x18] sm:$0xff] %v3177_v16  ;;  %v2712_v0 = vadd.f32 %v3229_v42, %v4917_v53  ;;  %v3231_v19 = vadd.f32 %v2561_v21, %v4902_v20 }
 0x1cb   :  { %v2739_v27 = vmax.f32 %v2711_v13, 0.0  ;;  %v2713_v30 = vadd.f32 %v3230_v17, %v4915_v49 }
 0x1cc   :  { %v2740_v2 = vmax.f32 %v2712_v0, 0.0  ;;  %v2714_v34 = vadd.f32 %v3231_v19, %v4917_v53 }
 0x1cd   :  { %v2741_v31 = vmax.f32 %v2713_v30, 0.0 }
 0x1ce   :  { %v3178_v40 = vpack.c.bf16 %v2740_v2, %v2739_v27  ;;  %v2742_v44 = vmax.f32 %v2714_v34, 0.0  ;;  %v2565_v45 = vpop.f32.mrb[12].mxu0 }
 0x1cf   :  { %v3232_v46 = vadd.f32 %v2565_v45, %v4904_v22  ;;  %v2567_v50 = vpop.f32.mrb[13].mxu0 }
 0x1d0   :  { %2847 = vst [vmem:[%s5044_s3 + $0x20] sm:$0xff] %v3178_v40  ;;  %v3179_v4 = vpack.c.bf16 %v2742_v44, %v2741_v31  ;;  %v3233_v20 = vadd.f32 %v2567_v50, %v4906_v23  ;;  %v2569_v51 = vpop.f32.mrb[14].mxu0 }
 0x1d1   :  { %v2715_v52 = vadd.f32 %v3232_v46, %v4915_v49  ;;  %v3234_v54 = vadd.f32 %v2569_v51, %v4908_v41  ;;  %v2571_v5 = vpop.f32.mrb[15].mxu0 }
 0x1d2   :  { %2848 = vst [vmem:[%s5044_s3 + $0x28] sm:$0xff] %v3179_v4  ;;  %v2716_v22 = vadd.f32 %v3233_v20, %v4917_v53  ;;  %v3235_v6 = vadd.f32 %v2571_v5, %v4910_v43 }
 0x1d3   :  { %v2743_v8 = vmax.f32 %v2715_v52, 0.0  ;;  %v2717_v10 = vadd.f32 %v3234_v54, %v4915_v49 }
 0x1d4   :  { %v2744_v57 = vmax.f32 %v2716_v22, 0.0  ;;  %v2718_v23 = vadd.f32 %v3235_v6, %v4917_v53 }
 0x1d5   :  { %v2745_v11 = vmax.f32 %v2717_v10, 0.0  ;;  %v2472_v12 = vpop.f32.mrb[28].mxu1 }
 0x1d6   :  { %v3180_v37 = vpack.c.bf16 %v2744_v57, %v2743_v8  ;;  %v2746_v24 = vmax.f32 %v2718_v23, 0.0  ;;  %v2575_v41 = vpop.f32.mrb[28].mxu0  ;;  %v3237_v26 = vadd.f32 %v4919_v55, %v2472_v12  ;;  %v2474_v47 = vpop.f32.mrb[29].mxu1 }
 0x1d7   :  { %v2577_v28 = vpop.f32.mrb[29].mxu0  ;;  %v3240_v60 = vadd.f32 %v4921_v61, %v2474_v47  ;;  %v2476_v14 = vpop.f32.mrb[30].mxu1 }
 0x1d8   :  { %2849 = vst [vmem:[%s5044_s3 + $0x30] sm:$0xff] %v3180_v37  ;;  %v3181_v43 = vpack.c.bf16 %v2746_v24, %v2745_v11  ;;  %v2579_v29 = vpop.f32.mrb[30].mxu0  ;;  %v3238_v32 = vadd.f32 %v3237_v26, %v2575_v41  ;;  %v3243_v33 = vadd.f32 %v4924_v39, %v2476_v14  ;;  %v2478_v59 = vpop.f32.mrb[31].mxu1 }
 0x1d9   :  { %v2581_v38 = vpop.f32.mrb[31].mxu0  ;;  %v3241_v55 = vadd.f32 %v3240_v60, %v2577_v28  ;;  %v3246_v62 = vadd.f32 %v4927_v15, %v2478_v59 }
 0x1da   :  { %2850 = vst [vmem:[%s5044_s3 + $0x38] sm:$0xff] %v3181_v43  ;;  %v2719_v1 = vadd.f32 %v3238_v32, %v4915_v49  ;;  %v3244_v16 = vadd.f32 %v3243_v33, %v2579_v29 }
 0x1db   :  { %v2720_v42 = vadd.f32 %v3241_v55, %v4917_v53  ;;  %v3247_v61 = vadd.f32 %v3246_v62, %v2581_v38 }
 0x1dc   :  { %v2747_v7 = vmax.f32 %v2719_v1, 0.0  ;;  %v2721_v9 = vadd.f32 %v3244_v16, %v4915_v49 }
 0x1dd   :  { %v2748_v13 = vmax.f32 %v2720_v42, 0.0  ;;  %v2722_v39 = vadd.f32 %v3247_v61, %v4917_v53  ;;  %v2482_v17 = vpop.f32.mrb[32].mxu1 }
 0x1de   :  { %v2585_v18 = vpop.f32.mrb[32].mxu0  ;;  %v2749_v21 = vmax.f32 %v2721_v9, 0.0  ;;  %v3249_v0 = vadd.f32 %v4931_v48, %v2482_v17  ;;  %v2484_v19 = vpop.f32.mrb[33].mxu1 }
 0x1df   :  { %v2587_v27 = vpop.f32.mrb[33].mxu0  ;;  %v3182_v15 = vpack.c.bf16 %v2748_v13, %v2747_v7  ;;  %v2750_v30 = vmax.f32 %v2722_v39, 0.0  ;;  %v3252_v2 = vadd.f32 %v4937_v56, %v2484_v19  ;;  %v2486_v34 = vpop.f32.mrb[34].mxu1 }
 0x1e0   :  { %v2589_v31 = vpop.f32.mrb[34].mxu0  ;;  %v3250_v40 = vadd.f32 %v3249_v0, %v2585_v18  ;;  %v3255_v44 = vadd.f32 %v4941_v35, %v2486_v34  ;;  %v2488_v45 = vpop.f32.mrb[35].mxu1 }
 0x1e1   :  { %v2591_v46 = vpop.f32.mrb[35].mxu0  ;;  %2851 = vst [vmem:[%s5044_s3 + $0x40] sm:$0xff] %v3182_v15  ;;  %v3183_v50 = vpack.c.bf16 %v2750_v30, %v2749_v21  ;;  %v3253_v4 = vadd.f32 %v3252_v2, %v2587_v27  ;;  %v3258_v48 = vadd.f32 %v4948_v58, %v2488_v45 }
 0x1e2   :  { %v2723_v20 = vadd.f32 %v3250_v40, %v4915_v49  ;;  %v3256_v51 = vadd.f32 %v3255_v44, %v2589_v31 }
 0x1e3   :  { %2852 = vst [vmem:[%s5044_s3 + $0x48] sm:$0xff] %v3183_v50  ;;  %v2724_v56 = vadd.f32 %v3253_v4, %v4917_v53  ;;  %v3259_v35 = vadd.f32 %v3258_v48, %v2591_v46 }
 0x1e4   :  { %v2751_v52 = vmax.f32 %v2723_v20, 0.0  ;;  %v2725_v54 = vadd.f32 %v3256_v51, %v4915_v49 }
 0x1e5   :  { %v2752_v5 = vmax.f32 %v2724_v56, 0.0  ;;  %v2726_v22 = vadd.f32 %v3259_v35, %v4917_v53  ;;  %v2492_v6 = vpop.f32.mrb[36].mxu1 }
 0x1e6   :  { %v2595_v8 = vpop.f32.mrb[36].mxu0  ;;  %v2753_v10 = vmax.f32 %v2725_v54, 0.0  ;;  %v3261_v58 = vadd.f32 %v4954_v36, %v2492_v6  ;;  %v2494_v57 = vpop.f32.mrb[37].mxu1 }
 0x1e7   :  { %v2597_v23 = vpop.f32.mrb[37].mxu0  ;;  %v3184_v11 = vpack.c.bf16 %v2752_v5, %v2751_v52  ;;  %v2754_v37 = vmax.f32 %v2726_v22, 0.0  ;;  %v3264_v24 = vadd.f32 %v4961_v3, %v2494_v57  ;;  %v2496_v12 = vpop.f32.mrb[38].mxu1 }
 0x1e8   :  { %v2599_v41 = vpop.f32.mrb[38].mxu0  ;;  %v3262_v26 = vadd.f32 %v3261_v58, %v2595_v8  ;;  %v3267_v47 = vadd.f32 %v4966_v63, %v2496_v12  ;;  %v2498_v28 = vpop.f32.mrb[39].mxu1 }
 0x1e9   :  { %v2601_v43 = vpop.f32.mrb[39].mxu0  ;;  %2853 = vst [vmem:[%s5044_s3 + $0x50] sm:$0xff] %v3184_v11  ;;  %v3185_v60 = vpack.c.bf16 %v2754_v37, %v2753_v10  ;;  %v3265_v14 = vadd.f32 %v3264_v24, %v2597_v23  ;;  %v3270_v36 = vadd.f32 %v4974_v25, %v2498_v28 }
 0x1ea   :  { %v2727_v29 = vadd.f32 %v3262_v26, %v4915_v49  ;;  %v3268_v32 = vadd.f32 %v3267_v47, %v2599_v41 }
 0x1eb   :  { %2854 = vst [vmem:[%s5044_s3 + $0x58] sm:$0xff] %v3185_v60  ;;  %v2728_v3 = vadd.f32 %v3265_v14, %v4917_v53  ;;  %v3271_v63 = vadd.f32 %v3270_v36, %v2601_v43 }
 0x1ec   :  { %v2755_v33 = vmax.f32 %v2727_v29, 0.0  ;;  %v2729_v59 = vadd.f32 %v3268_v32, %v4915_v49 }
 0x1ed   :  { %v2756_v38 = vmax.f32 %v2728_v3, 0.0  ;;  %v2730_v55 = vadd.f32 %v3271_v63, %v4917_v53 }
 0x1ee   :  { %v2757_v62 = vmax.f32 %v2729_v59, 0.0 }
 0x1ef   :  { %v3186_v1 = vpack.c.bf16 %v2756_v38, %v2755_v33  ;;  %v2758_v16 = vmax.f32 %v2730_v55, 0.0 }
 0x1f1   :  { %2855 = vst [vmem:[%s5044_s3 + $0x60] sm:$0xff] %v3186_v1  ;;  %v3187_v25 = vpack.c.bf16 %v2758_v16, %v2757_v62 }
 0x1f3   :  { %2856 = vst [vmem:[%s5044_s3 + $0x68] sm:$0xff] %v3187_v25 }

// kernel: my_alexnet_forward.10
= control target key start
LH: loop header
LB: loop body
LE: loop exit
PB: predicated region body
PF: predicated region fallthrough
CT: control target
= control target key end

     0   :  { %s5704_s1 = inlined_call_operand.vmem [shape: bf16[1792,384], index: 1, kind: input, shape index: {}]   ;;  %s5705_s0 = inlined_call_operand.vmem [shape: bf16[32,1792], index: 0, kind: input, shape index: {}]   ;;  %s5706_s2 = inlined_call_operand.vmem [shape: f32[1,384], index: 2, kind: input, shape index: {}]   ;;  %s5707_s3 = inlined_call_operand.vmem [shape: bf16[32,384], index: 3, kind: output, shape index: {}]  }
   0x1   :  { %v3937_v0 = vld [vmem:[%s5704_s1 + $0x4] ss:$12 sps:$4 sm:$0xff]   ;;  %v3941_v2 = vld [vmem:[%s5704_s1] ss:$12 sps:$4 sm:$0xff]   ;;  %v3943_v4 = vld [vmem:[%s5704_s1 + $0x1c] ss:$12 sps:$4 sm:$0xff]  }
   0x2   :  { %v3939_v1 = vld [vmem:[%s5704_s1 + $0x304] ss:$12 sps:$4 sm:$0xff]   ;;  %2451 = vmatprep.subr.bf16.mxu1 %v3937_v0  ;;  %v3942_v3 = vld [vmem:[%s5704_s1 + $0x300] ss:$12 sps:$4 sm:$0xff]   ;;  %v3945_v5 = vld [vmem:[%s5704_s1 + $0x31c] ss:$12 sps:$4 sm:$0xff]  }
   0x3   :  { %2557 = vmatprep.subr.bf16.mxu0 %v3939_v1  ;;  %2452 = vmatpush1.bf16.msra.mxu1 %v3941_v2  ;;  %v3947_v6 = vld [vmem:[%s5704_s1 + $0x18] ss:$12 sps:$4 sm:$0xff]   ;;  %v3949_v8 = vld [vmem:[%s5704_s1 + $0x34] ss:$12 sps:$4 sm:$0xff]   ;;  %v3953_v10 = vld [vmem:[%s5704_s1 + $0x30] ss:$12 sps:$4 sm:$0xff]  }
   0x4   :  { %2558 = vmatpush1.bf16.msra.mxu0 %v3942_v3  ;;  %2453 = vmatprep.subr.bf16.mxu1 %v3943_v4  ;;  %v3948_v7 = vld [vmem:[%s5704_s1 + $0x318] ss:$12 sps:$4 sm:$0xff]   ;;  %v3951_v9 = vld [vmem:[%s5704_s1 + $0x334] ss:$12 sps:$4 sm:$0xff]   ;;  %v3954_v11 = vld [vmem:[%s5704_s1 + $0x330] ss:$12 sps:$4 sm:$0xff]  }
   0x5   :  { %2559 = vmatprep.subr.bf16.mxu0 %v3945_v5  ;;  %v3955_v12 = vld [vmem:[%s5704_s1 + $0x4c] ss:$12 sps:$4 sm:$0xff]   ;;  %v3959_v14 = vld [vmem:[%s5704_s1 + $0x48] ss:$12 sps:$4 sm:$0xff]   ;;  %v3961_v16 = vld [vmem:[%s5704_s1 + $0x64] ss:$12 sps:$4 sm:$0xff]  }
   0x6   :  { %v3957_v13 = vld [vmem:[%s5704_s1 + $0x34c] ss:$12 sps:$4 sm:$0xff]   ;;  %v3960_v15 = vld [vmem:[%s5704_s1 + $0x348] ss:$12 sps:$4 sm:$0xff]   ;;  %v3963_v17 = vld [vmem:[%s5704_s1 + $0x364] ss:$12 sps:$4 sm:$0xff]  }
   0x7   :  { %2454 = vmatpush1.bf16.msra.mxu1 %v3947_v6  ;;  %v3965_v18 = vld [vmem:[%s5704_s1 + $0x60] ss:$12 sps:$4 sm:$0xff]   ;;  %v3967_v20 = vld [vmem:[%s5704_s1 + $0x7c] ss:$12 sps:$4 sm:$0xff]   ;;  %v3971_v22 = vld [vmem:[%s5704_s1 + $0x78] ss:$12 sps:$4 sm:$0xff]  }
   0x8   :  { %2560 = vmatpush1.bf16.msra.mxu0 %v3948_v7  ;;  %2455 = vmatprep.subr.bf16.mxu1 %v3949_v8  ;;  %v3966_v19 = vld [vmem:[%s5704_s1 + $0x360] ss:$12 sps:$4 sm:$0xff]   ;;  %v3969_v21 = vld [vmem:[%s5704_s1 + $0x37c] ss:$12 sps:$4 sm:$0xff]   ;;  %v3972_v23 = vld [vmem:[%s5704_s1 + $0x378] ss:$12 sps:$4 sm:$0xff]  }
   0x9   :  { %2561 = vmatprep.subr.bf16.mxu0 %v3951_v9  ;;  %v3973_v24 = vld [vmem:[%s5704_s1 + $0x94] ss:$12 sps:$4 sm:$0xff]   ;;  %v3977_v26 = vld [vmem:[%s5704_s1 + $0x90] ss:$12 sps:$4 sm:$0xff]   ;;  %v3979_v28 = vld [vmem:[%s5704_s1 + $0xac] ss:$12 sps:$4 sm:$0xff]  }
   0xa   :  { %v3975_v25 = vld [vmem:[%s5704_s1 + $0x394] ss:$12 sps:$4 sm:$0xff]   ;;  %v3978_v27 = vld [vmem:[%s5704_s1 + $0x390] ss:$12 sps:$4 sm:$0xff]   ;;  %v3981_v29 = vld [vmem:[%s5704_s1 + $0x3ac] ss:$12 sps:$4 sm:$0xff]  }
   0xb   :  { %2456 = vmatpush1.bf16.msra.mxu1 %v3953_v10  ;;  %v3983_v30 = vld [vmem:[%s5704_s1 + $0xa8] ss:$12 sps:$4 sm:$0xff]   ;;  %v3985_v32 = vld [vmem:[%s5704_s1 + $0xc4] ss:$12 sps:$4 sm:$0xff]   ;;  %v3989_v34 = vld [vmem:[%s5704_s1 + $0xc0] ss:$12 sps:$4 sm:$0xff]  }
   0xc   :  { %2562 = vmatpush1.bf16.msra.mxu0 %v3954_v11  ;;  %2457 = vmatprep.subr.bf16.mxu1 %v3955_v12  ;;  %v3984_v31 = vld [vmem:[%s5704_s1 + $0x3a8] ss:$12 sps:$4 sm:$0xff]   ;;  %v3987_v33 = vld [vmem:[%s5704_s1 + $0x3c4] ss:$12 sps:$4 sm:$0xff]   ;;  %v3990_v35 = vld [vmem:[%s5704_s1 + $0x3c0] ss:$12 sps:$4 sm:$0xff]  }
   0xd   :  { %2563 = vmatprep.subr.bf16.mxu0 %v3957_v13  ;;  %v3991_v36 = vld [vmem:[%s5704_s1 + $0xdc] ss:$12 sps:$4 sm:$0xff]   ;;  %v3995_v38 = vld [vmem:[%s5704_s1 + $0xd8] ss:$12 sps:$4 sm:$0xff]   ;;  %v3997_v40 = vld [vmem:[%s5704_s1 + $0xf4] ss:$12 sps:$4 sm:$0xff]  }
   0xe   :  { %v3993_v37 = vld [vmem:[%s5704_s1 + $0x3dc] ss:$12 sps:$4 sm:$0xff]   ;;  %v3996_v39 = vld [vmem:[%s5704_s1 + $0x3d8] ss:$12 sps:$4 sm:$0xff]   ;;  %v3999_v41 = vld [vmem:[%s5704_s1 + $0x3f4] ss:$12 sps:$4 sm:$0xff]  }
   0xf   :  { %2458 = vmatpush1.bf16.msra.mxu1 %v3959_v14  ;;  %v4001_v42 = vld [vmem:[%s5704_s1 + $0xf0] ss:$12 sps:$4 sm:$0xff]   ;;  %v4003_v44 = vld [vmem:[%s5704_s1 + $0x10c] ss:$12 sps:$4 sm:$0xff]   ;;  %v4007_v46 = vld [vmem:[%s5704_s1 + $0x108] ss:$12 sps:$4 sm:$0xff]  }
  0x10   :  { %2564 = vmatpush1.bf16.msra.mxu0 %v3960_v15  ;;  %2459 = vmatprep.subr.bf16.mxu1 %v3961_v16  ;;  %v4002_v43 = vld [vmem:[%s5704_s1 + $0x3f0] ss:$12 sps:$4 sm:$0xff]   ;;  %v4005_v45 = vld [vmem:[%s5704_s1 + $0x40c] ss:$12 sps:$4 sm:$0xff]   ;;  %v4008_v47 = vld [vmem:[%s5704_s1 + $0x408] ss:$12 sps:$4 sm:$0xff]  }
  0x11   :  { %2565 = vmatprep.subr.bf16.mxu0 %v3963_v17  ;;  %v4600_v48 = vld [vmem:[%s5705_s0 + $0x4] ss:$56 sps:$4 sm:$0xff]   ;;  %v4041_v51 = vld [vmem:[%s5705_s0 + $0x14] ss:$56 sps:$4 sm:$0xff]   ;;  %v4663_v4 = vld [vmem:[%s5705_s0] ss:$56 sps:$4 sm:$0xff]  }
  0x12   :  { %v4009_v49 = vld [vmem:[%s5704_s1 + $0x124] ss:$12 sps:$4 sm:$0xff]   ;;  %2483 = vmatprep.mubr.bf16.mxu1 %v4600_v48  ;;  %v4013_v52 = vld [vmem:[%s5704_s1 + $0x120] ss:$12 sps:$4 sm:$0xff]   ;;  %v4015_v54 = vld [vmem:[%s5704_s1 + $0x13c] ss:$12 sps:$4 sm:$0xff]   ;;  %2589 = vmatprep.mubr.bf16.mxu0 %v4041_v51 }
  0x13   :  { %2460 = vmatpush1.bf16.msra.mxu1 %v3965_v18  ;;  %v4011_v50 = vld [vmem:[%s5704_s1 + $0x424] ss:$12 sps:$4 sm:$0xff]   ;;  %v4014_v53 = vld [vmem:[%s5704_s1 + $0x420] ss:$12 sps:$4 sm:$0xff]   ;;  %v4017_v55 = vld [vmem:[%s5704_s1 + $0x43c] ss:$12 sps:$4 sm:$0xff]  }
  0x14   :  { %2566 = vmatpush1.bf16.msra.mxu0 %v3966_v19  ;;  %2461 = vmatprep.subr.bf16.mxu1 %v3967_v20  ;;  %v4019_v56 = vld [vmem:[%s5704_s1 + $0x138] ss:$12 sps:$4 sm:$0xff]   ;;  %v4021_v58 = vld [vmem:[%s5704_s1 + $0x154] ss:$12 sps:$4 sm:$0xff]   ;;  %v4025_v60 = vld [vmem:[%s5704_s1 + $0x150] ss:$12 sps:$4 sm:$0xff]  }
  0x15   :  { %2567 = vmatprep.subr.bf16.mxu0 %v3969_v21  ;;  %v4020_v57 = vld [vmem:[%s5704_s1 + $0x438] ss:$12 sps:$4 sm:$0xff]   ;;  %v4023_v59 = vld [vmem:[%s5704_s1 + $0x454] ss:$12 sps:$4 sm:$0xff]   ;;  %v4026_v61 = vld [vmem:[%s5704_s1 + $0x450] ss:$12 sps:$4 sm:$0xff]  }
  0x16   :  { %v4027_v62 = vld [vmem:[%s5704_s1 + $0x16c] ss:$12 sps:$4 sm:$0xff]   ;;  %v4031_v0 = vld [vmem:[%s5704_s1 + $0x168] ss:$12 sps:$4 sm:$0xff]   ;;  %v4038_v2 = vld [vmem:[%s5704_s1 + $0x184] ss:$12 sps:$4 sm:$0xff]  }
  0x17   :  { %2462 = vmatpush1.bf16.msra.mxu1 %v3971_v22  ;;  %v4029_v63 = vld [vmem:[%s5704_s1 + $0x46c] ss:$12 sps:$4 sm:$0xff]   ;;  %v4032_v1 = vld [vmem:[%s5704_s1 + $0x468] ss:$12 sps:$4 sm:$0xff]   ;;  %v4044_v3 = vld [vmem:[%s5704_s1 + $0x484] ss:$12 sps:$4 sm:$0xff]  }
  0x18   :  { %2568 = vmatpush1.bf16.msra.mxu0 %v3972_v23  ;;  %2463 = vmatprep.subr.bf16.mxu1 %v3973_v24  ;;  %v4036_v5 = vld [vmem:[%s5704_s1 + $0x180] ss:$12 sps:$4 sm:$0xff]   ;;  %v4039_v6 = vld [vmem:[%s5705_s0 + $0x10] ss:$56 sps:$4 sm:$0xff]   ;;  %v4045_v10 = vld [vmem:[%s5704_s1 + $0x198] ss:$12 sps:$4 sm:$0xff]  }
  0x19   :  { %2569 = vmatprep.subr.bf16.mxu0 %v3975_v25  ;;  %v4042_v7 = vld [vmem:[%s5704_s1 + $0x480] ss:$12 sps:$4 sm:$0xff]   ;;  %v4047_v8 = vld [vmem:[%s5704_s1 + $0x19c] ss:$12 sps:$4 sm:$0xff]   ;;  %v4048_v11 = vld [vmem:[%s5704_s1 + $0x498] ss:$12 sps:$4 sm:$0xff]  }
  0x1a   :  { %v4050_v9 = vld [vmem:[%s5704_s1 + $0x49c] ss:$12 sps:$4 sm:$0xff]   ;;  %v4053_v12 = vld [vmem:[%s5704_s1 + $0x1b4] ss:$12 sps:$4 sm:$0xff]   ;;  %v4059_v16 = vld [vmem:[%s5704_s1 + $0x1cc] ss:$12 sps:$4 sm:$0xff]  }
  0x1b   :  { %2464 = vmatpush1.bf16.msra.mxu1 %v3977_v26  ;;  %v4056_v13 = vld [vmem:[%s5704_s1 + $0x4b4] ss:$12 sps:$4 sm:$0xff]   ;;  %v4051_v14 = vld [vmem:[%s5704_s1 + $0x1b0] ss:$12 sps:$4 sm:$0xff]   ;;  %v4062_v17 = vld [vmem:[%s5704_s1 + $0x4cc] ss:$12 sps:$4 sm:$0xff]  }
  0x1c   :  { %2570 = vmatpush1.bf16.msra.mxu0 %v3978_v27  ;;  %2465 = vmatprep.subr.bf16.mxu1 %v3979_v28  ;;  %v4054_v15 = vld [vmem:[%s5704_s1 + $0x4b0] ss:$12 sps:$4 sm:$0xff]   ;;  %v4057_v18 = vld [vmem:[%s5704_s1 + $0x1c8] ss:$12 sps:$4 sm:$0xff]   ;;  %v4063_v22 = vld [vmem:[%s5704_s1 + $0x1e0] ss:$12 sps:$4 sm:$0xff]  }
  0x1d   :  { %2571 = vmatprep.subr.bf16.mxu0 %v3981_v29  ;;  %v4060_v19 = vld [vmem:[%s5704_s1 + $0x4c8] ss:$12 sps:$4 sm:$0xff]   ;;  %v4065_v20 = vld [vmem:[%s5704_s1 + $0x1e4] ss:$12 sps:$4 sm:$0xff]   ;;  %v4066_v23 = vld [vmem:[%s5704_s1 + $0x4e0] ss:$12 sps:$4 sm:$0xff]  }
  0x1e   :  { %v4068_v21 = vld [vmem:[%s5704_s1 + $0x4e4] ss:$12 sps:$4 sm:$0xff]   ;;  %v4071_v24 = vld [vmem:[%s5704_s1 + $0x1fc] ss:$12 sps:$4 sm:$0xff]   ;;  %v4738_v28 = vld [vmem:[%s5705_s0 + $0x74] ss:$56 sps:$4 sm:$0xff]  }
  0x1f   :  { %2466 = vmatpush1.bf16.msra.mxu1 %v3983_v30  ;;  %v4074_v25 = vld [vmem:[%s5704_s1 + $0x4fc] ss:$12 sps:$4 sm:$0xff]   ;;  %v4069_v26 = vld [vmem:[%s5704_s1 + $0x1f8] ss:$12 sps:$4 sm:$0xff]   ;;  %v4077_v30 = vld [vmem:[%s5704_s1 + $0x214] ss:$12 sps:$4 sm:$0xff]  }
  0x20   :  { %2572 = vmatpush1.bf16.msra.mxu0 %v3984_v31  ;;  %2467 = vmatprep.subr.bf16.mxu1 %v3985_v32  ;;  %v4072_v27 = vld [vmem:[%s5704_s1 + $0x4f8] ss:$12 sps:$4 sm:$0xff]   ;;  %v4743_v29 = vld [vmem:[%s5705_s0 + $0x70] ss:$56 sps:$4 sm:$0xff]   ;;  %v4080_v31 = vld [vmem:[%s5704_s1 + $0x514] ss:$12 sps:$4 sm:$0xff]  }
  0x21   :  { %2573 = vmatprep.subr.bf16.mxu0 %v3987_v33  ;;  %v4129_v32 = vld [vmem:[%s5705_s0 + $0x84] ss:$56 sps:$4 sm:$0xff]   ;;  %v4101_v51 = vld [vmem:[%s5704_s1 + $0x274] ss:$12 sps:$4 sm:$0xff]  }
  0x22   :  { %v4075_v33 = vld [vmem:[%s5704_s1 + $0x210] ss:$12 sps:$4 sm:$0xff]  }
  0x23   :  { %2468 = vmatpush1.bf16.msra.mxu1 %v3989_v34  ;;  %v4078_v34 = vld [vmem:[%s5704_s1 + $0x510] ss:$12 sps:$4 sm:$0xff]  }
  0x24   :  { %2574 = vmatpush1.bf16.msra.mxu0 %v3990_v35  ;;  %2469 = vmatprep.subr.bf16.mxu1 %v3991_v36  ;;  %v4134_v35 = vld [vmem:[%s5705_s0 + $0x80] ss:$56 sps:$4 sm:$0xff]  }
  0x25   :  { %2575 = vmatprep.subr.bf16.mxu0 %v3993_v37  ;;  %v4083_v36 = vld [vmem:[%s5704_s1 + $0x22c] ss:$12 sps:$4 sm:$0xff]  }
  0x26   :  { %v4086_v37 = vld [vmem:[%s5704_s1 + $0x52c] ss:$12 sps:$4 sm:$0xff]  }
  0x27   :  { %2470 = vmatpush1.bf16.msra.mxu1 %v3995_v38  ;;  %v4081_v38 = vld [vmem:[%s5704_s1 + $0x228] ss:$12 sps:$4 sm:$0xff]  }
  0x28   :  { %2576 = vmatpush1.bf16.msra.mxu0 %v3996_v39  ;;  %2471 = vmatprep.subr.bf16.mxu1 %v3997_v40  ;;  %v4084_v39 = vld [vmem:[%s5704_s1 + $0x528] ss:$12 sps:$4 sm:$0xff]   ;;  %v4089_v40 = vld [vmem:[%s5704_s1 + $0x244] ss:$12 sps:$4 sm:$0xff]  }
  0x29   :  { %2577 = vmatprep.subr.bf16.mxu0 %v3999_v41  ;;  %v4783_v41 = vld [vmem:[%s5705_s0 + $0xc] ss:$56 sps:$4 sm:$0xff]  }
  0x2b   :  { %2472 = vmatpush1.bf16.msra.mxu1 %v4001_v42  ;;  %v4092_v42 = vld [vmem:[%s5704_s1 + $0x544] ss:$12 sps:$4 sm:$0xff]  }
  0x2c   :  { %2578 = vmatpush1.bf16.msra.mxu0 %v4002_v43  ;;  %2473 = vmatprep.subr.bf16.mxu1 %v4003_v44  ;;  %v4146_v43 = vld [vmem:[%s5705_s0 + $0x1c] ss:$56 sps:$4 sm:$0xff]   ;;  %v4087_v44 = vld [vmem:[%s5704_s1 + $0x240] ss:$12 sps:$4 sm:$0xff]  }
  0x2d   :  { %2579 = vmatprep.subr.bf16.mxu0 %v4005_v45  ;;  %v4090_v45 = vld [vmem:[%s5704_s1 + $0x540] ss:$12 sps:$4 sm:$0xff]  }
  0x2f   :  { %2474 = vmatpush1.bf16.msra.mxu1 %v4007_v46  ;;  %v4095_v46 = vld [vmem:[%s5704_s1 + $0x25c] ss:$12 sps:$4 sm:$0xff]  }
  0x30   :  { %2580 = vmatpush1.bf16.msra.mxu0 %v4008_v47  ;;  %2475 = vmatprep.subr.bf16.mxu1 %v4009_v49  ;;  %v4098_v47 = vld [vmem:[%s5704_s1 + $0x55c] ss:$12 sps:$4 sm:$0xff]   ;;  %v4093_v49 = vld [vmem:[%s5704_s1 + $0x258] ss:$12 sps:$4 sm:$0xff]  }
  0x31   :  { %2581 = vmatprep.subr.bf16.mxu0 %v4011_v50  ;;  %v4096_v50 = vld [vmem:[%s5704_s1 + $0x558] ss:$12 sps:$4 sm:$0xff]  }
  0x33   :  { %2476 = vmatpush1.bf16.msra.mxu1 %v4013_v52  ;;  %v4104_v52 = vld [vmem:[%s5704_s1 + $0x574] ss:$12 sps:$4 sm:$0xff]  }
  0x34   :  { %2582 = vmatpush1.bf16.msra.mxu0 %v4014_v53  ;;  %2477 = vmatprep.subr.bf16.mxu1 %v4015_v54  ;;  %v4099_v53 = vld [vmem:[%s5704_s1 + $0x270] ss:$12 sps:$4 sm:$0xff]  }
  0x35   :  { %2583 = vmatprep.subr.bf16.mxu0 %v4017_v55  ;;  %v4102_v54 = vld [vmem:[%s5704_s1 + $0x570] ss:$12 sps:$4 sm:$0xff]   ;;  %v4107_v55 = vld [vmem:[%s5704_s1 + $0x28c] ss:$12 sps:$4 sm:$0xff]  }
  0x37   :  { %2478 = vmatpush1.bf16.msra.mxu1 %v4019_v56  ;;  %v4110_v56 = vld [vmem:[%s5704_s1 + $0x58c] ss:$12 sps:$4 sm:$0xff]  }
  0x38   :  { %2584 = vmatpush1.bf16.msra.mxu0 %v4020_v57  ;;  %2479 = vmatprep.subr.bf16.mxu1 %v4021_v58  ;;  %v4105_v57 = vld [vmem:[%s5704_s1 + $0x288] ss:$12 sps:$4 sm:$0xff]  }
  0x39   :  { %2585 = vmatprep.subr.bf16.mxu0 %v4023_v59  ;;  %v4108_v58 = vld [vmem:[%s5704_s1 + $0x588] ss:$12 sps:$4 sm:$0xff]   ;;  %v4113_v59 = vld [vmem:[%s5704_s1 + $0x2a4] ss:$12 sps:$4 sm:$0xff]  }
  0x3b   :  { %2480 = vmatpush1.bf16.msra.mxu1 %v4025_v60  ;;  %v4116_v60 = vld [vmem:[%s5704_s1 + $0x5a4] ss:$12 sps:$4 sm:$0xff]  }
  0x3c   :  { %2586 = vmatpush1.bf16.msra.mxu0 %v4026_v61  ;;  %2481 = vmatprep.subr.bf16.mxu1 %v4027_v62  ;;  %v4111_v61 = vld [vmem:[%s5704_s1 + $0x2a0] ss:$12 sps:$4 sm:$0xff]  }
  0x3d   :  { %2587 = vmatprep.subr.bf16.mxu0 %v4029_v63  ;;  %v4114_v62 = vld [vmem:[%s5704_s1 + $0x5a0] ss:$12 sps:$4 sm:$0xff]   ;;  %v4119_v63 = vld [vmem:[%s5704_s1 + $0x2bc] ss:$12 sps:$4 sm:$0xff]  }
  0x3f   :  { %2482 = vmatpush1.bf16.msra.mxu1 %v4031_v0  ;;  %v4122_v0 = vld [vmem:[%s5704_s1 + $0x5bc] ss:$12 sps:$4 sm:$0xff]  }
  0x40   :  { %2588 = vmatpush1.bf16.msra.mxu0 %v4032_v1  ;;  %2504 = vmatprep.subr.bf16.mxu1 %v4038_v2  ;;  %v4117_v1 = vld [vmem:[%s5704_s1 + $0x2b8] ss:$12 sps:$4 sm:$0xff]  }
  0x41   :  { %2610 = vmatprep.subr.bf16.mxu0 %v4044_v3  ;;  %v4120_v2 = vld [vmem:[%s5704_s1 + $0x5b8] ss:$12 sps:$4 sm:$0xff]   ;;  %v4128_v3 = vld [vmem:[%s5704_s1 + $0x2d4] ss:$12 sps:$4 sm:$0xff]  }
  0x42   :  { %2484 = vmatmul.mubr.bf16.vlgmr.msra.gmra.mrb[0].mxu1 %v4663_v4 }
  0x43   :  { %2590 = vmatmul.mubr.bf16.vlgmr.msra.gmra.mrb[0].mxu0 %v4039_v6  ;;  %2505 = vmatpush1.bf16.msra.mxu1 %v4036_v5  ;;  %v4133_v5 = vld [vmem:[%s5704_s1 + $0x5d4] ss:$12 sps:$4 sm:$0xff]   ;;  %v4126_v6 = vld [vmem:[%s5704_s1 + $0x2d0] ss:$12 sps:$4 sm:$0xff]  }
  0x44   :  { %2611 = vmatpush1.bf16.msra.mxu0 %v4042_v7  ;;  %2506 = vmatprep.subr.bf16.mxu1 %v4047_v8  ;;  %v4131_v7 = vld [vmem:[%s5704_s1 + $0x5d0] ss:$12 sps:$4 sm:$0xff]   ;;  %v4137_v8 = vld [vmem:[%s5704_s1 + $0x2ec] ss:$12 sps:$4 sm:$0xff]  }
  0x45   :  { %2612 = vmatprep.subr.bf16.mxu0 %v4050_v9  ;;  %2493 = vmatprep.mubr.bf16.mxu1 %v4738_v28  ;;  %v4140_v9 = vld [vmem:[%s5704_s1 + $0x5ec] ss:$12 sps:$4 sm:$0xff]  }
  0x46   :  { %2599 = vmatprep.mubr.bf16.mxu0 %v4129_v32  ;;  %v4165_v32 = vld [vmem:[%s5704_s1 + $0x648] ss:$12 sps:$4 sm:$0xff]  }
  0x47   :  { %2507 = vmatpush1.bf16.msra.mxu1 %v4045_v10  ;;  %v4135_v10 = vld [vmem:[%s5704_s1 + $0x2e8] ss:$12 sps:$4 sm:$0xff]  }
  0x48   :  { %2613 = vmatpush1.bf16.msra.mxu0 %v4048_v11  ;;  %2508 = vmatprep.subr.bf16.mxu1 %v4053_v12  ;;  %v4138_v11 = vld [vmem:[%s5704_s1 + $0x5e8] ss:$12 sps:$4 sm:$0xff]  }
  0x49   :  { %2614 = vmatprep.subr.bf16.mxu0 %v4056_v13  ;;  %v4885_v12 = vld [vmem:[%s5705_s0 + $0x8] ss:$56 sps:$4 sm:$0xff]   ;;  %v4144_v13 = vld [vmem:[%s5705_s0 + $0x18] ss:$56 sps:$4 sm:$0xff]  }
  0x4a   :  { %2494 = vmatmul.mubr.bf16.gmra.mrb[4].mxu1 %v4743_v29 }
  0x4b   :  { %2509 = vmatpush1.bf16.msra.mxu1 %v4051_v14  ;;  %2600 = vmatmul.mubr.bf16.gmra.mrb[4].mxu0 %v4134_v35  ;;  %v4149_v14 = vld [vmem:[%s5704_s1 + $0x604] ss:$12 sps:$4 sm:$0xff]   ;;  %v4173_v35 = vld [vmem:[%s5704_s1 + $0x128] ss:$12 sps:$4 sm:$0xff]  }
  0x4c   :  { %2615 = vmatpush1.bf16.msra.mxu0 %v4054_v15  ;;  %2510 = vmatprep.subr.bf16.mxu1 %v4059_v16  ;;  %v4150_v15 = vld [vmem:[%s5704_s1 + $0xc8] ss:$12 sps:$4 sm:$0xff]   ;;  %v4147_v16 = vld [vmem:[%s5704_s1 + $0x600] ss:$12 sps:$4 sm:$0xff]  }
  0x4d   :  { %2616 = vmatprep.subr.bf16.mxu0 %v4062_v17  ;;  %2536 = vmatprep.mubr.bf16.mxu1 %v4783_v41  ;;  %v4151_v17 = vld [vmem:[%s5704_s1 + $0x8] ss:$12 sps:$4 sm:$0xff]  }
  0x4e   :  { %2642 = vmatprep.mubr.bf16.mxu0 %v4146_v43  ;;  %v4179_v43 = vld [vmem:[%s5704_s1 + $0x80] ss:$12 sps:$4 sm:$0xff]  }
  0x4f   :  { %2511 = vmatpush1.bf16.msra.mxu1 %v4057_v18  ;;  %v4154_v18 = vld [vmem:[%s5704_s1 + $0x61c] ss:$12 sps:$4 sm:$0xff]  }
  0x50   :  { %2617 = vmatpush1.bf16.msra.mxu0 %v4060_v19  ;;  %2512 = vmatprep.subr.bf16.mxu1 %v4065_v20  ;;  %v4155_v19 = vld [vmem:[%s5704_s1 + $0xe0] ss:$12 sps:$4 sm:$0xff]   ;;  %v4911_v20 = vld [vmem:[%s5705_s0 + $0x7c] ss:$56 sps:$4 sm:$0xff]  }
  0x51   :  { %2618 = vmatprep.subr.bf16.mxu0 %v4068_v21  ;;  %v4152_v21 = vld [vmem:[%s5704_s1 + $0x618] ss:$12 sps:$4 sm:$0xff]  }
  0x53   :  { %2513 = vmatpush1.bf16.msra.mxu1 %v4063_v22  ;;  %v4156_v22 = vld [vmem:[%s5704_s1 + $0x20] ss:$12 sps:$4 sm:$0xff]  }
  0x54   :  { %2619 = vmatpush1.bf16.msra.mxu0 %v4066_v23  ;;  %2514 = vmatprep.subr.bf16.mxu1 %v4071_v24  ;;  %v4162_v23 = vld [vmem:[%s5704_s1 + $0x634] ss:$12 sps:$4 sm:$0xff]   ;;  %v4163_v24 = vld [vmem:[%s5704_s1 + $0xf8] ss:$12 sps:$4 sm:$0xff]  }
  0x55   :  { %2620 = vmatprep.subr.bf16.mxu0 %v4074_v25  ;;  %v4930_v25 = vld [vmem:[%s5705_s0 + $0x78] ss:$56 sps:$4 sm:$0xff]  }
  0x57   :  { %2515 = vmatpush1.bf16.msra.mxu1 %v4069_v26  ;;  %v4160_v26 = vld [vmem:[%s5704_s1 + $0x630] ss:$12 sps:$4 sm:$0xff]  }
  0x58   :  { %2621 = vmatpush1.bf16.msra.mxu0 %v4072_v27  ;;  %2516 = vmatprep.subr.bf16.mxu1 %v4077_v30  ;;  %v4164_v27 = vld [vmem:[%s5704_s1 + $0x38] ss:$12 sps:$4 sm:$0xff]  }
  0x59   :  { %2622 = vmatprep.subr.bf16.mxu0 %v4080_v31  ;;  %v4167_v30 = vld [vmem:[%s5704_s1 + $0x64c] ss:$12 sps:$4 sm:$0xff]   ;;  %v4168_v31 = vld [vmem:[%s5704_s1 + $0x110] ss:$12 sps:$4 sm:$0xff]  }
  0x5b   :  { %2517 = vmatpush1.bf16.msra.mxu1 %v4075_v33  ;;  %v4169_v33 = vld [vmem:[%s5704_s1 + $0x50] ss:$12 sps:$4 sm:$0xff]  }
  0x5c   :  { %2623 = vmatpush1.bf16.msra.mxu0 %v4078_v34  ;;  %2518 = vmatprep.subr.bf16.mxu1 %v4083_v36  ;;  %v4172_v34 = vld [vmem:[%s5704_s1 + $0x664] ss:$12 sps:$4 sm:$0xff]  }
  0x5d   :  { %2624 = vmatprep.subr.bf16.mxu0 %v4086_v37  ;;  %v4961_v36 = vld [vmem:[%s5705_s0 + $0x8c] ss:$56 sps:$4 sm:$0xff]  }
  0x5e   :  { %v4170_v37 = vld [vmem:[%s5704_s1 + $0x660] ss:$12 sps:$4 sm:$0xff]  }
  0x5f   :  { %2519 = vmatpush1.bf16.msra.mxu1 %v4081_v38  ;;  %v4174_v38 = vld [vmem:[%s5704_s1 + $0x68] ss:$12 sps:$4 sm:$0xff]  }
  0x60   :  { %2625 = vmatpush1.bf16.msra.mxu0 %v4084_v39  ;;  %2520 = vmatprep.subr.bf16.mxu1 %v4089_v40  ;;  %v4177_v39 = vld [vmem:[%s5704_s1 + $0x67c] ss:$12 sps:$4 sm:$0xff]   ;;  %v4178_v40 = vld [vmem:[%s5704_s1 + $0x140] ss:$12 sps:$4 sm:$0xff]  }
  0x61   :  { %2626 = vmatprep.subr.bf16.mxu0 %v4092_v42  ;;  %v4175_v42 = vld [vmem:[%s5704_s1 + $0x678] ss:$12 sps:$4 sm:$0xff]  }
  0x63   :  { %2521 = vmatpush1.bf16.msra.mxu1 %v4087_v44  ;;  %v4182_v44 = vld [vmem:[%s5704_s1 + $0x694] ss:$12 sps:$4 sm:$0xff]  }
  0x64   :  { %2627 = vmatpush1.bf16.msra.mxu0 %v4090_v45  ;;  %2522 = vmatprep.subr.bf16.mxu1 %v4095_v46  ;;  %v4183_v45 = vld [vmem:[%s5704_s1 + $0x158] ss:$12 sps:$4 sm:$0xff]  }
  0x65   :  { %2628 = vmatprep.subr.bf16.mxu0 %v4098_v47  ;;  %v4997_v46 = vld [vmem:[%s5705_s0 + $0x24] ss:$56 sps:$4 sm:$0xff]  }
  0x66   :  { %v4180_v47 = vld [vmem:[%s5704_s1 + $0x690] ss:$12 sps:$4 sm:$0xff]  }
  0x67   :  { %2523 = vmatpush1.bf16.msra.mxu1 %v4093_v49  ;;  %v4184_v49 = vld [vmem:[%s5704_s1 + $0x98] ss:$12 sps:$4 sm:$0xff]  }
  0x68   :  { %2629 = vmatpush1.bf16.msra.mxu0 %v4096_v50  ;;  %2524 = vmatprep.subr.bf16.mxu1 %v4101_v51  ;;  %v4187_v50 = vld [vmem:[%s5704_s1 + $0x6ac] ss:$12 sps:$4 sm:$0xff]   ;;  %v4188_v51 = vld [vmem:[%s5704_s1 + $0x170] ss:$12 sps:$4 sm:$0xff]  }
  0x69   :  { %2630 = vmatprep.subr.bf16.mxu0 %v4104_v52  ;;  %v4185_v52 = vld [vmem:[%s5704_s1 + $0x6a8] ss:$12 sps:$4 sm:$0xff]  }
  0x6b   :  { %2525 = vmatpush1.bf16.msra.mxu1 %v4099_v53  ;;  %v4189_v53 = vld [vmem:[%s5704_s1 + $0xb0] ss:$12 sps:$4 sm:$0xff]  }
  0x6c   :  { %2631 = vmatpush1.bf16.msra.mxu0 %v4102_v54  ;;  %2526 = vmatprep.subr.bf16.mxu1 %v4107_v55  ;;  %v4192_v54 = vld [vmem:[%s5704_s1 + $0x6c4] ss:$12 sps:$4 sm:$0xff]   ;;  %v4193_v55 = vld [vmem:[%s5704_s1 + $0x248] ss:$12 sps:$4 sm:$0xff]  }
  0x6d   :  { %2632 = vmatprep.subr.bf16.mxu0 %v4110_v56  ;;  %v4190_v56 = vld [vmem:[%s5704_s1 + $0x6c0] ss:$12 sps:$4 sm:$0xff]  }
  0x6f   :  { %2527 = vmatpush1.bf16.msra.mxu1 %v4105_v57  ;;  %v4194_v57 = vld [vmem:[%s5704_s1 + $0x188] ss:$12 sps:$4 sm:$0xff]  }
  0x70   :  { %2633 = vmatpush1.bf16.msra.mxu0 %v4108_v58  ;;  %2528 = vmatprep.subr.bf16.mxu1 %v4113_v59  ;;  %v4197_v58 = vld [vmem:[%s5704_s1 + $0x6dc] ss:$12 sps:$4 sm:$0xff]   ;;  %v4198_v59 = vld [vmem:[%s5704_s1 + $0x260] ss:$12 sps:$4 sm:$0xff]  }
  0x71   :  { %2634 = vmatprep.subr.bf16.mxu0 %v4116_v60  ;;  %v4195_v60 = vld [vmem:[%s5704_s1 + $0x6d8] ss:$12 sps:$4 sm:$0xff]  }
  0x73   :  { %2529 = vmatpush1.bf16.msra.mxu1 %v4111_v61  ;;  %v4199_v61 = vld [vmem:[%s5704_s1 + $0x1a0] ss:$12 sps:$4 sm:$0xff]  }
  0x74   :  { %2635 = vmatpush1.bf16.msra.mxu0 %v4114_v62  ;;  %2530 = vmatprep.subr.bf16.mxu1 %v4119_v63  ;;  %v4202_v62 = vld [vmem:[%s5704_s1 + $0x6f4] ss:$12 sps:$4 sm:$0xff]   ;;  %v4203_v63 = vld [vmem:[%s5704_s1 + $0x278] ss:$12 sps:$4 sm:$0xff]  }
  0x75   :  { %2636 = vmatprep.subr.bf16.mxu0 %v4122_v0  ;;  %v4204_v0 = vld [vmem:[%s5704_s1 + $0x1b8] ss:$12 sps:$4 sm:$0xff]  }
  0x77   :  { %2531 = vmatpush1.bf16.msra.mxu1 %v4117_v1  ;;  %v4207_v1 = vld [vmem:[%s5704_s1 + $0x70c] ss:$12 sps:$4 sm:$0xff]  }
  0x78   :  { %2637 = vmatpush1.bf16.msra.mxu0 %v4120_v2  ;;  %2532 = vmatprep.subr.bf16.mxu1 %v4128_v3  ;;  %v4205_v2 = vld [vmem:[%s5704_s1 + $0x708] ss:$12 sps:$4 sm:$0xff]   ;;  %v4209_v3 = vld [vmem:[%s5704_s1 + $0x1d0] ss:$12 sps:$4 sm:$0xff]  }
  0x79   :  { %2638 = vmatprep.subr.bf16.mxu0 %v4133_v5  ;;  %v4212_v5 = vld [vmem:[%s5704_s1 + $0x724] ss:$12 sps:$4 sm:$0xff]  }
  0x7b   :  { %2533 = vmatpush1.bf16.msra.mxu1 %v4126_v6  ;;  %v4213_v6 = vld [vmem:[%s5704_s1 + $0x2a8] ss:$12 sps:$4 sm:$0xff]  }
  0x7c   :  { %2639 = vmatpush1.bf16.msra.mxu0 %v4131_v7  ;;  %2534 = vmatprep.subr.bf16.mxu1 %v4137_v8  ;;  %v4210_v7 = vld [vmem:[%s5704_s1 + $0x720] ss:$12 sps:$4 sm:$0xff]   ;;  %v4217_v8 = vld [vmem:[%s5704_s1 + $0x73c] ss:$12 sps:$4 sm:$0xff]  }
  0x7d   :  { %2640 = vmatprep.subr.bf16.mxu0 %v4140_v9  ;;  %v4218_v9 = vld [vmem:[%s5704_s1 + $0x2c0] ss:$12 sps:$4 sm:$0xff]  }
  0x7f   :  { %2535 = vmatpush1.bf16.msra.mxu1 %v4135_v10  ;;  %v4219_v10 = vld [vmem:[%s5704_s1 + $0x200] ss:$12 sps:$4 sm:$0xff]  }
  0x80   :  { %2641 = vmatpush1.bf16.msra.mxu0 %v4138_v11  ;;  %3677 = vmatprep.subr.bf16.mxu1 %v4150_v15  ;;  %v4224_v11 = vld [vmem:[%s5704_s1 + $0x754] ss:$12 sps:$4 sm:$0xff]   ;;  %v4227_v15 = vld [vmem:[%s5704_s1 + $0x218] ss:$12 sps:$4 sm:$0xff]  }
  0x81   :  { %2663 = vmatprep.subr.bf16.mxu0 %v4149_v14  ;;  %v4222_v14 = vld [vmem:[%s5704_s1 + $0x750] ss:$12 sps:$4 sm:$0xff]  }
  0x82   :  { %2537 = vmatmul.mubr.bf16.vlgmr.msra.gmra.mrb[0].mxu1 %v4885_v12 }
  0x83   :  { %2643 = vmatmul.mubr.bf16.vlgmr.msra.gmra.mrb[0].mxu0 %v4144_v13  ;;  %3678 = vmatpush3.bf16.msra.mxu1 %v4151_v17  ;;  %v4225_v13 = vld [vmem:[%s5704_s1 + $0x2d8] ss:$12 sps:$4 sm:$0xff]   ;;  %v4231_v17 = vld [vmem:[%s5704_s1 + $0x2f0] ss:$12 sps:$4 sm:$0xff]  }
  0x84   :  { %2664 = vmatpush1.bf16.msra.mxu0 %v4147_v16  ;;  %3679 = vmatprep.subr.bf16.mxu1 %v4155_v19  ;;  %v4230_v16 = vld [vmem:[%s5704_s1 + $0x76c] ss:$12 sps:$4 sm:$0xff]   ;;  %v4232_v19 = vld [vmem:[%s5704_s1 + $0x230] ss:$12 sps:$4 sm:$0xff]  }
  0x85   :  { %2665 = vmatprep.subr.bf16.mxu0 %v4154_v18  ;;  %2546 = vmatprep.mubr.bf16.mxu1 %v4911_v20  ;;  %v4228_v18 = vld [vmem:[%s5704_s1 + $0x768] ss:$12 sps:$4 sm:$0xff]  }
  0x86   :  { %2652 = vmatprep.mubr.bf16.mxu0 %v4961_v36 }
  0x87   :  { %3680 = vmatpush3.bf16.msra.mxu1 %v4156_v22  ;;  %v4239_v22 = vld [vmem:[%s5704_s1 + $0x3c8] ss:$12 sps:$4 sm:$0xff]  }
  0x88   :  { %2666 = vmatpush1.bf16.msra.mxu0 %v4152_v21  ;;  %3681 = vmatprep.subr.bf16.mxu1 %v4163_v24  ;;  %v4238_v21 = vld [vmem:[%s5704_s1 + $0x784] ss:$12 sps:$4 sm:$0xff]   ;;  %v4236_v24 = vld [vmem:[%s5704_s1 + $0x780] ss:$12 sps:$4 sm:$0xff]  }
  0x89   :  { %2667 = vmatprep.subr.bf16.mxu0 %v4162_v23  ;;  %v5127_v23 = vld [vmem:[%s5705_s0 + $0x20] ss:$56 sps:$4 sm:$0xff]  }
  0x8a   :  { %2547 = vmatmul.mubr.bf16.gmra.mrb[4].mxu1 %v4930_v25 }
  0x8b   :  { %3682 = vmatpush3.bf16.msra.mxu1 %v4164_v27  ;;  %2854 = vmatprep.mubr.bf16.mxu1 %v4600_v48  ;;  %v4975_v48 = vld [vmem:[%s5705_s0 + $0x88] ss:$56 sps:$4 sm:$0xff]  }
  0x8c   :  { %2668 = vmatpush1.bf16.msra.mxu0 %v4160_v26  ;;  %3683 = vmatprep.subr.bf16.mxu1 %v4168_v31  ;;  %v4240_v26 = vld [vmem:[%s5704_s1 + $0x308] ss:$12 sps:$4 sm:$0xff]   ;;  %v4241_v31 = vld [vmem:[%s5704_s1 + $0x798] ss:$12 sps:$4 sm:$0xff]  }
  0x8d   :  { %2669 = vmatprep.subr.bf16.mxu0 %v4167_v30  ;;  %2653 = vmatmul.mubr.bf16.gmra.mrb[4].mxu0 %v4975_v48  ;;  %v4243_v27 = vld [vmem:[%s5704_s1 + $0x79c] ss:$12 sps:$4 sm:$0xff]   ;;  %v4244_v30 = vld [vmem:[%s5704_s1 + $0x3e0] ss:$12 sps:$4 sm:$0xff]  }
  0x8e   :  { %2695 = vmatprep.mubr.bf16.mxu0 %v4997_v46 }
  0x8f   :  { %3684 = vmatpush3.bf16.msra.mxu1 %v4169_v33  ;;  %v4248_v33 = vld [vmem:[%s5704_s1 + $0x7b4] ss:$12 sps:$4 sm:$0xff]  }
  0x90   :  { %2670 = vmatpush1.bf16.msra.mxu0 %v4165_v32  ;;  %3685 = vmatprep.subr.bf16.mxu1 %v4173_v35  ;;  %v4245_v32 = vld [vmem:[%s5704_s1 + $0x320] ss:$12 sps:$4 sm:$0xff]   ;;  %v4246_v35 = vld [vmem:[%s5704_s1 + $0x7b0] ss:$12 sps:$4 sm:$0xff]  }
  0x91   :  { %2671 = vmatprep.subr.bf16.mxu0 %v4172_v34  ;;  %v4249_v34 = vld [vmem:[%s5704_s1 + $0x3f8] ss:$12 sps:$4 sm:$0xff]  }
  0x93   :  { %3686 = vmatpush3.bf16.msra.mxu1 %v4174_v38  ;;  %v4253_v38 = vld [vmem:[%s5704_s1 + $0x7cc] ss:$12 sps:$4 sm:$0xff]  }
  0x94   :  { %2672 = vmatpush1.bf16.msra.mxu0 %v4170_v37  ;;  %3687 = vmatprep.subr.bf16.mxu1 %v4178_v40  ;;  %v4250_v37 = vld [vmem:[%s5704_s1 + $0x338] ss:$12 sps:$4 sm:$0xff]   ;;  %v4251_v40 = vld [vmem:[%s5704_s1 + $0x7c8] ss:$12 sps:$4 sm:$0xff]  }
  0x95   :  { %2673 = vmatprep.subr.bf16.mxu0 %v4177_v39  ;;  %v4254_v39 = vld [vmem:[%s5704_s1 + $0x410] ss:$12 sps:$4 sm:$0xff]  }
  0x97   :  { %3688 = vmatpush3.bf16.msra.mxu1 %v4179_v43  ;;  %v4258_v43 = vld [vmem:[%s5704_s1 + $0x7e4] ss:$12 sps:$4 sm:$0xff]  }
  0x98   :  { %2674 = vmatpush1.bf16.msra.mxu0 %v4175_v42  ;;  %3689 = vmatprep.subr.bf16.mxu1 %v4183_v45  ;;  %v4255_v42 = vld [vmem:[%s5704_s1 + $0x350] ss:$12 sps:$4 sm:$0xff]   ;;  %v5199_v45 = vld [vmem:[%s5705_s0 + $0x2c] ss:$56 sps:$4 sm:$0xff]  }
  0x99   :  { %2675 = vmatprep.subr.bf16.mxu0 %v4182_v44  ;;  %v4259_v44 = vld [vmem:[%s5704_s1 + $0x428] ss:$12 sps:$4 sm:$0xff]  }
  0x9b   :  { %3690 = vmatpush3.bf16.msra.mxu1 %v4184_v49  ;;  %v4260_v49 = vld [vmem:[%s5704_s1 + $0x368] ss:$12 sps:$4 sm:$0xff]  }
  0x9c   :  { %2676 = vmatpush1.bf16.msra.mxu0 %v4180_v47  ;;  %3691 = vmatprep.subr.bf16.mxu1 %v4188_v51  ;;  %v4256_v47 = vld [vmem:[%s5704_s1 + $0x7e0] ss:$12 sps:$4 sm:$0xff]  }
  0x9d   :  { %2677 = vmatprep.subr.bf16.mxu0 %v4187_v50  ;;  %v4263_v50 = vld [vmem:[%s5704_s1 + $0x7fc] ss:$12 sps:$4 sm:$0xff]   ;;  %v4264_v51 = vld [vmem:[%s5704_s1 + $0x440] ss:$12 sps:$4 sm:$0xff]  }
  0x9f   :  { %3692 = vmatpush3.bf16.msra.mxu1 %v4189_v53  ;;  %v4265_v53 = vld [vmem:[%s5704_s1 + $0x380] ss:$12 sps:$4 sm:$0xff]  }
  0xa0   :  { %2678 = vmatpush1.bf16.msra.mxu0 %v4185_v52  ;;  %3705 = vmatprep.subr.bf16.mxu1 %v4193_v55  ;;  %v4261_v52 = vld [vmem:[%s5704_s1 + $0x7f8] ss:$12 sps:$4 sm:$0xff]  }
  0xa1   :  { %2679 = vmatprep.subr.bf16.mxu0 %v4192_v54  ;;  %v4268_v54 = vld [vmem:[%s5704_s1 + $0x814] ss:$12 sps:$4 sm:$0xff]   ;;  %v4269_v55 = vld [vmem:[%s5704_s1 + $0x458] ss:$12 sps:$4 sm:$0xff]  }
  0xa2   :  { %2855 = vmatmul.mubr.bf16.vlgmr.msra.gmra.mrb[8].mxu1 %v4663_v4  ;;  %v4200_v4 = vld [vmem:[%s5704_s1 + $0x6f0] ss:$12 sps:$4 sm:$0xff]  }
  0xa3   :  { %3706 = vmatpush3.bf16.msra.mxu1 %v4194_v57  ;;  %2862 = vmatprep.mubr.bf16.mxu1 %v4738_v28  ;;  %v4208_v28 = vld [vmem:[%s5704_s1 + $0x290] ss:$12 sps:$4 sm:$0xff]   ;;  %v4270_v57 = vld [vmem:[%s5704_s1 + $0x398] ss:$12 sps:$4 sm:$0xff]  }
  0xa4   :  { %2680 = vmatpush1.bf16.msra.mxu0 %v4190_v56  ;;  %3707 = vmatprep.subr.bf16.mxu1 %v4198_v59  ;;  %v4266_v56 = vld [vmem:[%s5704_s1 + $0x810] ss:$12 sps:$4 sm:$0xff]  }
  0xa5   :  { %2681 = vmatprep.subr.bf16.mxu0 %v4197_v58  ;;  %v4273_v58 = vld [vmem:[%s5704_s1 + $0x82c] ss:$12 sps:$4 sm:$0xff]   ;;  %v4274_v59 = vld [vmem:[%s5704_s1 + $0x470] ss:$12 sps:$4 sm:$0xff]  }
  0xa7   :  { %3708 = vmatpush3.bf16.msra.mxu1 %v4199_v61  ;;  %v4275_v61 = vld [vmem:[%s5704_s1 + $0x3b0] ss:$12 sps:$4 sm:$0xff]  }
  0xa8   :  { %2682 = vmatpush1.bf16.msra.mxu0 %v4195_v60  ;;  %3709 = vmatprep.subr.bf16.mxu1 %v4203_v63  ;;  %v4271_v60 = vld [vmem:[%s5704_s1 + $0x828] ss:$12 sps:$4 sm:$0xff]  }
  0xa9   :  { %2683 = vmatprep.subr.bf16.mxu0 %v4202_v62  ;;  %v4278_v62 = vld [vmem:[%s5704_s1 + $0x844] ss:$12 sps:$4 sm:$0xff]   ;;  %v4279_v63 = vld [vmem:[%s5704_s1 + $0x548] ss:$12 sps:$4 sm:$0xff]  }
  0xaa   :  { %2863 = vmatmul.mubr.bf16.gmra.mrb[12].mxu1 %v4743_v29  ;;  %v4214_v29 = vld [vmem:[%s5704_s1 + $0x1e8] ss:$12 sps:$4 sm:$0xff]  }
  0xab   :  { %3710 = vmatpush3.bf16.msra.mxu1 %v4204_v0  ;;  %2903 = vmatprep.mubr.bf16.mxu1 %v4783_v41  ;;  %v4215_v41 = vld [vmem:[%s5704_s1 + $0x738] ss:$12 sps:$4 sm:$0xff]   ;;  %v4280_v0 = vld [vmem:[%s5704_s1 + $0x488] ss:$12 sps:$4 sm:$0xff]  }
  0xac   :  { %2684 = vmatpush1.bf16.msra.mxu0 %v4200_v4  ;;  %3711 = vmatprep.subr.bf16.mxu1 %v4208_v28  ;;  %v4276_v4 = vld [vmem:[%s5704_s1 + $0x840] ss:$12 sps:$4 sm:$0xff]  }
  0xad   :  { %2685 = vmatprep.subr.bf16.mxu0 %v4207_v1  ;;  %v4283_v1 = vld [vmem:[%s5704_s1 + $0x85c] ss:$12 sps:$4 sm:$0xff]   ;;  %v4284_v28 = vld [vmem:[%s5704_s1 + $0x560] ss:$12 sps:$4 sm:$0xff]  }
  0xaf   :  { %3712 = vmatpush3.bf16.msra.mxu1 %v4209_v3  ;;  %v4281_v3 = vld [vmem:[%s5704_s1 + $0x858] ss:$12 sps:$4 sm:$0xff]  }
  0xb0   :  { %2686 = vmatpush1.bf16.msra.mxu0 %v4205_v2  ;;  %3713 = vmatprep.subr.bf16.mxu1 %v4213_v6  ;;  %v4428_v2 = vld [vmem:[%s5705_s0 + $0x10] ss:$56 sps:$4 sm:$0xff]   ;;  %v4288_v6 = vld [vmem:[%s5704_s1 + $0x874] ss:$12 sps:$4 sm:$0xff]  }
  0xb1   :  { %2687 = vmatprep.subr.bf16.mxu0 %v4212_v5  ;;  %v4285_v5 = vld [vmem:[%s5704_s1 + $0x4a0] ss:$12 sps:$4 sm:$0xff]  }
  0xb3   :  { %3714 = vmatpush3.bf16.msra.mxu1 %v4214_v29  ;;  %v4429_v29 = vld [vmem:[%s5705_s0 + $0x84] ss:$56 sps:$4 sm:$0xff]  }
  0xb4   :  { %2688 = vmatpush1.bf16.msra.mxu0 %v4210_v7  ;;  %3715 = vmatprep.subr.bf16.mxu1 %v4218_v9  ;;  %v4289_v7 = vld [vmem:[%s5704_s1 + $0x578] ss:$12 sps:$4 sm:$0xff]  }
  0xb5   :  { %2689 = vmatprep.subr.bf16.mxu0 %v4217_v8  ;;  %v4286_v8 = vld [vmem:[%s5704_s1 + $0x870] ss:$12 sps:$4 sm:$0xff]   ;;  %v4290_v9 = vld [vmem:[%s5704_s1 + $0x4b8] ss:$12 sps:$4 sm:$0xff]  }
  0xb7   :  { %3716 = vmatpush3.bf16.msra.mxu1 %v4219_v10  ;;  %v4294_v10 = vld [vmem:[%s5704_s1 + $0x590] ss:$12 sps:$4 sm:$0xff]  }
  0xb8   :  { %2690 = vmatpush1.bf16.msra.mxu0 %v4215_v41  ;;  %3717 = vmatprep.subr.bf16.mxu1 %v4225_v13  ;;  %v4293_v41 = vld [vmem:[%s5704_s1 + $0x88c] ss:$12 sps:$4 sm:$0xff]   ;;  %v4291_v13 = vld [vmem:[%s5704_s1 + $0x888] ss:$12 sps:$4 sm:$0xff]  }
  0xb9   :  { %2691 = vmatprep.subr.bf16.mxu0 %v4224_v11  ;;  %v4430_v11 = vld [vmem:[%s5705_s0 + $0x80] ss:$56 sps:$4 sm:$0xff]  }
  0xbb   :  { %3718 = vmatpush3.bf16.msra.mxu1 %v4227_v15  ;;  %v4298_v15 = vld [vmem:[%s5704_s1 + $0x8a4] ss:$12 sps:$4 sm:$0xff]  }
  0xbc   :  { %2692 = vmatpush1.bf16.msra.mxu0 %v4222_v14  ;;  %3719 = vmatprep.subr.bf16.mxu1 %v4231_v17  ;;  %v4295_v14 = vld [vmem:[%s5704_s1 + $0x4d0] ss:$12 sps:$4 sm:$0xff]   ;;  %v4296_v17 = vld [vmem:[%s5704_s1 + $0x8a0] ss:$12 sps:$4 sm:$0xff]  }
  0xbd   :  { %2693 = vmatprep.subr.bf16.mxu0 %v4230_v16  ;;  %v4299_v16 = vld [vmem:[%s5704_s1 + $0x5a8] ss:$12 sps:$4 sm:$0xff]  }
  0xbf   :  { %3720 = vmatpush3.bf16.msra.mxu1 %v4232_v19  ;;  %v4300_v19 = vld [vmem:[%s5704_s1 + $0x4e8] ss:$12 sps:$4 sm:$0xff]  }
  0xc0   :  { %2694 = vmatpush1.bf16.msra.mxu0 %v4228_v18  ;;  %3733 = vmatprep.subr.bf16.mxu1 %v4239_v22  ;;  %v4431_v18 = vld [vmem:[%s5705_s0 + $0x1c] ss:$56 sps:$4 sm:$0xff]   ;;  %v4304_v22 = vld [vmem:[%s5704_s1 + $0x5c0] ss:$12 sps:$4 sm:$0xff]  }
  0xc1   :  { %2716 = vmatprep.subr.bf16.mxu0 %v4238_v21  ;;  %v4303_v21 = vld [vmem:[%s5704_s1 + $0x8bc] ss:$12 sps:$4 sm:$0xff]  }
  0xc2   :  { %2904 = vmatmul.mubr.bf16.vlgmr.msra.gmra.mrb[16].mxu1 %v4885_v12  ;;  %v5159_v12 = vld [vmem:[%s5705_s0 + $0x94] ss:$56 sps:$4 sm:$0xff]  }
  0xc3   :  { %2696 = vmatmul.mubr.bf16.vlgmr.msra.gmra.mrb[0].mxu0 %v5127_v23  ;;  %3734 = vmatpush3.bf16.msra.mxu1 %v4240_v26  ;;  %v4305_v26 = vld [vmem:[%s5704_s1 + $0x500] ss:$12 sps:$4 sm:$0xff]  }
  0xc4   :  { %2717 = vmatpush1.bf16.msra.mxu0 %v4236_v24  ;;  %3735 = vmatprep.subr.bf16.mxu1 %v4244_v30  ;;  %v4301_v24 = vld [vmem:[%s5704_s1 + $0x8b8] ss:$12 sps:$4 sm:$0xff]  }
  0xc5   :  { %2718 = vmatprep.subr.bf16.mxu0 %v4243_v27  ;;  %2911 = vmatprep.mubr.bf16.mxu1 %v4911_v20  ;;  %v5173_v20 = vld [vmem:[%s5705_s0 + $0x90] ss:$56 sps:$4 sm:$0xff]   ;;  %v4310_v27 = vld [vmem:[%s5704_s1 + $0x8d4] ss:$12 sps:$4 sm:$0xff]   ;;  %v4311_v30 = vld [vmem:[%s5704_s1 + $0x5d8] ss:$12 sps:$4 sm:$0xff]  }
  0xc6   :  { %2705 = vmatprep.mubr.bf16.mxu0 %v5159_v12 }
  0xc7   :  { %3736 = vmatpush3.bf16.msra.mxu1 %v4245_v32  ;;  %v4313_v32 = vld [vmem:[%s5704_s1 + $0x518] ss:$12 sps:$4 sm:$0xff]  }
  0xc8   :  { %2719 = vmatpush1.bf16.msra.mxu0 %v4241_v31  ;;  %3737 = vmatprep.subr.bf16.mxu1 %v4249_v34  ;;  %v4308_v31 = vld [vmem:[%s5704_s1 + $0x8d0] ss:$12 sps:$4 sm:$0xff]  }
  0xc9   :  { %2720 = vmatprep.subr.bf16.mxu0 %v4248_v33  ;;  %v4316_v33 = vld [vmem:[%s5704_s1 + $0x8ec] ss:$12 sps:$4 sm:$0xff]   ;;  %v4317_v34 = vld [vmem:[%s5704_s1 + $0x5f0] ss:$12 sps:$4 sm:$0xff]  }
  0xca   :  { %2912 = vmatmul.mubr.bf16.gmra.mrb[20].mxu1 %v4930_v25  ;;  %v4427_v25 = vld [vmem:[%s5705_s0 + $0x14] ss:$56 sps:$4 sm:$0xff]  }
  0xcb   :  { %2706 = vmatmul.mubr.bf16.gmra.mrb[4].mxu0 %v5173_v20  ;;  %3738 = vmatpush3.bf16.msra.mxu1 %v4250_v37  ;;  %v4318_v37 = vld [vmem:[%s5704_s1 + $0x530] ss:$12 sps:$4 sm:$0xff]  }
  0xcc   :  { %2721 = vmatpush1.bf16.msra.mxu0 %v4246_v35  ;;  %3739 = vmatprep.subr.bf16.mxu1 %v4254_v39  ;;  %v4314_v35 = vld [vmem:[%s5704_s1 + $0x8e8] ss:$12 sps:$4 sm:$0xff]  }
  0xcd   :  { %2722 = vmatprep.subr.bf16.mxu0 %v4253_v38  ;;  %2952 = vmatprep.mubr.bf16.mxu1 %v4427_v25  ;;  %v4324_v38 = vld [vmem:[%s5704_s1 + $0x904] ss:$12 sps:$4 sm:$0xff]   ;;  %v4325_v39 = vld [vmem:[%s5704_s1 + $0x6c8] ss:$12 sps:$4 sm:$0xff]   ;;  %v4330_v25 = vld [vmem:[%s5704_s1 + $0x6e0] ss:$12 sps:$4 sm:$0xff]  }
  0xce   :  { %2748 = vmatprep.mubr.bf16.mxu0 %v5199_v45 }
  0xcf   :  { %3740 = vmatpush3.bf16.msra.mxu1 %v4255_v42  ;;  %v4322_v42 = vld [vmem:[%s5704_s1 + $0x900] ss:$12 sps:$4 sm:$0xff]  }
  0xd0   :  { %2723 = vmatpush1.bf16.msra.mxu0 %v4251_v40  ;;  %3741 = vmatprep.subr.bf16.mxu1 %v4259_v44  ;;  %v5361_v40 = vld [vmem:[%s5705_s0 + $0x28] ss:$56 sps:$4 sm:$0xff]  }
  0xd1   :  { %2724 = vmatprep.subr.bf16.mxu0 %v4258_v43  ;;  %v4326_v43 = vld [vmem:[%s5704_s1 + $0x608] ss:$12 sps:$4 sm:$0xff]  }
  0xd2   :  { %v4329_v44 = vld [vmem:[%s5704_s1 + $0x91c] ss:$12 sps:$4 sm:$0xff]  }
  0xd3   :  { %3742 = vmatpush3.bf16.msra.mxu1 %v4260_v49  ;;  %v5381_v49 = vld [vmem:[%s5705_s0 + $0x9c] ss:$56 sps:$4 sm:$0xff]  }
  0xd4   :  { %2725 = vmatpush1.bf16.msra.mxu0 %v4256_v47  ;;  %3743 = vmatprep.subr.bf16.mxu1 %v4264_v51  ;;  %v4327_v47 = vld [vmem:[%s5704_s1 + $0x918] ss:$12 sps:$4 sm:$0xff]   ;;  %v4331_v51 = vld [vmem:[%s5704_s1 + $0x620] ss:$12 sps:$4 sm:$0xff]  }
  0xd5   :  { %2726 = vmatprep.subr.bf16.mxu0 %v4263_v50  ;;  %v4432_v50 = vld [vmem:[%s5705_s0 + $0x18] ss:$56 sps:$4 sm:$0xff]  }
  0xd7   :  { %3744 = vmatpush3.bf16.msra.mxu1 %v4265_v53  ;;  %v4335_v53 = vld [vmem:[%s5704_s1 + $0x6f8] ss:$12 sps:$4 sm:$0xff]  }
  0xd8   :  { %2727 = vmatpush1.bf16.msra.mxu0 %v4261_v52  ;;  %3745 = vmatprep.subr.bf16.mxu1 %v4269_v55  ;;  %v4334_v52 = vld [vmem:[%s5704_s1 + $0x934] ss:$12 sps:$4 sm:$0xff]   ;;  %v4336_v55 = vld [vmem:[%s5704_s1 + $0x638] ss:$12 sps:$4 sm:$0xff]  }
  0xd9   :  { %2728 = vmatprep.subr.bf16.mxu0 %v4268_v54  ;;  %v4332_v54 = vld [vmem:[%s5704_s1 + $0x930] ss:$12 sps:$4 sm:$0xff]  }
  0xdb   :  { %3746 = vmatpush3.bf16.msra.mxu1 %v4270_v57  ;;  %v4340_v57 = vld [vmem:[%s5704_s1 + $0x710] ss:$12 sps:$4 sm:$0xff]  }
  0xdc   :  { %2729 = vmatpush1.bf16.msra.mxu0 %v4266_v56  ;;  %3747 = vmatprep.subr.bf16.mxu1 %v4274_v59  ;;  %v5407_v56 = vld [vmem:[%s5705_s0 + $0x98] ss:$56 sps:$4 sm:$0xff]   ;;  %v4337_v59 = vld [vmem:[%s5704_s1 + $0x948] ss:$12 sps:$4 sm:$0xff]  }
  0xdd   :  { %2730 = vmatprep.subr.bf16.mxu0 %v4273_v58  ;;  %v5418_v58 = vld [vmem:[%s5705_s0 + $0x34] ss:$56 sps:$4 sm:$0xff]  }
  0xdf   :  { %3748 = vmatpush3.bf16.msra.mxu1 %v4275_v61  ;;  %v4344_v61 = vld [vmem:[%s5704_s1 + $0x964] ss:$12 sps:$4 sm:$0xff]  }
  0xe0   :  { %2731 = vmatpush1.bf16.msra.mxu0 %v4271_v60  ;;  %3761 = vmatprep.subr.bf16.mxu1 %v4279_v63  ;;  %v4341_v60 = vld [vmem:[%s5704_s1 + $0x650] ss:$12 sps:$4 sm:$0xff]   ;;  %v4346_v63 = vld [vmem:[%s5704_s1 + $0x668] ss:$12 sps:$4 sm:$0xff]  }
  0xe1   :  { %2732 = vmatprep.subr.bf16.mxu0 %v4278_v62  ;;  %v4342_v62 = vld [vmem:[%s5704_s1 + $0x960] ss:$12 sps:$4 sm:$0xff]  }
  0xe2   :  { %2953 = vmatmul.mubr.bf16.vlgmr.msra.gmra.mrb[24].mxu1 %v4428_v2  ;;  %v4355_v2 = vld [vmem:[%s5704_s1 + $0x758] ss:$12 sps:$4 sm:$0xff]  }
  0xe3   :  { %3762 = vmatpush3.bf16.msra.mxu1 %v4280_v0  ;;  %2960 = vmatprep.mubr.bf16.mxu1 %v4429_v29  ;;  %v4350_v0 = vld [vmem:[%s5704_s1 + $0x740] ss:$12 sps:$4 sm:$0xff]   ;;  %v4357_v29 = vld [vmem:[%s5704_s1 + $0x9a8] ss:$12 sps:$4 sm:$0xff]  }
  0xe4   :  { %2733 = vmatpush1.bf16.msra.mxu0 %v4276_v4  ;;  %3763 = vmatprep.subr.bf16.mxu1 %v4284_v28  ;;  %v4349_v4 = vld [vmem:[%s5704_s1 + $0x97c] ss:$12 sps:$4 sm:$0xff]   ;;  %v4354_v28 = vld [vmem:[%s5704_s1 + $0x994] ss:$12 sps:$4 sm:$0xff]  }
  0xe5   :  { %2734 = vmatprep.subr.bf16.mxu0 %v4283_v1  ;;  %v4351_v1 = vld [vmem:[%s5704_s1 + $0x680] ss:$12 sps:$4 sm:$0xff]  }
  0xe7   :  { %3764 = vmatpush3.bf16.msra.mxu1 %v4285_v5  ;;  %v4356_v5 = vld [vmem:[%s5704_s1 + $0x698] ss:$12 sps:$4 sm:$0xff]  }
  0xe8   :  { %2735 = vmatpush1.bf16.msra.mxu0 %v4281_v3  ;;  %3765 = vmatprep.subr.bf16.mxu1 %v4289_v7  ;;  %v4352_v3 = vld [vmem:[%s5704_s1 + $0x990] ss:$12 sps:$4 sm:$0xff]  }
  0xe9   :  { %2736 = vmatprep.subr.bf16.mxu0 %v4288_v6  ;;  %v4359_v6 = vld [vmem:[%s5704_s1 + $0x9ac] ss:$12 sps:$4 sm:$0xff]   ;;  %v4360_v7 = vld [vmem:[%s5704_s1 + $0x770] ss:$12 sps:$4 sm:$0xff]  }
  0xea   :  { %2961 = vmatmul.mubr.bf16.gmra.mrb[28].mxu1 %v4430_v11  ;;  %v4366_v11 = vld [vmem:[%s5704_s1 + $0x788] ss:$12 sps:$4 sm:$0xff]  }
  0xeb   :  { %3766 = vmatpush3.bf16.msra.mxu1 %v4290_v9  ;;  %3001 = vmatprep.mubr.bf16.mxu1 %v4431_v18  ;;  %v4364_v9 = vld [vmem:[%s5704_s1 + $0x9c4] ss:$12 sps:$4 sm:$0xff]  }
  0xec   :  { %2737 = vmatpush1.bf16.msra.mxu0 %v4286_v8  ;;  %3767 = vmatprep.subr.bf16.mxu1 %v4294_v10  ;;  %v4361_v8 = vld [vmem:[%s5704_s1 + $0x6b0] ss:$12 sps:$4 sm:$0xff]   ;;  %v4362_v10 = vld [vmem:[%s5704_s1 + $0x9c0] ss:$12 sps:$4 sm:$0xff]  }
  0xed   :  { %2738 = vmatprep.subr.bf16.mxu0 %v4293_v41  ;;  %v4365_v41 = vld [vmem:[%s5704_s1 + $0x848] ss:$12 sps:$4 sm:$0xff]   ;;  %v4372_v18 = vld [vmem:[%s5704_s1 + $0x9f0] ss:$12 sps:$4 sm:$0xff]  }
  0xef   :  { %3768 = vmatpush3.bf16.msra.mxu1 %v4295_v14  ;;  %v4370_v14 = vld [vmem:[%s5704_s1 + $0x860] ss:$12 sps:$4 sm:$0xff]  }
  0xf0   :  { %2739 = vmatpush1.bf16.msra.mxu0 %v4291_v13  ;;  %3769 = vmatprep.subr.bf16.mxu1 %v4299_v16  ;;  %v4369_v13 = vld [vmem:[%s5704_s1 + $0x9dc] ss:$12 sps:$4 sm:$0xff]   ;;  %v4371_v16 = vld [vmem:[%s5704_s1 + $0x7a0] ss:$12 sps:$4 sm:$0xff]  }
  0xf1   :  { %2740 = vmatprep.subr.bf16.mxu0 %v4298_v15  ;;  %v4367_v15 = vld [vmem:[%s5704_s1 + $0x9d8] ss:$12 sps:$4 sm:$0xff]  }
  0xf3   :  { %3770 = vmatpush3.bf16.msra.mxu1 %v4300_v19  ;;  %v4376_v19 = vld [vmem:[%s5704_s1 + $0x7b8] ss:$12 sps:$4 sm:$0xff]  }
  0xf4   :  { %2741 = vmatpush1.bf16.msra.mxu0 %v4296_v17  ;;  %3771 = vmatprep.subr.bf16.mxu1 %v4304_v22  ;;  %v4374_v17 = vld [vmem:[%s5704_s1 + $0x9f4] ss:$12 sps:$4 sm:$0xff]  }
  0xf5   :  { %2742 = vmatprep.subr.bf16.mxu0 %v4303_v21  ;;  %v4379_v21 = vld [vmem:[%s5704_s1 + $0xa0c] ss:$12 sps:$4 sm:$0xff]   ;;  %v4377_v22 = vld [vmem:[%s5704_s1 + $0xa08] ss:$12 sps:$4 sm:$0xff]  }
  0xf7   :  { %3772 = vmatpush3.bf16.msra.mxu1 %v4305_v26  ;;  %v4384_v26 = vld [vmem:[%s5704_s1 + $0xa24] ss:$12 sps:$4 sm:$0xff]  }
  0xf8   :  { %2743 = vmatpush1.bf16.msra.mxu0 %v4301_v24  ;;  %3773 = vmatprep.subr.bf16.mxu1 %v4311_v30  ;;  %v4381_v24 = vld [vmem:[%s5704_s1 + $0x7d0] ss:$12 sps:$4 sm:$0xff]   ;;  %v4386_v30 = vld [vmem:[%s5704_s1 + $0x7e8] ss:$12 sps:$4 sm:$0xff]  }
  0xf9   :  { %2744 = vmatprep.subr.bf16.mxu0 %v4310_v27  ;;  %v4382_v27 = vld [vmem:[%s5704_s1 + $0xa20] ss:$12 sps:$4 sm:$0xff]  }
  0xfb   :  { %3774 = vmatpush3.bf16.msra.mxu1 %v4313_v32  ;;  %v4387_v32 = vld [vmem:[%s5704_s1 + $0xa38] ss:$12 sps:$4 sm:$0xff]  }
  0xfc   :  { %2745 = vmatpush1.bf16.msra.mxu0 %v4308_v31  ;;  %3775 = vmatprep.subr.bf16.mxu1 %v4317_v34  ;;  %v4389_v31 = vld [vmem:[%s5704_s1 + $0xa3c] ss:$12 sps:$4 sm:$0xff]   ;;  %v4397_v34 = vld [vmem:[%s5704_s1 + $0xa54] ss:$12 sps:$4 sm:$0xff]  }
  0xfd   :  { %2746 = vmatprep.subr.bf16.mxu0 %v4316_v33  ;;  %v4391_v33 = vld [vmem:[%s5704_s1 + $0x800] ss:$12 sps:$4 sm:$0xff]  }
  0xff   :  { %3776 = vmatpush3.bf16.msra.mxu1 %v4318_v37  ;;  %v4395_v37 = vld [vmem:[%s5704_s1 + $0xa50] ss:$12 sps:$4 sm:$0xff]  }
 0x100   :  { %2747 = vmatpush1.bf16.msra.mxu0 %v4314_v35  ;;  %3789 = vmatprep.subr.bf16.mxu1 %v4325_v39  ;;  %v4398_v35 = vld [vmem:[%s5704_s1 + $0x8d8] ss:$12 sps:$4 sm:$0xff]  }
 0x101   :  { %2769 = vmatprep.subr.bf16.mxu0 %v4324_v38  ;;  %v4399_v38 = vld [vmem:[%s5704_s1 + $0x818] ss:$12 sps:$4 sm:$0xff]  }
 0x102   :  { %3002 = vmatmul.mubr.bf16.vlgmr.msra.gmra.mrb[32].mxu1 %v4432_v50  ;;  %v4402_v39 = vld [vmem:[%s5704_s1 + $0xa6c] ss:$12 sps:$4 sm:$0xff]   ;;  %v4409_v50 = vld [vmem:[%s5704_s1 + $0x908] ss:$12 sps:$4 sm:$0xff]  }
 0x103   :  { %2749 = vmatmul.mubr.bf16.vlgmr.msra.gmra.mrb[0].mxu0 %v5361_v40  ;;  %3790 = vmatpush3.bf16.msra.mxu1 %v4326_v43  ;;  %v4400_v43 = vld [vmem:[%s5704_s1 + $0xa68] ss:$12 sps:$4 sm:$0xff]  }
 0x104   :  { %2770 = vmatpush1.bf16.msra.mxu0 %v4322_v42  ;;  %3791 = vmatprep.subr.bf16.mxu1 %v4330_v25  ;;  %v4403_v42 = vld [vmem:[%s5704_s1 + $0x8f0] ss:$12 sps:$4 sm:$0xff]   ;;  %v4408_v25 = vld [vmem:[%s5704_s1 + $0x9c8] ss:$12 sps:$4 sm:$0xff]  }
 0x105   :  { %2771 = vmatprep.subr.bf16.mxu0 %v4329_v44  ;;  %3009 = vmatprep.mubr.bf16.mxu1 %v4961_v36  ;;  %v4339_v36 = vld [vmem:[%s5704_s1 + $0x94c] ss:$12 sps:$4 sm:$0xff]   ;;  %v4404_v44 = vld [vmem:[%s5704_s1 + $0x830] ss:$12 sps:$4 sm:$0xff]  }
 0x106   :  { %2758 = vmatprep.mubr.bf16.mxu0 %v5381_v49 }
 0x107   :  { %3792 = vmatpush3.bf16.msra.mxu1 %v4331_v51  ;;  %v4410_v51 = vld [vmem:[%s5704_s1 + $0x9e0] ss:$12 sps:$4 sm:$0xff]  }
 0x108   :  { %2772 = vmatpush1.bf16.msra.mxu0 %v4327_v47  ;;  %3793 = vmatprep.subr.bf16.mxu1 %v4335_v53  ;;  %v5584_v47 = vld [vmem:[%s5705_s0 + $0x30] ss:$56 sps:$4 sm:$0xff]   ;;  %v4411_v53 = vld [vmem:[%s5704_s1 + $0x920] ss:$12 sps:$4 sm:$0xff]  }
 0x109   :  { %2773 = vmatprep.subr.bf16.mxu0 %v4334_v52  ;;  %v4412_v52 = vld [vmem:[%s5705_s0 + $0xa4] ss:$56 sps:$4 sm:$0xff]  }
 0x10a   :  { %3010 = vmatmul.mubr.bf16.gmra.mrb[36].mxu1 %v4975_v48  ;;  %v4345_v48 = vld [vmem:[%s5704_s1 + $0x728] ss:$12 sps:$4 sm:$0xff]  }
 0x10b   :  { %2759 = vmatmul.mubr.bf16.gmra.mrb[4].mxu0 %v5407_v56  ;;  %3794 = vmatpush3.bf16.msra.mxu1 %v4336_v55  ;;  %v4414_v55 = vld [vmem:[%s5705_s0 + $0xa0] ss:$56 sps:$4 sm:$0xff]  }
 0x10c   :  { %2774 = vmatpush1.bf16.msra.mxu0 %v4332_v54  ;;  %3795 = vmatprep.subr.bf16.mxu1 %v4340_v57  ;;  %v4415_v54 = vld [vmem:[%s5704_s1 + $0x9f8] ss:$12 sps:$4 sm:$0xff]   ;;  %v4419_v57 = vld [vmem:[%s5704_s1 + $0xa28] ss:$12 sps:$4 sm:$0xff]  }
 0x10d   :  { %2775 = vmatprep.subr.bf16.mxu0 %v4339_v36  ;;  %3050 = vmatprep.mubr.bf16.mxu1 %v4997_v46  ;;  %v4347_v46 = vld [vmem:[%s5704_s1 + $0x978] ss:$12 sps:$4 sm:$0xff]   ;;  %v4417_v36 = vld [vmem:[%s5704_s1 + $0xa10] ss:$12 sps:$4 sm:$0xff]  }
 0x10e   :  { %2801 = vmatprep.mubr.bf16.mxu0 %v5418_v58 }
 0x10f   :  { %3796 = vmatpush3.bf16.msra.mxu1 %v4341_v60  ;;  %v4422_v60 = vld [vmem:[%s5704_s1 + $0x980] ss:$12 sps:$4 sm:$0xff]  }
 0x110   :  { %2776 = vmatpush1.bf16.msra.mxu0 %v4337_v59  ;;  %3797 = vmatprep.subr.bf16.mxu1 %v4345_v48  ;;  %v4421_v59 = vld [vmem:[%s5704_s1 + $0xa40] ss:$12 sps:$4 sm:$0xff]  }
 0x111   :  { %2777 = vmatprep.subr.bf16.mxu0 %v4344_v61 }
 0x113   :  { %3798 = vmatpush3.bf16.msra.mxu1 %v4346_v63  ;;  %v4424_v63 = vld [vmem:[%s5704_s1 + $0x998] ss:$12 sps:$4 sm:$0xff]  }
 0x114   :  { %2778 = vmatpush1.bf16.msra.mxu0 %v4342_v62  ;;  %3799 = vmatprep.subr.bf16.mxu1 %v4350_v0  ;;  %v4425_v0 = vld [vmem:[%s5704_s1 + $0xa70] ss:$12 sps:$4 sm:$0xff]  }
 0x115   :  { %2779 = vmatprep.subr.bf16.mxu0 %v4349_v4 }
 0x117   :  { %3800 = vmatpush3.bf16.msra.mxu1 %v4351_v1 }
 0x118   :  { %2780 = vmatpush1.bf16.msra.mxu0 %v4347_v46  ;;  %3801 = vmatprep.subr.bf16.mxu1 %v4355_v2  ;;  %v4426_v46 = vld [vmem:[%s5704_s1 + $0x9b0] ss:$12 sps:$4 sm:$0xff]  }
 0x119   :  { %2781 = vmatprep.subr.bf16.mxu0 %v4354_v28 }
 0x11b   :  { %3802 = vmatpush3.bf16.msra.mxu1 %v4356_v5 }
 0x11c   :  { %2782 = vmatpush1.bf16.msra.mxu0 %v4352_v3  ;;  %3803 = vmatprep.subr.bf16.mxu1 %v4360_v7 }
 0x11d   :  { %2783 = vmatprep.subr.bf16.mxu0 %v4359_v6 }
 0x11f   :  { %3804 = vmatpush3.bf16.msra.mxu1 %v4361_v8 }
 0x120   :  { %2784 = vmatpush1.bf16.msra.mxu0 %v4357_v29  ;;  %3817 = vmatprep.subr.bf16.mxu1 %v4365_v41 }
 0x121   :  { %2785 = vmatprep.subr.bf16.mxu0 %v4364_v9 }
 0x122   :  { %3051 = vmatmul.mubr.bf16.vlgmr.msra.gmra.mrb[40].mxu1 %v5127_v23  ;;  %v4375_v23 = vld [vmem:[%s5704_s1 + $0x878] ss:$12 sps:$4 sm:$0xff]  }
 0x123   :  { %3818 = vmatpush3.bf16.msra.mxu1 %v4366_v11  ;;  %3058 = vmatprep.mubr.bf16.mxu1 %v5159_v12  ;;  %v4380_v12 = vld [vmem:[%s5704_s1 + $0x890] ss:$12 sps:$4 sm:$0xff]  }
 0x124   :  { %2786 = vmatpush1.bf16.msra.mxu0 %v4362_v10  ;;  %3819 = vmatprep.subr.bf16.mxu1 %v4370_v14 }
 0x125   :  { %2787 = vmatprep.subr.bf16.mxu0 %v4369_v13 }
 0x127   :  { %3820 = vmatpush3.bf16.msra.mxu1 %v4371_v16 }
 0x128   :  { %2788 = vmatpush1.bf16.msra.mxu0 %v4367_v15  ;;  %3821 = vmatprep.subr.bf16.mxu1 %v4375_v23 }
 0x129   :  { %2789 = vmatprep.subr.bf16.mxu0 %v4374_v17 }
 0x12a   :  { %3059 = vmatmul.mubr.bf16.gmra.mrb[44].mxu1 %v5173_v20  ;;  %v4385_v20 = vld [vmem:[%s5704_s1 + $0x8a8] ss:$12 sps:$4 sm:$0xff]  }
 0x12b   :  { %3822 = vmatpush3.bf16.msra.mxu1 %v4376_v19  ;;  %3099 = vmatprep.mubr.bf16.mxu1 %v5199_v45  ;;  %v4390_v45 = vld [vmem:[%s5704_s1 + $0x8c0] ss:$12 sps:$4 sm:$0xff]  }
 0x12c   :  { %2790 = vmatpush1.bf16.msra.mxu0 %v4372_v18  ;;  %3823 = vmatprep.subr.bf16.mxu1 %v4380_v12 }
 0x12d   :  { %2791 = vmatprep.subr.bf16.mxu0 %v4379_v21 }
 0x12f   :  { %3824 = vmatpush3.bf16.msra.mxu1 %v4381_v24 }
 0x130   :  { %2792 = vmatpush1.bf16.msra.mxu0 %v4377_v22  ;;  %3825 = vmatprep.subr.bf16.mxu1 %v4385_v20 }
 0x131   :  { %2793 = vmatprep.subr.bf16.mxu0 %v4384_v26 }
 0x133   :  { %3826 = vmatpush3.bf16.msra.mxu1 %v4386_v30 }
 0x134   :  { %2794 = vmatpush1.bf16.msra.mxu0 %v4382_v27  ;;  %3827 = vmatprep.subr.bf16.mxu1 %v4390_v45 }
 0x135   :  { %2795 = vmatprep.subr.bf16.mxu0 %v4389_v31 }
 0x137   :  { %3828 = vmatpush3.bf16.msra.mxu1 %v4391_v33 }
 0x138   :  { %2796 = vmatpush1.bf16.msra.mxu0 %v4387_v32  ;;  %3829 = vmatprep.subr.bf16.mxu1 %v4398_v35 }
 0x139   :  { %2797 = vmatprep.subr.bf16.mxu0 %v4397_v34 }
 0x13b   :  { %3830 = vmatpush3.bf16.msra.mxu1 %v4399_v38 }
 0x13c   :  { %2798 = vmatpush1.bf16.msra.mxu0 %v4395_v37  ;;  %3831 = vmatprep.subr.bf16.mxu1 %v4403_v42 }
 0x13d   :  { %2799 = vmatprep.subr.bf16.mxu0 %v4402_v39 }
 0x13f   :  { %3832 = vmatpush3.bf16.msra.mxu1 %v4404_v44 }
 0x140   :  { %2800 = vmatpush1.bf16.msra.mxu0 %v4400_v43  ;;  %3873 = vmatprep.subr.bf16.mxu1 %v4408_v25 }
 0x141   :  { %3845 = vmatprep.subr.bf16.mxu0 %v4408_v25 }
 0x142   :  { %3100 = vmatmul.mubr.bf16.vlgmr.msra.gmra.mrb[48].mxu1 %v5361_v40  ;;  %v4416_v40 = vld [vmem:[%s5704_s1 + $0x938] ss:$12 sps:$4 sm:$0xff]  }
 0x143   :  { %2802 = vmatmul.mubr.bf16.vlgmr.msra.gmra.mrb[0].mxu0 %v5584_v47  ;;  %3881 = vmatpush3.bf16.msra.mxu1 %v4409_v50 }
 0x144   :  { %3846 = vmatpush3.bf16.msra.mxu0 %v4409_v50  ;;  %3874 = vmatprep.subr.bf16.mxu1 %v4410_v51 }
 0x145   :  { %3847 = vmatprep.subr.bf16.mxu0 %v4410_v51  ;;  %2811 = vmatprep.mubr.bf16.mxu0 %v4412_v52 }
 0x146   :  { %3107 = vmatprep.mubr.bf16.mxu1 %v5381_v49  ;;  %v4418_v49 = vld [vmem:[%s5704_s1 + $0x950] ss:$12 sps:$4 sm:$0xff]  }
 0x147   :  { %3882 = vmatpush3.bf16.msra.mxu1 %v4411_v53 }
 0x148   :  { %3848 = vmatpush3.bf16.msra.mxu0 %v4411_v53  ;;  %3875 = vmatprep.subr.bf16.mxu1 %v4415_v54 }
 0x149   :  { %3849 = vmatprep.subr.bf16.mxu0 %v4415_v54 }
 0x14a   :  { %3108 = vmatmul.mubr.bf16.gmra.mrb[52].mxu1 %v5407_v56  ;;  %v4420_v56 = vld [vmem:[%s5704_s1 + $0x968] ss:$12 sps:$4 sm:$0xff]  }
 0x14b   :  { %2812 = vmatmul.mubr.bf16.gmra.mrb[4].mxu0 %v4414_v55  ;;  %3883 = vmatpush3.bf16.msra.mxu1 %v4416_v40 }
 0x14c   :  { %3850 = vmatpush3.bf16.msra.mxu0 %v4416_v40  ;;  %3876 = vmatprep.subr.bf16.mxu1 %v4417_v36 }
 0x14d   :  { %3851 = vmatprep.subr.bf16.mxu0 %v4417_v36  ;;  %3148 = vmatprep.mubr.bf16.mxu0 %v5418_v58  ;;  %v4423_v58 = vld [vmem:[%s5704_s1 + $0xa58] ss:$12 sps:$4 sm:$0xff]  }
 0x14e   :  { %3156 = vmatprep.mubr.bf16.mxu1 %v4412_v52 }
 0x14f   :  { %3884 = vmatpush3.bf16.msra.mxu1 %v4418_v49 }
 0x150   :  { %3852 = vmatpush3.bf16.msra.mxu0 %v4418_v49  ;;  %3877 = vmatprep.subr.bf16.mxu1 %v4419_v57 }
 0x151   :  { %3853 = vmatprep.subr.bf16.mxu0 %v4419_v57 }
 0x153   :  { %3885 = vmatpush3.bf16.msra.mxu1 %v4420_v56 }
 0x154   :  { %3854 = vmatpush3.bf16.msra.mxu0 %v4420_v56  ;;  %3878 = vmatprep.subr.bf16.mxu1 %v4421_v59 }
 0x155   :  { %3855 = vmatprep.subr.bf16.mxu0 %v4421_v59  ;;  %v5633_v61 = vpop.f32.mrb[0].mxu1 }
 0x156   :  { %v5635_v48 = vpop.f32.mrb[1].mxu1 }
 0x157   :  { %v5637_v62 = vpop.f32.mrb[2].mxu1  ;;  %3886 = vmatpush3.bf16.msra.mxu1 %v4422_v60 }
 0x158   :  { %3856 = vmatpush3.bf16.msra.mxu0 %v4422_v60  ;;  %v5642_v4 = vpop.f32.mrb[3].mxu1  ;;  %3879 = vmatprep.subr.bf16.mxu1 %v4423_v58 }
 0x159   :  { %3857 = vmatprep.subr.bf16.mxu0 %v4423_v58 }
 0x15b   :  { %3887 = vmatpush3.bf16.msra.mxu1 %v4424_v63 }
 0x15c   :  { %3858 = vmatpush3.bf16.msra.mxu0 %v4424_v63  ;;  %3880 = vmatprep.subr.bf16.mxu1 %v4425_v0 }
 0x15d   :  { %3859 = vmatprep.subr.bf16.mxu0 %v4425_v0  ;;  %v5650_v1 = vpop.f32.mrb[4].mxu1 }
 0x15e   :  { %v5652_v28 = vpop.f32.mrb[5].mxu1 }
 0x15f   :  { %v5654_v2 = vpop.f32.mrb[6].mxu1  ;;  %3888 = vmatpush3.bf16.msra.mxu1 %v4426_v46 }
 0x160   :  { %3860 = vmatpush3.bf16.msra.mxu0 %v4426_v46  ;;  %v5656_v3 = vpop.f32.mrb[7].mxu1 }
 0x162   :  { %3157 = vmatmul.mubr.bf16.vlgmr.msra.gmra.mrb[56].mxu1 %v4414_v55 }
 0x163   :  { %3149 = vmatmul.mubr.bf16.vlgmr.msra.gmra.mrb[8].mxu0 %v5584_v47 }
 0x175   :  { %v3693_v5 = vpop.f32.mrb[8].mxu1 }
 0x176   :  { %v3694_v6 = vpop.f32.mrb[9].mxu1 }
 0x177   :  { %v3695_v7 = vadd.f32 %v3694_v6, %v3693_v5  ;;  %v3696_v29 = vpop.f32.mrb[10].mxu1 }
 0x178   :  { %v3697_v8 = vpop.f32.mrb[11].mxu1 }
 0x179   :  { %v3698_v9 = vadd.f32 %v3697_v8, %v3696_v29 }
 0x17d   :  { %v3699_v41 = vpop.f32.mrb[12].mxu1 }
 0x17e   :  { %v3700_v10 = vpop.f32.mrb[13].mxu1 }
 0x17f   :  { %v3701_v11 = vadd.f32 %v3700_v10, %v3699_v41  ;;  %v3702_v13 = vpop.f32.mrb[14].mxu1 }
 0x180   :  { %v3703_v14 = vpop.f32.mrb[15].mxu1 }
 0x181   :  { %v3704_v15 = vadd.f32 %v3703_v14, %v3702_v13 }
 0x195   :  { %v3721_v16 = vpop.f32.mrb[16].mxu1 }
 0x196   :  { %v3722_v17 = vpop.f32.mrb[17].mxu1 }
 0x197   :  { %v3723_v23 = vadd.f32 %v3722_v17, %v3721_v16  ;;  %v3724_v18 = vpop.f32.mrb[18].mxu1 }
 0x198   :  { %v3725_v19 = vpop.f32.mrb[19].mxu1 }
 0x199   :  { %v2906_v21 = vadd.f32 %v3723_v23, %v3695_v7  ;;  %v3726_v12 = vadd.f32 %v3725_v19, %v3724_v18 }
 0x19b   :  { %v2909_v22 = vadd.f32 %v3726_v12, %v3698_v9 }
 0x19d   :  { %v3727_v24 = vpop.f32.mrb[20].mxu1 }
 0x19e   :  { %v3728_v26 = vpop.f32.mrb[21].mxu1 }
 0x19f   :  { %v3729_v20 = vadd.f32 %v3728_v26, %v3727_v24  ;;  %v3730_v27 = vpop.f32.mrb[22].mxu1  ;;  %v3206_v24 = vlaneseq }
 0x1a0   :  { %v3731_v30 = vpop.f32.mrb[23].mxu1 }
 0x1a1   :  { %v2914_v31 = vadd.f32 %v3729_v20, %v3701_v11  ;;  %v3732_v45 = vadd.f32 %v3731_v30, %v3730_v27  ;;  %v5659_v26 = vshrl.u32 %v3206_v24, 7  ;;  %v5665_v27 = vld [vmem:[%s5706_s2] sm:$0x7] }
 0x1a3   :  { %v2917_v32 = vadd.f32 %v3732_v45, %v3704_v15  ;;  %v3208_v20 = vsub.s32 0, %v5659_v26  ;;  %v3212_v30 = vsub.s32 1, %v5659_v26 }
 0x1b5   :  { %v3749_v33 = vpop.f32.mrb[24].mxu1 }
 0x1b6   :  { %v3750_v34 = vpop.f32.mrb[25].mxu1 }
 0x1b7   :  { %v3751_v35 = vadd.f32 %v3750_v34, %v3749_v33  ;;  %v3752_v37 = vpop.f32.mrb[26].mxu1  ;;  %v3213_v33 = vrot.slane %v5665_v27, %v3212_v30 }
 0x1b8   :  { %v3753_v38 = vpop.f32.mrb[27].mxu1 }
 0x1b9   :  { %v2955_v39 = vadd.f32 %v3751_v35, %v2906_v21  ;;  %v3754_v42 = vadd.f32 %v3753_v38, %v3752_v37 }
 0x1bb   :  { %v2958_v43 = vadd.f32 %v3754_v42, %v2909_v22 }
 0x1bd   :  { %v3755_v44 = vpop.f32.mrb[28].mxu1 }
 0x1be   :  { %v3756_v25 = vpop.f32.mrb[29].mxu1 }
 0x1bf   :  { %v3757_v47 = vadd.f32 %v3756_v25, %v3755_v44  ;;  %v3758_v50 = vpop.f32.mrb[30].mxu1 }
 0x1c0   :  { %v3759_v51 = vpop.f32.mrb[31].mxu1 }
 0x1c1   :  { %v2963_v52 = vadd.f32 %v3757_v47, %v2914_v31  ;;  %v3760_v53 = vadd.f32 %v3759_v51, %v3758_v50  ;;  %v3209_v31 = vrot.slane %v5665_v27, %v3208_v20 }
 0x1c3   :  { %v2966_v54 = vadd.f32 %v3760_v53, %v2917_v32 }
 0x1d5   :  { %v3777_v55 = vpop.f32.mrb[32].mxu1 }
 0x1d6   :  { %v3778_v40 = vpop.f32.mrb[33].mxu1 }
 0x1d7   :  { %v3779_v36 = vadd.f32 %v3778_v40, %v3777_v55  ;;  %v3780_v49 = vpop.f32.mrb[34].mxu1 }
 0x1d8   :  { %v3781_v57 = vpop.f32.mrb[35].mxu1 }
 0x1d9   :  { %v3004_v56 = vadd.f32 %v3779_v36, %v2955_v39  ;;  %v3782_v59 = vadd.f32 %v3781_v57, %v3780_v49 }
 0x1db   :  { %v3007_v60 = vadd.f32 %v3782_v59, %v2958_v43 }
 0x1dd   :  { %v3783_v58 = vpop.f32.mrb[36].mxu1 }
 0x1de   :  { %v3784_v63 = vpop.f32.mrb[37].mxu1 }
 0x1df   :  { %v3785_v0 = vadd.f32 %v3784_v63, %v3783_v58  ;;  %v3786_v46 = vpop.f32.mrb[38].mxu1 }
 0x1e0   :  { %v3787_v5 = vpop.f32.mrb[39].mxu1 }
 0x1e1   :  { %v3012_v6 = vadd.f32 %v3785_v0, %v2963_v52  ;;  %v3788_v7 = vadd.f32 %v3787_v5, %v3786_v46 }
 0x1e3   :  { %v3015_v29 = vadd.f32 %v3788_v7, %v2966_v54 }
 0x1f5   :  { %v3805_v8 = vpop.f32.mrb[40].mxu1 }
 0x1f6   :  { %v3806_v9 = vpop.f32.mrb[41].mxu1 }
 0x1f7   :  { %v3807_v41 = vadd.f32 %v3806_v9, %v3805_v8  ;;  %v3808_v10 = vpop.f32.mrb[42].mxu1 }
 0x1f8   :  { %v3809_v11 = vpop.f32.mrb[43].mxu1 }
 0x1f9   :  { %v3053_v13 = vadd.f32 %v3807_v41, %v3004_v56  ;;  %v3810_v14 = vadd.f32 %v3809_v11, %v3808_v10 }
 0x1fb   :  { %v3056_v15 = vadd.f32 %v3810_v14, %v3007_v60 }
 0x1fd   :  { %v3811_v16 = vpop.f32.mrb[44].mxu1 }
 0x1fe   :  { %v3812_v17 = vpop.f32.mrb[45].mxu1 }
 0x1ff   :  { %v3813_v23 = vadd.f32 %v3812_v17, %v3811_v16  ;;  %v3814_v18 = vpop.f32.mrb[46].mxu1 }
 0x200   :  { %v3815_v19 = vpop.f32.mrb[47].mxu1 }
 0x201   :  { %v3061_v21 = vadd.f32 %v3813_v23, %v3012_v6  ;;  %v3816_v12 = vadd.f32 %v3815_v19, %v3814_v18 }
 0x203   :  { %v3064_v22 = vadd.f32 %v3816_v12, %v3015_v29 }
 0x215   :  { %v3833_v32 = vpop.f32.mrb[48].mxu1 }
 0x216   :  { %v2803_v45 = vpop.f32.mrb[0].mxu0  ;;  %v3834_v37 = vpop.f32.mrb[49].mxu1 }
 0x217   :  { %v3889_v34 = vadd.f32 %v2803_v45, %v5633_v61  ;;  %v2805_v35 = vpop.f32.mrb[1].mxu0  ;;  %v3835_v39 = vadd.f32 %v3834_v37, %v3833_v32  ;;  %v3836_v43 = vpop.f32.mrb[50].mxu1 }
 0x218   :  { %v3890_v38 = vadd.f32 %v2805_v35, %v5635_v48  ;;  %v2807_v42 = vpop.f32.mrb[2].mxu0  ;;  %v3837_v50 = vpop.f32.mrb[51].mxu1 }
 0x219   :  { %v3221_v44 = vadd.f32 %v3889_v34, %v3209_v31  ;;  %v3891_v25 = vadd.f32 %v2807_v42, %v5637_v62  ;;  %v2809_v47 = vpop.f32.mrb[3].mxu0  ;;  %v3102_v52 = vadd.f32 %v3835_v39, %v3053_v13  ;;  %v3838_v54 = vadd.f32 %v3837_v50, %v3836_v43 }
 0x21a   :  { %v3222_v51 = vadd.f32 %v3890_v38, %v3213_v33  ;;  %v3892_v53 = vadd.f32 %v2809_v47, %v5642_v4 }
 0x21b   :  { %v3233_v55 = vmax.f32 %v3221_v44, 0.0  ;;  %v3224_v40 = vadd.f32 %v3891_v25, %v3209_v31  ;;  %v3105_v49 = vadd.f32 %v3838_v54, %v3056_v15 }
 0x21c   :  { %v3234_v61 = vmax.f32 %v3222_v51, 0.0  ;;  %v3225_v36 = vadd.f32 %v3892_v53, %v3213_v33 }
 0x21d   :  { %v3236_v57 = vmax.f32 %v3224_v40, 0.0  ;;  %v3839_v60 = vpop.f32.mrb[52].mxu1 }
 0x21e   :  { %v3669_v48 = vpack.c.bf16 %v3234_v61, %v3233_v55  ;;  %v3237_v56 = vmax.f32 %v3225_v36, 0.0  ;;  %v2813_v59 = vpop.f32.mrb[4].mxu0  ;;  %v3840_v63 = vpop.f32.mrb[53].mxu1 }
 0x21f   :  { %v3893_v58 = vadd.f32 %v2813_v59, %v5650_v1  ;;  %v2815_v62 = vpop.f32.mrb[5].mxu0  ;;  %v3841_v46 = vadd.f32 %v3840_v63, %v3839_v60  ;;  %v3842_v6 = vpop.f32.mrb[54].mxu1 }
 0x220   :  { %3285 = vst [vmem:[%s5707_s3] sm:$0xff] %v3669_v48  ;;  %v3671_v4 = vpack.c.bf16 %v3237_v56, %v3236_v57  ;;  %v3894_v0 = vadd.f32 %v2815_v62, %v5652_v28  ;;  %v2817_v5 = vpop.f32.mrb[6].mxu0  ;;  %v3843_v9 = vpop.f32.mrb[55].mxu1 }
 0x221   :  { %v3227_v7 = vadd.f32 %v3893_v58, %v3209_v31  ;;  %v3895_v29 = vadd.f32 %v2817_v5, %v5654_v2  ;;  %v2819_v8 = vpop.f32.mrb[7].mxu0  ;;  %v3110_v41 = vadd.f32 %v3841_v46, %v3061_v21  ;;  %v3844_v11 = vadd.f32 %v3843_v9, %v3842_v6 }
 0x222   :  { %3287 = vst [vmem:[%s5707_s3 + $0xc] sm:$0xff] %v3671_v4  ;;  %v3228_v1 = vadd.f32 %v3894_v0, %v3213_v33  ;;  %v3896_v10 = vadd.f32 %v2819_v8, %v5656_v3  ;;  %v3216_v3 = vsub.s32 2, %v5659_v26 }
 0x223   :  { %v3239_v13 = vmax.f32 %v3227_v7, 0.0  ;;  %v3230_v14 = vadd.f32 %v3895_v29, %v3209_v31  ;;  %v3113_v16 = vadd.f32 %v3844_v11, %v3064_v22 }
 0x224   :  { %v3240_v28 = vmax.f32 %v3228_v1, 0.0  ;;  %v3231_v15 = vadd.f32 %v3896_v10, %v3213_v33  ;;  %v3217_v22 = vrot.slane %v5665_v27, %v3216_v3 }
 0x225   :  { %v3242_v17 = vmax.f32 %v3230_v14, 0.0 }
 0x226   :  { %v3673_v23 = vpack.c.bf16 %v3240_v28, %v3239_v13  ;;  %v3243_v18 = vmax.f32 %v3231_v15, 0.0 }
 0x228   :  { %3289 = vst [vmem:[%s5707_s3 + $0x18] sm:$0xff] %v3673_v23  ;;  %v3675_v2 = vpack.c.bf16 %v3243_v18, %v3242_v17 }
 0x22a   :  { %3291 = vst [vmem:[%s5707_s3 + $0x24] sm:$0xff] %v3675_v2 }
 0x235   :  { %v3867_v21 = vpop.f32.mrb[56].mxu1 }
 0x236   :  { %v3861_v19 = vpop.f32.mrb[8].mxu0  ;;  %v3868_v24 = vpop.f32.mrb[57].mxu1 }
 0x237   :  { %v3862_v12 = vpop.f32.mrb[9].mxu0  ;;  %v3869_v30 = vadd.f32 %v3868_v24, %v3867_v21  ;;  %v3870_v45 = vpop.f32.mrb[58].mxu1 }
 0x238   :  { %v3863_v20 = vadd.f32 %v3862_v12, %v3861_v19  ;;  %v3864_v31 = vpop.f32.mrb[10].mxu0  ;;  %v3871_v33 = vpop.f32.mrb[59].mxu1 }
 0x239   :  { %v3865_v32 = vpop.f32.mrb[11].mxu0  ;;  %v3159_v35 = vadd.f32 %v3869_v30, %v3110_v41  ;;  %v3872_v38 = vadd.f32 %v3871_v33, %v3870_v45 }
 0x23a   :  { %v3151_v34 = vadd.f32 %v3863_v20, %v3102_v52  ;;  %v3866_v37 = vadd.f32 %v3865_v32, %v3864_v31 }
 0x23b   :  { %v3229_v42 = vadd.f32 %v3217_v22, %v3159_v35  ;;  %v3162_v26 = vadd.f32 %v3872_v38, %v3113_v16 }
 0x23c   :  { %v3223_v39 = vadd.f32 %v3217_v22, %v3151_v34  ;;  %v3154_v43 = vadd.f32 %v3866_v37, %v3105_v49 }
 0x23d   :  { %v3241_v25 = vmax.f32 %v3229_v42, 0.0  ;;  %v3232_v50 = vadd.f32 %v3217_v22, %v3162_v26 }
 0x23e   :  { %v3235_v44 = vmax.f32 %v3223_v39, 0.0  ;;  %v3226_v47 = vadd.f32 %v3217_v22, %v3154_v43 }
 0x23f   :  { %v3674_v53 = vpack.c.bf16 %v3241_v25, %v3241_v25  ;;  %v3244_v54 = vmax.f32 %v3232_v50, 0.0 }
 0x240   :  { %v3670_v51 = vpack.c.bf16 %v3235_v44, %v3235_v44  ;;  %v3238_v27 = vmax.f32 %v3226_v47, 0.0 }
 0x241   :  { %3290 = vst [vmem:[%s5707_s3 + $0x20] sm:$0xf] %v3674_v53  ;;  %v3676_v55 = vpack.c.bf16 %v3244_v54, %v3244_v54 }
 0x242   :  { %3286 = vst [vmem:[%s5707_s3 + $0x8] sm:$0xf] %v3670_v51  ;;  %v3672_v52 = vpack.c.bf16 %v3238_v27, %v3238_v27 }
 0x243   :  { %3292 = vst [vmem:[%s5707_s3 + $0x2c] sm:$0xf] %v3676_v55 }
 0x244   :  { %3288 = vst [vmem:[%s5707_s3 + $0x14] sm:$0xf] %v3672_v52 }

// kernel: my_alexnet_forward.11
= control target key start
LH: loop header
LB: loop body
LE: loop exit
PB: predicated region body
PF: predicated region fallthrough
CT: control target
= control target key end

     0   :  { %s2401_s12 = smov 0   ;;  %s2403_s13 = smov 0   ;;  %s2693_s0 = inlined_call_operand.vmem [shape: bf16[32,3456], index: 0, kind: input, shape index: {}]   ;;  %s2694_s1 = inlined_call_operand.vmem [shape: bf16[3456,256], index: 1, kind: input, shape index: {}]   ;;  %s2695_s2 = inlined_call_operand.vmem [shape: f32[1,256], index: 2, kind: input, shape index: {}]   ;;  %s2696_s3 = inlined_call_operand.vmem [shape: bf16[32,256], index: 3, kind: output, shape index: {}]  }
   0x1   :  { %s2405_s14 = smov 0   ;;  %s2407_s15 = smov 0  }
   0x2   :  { %s2409_s16 = smov 0  }
   0x3 LB: > { %s25_s17 = sadd.s32 1, %s2373_s15  ;;  %p48_p1 = scmp.ne.s32.totalorder %s2365_s13, %s2361_s12  ;;  %s2377_s16 = sphi %s2409_s16, %s13_s16   ;;  %s2373_s15 = sphi %s2407_s15, %s2700_s15   ;;  %s2369_s14 = sphi %s2405_s14, %s2699_s14   ;;  %s2365_s13 = sphi %s2403_s13, %s2698_s13   ;;  %s2361_s12 = sphi %s2401_s12, %s2697_s12  }
   0x4   : > { %p26_p0 = scmp.ge.s32.totalorder %s25_s17, 3  ;;  %p49_p2 = scmp.eq.s32.totalorder %s2377_s16, 0 }
   0x5   : > { %s41_s19 = sadd.s32 1, %s2365_s13  ;;  %p1814_p5 = scmp.ge.s32.totalorder %s2377_s16, 3 }
   0x6   : > { %s2702_s17 = smov (%p26_p0, %s25_s17), 0  ;;  %p50_p3 = por %p49_p2, %p48_p1 }
   0x7   : > { %s37_s18 = ssub.s32 %s2373_s15, %s2702_s17  ;;  %164 = sbr.rel (%p1814_p5) target bundleno = 29 (0x1d), region = 20 }
   0x8   : > { %p39_p4 = scmp.eq.s32.totalorder %s37_s18, 0 }
   0xa   : > { %s2436_s20 = scalar_select %p39_p4, %s2365_s13, %s41_s19  }
   0xe   : > { %167 = sbr.rel (!%p50_p3) target bundleno = 29 (0x1d), region = 24  ;;  %s169_s21 = sand.u32 (%p50_p3), 1, %s2365_s13  }
   0xf   : > { %s1999_s22 = smul.u32 (%p50_p3), 36, %s2373_s15 }
  0x10   : > { %s2053_s23 = smul.u32 (%p50_p3), 144, %s169_s21 }
  0x11   : > { %s2444_s26 = scalar_lea.vmem (%p50_p3), %s2693_s0, %s1999_s22 }
  0x12   : > { %v192_v0 = vld [vmem:[%s2444_s26] sm:$0xff] (%p50_p3)  ;;  %v194_v1 = vld [vmem:[%s2444_s26 + $0x8] sm:$0xff] (%p50_p3)  ;;  %v196_v2 = vld [vmem:[%s2444_s26 + $0x10] sm:$0xff] (%p50_p3)  ;;  %s2449_s27 = scalar_lea.vmem (%p50_p3), [#allocation3], %s2053_s23 }
  0x13   : > { %193 = vst [vmem:[%s2449_s27] sm:$0xff] (%p50_p3), %v192_v0  ;;  %195 = vst [vmem:[%s2449_s27 + $0x8] sm:$0xff] (%p50_p3), %v194_v1  ;;  %v198_v3 = vld [vmem:[%s2444_s26 + $0x18] sm:$0xff] (%p50_p3)  ;;  %v200_v4 = vld [vmem:[%s2444_s26 + $0x6c] sm:$0xff] (%p50_p3) }
  0x14   : > { %197 = vst [vmem:[%s2449_s27 + $0x10] sm:$0xff] (%p50_p3), %v196_v2  ;;  %v202_v5 = vld [vmem:[%s2444_s26 + $0x74] sm:$0xff] (%p50_p3)  ;;  %199 = vst [vmem:[%s2449_s27 + $0x18] sm:$0xff] (%p50_p3), %v198_v3  ;;  %v204_v6 = vld [vmem:[%s2444_s26 + $0x7c] sm:$0xff] (%p50_p3) }
  0x15   : > { %201 = vst [vmem:[%s2449_s27 + $0x24] sm:$0xff] %v200_v4  ;;  %203 = vst [vmem:[%s2449_s27 + $0x2c] sm:$0xff] %v202_v5  ;;  %v206_v7 = vld [vmem:[%s2444_s26 + $0x84] sm:$0xff]  ;;  %v208_v8 = vld [vmem:[%s2444_s26 + $0xd8] sm:$0xff] }
  0x16   : > { %205 = vst [vmem:[%s2449_s27 + $0x34] sm:$0xff] %v204_v6  ;;  %207 = vst [vmem:[%s2449_s27 + $0x3c] sm:$0xff] %v206_v7  ;;  %v210_v9 = vld [vmem:[%s2444_s26 + $0xe0] sm:$0xff]  ;;  %v212_v10 = vld [vmem:[%s2444_s26 + $0xe8] sm:$0xff] }
  0x17   : > { %209 = vst [vmem:[%s2449_s27 + $0x48] sm:$0xff] %v208_v8  ;;  %v214_v11 = vld [vmem:[%s2444_s26 + $0xf0] sm:$0xff]  ;;  %211 = vst [vmem:[%s2449_s27 + $0x50] sm:$0xff] %v210_v9  ;;  %v216_v12 = vld [vmem:[%s2444_s26 + $0x144] sm:$0xff] }
  0x18   : > { %213 = vst [vmem:[%s2449_s27 + $0x58] sm:$0xff] %v212_v10  ;;  %215 = vst [vmem:[%s2449_s27 + $0x60] sm:$0xff] %v214_v11  ;;  %v218_v13 = vld [vmem:[%s2444_s26 + $0x14c] sm:$0xff]  ;;  %v220_v14 = vld [vmem:[%s2444_s26 + $0x154] sm:$0xff] }
  0x19   : > { %217 = vst [vmem:[%s2449_s27 + $0x6c] sm:$0xff] %v216_v12  ;;  %219 = vst [vmem:[%s2449_s27 + $0x74] sm:$0xff] %v218_v13  ;;  %v222_v15 = vld [vmem:[%s2444_s26 + $0x15c] sm:$0xff]  ;;  %v1818_v17 = vld [vmem:[%s2444_s26 + $0x8c] sm:$0xf] }
  0x1a   : > { %221 = vst [vmem:[%s2449_s27 + $0x7c] sm:$0xff] %v220_v14  ;;  %v1816_v16 = vld [vmem:[%s2444_s26 + $0x20] sm:$0xf]  ;;  %223 = vst [vmem:[%s2449_s27 + $0x84] sm:$0xff] %v222_v15  ;;  %v1820_v18 = vld [vmem:[%s2444_s26 + $0xf8] sm:$0xf] }
  0x1b   : > { %1817 = vst [vmem:[%s2449_s27 + $0x20] sm:$0xf] %v1816_v16  ;;  %1819 = vst [vmem:[%s2449_s27 + $0x44] sm:$0xf] %v1818_v17  ;;  %v1822_v19 = vld [vmem:[%s2444_s26 + $0x164] sm:$0xf] }
  0x1c   : > { %1821 = vst [vmem:[%s2449_s27 + $0x68] sm:$0xf] %v1820_v18  ;;  %1823 = vst [vmem:[%s2449_s27 + $0x8c] sm:$0xf] %v1822_v19 }
  0x1d PF: > { %p1824_p6 = scmp.ge.s32.totalorder %s2377_s16, 1  ;;  %p258_p7 = scmp.lt.s32.totalorder %s2377_s16, 4 }
  0x1f   : > { %p259_p8 = pnand %p1824_p6, %p258_p7 }
  0x20   : > { %s265_s28 = sand.u32 (!%p259_p8), 1, %s2361_s12   ;;  %s309_s29 = smul.u32 (!%p259_p8), 144, %s2369_s14 }
  0x21   : > { %262 = sbr.rel (%p259_p8) target bundleno = 443 (0x1bb), region = 54  ;;  %p1827_p10 = scmp.ne.s32.totalorder (!%p259_p8), %s2369_s14, 0 }
  0x22   : > { %s2054_s30 = smul.u32 (!%p259_p8), 144, %s265_s28  ;;  %p311_p9 = scmp.lt.s32.totalorder (!%p259_p8), %s309_s29, 431 }
  0x24   : > { %s2497_s8 = scalar_lea.vmem (!%p259_p8), [#allocation3], %s2054_s30 }
  0x28   : > { %s2704_s29 = smov (!%p311_p9, %s309_s29), 431  ;;  %342 = sbr.rel (%p1827_p10) target bundleno = 47 (0x2f), region = 62 }
  0x29   : > { %s2000_s4 = sshll.u32 %s2704_s29, 3  ;;  %v2379_v20 = vmov (!%p1827_p10), 0.0  }
  0x2a   : > { %s2495_s7 = scalar_lea.vmem %s2694_s1, %s2000_s4  ;;  %343 = vst [vmem:[#allocation2] sm:$0xff] (!%p1827_p10), %v2379_v20  ;;  %344 = vst [vmem:[#allocation2 + $0x8] sm:$0xff] (!%p1827_p10), %v2379_v20 }
  0x2b   : > { %345 = vst [vmem:[#allocation2 + $0x10] sm:$0xff] (!%p1827_p10), %v2379_v20  ;;  %346 = vst [vmem:[#allocation2 + $0x18] sm:$0xff] (!%p1827_p10), %v2379_v20 }
  0x2c   : > { %347 = vst [vmem:[#allocation2 + $0x20] sm:$0xff] (!%p1827_p10), %v2379_v20  ;;  %348 = vst [vmem:[#allocation2 + $0x28] sm:$0xff] (!%p1827_p10), %v2379_v20 }
  0x2d   : > { %349 = vst [vmem:[#allocation2 + $0x30] sm:$0xff] (!%p1827_p10), %v2379_v20  ;;  %350 = vst [vmem:[#allocation2 + $0x38] sm:$0xff] (!%p1827_p10), %v2379_v20 }
  0x2f PF: > { %v2097_v21 = vld [vmem:[%s2495_s7 + $0x4] ss:$8 sps:$4 sm:$0xff]   ;;  %v2101_v23 = vld [vmem:[%s2495_s7] ss:$8 sps:$4 sm:$0xff]   ;;  %v2103_v25 = vld [vmem:[%s2495_s7 + $0x14] ss:$8 sps:$4 sm:$0xff]  }
  0x30   : > { %v2099_v22 = vld [vmem:[%s2495_s7 + $0x204] ss:$8 sps:$4 sm:$0xff]   ;;  %1335 = vmatprep.subr.bf16.mxu1 %v2097_v21  ;;  %v2102_v24 = vld [vmem:[%s2495_s7 + $0x200] ss:$8 sps:$4 sm:$0xff]   ;;  %v2105_v26 = vld [vmem:[%s2495_s7 + $0x214] ss:$8 sps:$4 sm:$0xff]  }
  0x31   : > { %1441 = vmatprep.subr.bf16.mxu0 %v2099_v22  ;;  %1336 = vmatpush1.bf16.msra.mxu1 %v2101_v23  ;;  %v2107_v27 = vld [vmem:[%s2495_s7 + $0x10] ss:$8 sps:$4 sm:$0xff]   ;;  %v2109_v29 = vld [vmem:[%s2495_s7 + $0x24] ss:$8 sps:$4 sm:$0xff]   ;;  %v2113_v31 = vld [vmem:[%s2495_s7 + $0x20] ss:$8 sps:$4 sm:$0xff]  }
  0x32   : > { %1442 = vmatpush1.bf16.msra.mxu0 %v2102_v24  ;;  %1337 = vmatprep.subr.bf16.mxu1 %v2103_v25  ;;  %v2108_v28 = vld [vmem:[%s2495_s7 + $0x210] ss:$8 sps:$4 sm:$0xff]   ;;  %v2111_v30 = vld [vmem:[%s2495_s7 + $0x224] ss:$8 sps:$4 sm:$0xff]   ;;  %v2114_v32 = vld [vmem:[%s2495_s7 + $0x220] ss:$8 sps:$4 sm:$0xff]  }
  0x33   : > { %1443 = vmatprep.subr.bf16.mxu0 %v2105_v26  ;;  %v2115_v33 = vld [vmem:[%s2495_s7 + $0x34] ss:$8 sps:$4 sm:$0xff]   ;;  %v2119_v35 = vld [vmem:[%s2495_s7 + $0x30] ss:$8 sps:$4 sm:$0xff]   ;;  %v2121_v37 = vld [vmem:[%s2495_s7 + $0x44] ss:$8 sps:$4 sm:$0xff]  }
  0x34   : > { %v2117_v34 = vld [vmem:[%s2495_s7 + $0x234] ss:$8 sps:$4 sm:$0xff]   ;;  %v2120_v36 = vld [vmem:[%s2495_s7 + $0x230] ss:$8 sps:$4 sm:$0xff]   ;;  %v2123_v38 = vld [vmem:[%s2495_s7 + $0x244] ss:$8 sps:$4 sm:$0xff]  }
  0x35   : > { %1338 = vmatpush1.bf16.msra.mxu1 %v2107_v27  ;;  %v2125_v39 = vld [vmem:[%s2495_s7 + $0x40] ss:$8 sps:$4 sm:$0xff]   ;;  %v2127_v41 = vld [vmem:[%s2495_s7 + $0x54] ss:$8 sps:$4 sm:$0xff]   ;;  %v2131_v43 = vld [vmem:[%s2495_s7 + $0x50] ss:$8 sps:$4 sm:$0xff]  }
  0x36   : > { %1444 = vmatpush1.bf16.msra.mxu0 %v2108_v28  ;;  %1339 = vmatprep.subr.bf16.mxu1 %v2109_v29  ;;  %v2126_v40 = vld [vmem:[%s2495_s7 + $0x240] ss:$8 sps:$4 sm:$0xff]   ;;  %v2129_v42 = vld [vmem:[%s2495_s7 + $0x254] ss:$8 sps:$4 sm:$0xff]   ;;  %v2132_v44 = vld [vmem:[%s2495_s7 + $0x250] ss:$8 sps:$4 sm:$0xff]  }
  0x37   : > { %1445 = vmatprep.subr.bf16.mxu0 %v2111_v30  ;;  %v2133_v45 = vld [vmem:[%s2495_s7 + $0x64] ss:$8 sps:$4 sm:$0xff]   ;;  %v2137_v47 = vld [vmem:[%s2495_s7 + $0x60] ss:$8 sps:$4 sm:$0xff]   ;;  %v2139_v49 = vld [vmem:[%s2495_s7 + $0x74] ss:$8 sps:$4 sm:$0xff]  }
  0x38   : > { %v2135_v46 = vld [vmem:[%s2495_s7 + $0x264] ss:$8 sps:$4 sm:$0xff]   ;;  %v2138_v48 = vld [vmem:[%s2495_s7 + $0x260] ss:$8 sps:$4 sm:$0xff]   ;;  %v2141_v50 = vld [vmem:[%s2495_s7 + $0x274] ss:$8 sps:$4 sm:$0xff]  }
  0x39   : > { %1340 = vmatpush1.bf16.msra.mxu1 %v2113_v31  ;;  %v2143_v51 = vld [vmem:[%s2495_s7 + $0x70] ss:$8 sps:$4 sm:$0xff]   ;;  %v2145_v53 = vld [vmem:[%s2495_s7 + $0x84] ss:$8 sps:$4 sm:$0xff]   ;;  %v2149_v55 = vld [vmem:[%s2495_s7 + $0x80] ss:$8 sps:$4 sm:$0xff]  }
  0x3a   : > { %1446 = vmatpush1.bf16.msra.mxu0 %v2114_v32  ;;  %1341 = vmatprep.subr.bf16.mxu1 %v2115_v33  ;;  %v2144_v52 = vld [vmem:[%s2495_s7 + $0x270] ss:$8 sps:$4 sm:$0xff]   ;;  %v2147_v54 = vld [vmem:[%s2495_s7 + $0x284] ss:$8 sps:$4 sm:$0xff]   ;;  %v2150_v56 = vld [vmem:[%s2495_s7 + $0x280] ss:$8 sps:$4 sm:$0xff]  }
  0x3b   : > { %1447 = vmatprep.subr.bf16.mxu0 %v2117_v34  ;;  %v2151_v57 = vld [vmem:[%s2495_s7 + $0x94] ss:$8 sps:$4 sm:$0xff]   ;;  %v2155_v59 = vld [vmem:[%s2495_s7 + $0x90] ss:$8 sps:$4 sm:$0xff]   ;;  %v2157_v61 = vld [vmem:[%s2495_s7 + $0xa4] ss:$8 sps:$4 sm:$0xff]  }
  0x3c   : > { %v2153_v58 = vld [vmem:[%s2495_s7 + $0x294] ss:$8 sps:$4 sm:$0xff]   ;;  %v2156_v60 = vld [vmem:[%s2495_s7 + $0x290] ss:$8 sps:$4 sm:$0xff]   ;;  %v2159_v62 = vld [vmem:[%s2495_s7 + $0x2a4] ss:$8 sps:$4 sm:$0xff]  }
  0x3d   : > { %1342 = vmatpush1.bf16.msra.mxu1 %v2119_v35  ;;  %v2161_v63 = vld [vmem:[%s2495_s7 + $0xa0] ss:$8 sps:$4 sm:$0xff]   ;;  %v2163_v1 = vld [vmem:[%s2495_s7 + $0xb4] ss:$8 sps:$4 sm:$0xff]   ;;  %v2167_v3 = vld [vmem:[%s2495_s7 + $0xb0] ss:$8 sps:$4 sm:$0xff]  }
  0x3e   : > { %1448 = vmatpush1.bf16.msra.mxu0 %v2120_v36  ;;  %1343 = vmatprep.subr.bf16.mxu1 %v2121_v37  ;;  %v2162_v0 = vld [vmem:[%s2495_s7 + $0x2a0] ss:$8 sps:$4 sm:$0xff]   ;;  %v2165_v2 = vld [vmem:[%s2495_s7 + $0x2b4] ss:$8 sps:$4 sm:$0xff]   ;;  %v2168_v4 = vld [vmem:[%s2495_s7 + $0x2b0] ss:$8 sps:$4 sm:$0xff]  }
  0x3f   : > { %1449 = vmatprep.subr.bf16.mxu0 %v2123_v38  ;;  %v2195_v5 = vld [vmem:[%s2497_s8 + $0x4] ss:$36 sps:$4 sm:$0xff]   ;;  %v2201_v8 = vld [vmem:[%s2497_s8 + $0x14] ss:$36 sps:$4 sm:$0xff]   ;;  %p1990_p11 = scmp.ne.s32.totalorder %s2369_s14, 2 }
  0x40   : > { %v2169_v6 = vld [vmem:[%s2495_s7 + $0xc4] ss:$8 sps:$4 sm:$0xff]   ;;  %1367 = vmatprep.mubr.bf16.mxu1 %v2195_v5  ;;  %v2173_v9 = vld [vmem:[%s2495_s7 + $0xc0] ss:$8 sps:$4 sm:$0xff]   ;;  %v2175_v11 = vld [vmem:[%s2495_s7 + $0xd4] ss:$8 sps:$4 sm:$0xff]   ;;  %1473 = vmatprep.mubr.bf16.mxu0 %v2201_v8 }
  0x41   : > { %1344 = vmatpush1.bf16.msra.mxu1 %v2125_v39  ;;  %v2171_v7 = vld [vmem:[%s2495_s7 + $0x2c4] ss:$8 sps:$4 sm:$0xff]   ;;  %v2174_v10 = vld [vmem:[%s2495_s7 + $0x2c0] ss:$8 sps:$4 sm:$0xff]   ;;  %v2177_v12 = vld [vmem:[%s2495_s7 + $0x2d4] ss:$8 sps:$4 sm:$0xff]  }
  0x42   : > { %1450 = vmatpush1.bf16.msra.mxu0 %v2126_v40  ;;  %1345 = vmatprep.subr.bf16.mxu1 %v2127_v41  ;;  %v2179_v13 = vld [vmem:[%s2495_s7 + $0xd0] ss:$8 sps:$4 sm:$0xff]   ;;  %v2181_v15 = vld [vmem:[%s2495_s7 + $0xe4] ss:$8 sps:$4 sm:$0xff]   ;;  %v2185_v17 = vld [vmem:[%s2495_s7 + $0xe0] ss:$8 sps:$4 sm:$0xff]  }
  0x43   : > { %1451 = vmatprep.subr.bf16.mxu0 %v2129_v42  ;;  %v2180_v14 = vld [vmem:[%s2495_s7 + $0x2d0] ss:$8 sps:$4 sm:$0xff]   ;;  %v2183_v16 = vld [vmem:[%s2495_s7 + $0x2e4] ss:$8 sps:$4 sm:$0xff]   ;;  %v2186_v18 = vld [vmem:[%s2495_s7 + $0x2e0] ss:$8 sps:$4 sm:$0xff]  }
  0x44   : > { %v2187_v19 = vld [vmem:[%s2495_s7 + $0xf4] ss:$8 sps:$4 sm:$0xff]   ;;  %v2191_v21 = vld [vmem:[%s2495_s7 + $0xf0] ss:$8 sps:$4 sm:$0xff]   ;;  %v2198_v23 = vld [vmem:[%s2495_s7 + $0x104] ss:$8 sps:$4 sm:$0xff]  }
  0x45   : > { %1346 = vmatpush1.bf16.msra.mxu1 %v2131_v43  ;;  %v2189_v20 = vld [vmem:[%s2495_s7 + $0x2f4] ss:$8 sps:$4 sm:$0xff]   ;;  %v2192_v22 = vld [vmem:[%s2495_s7 + $0x2f0] ss:$8 sps:$4 sm:$0xff]   ;;  %v2204_v24 = vld [vmem:[%s2495_s7 + $0x304] ss:$8 sps:$4 sm:$0xff]  }
  0x46   : > { %1452 = vmatpush1.bf16.msra.mxu0 %v2132_v44  ;;  %1347 = vmatprep.subr.bf16.mxu1 %v2133_v45  ;;  %v2193_v25 = vld [vmem:[%s2497_s8] ss:$36 sps:$4 sm:$0xff]   ;;  %v2199_v27 = vld [vmem:[%s2497_s8 + $0x10] ss:$36 sps:$4 sm:$0xff]  }
  0x47   : > { %1453 = vmatprep.subr.bf16.mxu0 %v2135_v46  ;;  %v2196_v26 = vld [vmem:[%s2495_s7 + $0x100] ss:$8 sps:$4 sm:$0xff]   ;;  %v2207_v29 = vld [vmem:[%s2495_s7 + $0x114] ss:$8 sps:$4 sm:$0xff]   ;;  %v2205_v31 = vld [vmem:[%s2495_s7 + $0x110] ss:$8 sps:$4 sm:$0xff]  }
  0x48   : > { %v2202_v28 = vld [vmem:[%s2495_s7 + $0x300] ss:$8 sps:$4 sm:$0xff]   ;;  %v2210_v30 = vld [vmem:[%s2495_s7 + $0x314] ss:$8 sps:$4 sm:$0xff]   ;;  %v2208_v32 = vld [vmem:[%s2495_s7 + $0x310] ss:$8 sps:$4 sm:$0xff]  }
  0x49   : > { %1348 = vmatpush1.bf16.msra.mxu1 %v2137_v47  ;;  %v2213_v33 = vld [vmem:[%s2495_s7 + $0x124] ss:$8 sps:$4 sm:$0xff]   ;;  %v2211_v35 = vld [vmem:[%s2495_s7 + $0x120] ss:$8 sps:$4 sm:$0xff]   ;;  %v2219_v37 = vld [vmem:[%s2495_s7 + $0x134] ss:$8 sps:$4 sm:$0xff]  }
  0x4a   : > { %1454 = vmatpush1.bf16.msra.mxu0 %v2138_v48  ;;  %1349 = vmatprep.subr.bf16.mxu1 %v2139_v49  ;;  %v2216_v34 = vld [vmem:[%s2495_s7 + $0x324] ss:$8 sps:$4 sm:$0xff]   ;;  %v2214_v36 = vld [vmem:[%s2495_s7 + $0x320] ss:$8 sps:$4 sm:$0xff]   ;;  %v2222_v38 = vld [vmem:[%s2495_s7 + $0x334] ss:$8 sps:$4 sm:$0xff]  }
  0x4b   : > { %1455 = vmatprep.subr.bf16.mxu0 %v2141_v50  ;;  %v2217_v39 = vld [vmem:[%s2495_s7 + $0x130] ss:$8 sps:$4 sm:$0xff]   ;;  %v2225_v41 = vld [vmem:[%s2495_s7 + $0x144] ss:$8 sps:$4 sm:$0xff]   ;;  %v2223_v43 = vld [vmem:[%s2495_s7 + $0x140] ss:$8 sps:$4 sm:$0xff]  }
  0x4c   : > { %v2220_v40 = vld [vmem:[%s2495_s7 + $0x330] ss:$8 sps:$4 sm:$0xff]   ;;  %v2228_v42 = vld [vmem:[%s2495_s7 + $0x344] ss:$8 sps:$4 sm:$0xff]   ;;  %v2226_v44 = vld [vmem:[%s2495_s7 + $0x340] ss:$8 sps:$4 sm:$0xff]  }
  0x4d   : > { %1350 = vmatpush1.bf16.msra.mxu1 %v2143_v51  ;;  %v2231_v45 = vld [vmem:[%s2495_s7 + $0x154] ss:$8 sps:$4 sm:$0xff]   ;;  %v2229_v47 = vld [vmem:[%s2495_s7 + $0x150] ss:$8 sps:$4 sm:$0xff]   ;;  %v2237_v49 = vld [vmem:[%s2495_s7 + $0x164] ss:$8 sps:$4 sm:$0xff]  }
  0x4e   : > { %1456 = vmatpush1.bf16.msra.mxu0 %v2144_v52  ;;  %1351 = vmatprep.subr.bf16.mxu1 %v2145_v53  ;;  %v2234_v46 = vld [vmem:[%s2495_s7 + $0x354] ss:$8 sps:$4 sm:$0xff]   ;;  %v2232_v48 = vld [vmem:[%s2495_s7 + $0x350] ss:$8 sps:$4 sm:$0xff]   ;;  %v2240_v53 = vld [vmem:[%s2495_s7 + $0x364] ss:$8 sps:$4 sm:$0xff]  }
  0x4f   : > { %1457 = vmatprep.subr.bf16.mxu0 %v2147_v54  ;;  %v2283_v50 = vld [vmem:[%s2497_s8 + $0x4c] ss:$36 sps:$4 sm:$0xff]   ;;  %v2285_v51 = vld [vmem:[%s2497_s8 + $0x5c] ss:$36 sps:$4 sm:$0xff]  }
  0x50   : > { %v2287_v52 = vld [vmem:[%s2497_s8 + $0x48] ss:$36 sps:$4 sm:$0xff]   ;;  %v2291_v54 = vld [vmem:[%s2497_s8 + $0x58] ss:$36 sps:$4 sm:$0xff]  }
  0x51   : > { %1352 = vmatpush1.bf16.msra.mxu1 %v2149_v55  ;;  %v2235_v55 = vld [vmem:[%s2495_s7 + $0x160] ss:$8 sps:$4 sm:$0xff]   ;;  %v2253_v5 = vld [vmem:[%s2495_s7 + $0x190] ss:$8 sps:$4 sm:$0xff]   ;;  %v2264_v8 = vld [vmem:[%s2495_s7 + $0x3a4] ss:$8 sps:$4 sm:$0xff]  }
  0x52   : > { %1458 = vmatpush1.bf16.msra.mxu0 %v2150_v56  ;;  %1353 = vmatprep.subr.bf16.mxu1 %v2151_v57  ;;  %v2238_v56 = vld [vmem:[%s2495_s7 + $0x360] ss:$8 sps:$4 sm:$0xff]   ;;  %v2243_v57 = vld [vmem:[%s2495_s7 + $0x174] ss:$8 sps:$4 sm:$0xff]  }
  0x53   : > { %1459 = vmatprep.subr.bf16.mxu0 %v2153_v58  ;;  %v2246_v58 = vld [vmem:[%s2495_s7 + $0x374] ss:$8 sps:$4 sm:$0xff]  }
  0x55   : > { %1354 = vmatpush1.bf16.msra.mxu1 %v2155_v59  ;;  %v2241_v59 = vld [vmem:[%s2495_s7 + $0x170] ss:$8 sps:$4 sm:$0xff]  }
  0x56   : > { %1460 = vmatpush1.bf16.msra.mxu0 %v2156_v60  ;;  %1355 = vmatprep.subr.bf16.mxu1 %v2157_v61  ;;  %v2244_v60 = vld [vmem:[%s2495_s7 + $0x370] ss:$8 sps:$4 sm:$0xff]   ;;  %v2249_v61 = vld [vmem:[%s2495_s7 + $0x184] ss:$8 sps:$4 sm:$0xff]  }
  0x57   : > { %1461 = vmatprep.subr.bf16.mxu0 %v2159_v62  ;;  %v2303_v62 = vld [vmem:[%s2497_s8 + $0xc] ss:$36 sps:$4 sm:$0xff]  }
  0x59   : > { %1356 = vmatpush1.bf16.msra.mxu1 %v2161_v63  ;;  %v2252_v63 = vld [vmem:[%s2495_s7 + $0x384] ss:$8 sps:$4 sm:$0xff]  }
  0x5a   : > { %1462 = vmatpush1.bf16.msra.mxu0 %v2162_v0  ;;  %1357 = vmatprep.subr.bf16.mxu1 %v2163_v1  ;;  %v2306_v0 = vld [vmem:[%s2497_s8 + $0x1c] ss:$36 sps:$4 sm:$0xff]  }
  0x5b   : > { %1463 = vmatprep.subr.bf16.mxu0 %v2165_v2  ;;  %v2247_v1 = vld [vmem:[%s2495_s7 + $0x180] ss:$8 sps:$4 sm:$0xff]  }
  0x5c   : > { %v2250_v2 = vld [vmem:[%s2495_s7 + $0x380] ss:$8 sps:$4 sm:$0xff]  }
  0x5d   : > { %1358 = vmatpush1.bf16.msra.mxu1 %v2167_v3  ;;  %v2255_v3 = vld [vmem:[%s2495_s7 + $0x194] ss:$8 sps:$4 sm:$0xff]  }
  0x5e   : > { %1464 = vmatpush1.bf16.msra.mxu0 %v2168_v4  ;;  %1359 = vmatprep.subr.bf16.mxu1 %v2169_v6  ;;  %v2258_v4 = vld [vmem:[%s2495_s7 + $0x394] ss:$8 sps:$4 sm:$0xff]   ;;  %v2256_v6 = vld [vmem:[%s2495_s7 + $0x390] ss:$8 sps:$4 sm:$0xff]  }
  0x5f   : > { %1465 = vmatprep.subr.bf16.mxu0 %v2171_v7  ;;  %v2261_v7 = vld [vmem:[%s2495_s7 + $0x1a4] ss:$8 sps:$4 sm:$0xff]  }
  0x61   : > { %1360 = vmatpush1.bf16.msra.mxu1 %v2173_v9  ;;  %v2259_v9 = vld [vmem:[%s2495_s7 + $0x1a0] ss:$8 sps:$4 sm:$0xff]  }
  0x62   : > { %1466 = vmatpush1.bf16.msra.mxu0 %v2174_v10  ;;  %1361 = vmatprep.subr.bf16.mxu1 %v2175_v11  ;;  %v2262_v10 = vld [vmem:[%s2495_s7 + $0x3a0] ss:$8 sps:$4 sm:$0xff]   ;;  %v2267_v11 = vld [vmem:[%s2495_s7 + $0x1b4] ss:$8 sps:$4 sm:$0xff]  }
  0x63   : > { %1467 = vmatprep.subr.bf16.mxu0 %v2177_v12  ;;  %v2270_v12 = vld [vmem:[%s2495_s7 + $0x3b4] ss:$8 sps:$4 sm:$0xff]  }
  0x65   : > { %1362 = vmatpush1.bf16.msra.mxu1 %v2179_v13  ;;  %v2265_v13 = vld [vmem:[%s2495_s7 + $0x1b0] ss:$8 sps:$4 sm:$0xff]  }
  0x66   : > { %1468 = vmatpush1.bf16.msra.mxu0 %v2180_v14  ;;  %1363 = vmatprep.subr.bf16.mxu1 %v2181_v15  ;;  %v2268_v14 = vld [vmem:[%s2495_s7 + $0x3b0] ss:$8 sps:$4 sm:$0xff]   ;;  %v2273_v15 = vld [vmem:[%s2495_s7 + $0x1c4] ss:$8 sps:$4 sm:$0xff]  }
  0x67   : > { %1469 = vmatprep.subr.bf16.mxu0 %v2183_v16  ;;  %v2276_v16 = vld [vmem:[%s2495_s7 + $0x3c4] ss:$8 sps:$4 sm:$0xff]  }
  0x69   : > { %1364 = vmatpush1.bf16.msra.mxu1 %v2185_v17  ;;  %v2271_v17 = vld [vmem:[%s2495_s7 + $0x1c0] ss:$8 sps:$4 sm:$0xff]  }
  0x6a   : > { %1470 = vmatpush1.bf16.msra.mxu0 %v2186_v18  ;;  %1365 = vmatprep.subr.bf16.mxu1 %v2187_v19  ;;  %v2274_v18 = vld [vmem:[%s2495_s7 + $0x3c0] ss:$8 sps:$4 sm:$0xff]   ;;  %v2279_v19 = vld [vmem:[%s2495_s7 + $0x1d4] ss:$8 sps:$4 sm:$0xff]  }
  0x6b   : > { %1471 = vmatprep.subr.bf16.mxu0 %v2189_v20  ;;  %v2282_v20 = vld [vmem:[%s2495_s7 + $0x3d4] ss:$8 sps:$4 sm:$0xff]  }
  0x6d   : > { %1366 = vmatpush1.bf16.msra.mxu1 %v2191_v21  ;;  %v2277_v21 = vld [vmem:[%s2495_s7 + $0x1d0] ss:$8 sps:$4 sm:$0xff]  }
  0x6e   : > { %1472 = vmatpush1.bf16.msra.mxu0 %v2192_v22  ;;  %1388 = vmatprep.subr.bf16.mxu1 %v2198_v23  ;;  %v2280_v22 = vld [vmem:[%s2495_s7 + $0x3d0] ss:$8 sps:$4 sm:$0xff]   ;;  %v2290_v23 = vld [vmem:[%s2495_s7 + $0x1e4] ss:$8 sps:$4 sm:$0xff]  }
  0x6f   : > { %1494 = vmatprep.subr.bf16.mxu0 %v2204_v24  ;;  %v2294_v24 = vld [vmem:[%s2495_s7 + $0x3e4] ss:$8 sps:$4 sm:$0xff]  }
  0x70   : > { %1368 = vmatmul.mubr.bf16.vlgmr.msra.gmra.mrb[0].mxu1 %v2193_v25  ;;  %v2288_v25 = vld [vmem:[%s2495_s7 + $0x1e0] ss:$8 sps:$4 sm:$0xff]  }
  0x71   : > { %1474 = vmatmul.mubr.bf16.vlgmr.msra.gmra.mrb[0].mxu0 %v2199_v27  ;;  %1389 = vmatpush1.bf16.msra.mxu1 %v2196_v26  ;;  %v2292_v26 = vld [vmem:[%s2495_s7 + $0x3e0] ss:$8 sps:$4 sm:$0xff]   ;;  %v2297_v27 = vld [vmem:[%s2495_s7 + $0x1f4] ss:$8 sps:$4 sm:$0xff]  }
  0x72   : > { %1495 = vmatpush1.bf16.msra.mxu0 %v2202_v28  ;;  %1390 = vmatprep.subr.bf16.mxu1 %v2207_v29  ;;  %v2300_v28 = vld [vmem:[%s2495_s7 + $0x3f4] ss:$8 sps:$4 sm:$0xff]   ;;  %v2295_v29 = vld [vmem:[%s2495_s7 + $0x1f0] ss:$8 sps:$4 sm:$0xff]  }
  0x73   : > { %1496 = vmatprep.subr.bf16.mxu0 %v2210_v30  ;;  %1377 = vmatprep.mubr.bf16.mxu1 %v2283_v50  ;;  %v2298_v30 = vld [vmem:[%s2495_s7 + $0x3f0] ss:$8 sps:$4 sm:$0xff]   ;;  %v2333_v50 = vld [vmem:[%s2495_s7 + $0x464] ss:$8 sps:$4 sm:$0xff]  }
  0x74   : > { %1483 = vmatprep.mubr.bf16.mxu0 %v2285_v51  ;;  %v2331_v51 = vld [vmem:[%s2495_s7 + $0x460] ss:$8 sps:$4 sm:$0xff]  }
  0x75   : > { %1391 = vmatpush1.bf16.msra.mxu1 %v2205_v31  ;;  %v2309_v31 = vld [vmem:[%s2495_s7 + $0x404] ss:$8 sps:$4 sm:$0xff]  }
  0x76   : > { %1497 = vmatpush1.bf16.msra.mxu0 %v2208_v32  ;;  %1392 = vmatprep.subr.bf16.mxu1 %v2213_v33  ;;  %v2301_v32 = vld [vmem:[%s2497_s8 + $0x8] ss:$36 sps:$4 sm:$0xff]   ;;  %v2304_v33 = vld [vmem:[%s2497_s8 + $0x18] ss:$36 sps:$4 sm:$0xff]  }
  0x77   : > { %1498 = vmatprep.subr.bf16.mxu0 %v2216_v34  ;;  %v2307_v34 = vld [vmem:[%s2495_s7 + $0x400] ss:$8 sps:$4 sm:$0xff]  }
  0x78   : > { %1378 = vmatmul.mubr.bf16.gmra.mrb[4].mxu1 %v2287_v52  ;;  %v2336_v52 = vld [vmem:[%s2495_s7 + $0x474] ss:$8 sps:$4 sm:$0xff]  }
  0x79   : > { %1393 = vmatpush1.bf16.msra.mxu1 %v2211_v35  ;;  %1484 = vmatmul.mubr.bf16.gmra.mrb[4].mxu0 %v2291_v54  ;;  %v2312_v35 = vld [vmem:[%s2495_s7 + $0x414] ss:$8 sps:$4 sm:$0xff]  }
  0x7a   : > { %1499 = vmatpush1.bf16.msra.mxu0 %v2214_v36  ;;  %1394 = vmatprep.subr.bf16.mxu1 %v2219_v37  ;;  %v2313_v36 = vld [vmem:[%s2497_s8 + $0x54] ss:$36 sps:$4 sm:$0xff]   ;;  %v2315_v37 = vld [vmem:[%s2497_s8 + $0x64] ss:$36 sps:$4 sm:$0xff]  }
  0x7b   : > { %1500 = vmatprep.subr.bf16.mxu0 %v2222_v38  ;;  %1420 = vmatprep.mubr.bf16.mxu1 %v2303_v62  ;;  %v2310_v38 = vld [vmem:[%s2495_s7 + $0x410] ss:$8 sps:$4 sm:$0xff]  }
  0x7c   : > { %1526 = vmatprep.mubr.bf16.mxu0 %v2306_v0  ;;  %v2337_v54 = vld [vmem:[%s2497_s8 + $0x20] ss:$36 sps:$4 sm:$0xff]  }
  0x7d   : > { %1395 = vmatpush1.bf16.msra.mxu1 %v2217_v39  ;;  %v2321_v39 = vld [vmem:[%s2495_s7 + $0x424] ss:$8 sps:$4 sm:$0xff]  }
  0x7e   : > { %1501 = vmatpush1.bf16.msra.mxu0 %v2220_v40  ;;  %1396 = vmatprep.subr.bf16.mxu1 %v2225_v41  ;;  %v2317_v40 = vld [vmem:[%s2497_s8 + $0x50] ss:$36 sps:$4 sm:$0xff]   ;;  %v2318_v41 = vld [vmem:[%s2497_s8 + $0x60] ss:$36 sps:$4 sm:$0xff]  }
  0x7f   : > { %1502 = vmatprep.subr.bf16.mxu0 %v2228_v42  ;;  %v2319_v42 = vld [vmem:[%s2495_s7 + $0x420] ss:$8 sps:$4 sm:$0xff]  }
  0x81   : > { %1397 = vmatpush1.bf16.msra.mxu1 %v2223_v43  ;;  %v2324_v43 = vld [vmem:[%s2495_s7 + $0x434] ss:$8 sps:$4 sm:$0xff]  }
  0x82   : > { %1503 = vmatpush1.bf16.msra.mxu0 %v2226_v44  ;;  %1398 = vmatprep.subr.bf16.mxu1 %v2231_v45  ;;  %v2322_v44 = vld [vmem:[%s2495_s7 + $0x430] ss:$8 sps:$4 sm:$0xff]   ;;  %v2327_v45 = vld [vmem:[%s2495_s7 + $0x444] ss:$8 sps:$4 sm:$0xff]  }
  0x83   : > { %1504 = vmatprep.subr.bf16.mxu0 %v2234_v46  ;;  %v2380_v46 = vmov 0  }
  0x85   : > { %1399 = vmatpush1.bf16.msra.mxu1 %v2229_v47  ;;  %v2325_v47 = vld [vmem:[%s2495_s7 + $0x440] ss:$8 sps:$4 sm:$0xff]  }
  0x86   : > { %1505 = vmatpush1.bf16.msra.mxu0 %v2232_v48  ;;  %1400 = vmatprep.subr.bf16.mxu1 %v2237_v49  ;;  %v2330_v48 = vld [vmem:[%s2495_s7 + $0x454] ss:$8 sps:$4 sm:$0xff]   ;;  %v2328_v49 = vld [vmem:[%s2495_s7 + $0x450] ss:$8 sps:$4 sm:$0xff]  }
  0x87   : > { %1506 = vmatprep.subr.bf16.mxu0 %v2240_v53  ;;  %v2334_v53 = vld [vmem:[%s2495_s7 + $0x470] ss:$8 sps:$4 sm:$0xff]  }
  0x89   : > { %1401 = vmatpush1.bf16.msra.mxu1 %v2235_v55  ;;  %v2338_v55 = vld [vmem:[%s2497_s8 + $0x68] ss:$36 sps:$4 sm:$0xff]  }
  0x8a   : > { %1507 = vmatpush1.bf16.msra.mxu0 %v2238_v56  ;;  %1402 = vmatprep.subr.bf16.mxu1 %v2243_v57 }
  0x8b   : > { %1508 = vmatprep.subr.bf16.mxu0 %v2246_v58 }
  0x8d   : > { %1403 = vmatpush1.bf16.msra.mxu1 %v2241_v59 }
  0x8e   : > { %1509 = vmatpush1.bf16.msra.mxu0 %v2244_v60  ;;  %1404 = vmatprep.subr.bf16.mxu1 %v2249_v61 }
  0x8f   : > { %1510 = vmatprep.subr.bf16.mxu0 %v2252_v63 }
  0x91   : > { %1405 = vmatpush1.bf16.msra.mxu1 %v2247_v1 }
  0x92   : > { %1511 = vmatpush1.bf16.msra.mxu0 %v2250_v2  ;;  %1406 = vmatprep.subr.bf16.mxu1 %v2255_v3 }
  0x93   : > { %1512 = vmatprep.subr.bf16.mxu0 %v2258_v4 }
  0x95   : > { %1407 = vmatpush1.bf16.msra.mxu1 %v2253_v5 }
  0x96   : > { %1513 = vmatpush1.bf16.msra.mxu0 %v2256_v6  ;;  %1408 = vmatprep.subr.bf16.mxu1 %v2261_v7 }
  0x97   : > { %1514 = vmatprep.subr.bf16.mxu0 %v2264_v8  ;;  %v351_v8 = vld [vmem:[#allocation2] sm:$0xff] }
  0x99   : > { %1409 = vmatpush1.bf16.msra.mxu1 %v2259_v9 }
  0x9a   : > { %1515 = vmatpush1.bf16.msra.mxu0 %v2262_v10  ;;  %1410 = vmatprep.subr.bf16.mxu1 %v2267_v11  ;;  %v355_v10 = vld [vmem:[#allocation2 + $0x20] sm:$0xff] }
  0x9b   : > { %1516 = vmatprep.subr.bf16.mxu0 %v2270_v12 }
  0x9d   : > { %1411 = vmatpush1.bf16.msra.mxu1 %v2265_v13 }
  0x9e   : > { %1517 = vmatpush1.bf16.msra.mxu0 %v2268_v14  ;;  %1412 = vmatprep.subr.bf16.mxu1 %v2273_v15  ;;  %v352_v14 = vld [vmem:[#allocation2 + $0x8] sm:$0xff] }
  0x9f   : > { %1518 = vmatprep.subr.bf16.mxu0 %v2276_v16  ;;  %v356_v16 = vld [vmem:[#allocation2 + $0x28] sm:$0xff] }
  0xa1   : > { %1413 = vmatpush1.bf16.msra.mxu1 %v2271_v17 }
  0xa2   : > { %1519 = vmatpush1.bf16.msra.mxu0 %v2274_v18  ;;  %1414 = vmatprep.subr.bf16.mxu1 %v2279_v19 }
  0xa3   : > { %1520 = vmatprep.subr.bf16.mxu0 %v2282_v20  ;;  %v353_v20 = vld [vmem:[#allocation2 + $0x10] sm:$0xff] }
  0xa5   : > { %1415 = vmatpush1.bf16.msra.mxu1 %v2277_v21 }
  0xa6   : > { %1521 = vmatpush1.bf16.msra.mxu0 %v2280_v22  ;;  %1416 = vmatprep.subr.bf16.mxu1 %v2290_v23  ;;  %v357_v22 = vld [vmem:[#allocation2 + $0x30] sm:$0xff] }
  0xa7   : > { %1522 = vmatprep.subr.bf16.mxu0 %v2294_v24 }
  0xa9   : > { %1417 = vmatpush1.bf16.msra.mxu1 %v2288_v25 }
  0xaa   : > { %1523 = vmatpush1.bf16.msra.mxu0 %v2292_v26  ;;  %1418 = vmatprep.subr.bf16.mxu1 %v2297_v27 }
  0xab   : > { %1524 = vmatprep.subr.bf16.mxu0 %v2300_v28  ;;  %v354_v28 = vld [vmem:[#allocation2 + $0x18] sm:$0xff] }
  0xad   : > { %1419 = vmatpush1.bf16.msra.mxu1 %v2295_v29 }
  0xae   : > { %1525 = vmatpush1.bf16.msra.mxu0 %v2298_v30  ;;  %2005 = vmatprep.subr.bf16.mxu1 %v2309_v31  ;;  %v358_v30 = vld [vmem:[#allocation2 + $0x38] sm:$0xff] }
  0xaf   : > { %1547 = vmatprep.subr.bf16.mxu0 %v2309_v31 }
  0xb0   : > { %1421 = vmatmul.mubr.bf16.vlgmr.msra.gmra.mrb[0].mxu1 %v2301_v32 }
  0xb1   : > { %1527 = vmatmul.mubr.bf16.vlgmr.msra.gmra.mrb[0].mxu0 %v2304_v33  ;;  %2013 = vmatpush1.bf16.msra.mxu1 %v2307_v34 }
  0xb2   : > { %1548 = vmatpush1.bf16.msra.mxu0 %v2307_v34  ;;  %2006 = vmatprep.subr.bf16.mxu1 %v2312_v35 }
  0xb3   : > { %1549 = vmatprep.subr.bf16.mxu0 %v2312_v35  ;;  %1430 = vmatprep.mubr.bf16.mxu1 %v2313_v36 }
  0xb4   : > { %1536 = vmatprep.mubr.bf16.mxu0 %v2315_v37 }
  0xb5   : > { %2014 = vmatpush1.bf16.msra.mxu1 %v2310_v38 }
  0xb6   : > { %1550 = vmatpush1.bf16.msra.mxu0 %v2310_v38  ;;  %2007 = vmatprep.subr.bf16.mxu1 %v2321_v39 }
  0xb7   : > { %1551 = vmatprep.subr.bf16.mxu0 %v2321_v39 }
  0xb8   : > { %1431 = vmatmul.mubr.bf16.gmra.mrb[4].mxu1 %v2317_v40  ;;  %v1630_v40 = vlaneseq (!%p1990_p11) }
  0xb9   : > { %1537 = vmatmul.mubr.bf16.gmra.mrb[4].mxu0 %v2318_v41  ;;  %2015 = vmatpush1.bf16.msra.mxu1 %v2319_v42 }
  0xba   : > { %1552 = vmatpush1.bf16.msra.mxu0 %v2319_v42  ;;  %2008 = vmatprep.subr.bf16.mxu1 %v2324_v43  ;;  %v1631_v41 = vshrl.u32 (!%p1990_p11), %v1630_v40, 7  ;;  %v1628_v42 = vld [vmem:[%s2695_s2] sm:$0x3] (!%p1990_p11) }
  0xbb   : > { %1553 = vmatprep.subr.bf16.mxu0 %v2324_v43  ;;  %1579 = vmatprep.mubr.bf16.mxu0 %v2380_v46 }
  0xbc   : > { %1589 = vmatprep.mubr.bf16.mxu1 %v2380_v46  ;;  %v1636_v46 = vsub.s32 (!%p1990_p11), 1, %v1631_v41 }
  0xbd   : > { %2016 = vmatpush1.bf16.msra.mxu1 %v2322_v44 }
  0xbe   : > { %1554 = vmatpush1.bf16.msra.mxu0 %v2322_v44  ;;  %2009 = vmatprep.subr.bf16.mxu1 %v2327_v45 }
  0xbf   : > { %1555 = vmatprep.subr.bf16.mxu0 %v2327_v45  ;;  %v1632_v45 = vsub.s32 (!%p1990_p11), 0, %v1631_v41 }
  0xc1   : > { %2017 = vmatpush1.bf16.msra.mxu1 %v2325_v47 }
  0xc2   : > { %1556 = vmatpush1.bf16.msra.mxu0 %v2325_v47  ;;  %2010 = vmatprep.subr.bf16.mxu1 %v2330_v48 }
  0xc3   : > { %1557 = vmatprep.subr.bf16.mxu0 %v2330_v48 }
  0xc5   : > { %2018 = vmatpush1.bf16.msra.mxu1 %v2328_v49 }
  0xc6   : > { %1558 = vmatpush1.bf16.msra.mxu0 %v2328_v49  ;;  %2011 = vmatprep.subr.bf16.mxu1 %v2333_v50 }
  0xc7   : > { %1559 = vmatprep.subr.bf16.mxu0 %v2333_v50  ;;  %v1633_v50 = vrot.slane (!%p1990_p11), %v1628_v42, %v1632_v45 }
  0xc9   : > { %2019 = vmatpush1.bf16.msra.mxu1 %v2331_v51 }
  0xca   : > { %1560 = vmatpush1.bf16.msra.mxu0 %v2331_v51  ;;  %2012 = vmatprep.subr.bf16.mxu1 %v2336_v52  ;;  %v1637_v51 = vrot.slane (!%p1990_p11), %v1628_v42, %v1636_v46 }
  0xcb   : > { %1561 = vmatprep.subr.bf16.mxu0 %v2336_v52 }
  0xcd   : > { %2020 = vmatpush1.bf16.msra.mxu1 %v2334_v53 }
  0xce   : > { %1562 = vmatpush1.bf16.msra.mxu0 %v2334_v53 }
  0xd0   : > { %1590 = vmatmul.mubr.bf16.vlgmr.msra.gmra.mrb[8].mxu1 %v2338_v55 }
  0xd1   : > { %1580 = vmatmul.mubr.bf16.vlgmr.msra.gmra.mrb[0].mxu0 %v2337_v54 }
 0x183   : > { %v1422_v56 = vpop.f32.mrb[0].mxu1 }
 0x184   : > { %v1424_v57 = vpop.f32.mrb[1].mxu1 }
 0x185   : > { %v1426_v58 = vpop.f32.mrb[2].mxu1 }
 0x186   : > { %v1428_v59 = vpop.f32.mrb[3].mxu1 }
 0x18b   : > { %v1432_v60 = vpop.f32.mrb[4].mxu1 }
 0x18c   : > { %v1538_v61 = vpop.f32.mrb[4].mxu0  ;;  %v1434_v63 = vpop.f32.mrb[5].mxu1 }
 0x18d   : > { %v2025_v62 = vadd.f32 %v1538_v61, %v1432_v60  ;;  %v1540_v0 = vpop.f32.mrb[5].mxu0  ;;  %v1436_v2 = vpop.f32.mrb[6].mxu1 }
 0x18e   : > { %v2027_v1 = vadd.f32 %v1540_v0, %v1434_v63  ;;  %v1542_v3 = vpop.f32.mrb[6].mxu0  ;;  %v1438_v5 = vpop.f32.mrb[7].mxu1 }
 0x18f   : > { %v2029_v4 = vadd.f32 %v1542_v3, %v1436_v2  ;;  %v1544_v6 = vpop.f32.mrb[7].mxu0 }
 0x190   : > { %v2031_v7 = vadd.f32 %v1544_v6, %v1438_v5 }
 0x1a3   : > { %v1591_v11 = vpop.f32.mrb[8].mxu1 }
 0x1a4   : > { %v1581_v9 = vpop.f32.mrb[0].mxu0  ;;  %v2026_v13 = vadd.f32 %v2025_v62, %v1591_v11  ;;  %v1593_v17 = vpop.f32.mrb[9].mxu1 }
 0x1a5   : > { %v2021_v12 = vadd.f32 %v1581_v9, %v1422_v56  ;;  %v1583_v15 = vpop.f32.mrb[1].mxu0  ;;  %v2028_v19 = vadd.f32 %v2027_v1, %v1593_v17  ;;  %v1595_v23 = vpop.f32.mrb[10].mxu1 }
 0x1a6   : > { %v2022_v18 = vadd.f32 %v1583_v15, %v1424_v57  ;;  %v1585_v21 = vpop.f32.mrb[2].mxu0  ;;  %v1604_v25 = vadd.f32 %v2026_v13, %v355_v10  ;;  %v2030_v27 = vadd.f32 %v2029_v4, %v1595_v23  ;;  %v1597_v31 = vpop.f32.mrb[11].mxu1  ;;  %1619 = sbr.rel (%p1990_p11) target bundleno = 443 (0x1bb), region = 66 }
 0x1a7   : > { %v1600_v24 = vadd.f32 %v2021_v12, %v351_v8  ;;  %v2023_v26 = vadd.f32 %v1585_v21, %v1426_v58  ;;  %v1587_v29 = vpop.f32.mrb[3].mxu0  ;;  %v1605_v33 = vadd.f32 %v2028_v19, %v356_v16  ;;  %v2032_v35 = vadd.f32 %v2031_v7, %v1597_v31 }
 0x1a8   : > { %v1601_v32 = vadd.f32 %v2022_v18, %v352_v14  ;;  %v2024_v34 = vadd.f32 %v1587_v29, %v1428_v59  ;;  %1612 = vst [vmem:[#allocation2 + $0x20] sm:$0xff] %v1604_v25  ;;  %v1606_v37 = vadd.f32 %v2030_v27, %v357_v22 }
 0x1a9   : > { %1608 = vst [vmem:[#allocation2] sm:$0xff] %v1600_v24  ;;  %v1602_v36 = vadd.f32 %v2023_v26, %v353_v20  ;;  %1613 = vst [vmem:[#allocation2 + $0x28] sm:$0xff] %v1605_v33  ;;  %v1607_v39 = vadd.f32 %v2032_v35, %v358_v30 }
 0x1aa   : > { %1609 = vst [vmem:[#allocation2 + $0x8] sm:$0xff] %v1601_v32  ;;  %v1603_v38 = vadd.f32 %v2024_v34, %v354_v28  ;;  %1614 = vst [vmem:[#allocation2 + $0x30] sm:$0xff] %v1606_v37 }
 0x1ab   : > { %1610 = vst [vmem:[#allocation2 + $0x10] sm:$0xff] %v1602_v36  ;;  %1615 = vst [vmem:[#allocation2 + $0x38] sm:$0xff] %v1607_v39 }
 0x1ac   : > { %1611 = vst [vmem:[#allocation2 + $0x18] sm:$0xff] %v1603_v38 }
 0x1af   : > { %v1624_v49 = vld [vmem:[#allocation2 + $0x20] sm:$0xff] }
 0x1b0   : > { %v1620_v43 = vld [vmem:[#allocation2] sm:$0xff]  ;;  %v1625_v52 = vld [vmem:[#allocation2 + $0x28] sm:$0xff]  ;;  %v1644_v59 = vadd.f32 %v1633_v50, %v1624_v49 }
 0x1b1   : > { %v1621_v44 = vld [vmem:[#allocation2 + $0x8] sm:$0xff]  ;;  %v1626_v53 = vld [vmem:[#allocation2 + $0x30] sm:$0xff]  ;;  %v1640_v55 = vadd.f32 %v1633_v50, %v1620_v43  ;;  %v1645_v60 = vadd.f32 %v1637_v51, %v1625_v52 }
 0x1b2   : > { %v1622_v47 = vld [vmem:[#allocation2 + $0x10] sm:$0xff]  ;;  %v1627_v54 = vld [vmem:[#allocation2 + $0x38] sm:$0xff]  ;;  %v1641_v56 = vadd.f32 %v1637_v51, %v1621_v44  ;;  %v1646_v61 = vadd.f32 %v1633_v50, %v1626_v53  ;;  %v1652_v3 = vmax.f32 %v1644_v59, 0.0 }
 0x1b3   : > { %v1623_v48 = vld [vmem:[#allocation2 + $0x18] sm:$0xff]  ;;  %v1642_v57 = vadd.f32 %v1633_v50, %v1622_v47  ;;  %v1647_v62 = vadd.f32 %v1637_v51, %v1627_v54  ;;  %v1648_v63 = vmax.f32 %v1640_v55, 0.0  ;;  %v1653_v4 = vmax.f32 %v1645_v60, 0.0 }
 0x1b4   : > { %v1643_v58 = vadd.f32 %v1637_v51, %v1623_v48  ;;  %v1649_v0 = vmax.f32 %v1641_v56, 0.0  ;;  %v1654_v5 = vmax.f32 %v1646_v61, 0.0 }
 0x1b5   : > { %v1650_v1 = vmax.f32 %v1642_v57, 0.0  ;;  %v1655_v6 = vmax.f32 %v1647_v62, 0.0  ;;  %v2003_v9 = vpack.c.bf16 %v1653_v4, %v1652_v3 }
 0x1b6   : > { %v1651_v2 = vmax.f32 %v1643_v58, 0.0  ;;  %v2001_v7 = vpack.c.bf16 %v1649_v0, %v1648_v63 }
 0x1b7   : > { %v2004_v10 = vpack.c.bf16 %v1655_v6, %v1654_v5  ;;  %1682 = vst [vmem:[%s2696_s3 + $0x10] sm:$0xff] %v2003_v9 }
 0x1b8   : > { %v2002_v8 = vpack.c.bf16 %v1651_v2, %v1650_v1  ;;  %1680 = vst [vmem:[%s2696_s3] sm:$0xff] %v2001_v7 }
 0x1b9   : > { %1683 = vst [vmem:[%s2696_s3 + $0x18] sm:$0xff] %v2004_v10 }
 0x1ba   : > { %1681 = vst [vmem:[%s2696_s3 + $0x8] sm:$0xff] %v2002_v8 }
 0x1bb PF: > { %s13_s16 = sadd.s32 1, %s2377_s16   ;;  %s2697_s12 = smov %s2365_s13 }
 0x1bc   : > { %p10_p12 = scmp.ge.s32.totalorder %s13_s16, 5   ;;  %s2698_s13 = smov %s2436_s20 }
 0x1bd   : > { %s2699_s14 = smov %s2373_s15  ;;  %s2700_s15 = smov %s2702_s17 }
 0x1be   :  { %12 = sbr.rel (!%p10_p12) target bundleno = 3 (0x3), region = 113 }

// kernel: my_alexnet_forward.12
= control target key start
LH: loop header
LB: loop body
LE: loop exit
PB: predicated region body
PF: predicated region fallthrough
CT: control target
= control target key end

     0   :  { %s2401_s12 = smov 0   ;;  %s2403_s13 = smov 0   ;;  %s2693_s0 = inlined_call_operand.vmem [shape: bf16[32,2304], index: 0, kind: input, shape index: {}]   ;;  %s2694_s1 = inlined_call_operand.vmem [shape: bf16[2304,256], index: 1, kind: input, shape index: {}]   ;;  %s2695_s2 = inlined_call_operand.vmem [shape: f32[1,256], index: 2, kind: input, shape index: {}]   ;;  %s2696_s3 = inlined_call_operand.vmem [shape: bf16[32,256], index: 3, kind: output, shape index: {}]  }
   0x1   :  { %s2405_s14 = smov 0   ;;  %s2407_s15 = smov 0  }
   0x2   :  { %s2409_s16 = smov 0  }
   0x3 LB: > { %s25_s17 = sadd.s32 1, %s2373_s15  ;;  %p48_p1 = scmp.ne.s32.totalorder %s2365_s13, %s2361_s12  ;;  %s2377_s16 = sphi %s2409_s16, %s13_s16   ;;  %s2373_s15 = sphi %s2407_s15, %s2700_s15   ;;  %s2369_s14 = sphi %s2405_s14, %s2699_s14   ;;  %s2365_s13 = sphi %s2403_s13, %s2698_s13   ;;  %s2361_s12 = sphi %s2401_s12, %s2697_s12  }
   0x4   : > { %p26_p0 = scmp.ge.s32.totalorder %s25_s17, 2  ;;  %p49_p2 = scmp.eq.s32.totalorder %s2377_s16, 0 }
   0x5   : > { %s41_s19 = sadd.s32 1, %s2365_s13  ;;  %p1814_p5 = scmp.ge.s32.totalorder %s2377_s16, 2 }
   0x6   : > { %s2702_s17 = smov (%p26_p0, %s25_s17), 0  ;;  %p50_p3 = por %p49_p2, %p48_p1 }
   0x7   : > { %s37_s18 = ssub.s32 %s2373_s15, %s2702_s17  ;;  %164 = sbr.rel (%p1814_p5) target bundleno = 29 (0x1d), region = 20 }
   0x8   : > { %p39_p4 = scmp.eq.s32.totalorder %s37_s18, 0 }
   0xa   : > { %s2436_s20 = scalar_select %p39_p4, %s2365_s13, %s41_s19  }
   0xe   : > { %167 = sbr.rel (!%p50_p3) target bundleno = 29 (0x1d), region = 24  ;;  %s169_s21 = sand.u32 (%p50_p3), 1, %s2365_s13  }
   0xf   : > { %s1999_s22 = smul.u32 (%p50_p3), 36, %s2373_s15 }
  0x10   : > { %s2053_s23 = smul.u32 (%p50_p3), 144, %s169_s21 }
  0x11   : > { %s2444_s26 = scalar_lea.vmem (%p50_p3), %s2693_s0, %s1999_s22 }
  0x12   : > { %v192_v0 = vld [vmem:[%s2444_s26] sm:$0xff] (%p50_p3)  ;;  %v194_v1 = vld [vmem:[%s2444_s26 + $0x8] sm:$0xff] (%p50_p3)  ;;  %v196_v2 = vld [vmem:[%s2444_s26 + $0x10] sm:$0xff] (%p50_p3)  ;;  %s2449_s27 = scalar_lea.vmem (%p50_p3), [#allocation3], %s2053_s23 }
  0x13   : > { %193 = vst [vmem:[%s2449_s27] sm:$0xff] (%p50_p3), %v192_v0  ;;  %195 = vst [vmem:[%s2449_s27 + $0x8] sm:$0xff] (%p50_p3), %v194_v1  ;;  %v198_v3 = vld [vmem:[%s2444_s26 + $0x18] sm:$0xff] (%p50_p3)  ;;  %v200_v4 = vld [vmem:[%s2444_s26 + $0x48] sm:$0xff] (%p50_p3) }
  0x14   : > { %197 = vst [vmem:[%s2449_s27 + $0x10] sm:$0xff] (%p50_p3), %v196_v2  ;;  %v202_v5 = vld [vmem:[%s2444_s26 + $0x50] sm:$0xff] (%p50_p3)  ;;  %199 = vst [vmem:[%s2449_s27 + $0x18] sm:$0xff] (%p50_p3), %v198_v3  ;;  %v204_v6 = vld [vmem:[%s2444_s26 + $0x58] sm:$0xff] (%p50_p3) }
  0x15   : > { %201 = vst [vmem:[%s2449_s27 + $0x24] sm:$0xff] %v200_v4  ;;  %203 = vst [vmem:[%s2449_s27 + $0x2c] sm:$0xff] %v202_v5  ;;  %v206_v7 = vld [vmem:[%s2444_s26 + $0x60] sm:$0xff]  ;;  %v208_v8 = vld [vmem:[%s2444_s26 + $0x90] sm:$0xff] }
  0x16   : > { %205 = vst [vmem:[%s2449_s27 + $0x34] sm:$0xff] %v204_v6  ;;  %207 = vst [vmem:[%s2449_s27 + $0x3c] sm:$0xff] %v206_v7  ;;  %v210_v9 = vld [vmem:[%s2444_s26 + $0x98] sm:$0xff]  ;;  %v212_v10 = vld [vmem:[%s2444_s26 + $0xa0] sm:$0xff] }
  0x17   : > { %209 = vst [vmem:[%s2449_s27 + $0x48] sm:$0xff] %v208_v8  ;;  %v214_v11 = vld [vmem:[%s2444_s26 + $0xa8] sm:$0xff]  ;;  %211 = vst [vmem:[%s2449_s27 + $0x50] sm:$0xff] %v210_v9  ;;  %v216_v12 = vld [vmem:[%s2444_s26 + $0xd8] sm:$0xff] }
  0x18   : > { %213 = vst [vmem:[%s2449_s27 + $0x58] sm:$0xff] %v212_v10  ;;  %215 = vst [vmem:[%s2449_s27 + $0x60] sm:$0xff] %v214_v11  ;;  %v218_v13 = vld [vmem:[%s2444_s26 + $0xe0] sm:$0xff]  ;;  %v220_v14 = vld [vmem:[%s2444_s26 + $0xe8] sm:$0xff] }
  0x19   : > { %217 = vst [vmem:[%s2449_s27 + $0x6c] sm:$0xff] %v216_v12  ;;  %219 = vst [vmem:[%s2449_s27 + $0x74] sm:$0xff] %v218_v13  ;;  %v222_v15 = vld [vmem:[%s2444_s26 + $0xf0] sm:$0xff]  ;;  %v1816_v16 = vld [vmem:[%s2444_s26 + $0x20] sm:$0xf] }
  0x1a   : > { %221 = vst [vmem:[%s2449_s27 + $0x7c] sm:$0xff] %v220_v14  ;;  %v1818_v17 = vld [vmem:[%s2444_s26 + $0x68] sm:$0xf]  ;;  %223 = vst [vmem:[%s2449_s27 + $0x84] sm:$0xff] %v222_v15  ;;  %v1820_v18 = vld [vmem:[%s2444_s26 + $0xb0] sm:$0xf] }
  0x1b   : > { %1817 = vst [vmem:[%s2449_s27 + $0x20] sm:$0xf] %v1816_v16  ;;  %1819 = vst [vmem:[%s2449_s27 + $0x44] sm:$0xf] %v1818_v17  ;;  %v1822_v19 = vld [vmem:[%s2444_s26 + $0xf8] sm:$0xf] }
  0x1c   : > { %1821 = vst [vmem:[%s2449_s27 + $0x68] sm:$0xf] %v1820_v18  ;;  %1823 = vst [vmem:[%s2449_s27 + $0x8c] sm:$0xf] %v1822_v19 }
  0x1d PF: > { %p1824_p6 = scmp.ge.s32.totalorder %s2377_s16, 1  ;;  %p258_p7 = scmp.lt.s32.totalorder %s2377_s16, 3 }
  0x1f   : > { %p259_p8 = pnand %p1824_p6, %p258_p7 }
  0x20   : > { %s265_s28 = sand.u32 (!%p259_p8), 1, %s2361_s12   ;;  %s309_s29 = smul.u32 (!%p259_p8), 144, %s2369_s14 }
  0x21   : > { %262 = sbr.rel (%p259_p8) target bundleno = 443 (0x1bb), region = 54  ;;  %p1827_p10 = scmp.ne.s32.totalorder (!%p259_p8), %s2369_s14, 0 }
  0x22   : > { %s2054_s30 = smul.u32 (!%p259_p8), 144, %s265_s28  ;;  %p311_p9 = scmp.lt.s32.totalorder (!%p259_p8), %s309_s29, 287 }
  0x24   : > { %s2497_s8 = scalar_lea.vmem (!%p259_p8), [#allocation3], %s2054_s30 }
  0x28   : > { %s2704_s29 = smov (!%p311_p9, %s309_s29), 287  ;;  %342 = sbr.rel (%p1827_p10) target bundleno = 47 (0x2f), region = 62 }
  0x29   : > { %s2000_s4 = sshll.u32 %s2704_s29, 3  ;;  %v2379_v20 = vmov (!%p1827_p10), 0.0  }
  0x2a   : > { %s2495_s7 = scalar_lea.vmem %s2694_s1, %s2000_s4  ;;  %343 = vst [vmem:[#allocation2] sm:$0xff] (!%p1827_p10), %v2379_v20  ;;  %344 = vst [vmem:[#allocation2 + $0x8] sm:$0xff] (!%p1827_p10), %v2379_v20 }
  0x2b   : > { %345 = vst [vmem:[#allocation2 + $0x10] sm:$0xff] (!%p1827_p10), %v2379_v20  ;;  %346 = vst [vmem:[#allocation2 + $0x18] sm:$0xff] (!%p1827_p10), %v2379_v20 }
  0x2c   : > { %347 = vst [vmem:[#allocation2 + $0x20] sm:$0xff] (!%p1827_p10), %v2379_v20  ;;  %348 = vst [vmem:[#allocation2 + $0x28] sm:$0xff] (!%p1827_p10), %v2379_v20 }
  0x2d   : > { %349 = vst [vmem:[#allocation2 + $0x30] sm:$0xff] (!%p1827_p10), %v2379_v20  ;;  %350 = vst [vmem:[#allocation2 + $0x38] sm:$0xff] (!%p1827_p10), %v2379_v20 }
  0x2f PF: > { %v2097_v21 = vld [vmem:[%s2495_s7 + $0x4] ss:$8 sps:$4 sm:$0xff]   ;;  %v2101_v23 = vld [vmem:[%s2495_s7] ss:$8 sps:$4 sm:$0xff]   ;;  %v2103_v25 = vld [vmem:[%s2495_s7 + $0x14] ss:$8 sps:$4 sm:$0xff]  }
  0x30   : > { %v2099_v22 = vld [vmem:[%s2495_s7 + $0x204] ss:$8 sps:$4 sm:$0xff]   ;;  %1335 = vmatprep.subr.bf16.mxu1 %v2097_v21  ;;  %v2102_v24 = vld [vmem:[%s2495_s7 + $0x200] ss:$8 sps:$4 sm:$0xff]   ;;  %v2105_v26 = vld [vmem:[%s2495_s7 + $0x214] ss:$8 sps:$4 sm:$0xff]  }
  0x31   : > { %1441 = vmatprep.subr.bf16.mxu0 %v2099_v22  ;;  %1336 = vmatpush1.bf16.msra.mxu1 %v2101_v23  ;;  %v2107_v27 = vld [vmem:[%s2495_s7 + $0x10] ss:$8 sps:$4 sm:$0xff]   ;;  %v2109_v29 = vld [vmem:[%s2495_s7 + $0x24] ss:$8 sps:$4 sm:$0xff]   ;;  %v2113_v31 = vld [vmem:[%s2495_s7 + $0x20] ss:$8 sps:$4 sm:$0xff]  }
  0x32   : > { %1442 = vmatpush1.bf16.msra.mxu0 %v2102_v24  ;;  %1337 = vmatprep.subr.bf16.mxu1 %v2103_v25  ;;  %v2108_v28 = vld [vmem:[%s2495_s7 + $0x210] ss:$8 sps:$4 sm:$0xff]   ;;  %v2111_v30 = vld [vmem:[%s2495_s7 + $0x224] ss:$8 sps:$4 sm:$0xff]   ;;  %v2114_v32 = vld [vmem:[%s2495_s7 + $0x220] ss:$8 sps:$4 sm:$0xff]  }
  0x33   : > { %1443 = vmatprep.subr.bf16.mxu0 %v2105_v26  ;;  %v2115_v33 = vld [vmem:[%s2495_s7 + $0x34] ss:$8 sps:$4 sm:$0xff]   ;;  %v2119_v35 = vld [vmem:[%s2495_s7 + $0x30] ss:$8 sps:$4 sm:$0xff]   ;;  %v2121_v37 = vld [vmem:[%s2495_s7 + $0x44] ss:$8 sps:$4 sm:$0xff]  }
  0x34   : > { %v2117_v34 = vld [vmem:[%s2495_s7 + $0x234] ss:$8 sps:$4 sm:$0xff]   ;;  %v2120_v36 = vld [vmem:[%s2495_s7 + $0x230] ss:$8 sps:$4 sm:$0xff]   ;;  %v2123_v38 = vld [vmem:[%s2495_s7 + $0x244] ss:$8 sps:$4 sm:$0xff]  }
  0x35   : > { %1338 = vmatpush1.bf16.msra.mxu1 %v2107_v27  ;;  %v2125_v39 = vld [vmem:[%s2495_s7 + $0x40] ss:$8 sps:$4 sm:$0xff]   ;;  %v2127_v41 = vld [vmem:[%s2495_s7 + $0x54] ss:$8 sps:$4 sm:$0xff]   ;;  %v2131_v43 = vld [vmem:[%s2495_s7 + $0x50] ss:$8 sps:$4 sm:$0xff]  }
  0x36   : > { %1444 = vmatpush1.bf16.msra.mxu0 %v2108_v28  ;;  %1339 = vmatprep.subr.bf16.mxu1 %v2109_v29  ;;  %v2126_v40 = vld [vmem:[%s2495_s7 + $0x240] ss:$8 sps:$4 sm:$0xff]   ;;  %v2129_v42 = vld [vmem:[%s2495_s7 + $0x254] ss:$8 sps:$4 sm:$0xff]   ;;  %v2132_v44 = vld [vmem:[%s2495_s7 + $0x250] ss:$8 sps:$4 sm:$0xff]  }
  0x37   : > { %1445 = vmatprep.subr.bf16.mxu0 %v2111_v30  ;;  %v2133_v45 = vld [vmem:[%s2495_s7 + $0x64] ss:$8 sps:$4 sm:$0xff]   ;;  %v2137_v47 = vld [vmem:[%s2495_s7 + $0x60] ss:$8 sps:$4 sm:$0xff]   ;;  %v2139_v49 = vld [vmem:[%s2495_s7 + $0x74] ss:$8 sps:$4 sm:$0xff]  }
  0x38   : > { %v2135_v46 = vld [vmem:[%s2495_s7 + $0x264] ss:$8 sps:$4 sm:$0xff]   ;;  %v2138_v48 = vld [vmem:[%s2495_s7 + $0x260] ss:$8 sps:$4 sm:$0xff]   ;;  %v2141_v50 = vld [vmem:[%s2495_s7 + $0x274] ss:$8 sps:$4 sm:$0xff]  }
  0x39   : > { %1340 = vmatpush1.bf16.msra.mxu1 %v2113_v31  ;;  %v2143_v51 = vld [vmem:[%s2495_s7 + $0x70] ss:$8 sps:$4 sm:$0xff]   ;;  %v2145_v53 = vld [vmem:[%s2495_s7 + $0x84] ss:$8 sps:$4 sm:$0xff]   ;;  %v2149_v55 = vld [vmem:[%s2495_s7 + $0x80] ss:$8 sps:$4 sm:$0xff]  }
  0x3a   : > { %1446 = vmatpush1.bf16.msra.mxu0 %v2114_v32  ;;  %1341 = vmatprep.subr.bf16.mxu1 %v2115_v33  ;;  %v2144_v52 = vld [vmem:[%s2495_s7 + $0x270] ss:$8 sps:$4 sm:$0xff]   ;;  %v2147_v54 = vld [vmem:[%s2495_s7 + $0x284] ss:$8 sps:$4 sm:$0xff]   ;;  %v2150_v56 = vld [vmem:[%s2495_s7 + $0x280] ss:$8 sps:$4 sm:$0xff]  }
  0x3b   : > { %1447 = vmatprep.subr.bf16.mxu0 %v2117_v34  ;;  %v2151_v57 = vld [vmem:[%s2495_s7 + $0x94] ss:$8 sps:$4 sm:$0xff]   ;;  %v2155_v59 = vld [vmem:[%s2495_s7 + $0x90] ss:$8 sps:$4 sm:$0xff]   ;;  %v2157_v61 = vld [vmem:[%s2495_s7 + $0xa4] ss:$8 sps:$4 sm:$0xff]  }
  0x3c   : > { %v2153_v58 = vld [vmem:[%s2495_s7 + $0x294] ss:$8 sps:$4 sm:$0xff]   ;;  %v2156_v60 = vld [vmem:[%s2495_s7 + $0x290] ss:$8 sps:$4 sm:$0xff]   ;;  %v2159_v62 = vld [vmem:[%s2495_s7 + $0x2a4] ss:$8 sps:$4 sm:$0xff]  }
  0x3d   : > { %1342 = vmatpush1.bf16.msra.mxu1 %v2119_v35  ;;  %v2161_v63 = vld [vmem:[%s2495_s7 + $0xa0] ss:$8 sps:$4 sm:$0xff]   ;;  %v2163_v1 = vld [vmem:[%s2495_s7 + $0xb4] ss:$8 sps:$4 sm:$0xff]   ;;  %v2167_v3 = vld [vmem:[%s2495_s7 + $0xb0] ss:$8 sps:$4 sm:$0xff]  }
  0x3e   : > { %1448 = vmatpush1.bf16.msra.mxu0 %v2120_v36  ;;  %1343 = vmatprep.subr.bf16.mxu1 %v2121_v37  ;;  %v2162_v0 = vld [vmem:[%s2495_s7 + $0x2a0] ss:$8 sps:$4 sm:$0xff]   ;;  %v2165_v2 = vld [vmem:[%s2495_s7 + $0x2b4] ss:$8 sps:$4 sm:$0xff]   ;;  %v2168_v4 = vld [vmem:[%s2495_s7 + $0x2b0] ss:$8 sps:$4 sm:$0xff]  }
  0x3f   : > { %1449 = vmatprep.subr.bf16.mxu0 %v2123_v38  ;;  %v2195_v5 = vld [vmem:[%s2497_s8 + $0x4] ss:$36 sps:$4 sm:$0xff]   ;;  %v2201_v8 = vld [vmem:[%s2497_s8 + $0x14] ss:$36 sps:$4 sm:$0xff]   ;;  %p1990_p11 = scmp.ne.s32.totalorder %s2369_s14, 1 }
  0x40   : > { %v2169_v6 = vld [vmem:[%s2495_s7 + $0xc4] ss:$8 sps:$4 sm:$0xff]   ;;  %1367 = vmatprep.mubr.bf16.mxu1 %v2195_v5  ;;  %v2173_v9 = vld [vmem:[%s2495_s7 + $0xc0] ss:$8 sps:$4 sm:$0xff]   ;;  %v2175_v11 = vld [vmem:[%s2495_s7 + $0xd4] ss:$8 sps:$4 sm:$0xff]   ;;  %1473 = vmatprep.mubr.bf16.mxu0 %v2201_v8 }
  0x41   : > { %1344 = vmatpush1.bf16.msra.mxu1 %v2125_v39  ;;  %v2171_v7 = vld [vmem:[%s2495_s7 + $0x2c4] ss:$8 sps:$4 sm:$0xff]   ;;  %v2174_v10 = vld [vmem:[%s2495_s7 + $0x2c0] ss:$8 sps:$4 sm:$0xff]   ;;  %v2177_v12 = vld [vmem:[%s2495_s7 + $0x2d4] ss:$8 sps:$4 sm:$0xff]  }
  0x42   : > { %1450 = vmatpush1.bf16.msra.mxu0 %v2126_v40  ;;  %1345 = vmatprep.subr.bf16.mxu1 %v2127_v41  ;;  %v2179_v13 = vld [vmem:[%s2495_s7 + $0xd0] ss:$8 sps:$4 sm:$0xff]   ;;  %v2181_v15 = vld [vmem:[%s2495_s7 + $0xe4] ss:$8 sps:$4 sm:$0xff]   ;;  %v2185_v17 = vld [vmem:[%s2495_s7 + $0xe0] ss:$8 sps:$4 sm:$0xff]  }
  0x43   : > { %1451 = vmatprep.subr.bf16.mxu0 %v2129_v42  ;;  %v2180_v14 = vld [vmem:[%s2495_s7 + $0x2d0] ss:$8 sps:$4 sm:$0xff]   ;;  %v2183_v16 = vld [vmem:[%s2495_s7 + $0x2e4] ss:$8 sps:$4 sm:$0xff]   ;;  %v2186_v18 = vld [vmem:[%s2495_s7 + $0x2e0] ss:$8 sps:$4 sm:$0xff]  }
  0x44   : > { %v2187_v19 = vld [vmem:[%s2495_s7 + $0xf4] ss:$8 sps:$4 sm:$0xff]   ;;  %v2191_v21 = vld [vmem:[%s2495_s7 + $0xf0] ss:$8 sps:$4 sm:$0xff]   ;;  %v2198_v23 = vld [vmem:[%s2495_s7 + $0x104] ss:$8 sps:$4 sm:$0xff]  }
  0x45   : > { %1346 = vmatpush1.bf16.msra.mxu1 %v2131_v43  ;;  %v2189_v20 = vld [vmem:[%s2495_s7 + $0x2f4] ss:$8 sps:$4 sm:$0xff]   ;;  %v2192_v22 = vld [vmem:[%s2495_s7 + $0x2f0] ss:$8 sps:$4 sm:$0xff]   ;;  %v2204_v24 = vld [vmem:[%s2495_s7 + $0x304] ss:$8 sps:$4 sm:$0xff]  }
  0x46   : > { %1452 = vmatpush1.bf16.msra.mxu0 %v2132_v44  ;;  %1347 = vmatprep.subr.bf16.mxu1 %v2133_v45  ;;  %v2193_v25 = vld [vmem:[%s2497_s8] ss:$36 sps:$4 sm:$0xff]   ;;  %v2199_v27 = vld [vmem:[%s2497_s8 + $0x10] ss:$36 sps:$4 sm:$0xff]  }
  0x47   : > { %1453 = vmatprep.subr.bf16.mxu0 %v2135_v46  ;;  %v2196_v26 = vld [vmem:[%s2495_s7 + $0x100] ss:$8 sps:$4 sm:$0xff]   ;;  %v2207_v29 = vld [vmem:[%s2495_s7 + $0x114] ss:$8 sps:$4 sm:$0xff]   ;;  %v2205_v31 = vld [vmem:[%s2495_s7 + $0x110] ss:$8 sps:$4 sm:$0xff]  }
  0x48   : > { %v2202_v28 = vld [vmem:[%s2495_s7 + $0x300] ss:$8 sps:$4 sm:$0xff]   ;;  %v2210_v30 = vld [vmem:[%s2495_s7 + $0x314] ss:$8 sps:$4 sm:$0xff]   ;;  %v2208_v32 = vld [vmem:[%s2495_s7 + $0x310] ss:$8 sps:$4 sm:$0xff]  }
  0x49   : > { %1348 = vmatpush1.bf16.msra.mxu1 %v2137_v47  ;;  %v2213_v33 = vld [vmem:[%s2495_s7 + $0x124] ss:$8 sps:$4 sm:$0xff]   ;;  %v2211_v35 = vld [vmem:[%s2495_s7 + $0x120] ss:$8 sps:$4 sm:$0xff]   ;;  %v2219_v37 = vld [vmem:[%s2495_s7 + $0x134] ss:$8 sps:$4 sm:$0xff]  }
  0x4a   : > { %1454 = vmatpush1.bf16.msra.mxu0 %v2138_v48  ;;  %1349 = vmatprep.subr.bf16.mxu1 %v2139_v49  ;;  %v2216_v34 = vld [vmem:[%s2495_s7 + $0x324] ss:$8 sps:$4 sm:$0xff]   ;;  %v2214_v36 = vld [vmem:[%s2495_s7 + $0x320] ss:$8 sps:$4 sm:$0xff]   ;;  %v2222_v38 = vld [vmem:[%s2495_s7 + $0x334] ss:$8 sps:$4 sm:$0xff]  }
  0x4b   : > { %1455 = vmatprep.subr.bf16.mxu0 %v2141_v50  ;;  %v2217_v39 = vld [vmem:[%s2495_s7 + $0x130] ss:$8 sps:$4 sm:$0xff]   ;;  %v2225_v41 = vld [vmem:[%s2495_s7 + $0x144] ss:$8 sps:$4 sm:$0xff]   ;;  %v2223_v43 = vld [vmem:[%s2495_s7 + $0x140] ss:$8 sps:$4 sm:$0xff]  }
  0x4c   : > { %v2220_v40 = vld [vmem:[%s2495_s7 + $0x330] ss:$8 sps:$4 sm:$0xff]   ;;  %v2228_v42 = vld [vmem:[%s2495_s7 + $0x344] ss:$8 sps:$4 sm:$0xff]   ;;  %v2226_v44 = vld [vmem:[%s2495_s7 + $0x340] ss:$8 sps:$4 sm:$0xff]  }
  0x4d   : > { %1350 = vmatpush1.bf16.msra.mxu1 %v2143_v51  ;;  %v2231_v45 = vld [vmem:[%s2495_s7 + $0x154] ss:$8 sps:$4 sm:$0xff]   ;;  %v2229_v47 = vld [vmem:[%s2495_s7 + $0x150] ss:$8 sps:$4 sm:$0xff]   ;;  %v2237_v49 = vld [vmem:[%s2495_s7 + $0x164] ss:$8 sps:$4 sm:$0xff]  }
  0x4e   : > { %1456 = vmatpush1.bf16.msra.mxu0 %v2144_v52  ;;  %1351 = vmatprep.subr.bf16.mxu1 %v2145_v53  ;;  %v2234_v46 = vld [vmem:[%s2495_s7 + $0x354] ss:$8 sps:$4 sm:$0xff]   ;;  %v2232_v48 = vld [vmem:[%s2495_s7 + $0x350] ss:$8 sps:$4 sm:$0xff]   ;;  %v2240_v53 = vld [vmem:[%s2495_s7 + $0x364] ss:$8 sps:$4 sm:$0xff]  }
  0x4f   : > { %1457 = vmatprep.subr.bf16.mxu0 %v2147_v54  ;;  %v2283_v50 = vld [vmem:[%s2497_s8 + $0x4c] ss:$36 sps:$4 sm:$0xff]   ;;  %v2285_v51 = vld [vmem:[%s2497_s8 + $0x5c] ss:$36 sps:$4 sm:$0xff]  }
  0x50   : > { %v2287_v52 = vld [vmem:[%s2497_s8 + $0x48] ss:$36 sps:$4 sm:$0xff]   ;;  %v2291_v54 = vld [vmem:[%s2497_s8 + $0x58] ss:$36 sps:$4 sm:$0xff]  }
  0x51   : > { %1352 = vmatpush1.bf16.msra.mxu1 %v2149_v55  ;;  %v2235_v55 = vld [vmem:[%s2495_s7 + $0x160] ss:$8 sps:$4 sm:$0xff]   ;;  %v2253_v5 = vld [vmem:[%s2495_s7 + $0x190] ss:$8 sps:$4 sm:$0xff]   ;;  %v2264_v8 = vld [vmem:[%s2495_s7 + $0x3a4] ss:$8 sps:$4 sm:$0xff]  }
  0x52   : > { %1458 = vmatpush1.bf16.msra.mxu0 %v2150_v56  ;;  %1353 = vmatprep.subr.bf16.mxu1 %v2151_v57  ;;  %v2238_v56 = vld [vmem:[%s2495_s7 + $0x360] ss:$8 sps:$4 sm:$0xff]   ;;  %v2243_v57 = vld [vmem:[%s2495_s7 + $0x174] ss:$8 sps:$4 sm:$0xff]  }
  0x53   : > { %1459 = vmatprep.subr.bf16.mxu0 %v2153_v58  ;;  %v2246_v58 = vld [vmem:[%s2495_s7 + $0x374] ss:$8 sps:$4 sm:$0xff]  }
  0x55   : > { %1354 = vmatpush1.bf16.msra.mxu1 %v2155_v59  ;;  %v2241_v59 = vld [vmem:[%s2495_s7 + $0x170] ss:$8 sps:$4 sm:$0xff]  }
  0x56   : > { %1460 = vmatpush1.bf16.msra.mxu0 %v2156_v60  ;;  %1355 = vmatprep.subr.bf16.mxu1 %v2157_v61  ;;  %v2244_v60 = vld [vmem:[%s2495_s7 + $0x370] ss:$8 sps:$4 sm:$0xff]   ;;  %v2249_v61 = vld [vmem:[%s2495_s7 + $0x184] ss:$8 sps:$4 sm:$0xff]  }
  0x57   : > { %1461 = vmatprep.subr.bf16.mxu0 %v2159_v62  ;;  %v2303_v62 = vld [vmem:[%s2497_s8 + $0xc] ss:$36 sps:$4 sm:$0xff]  }
  0x59   : > { %1356 = vmatpush1.bf16.msra.mxu1 %v2161_v63  ;;  %v2252_v63 = vld [vmem:[%s2495_s7 + $0x384] ss:$8 sps:$4 sm:$0xff]  }
  0x5a   : > { %1462 = vmatpush1.bf16.msra.mxu0 %v2162_v0  ;;  %1357 = vmatprep.subr.bf16.mxu1 %v2163_v1  ;;  %v2306_v0 = vld [vmem:[%s2497_s8 + $0x1c] ss:$36 sps:$4 sm:$0xff]  }
  0x5b   : > { %1463 = vmatprep.subr.bf16.mxu0 %v2165_v2  ;;  %v2247_v1 = vld [vmem:[%s2495_s7 + $0x180] ss:$8 sps:$4 sm:$0xff]  }
  0x5c   : > { %v2250_v2 = vld [vmem:[%s2495_s7 + $0x380] ss:$8 sps:$4 sm:$0xff]  }
  0x5d   : > { %1358 = vmatpush1.bf16.msra.mxu1 %v2167_v3  ;;  %v2255_v3 = vld [vmem:[%s2495_s7 + $0x194] ss:$8 sps:$4 sm:$0xff]  }
  0x5e   : > { %1464 = vmatpush1.bf16.msra.mxu0 %v2168_v4  ;;  %1359 = vmatprep.subr.bf16.mxu1 %v2169_v6  ;;  %v2258_v4 = vld [vmem:[%s2495_s7 + $0x394] ss:$8 sps:$4 sm:$0xff]   ;;  %v2256_v6 = vld [vmem:[%s2495_s7 + $0x390] ss:$8 sps:$4 sm:$0xff]  }
  0x5f   : > { %1465 = vmatprep.subr.bf16.mxu0 %v2171_v7  ;;  %v2261_v7 = vld [vmem:[%s2495_s7 + $0x1a4] ss:$8 sps:$4 sm:$0xff]  }
  0x61   : > { %1360 = vmatpush1.bf16.msra.mxu1 %v2173_v9  ;;  %v2259_v9 = vld [vmem:[%s2495_s7 + $0x1a0] ss:$8 sps:$4 sm:$0xff]  }
  0x62   : > { %1466 = vmatpush1.bf16.msra.mxu0 %v2174_v10  ;;  %1361 = vmatprep.subr.bf16.mxu1 %v2175_v11  ;;  %v2262_v10 = vld [vmem:[%s2495_s7 + $0x3a0] ss:$8 sps:$4 sm:$0xff]   ;;  %v2267_v11 = vld [vmem:[%s2495_s7 + $0x1b4] ss:$8 sps:$4 sm:$0xff]  }
  0x63   : > { %1467 = vmatprep.subr.bf16.mxu0 %v2177_v12  ;;  %v2270_v12 = vld [vmem:[%s2495_s7 + $0x3b4] ss:$8 sps:$4 sm:$0xff]  }
  0x65   : > { %1362 = vmatpush1.bf16.msra.mxu1 %v2179_v13  ;;  %v2265_v13 = vld [vmem:[%s2495_s7 + $0x1b0] ss:$8 sps:$4 sm:$0xff]  }
  0x66   : > { %1468 = vmatpush1.bf16.msra.mxu0 %v2180_v14  ;;  %1363 = vmatprep.subr.bf16.mxu1 %v2181_v15  ;;  %v2268_v14 = vld [vmem:[%s2495_s7 + $0x3b0] ss:$8 sps:$4 sm:$0xff]   ;;  %v2273_v15 = vld [vmem:[%s2495_s7 + $0x1c4] ss:$8 sps:$4 sm:$0xff]  }
  0x67   : > { %1469 = vmatprep.subr.bf16.mxu0 %v2183_v16  ;;  %v2276_v16 = vld [vmem:[%s2495_s7 + $0x3c4] ss:$8 sps:$4 sm:$0xff]  }
  0x69   : > { %1364 = vmatpush1.bf16.msra.mxu1 %v2185_v17  ;;  %v2271_v17 = vld [vmem:[%s2495_s7 + $0x1c0] ss:$8 sps:$4 sm:$0xff]  }
  0x6a   : > { %1470 = vmatpush1.bf16.msra.mxu0 %v2186_v18  ;;  %1365 = vmatprep.subr.bf16.mxu1 %v2187_v19  ;;  %v2274_v18 = vld [vmem:[%s2495_s7 + $0x3c0] ss:$8 sps:$4 sm:$0xff]   ;;  %v2279_v19 = vld [vmem:[%s2495_s7 + $0x1d4] ss:$8 sps:$4 sm:$0xff]  }
  0x6b   : > { %1471 = vmatprep.subr.bf16.mxu0 %v2189_v20  ;;  %v2282_v20 = vld [vmem:[%s2495_s7 + $0x3d4] ss:$8 sps:$4 sm:$0xff]  }
  0x6d   : > { %1366 = vmatpush1.bf16.msra.mxu1 %v2191_v21  ;;  %v2277_v21 = vld [vmem:[%s2495_s7 + $0x1d0] ss:$8 sps:$4 sm:$0xff]  }
  0x6e   : > { %1472 = vmatpush1.bf16.msra.mxu0 %v2192_v22  ;;  %1388 = vmatprep.subr.bf16.mxu1 %v2198_v23  ;;  %v2280_v22 = vld [vmem:[%s2495_s7 + $0x3d0] ss:$8 sps:$4 sm:$0xff]   ;;  %v2290_v23 = vld [vmem:[%s2495_s7 + $0x1e4] ss:$8 sps:$4 sm:$0xff]  }
  0x6f   : > { %1494 = vmatprep.subr.bf16.mxu0 %v2204_v24  ;;  %v2294_v24 = vld [vmem:[%s2495_s7 + $0x3e4] ss:$8 sps:$4 sm:$0xff]  }
  0x70   : > { %1368 = vmatmul.mubr.bf16.vlgmr.msra.gmra.mrb[0].mxu1 %v2193_v25  ;;  %v2288_v25 = vld [vmem:[%s2495_s7 + $0x1e0] ss:$8 sps:$4 sm:$0xff]  }
  0x71   : > { %1474 = vmatmul.mubr.bf16.vlgmr.msra.gmra.mrb[0].mxu0 %v2199_v27  ;;  %1389 = vmatpush1.bf16.msra.mxu1 %v2196_v26  ;;  %v2292_v26 = vld [vmem:[%s2495_s7 + $0x3e0] ss:$8 sps:$4 sm:$0xff]   ;;  %v2297_v27 = vld [vmem:[%s2495_s7 + $0x1f4] ss:$8 sps:$4 sm:$0xff]  }
  0x72   : > { %1495 = vmatpush1.bf16.msra.mxu0 %v2202_v28  ;;  %1390 = vmatprep.subr.bf16.mxu1 %v2207_v29  ;;  %v2300_v28 = vld [vmem:[%s2495_s7 + $0x3f4] ss:$8 sps:$4 sm:$0xff]   ;;  %v2295_v29 = vld [vmem:[%s2495_s7 + $0x1f0] ss:$8 sps:$4 sm:$0xff]  }
  0x73   : > { %1496 = vmatprep.subr.bf16.mxu0 %v2210_v30  ;;  %1377 = vmatprep.mubr.bf16.mxu1 %v2283_v50  ;;  %v2298_v30 = vld [vmem:[%s2495_s7 + $0x3f0] ss:$8 sps:$4 sm:$0xff]   ;;  %v2333_v50 = vld [vmem:[%s2495_s7 + $0x464] ss:$8 sps:$4 sm:$0xff]  }
  0x74   : > { %1483 = vmatprep.mubr.bf16.mxu0 %v2285_v51  ;;  %v2331_v51 = vld [vmem:[%s2495_s7 + $0x460] ss:$8 sps:$4 sm:$0xff]  }
  0x75   : > { %1391 = vmatpush1.bf16.msra.mxu1 %v2205_v31  ;;  %v2309_v31 = vld [vmem:[%s2495_s7 + $0x404] ss:$8 sps:$4 sm:$0xff]  }
  0x76   : > { %1497 = vmatpush1.bf16.msra.mxu0 %v2208_v32  ;;  %1392 = vmatprep.subr.bf16.mxu1 %v2213_v33  ;;  %v2301_v32 = vld [vmem:[%s2497_s8 + $0x8] ss:$36 sps:$4 sm:$0xff]   ;;  %v2304_v33 = vld [vmem:[%s2497_s8 + $0x18] ss:$36 sps:$4 sm:$0xff]  }
  0x77   : > { %1498 = vmatprep.subr.bf16.mxu0 %v2216_v34  ;;  %v2307_v34 = vld [vmem:[%s2495_s7 + $0x400] ss:$8 sps:$4 sm:$0xff]  }
  0x78   : > { %1378 = vmatmul.mubr.bf16.gmra.mrb[4].mxu1 %v2287_v52  ;;  %v2336_v52 = vld [vmem:[%s2495_s7 + $0x474] ss:$8 sps:$4 sm:$0xff]  }
  0x79   : > { %1393 = vmatpush1.bf16.msra.mxu1 %v2211_v35  ;;  %1484 = vmatmul.mubr.bf16.gmra.mrb[4].mxu0 %v2291_v54  ;;  %v2312_v35 = vld [vmem:[%s2495_s7 + $0x414] ss:$8 sps:$4 sm:$0xff]  }
  0x7a   : > { %1499 = vmatpush1.bf16.msra.mxu0 %v2214_v36  ;;  %1394 = vmatprep.subr.bf16.mxu1 %v2219_v37  ;;  %v2313_v36 = vld [vmem:[%s2497_s8 + $0x54] ss:$36 sps:$4 sm:$0xff]   ;;  %v2315_v37 = vld [vmem:[%s2497_s8 + $0x64] ss:$36 sps:$4 sm:$0xff]  }
  0x7b   : > { %1500 = vmatprep.subr.bf16.mxu0 %v2222_v38  ;;  %1420 = vmatprep.mubr.bf16.mxu1 %v2303_v62  ;;  %v2310_v38 = vld [vmem:[%s2495_s7 + $0x410] ss:$8 sps:$4 sm:$0xff]  }
  0x7c   : > { %1526 = vmatprep.mubr.bf16.mxu0 %v2306_v0  ;;  %v2337_v54 = vld [vmem:[%s2497_s8 + $0x20] ss:$36 sps:$4 sm:$0xff]  }
  0x7d   : > { %1395 = vmatpush1.bf16.msra.mxu1 %v2217_v39  ;;  %v2321_v39 = vld [vmem:[%s2495_s7 + $0x424] ss:$8 sps:$4 sm:$0xff]  }
  0x7e   : > { %1501 = vmatpush1.bf16.msra.mxu0 %v2220_v40  ;;  %1396 = vmatprep.subr.bf16.mxu1 %v2225_v41  ;;  %v2317_v40 = vld [vmem:[%s2497_s8 + $0x50] ss:$36 sps:$4 sm:$0xff]   ;;  %v2318_v41 = vld [vmem:[%s2497_s8 + $0x60] ss:$36 sps:$4 sm:$0xff]  }
  0x7f   : > { %1502 = vmatprep.subr.bf16.mxu0 %v2228_v42  ;;  %v2319_v42 = vld [vmem:[%s2495_s7 + $0x420] ss:$8 sps:$4 sm:$0xff]  }
  0x81   : > { %1397 = vmatpush1.bf16.msra.mxu1 %v2223_v43  ;;  %v2324_v43 = vld [vmem:[%s2495_s7 + $0x434] ss:$8 sps:$4 sm:$0xff]  }
  0x82   : > { %1503 = vmatpush1.bf16.msra.mxu0 %v2226_v44  ;;  %1398 = vmatprep.subr.bf16.mxu1 %v2231_v45  ;;  %v2322_v44 = vld [vmem:[%s2495_s7 + $0x430] ss:$8 sps:$4 sm:$0xff]   ;;  %v2327_v45 = vld [vmem:[%s2495_s7 + $0x444] ss:$8 sps:$4 sm:$0xff]  }
  0x83   : > { %1504 = vmatprep.subr.bf16.mxu0 %v2234_v46  ;;  %v2380_v46 = vmov 0  }
  0x85   : > { %1399 = vmatpush1.bf16.msra.mxu1 %v2229_v47  ;;  %v2325_v47 = vld [vmem:[%s2495_s7 + $0x440] ss:$8 sps:$4 sm:$0xff]  }
  0x86   : > { %1505 = vmatpush1.bf16.msra.mxu0 %v2232_v48  ;;  %1400 = vmatprep.subr.bf16.mxu1 %v2237_v49  ;;  %v2330_v48 = vld [vmem:[%s2495_s7 + $0x454] ss:$8 sps:$4 sm:$0xff]   ;;  %v2328_v49 = vld [vmem:[%s2495_s7 + $0x450] ss:$8 sps:$4 sm:$0xff]  }
  0x87   : > { %1506 = vmatprep.subr.bf16.mxu0 %v2240_v53  ;;  %v2334_v53 = vld [vmem:[%s2495_s7 + $0x470] ss:$8 sps:$4 sm:$0xff]  }
  0x89   : > { %1401 = vmatpush1.bf16.msra.mxu1 %v2235_v55  ;;  %v2338_v55 = vld [vmem:[%s2497_s8 + $0x68] ss:$36 sps:$4 sm:$0xff]  }
  0x8a   : > { %1507 = vmatpush1.bf16.msra.mxu0 %v2238_v56  ;;  %1402 = vmatprep.subr.bf16.mxu1 %v2243_v57 }
  0x8b   : > { %1508 = vmatprep.subr.bf16.mxu0 %v2246_v58 }
  0x8d   : > { %1403 = vmatpush1.bf16.msra.mxu1 %v2241_v59 }
  0x8e   : > { %1509 = vmatpush1.bf16.msra.mxu0 %v2244_v60  ;;  %1404 = vmatprep.subr.bf16.mxu1 %v2249_v61 }
  0x8f   : > { %1510 = vmatprep.subr.bf16.mxu0 %v2252_v63 }
  0x91   : > { %1405 = vmatpush1.bf16.msra.mxu1 %v2247_v1 }
  0x92   : > { %1511 = vmatpush1.bf16.msra.mxu0 %v2250_v2  ;;  %1406 = vmatprep.subr.bf16.mxu1 %v2255_v3 }
  0x93   : > { %1512 = vmatprep.subr.bf16.mxu0 %v2258_v4 }
  0x95   : > { %1407 = vmatpush1.bf16.msra.mxu1 %v2253_v5 }
  0x96   : > { %1513 = vmatpush1.bf16.msra.mxu0 %v2256_v6  ;;  %1408 = vmatprep.subr.bf16.mxu1 %v2261_v7 }
  0x97   : > { %1514 = vmatprep.subr.bf16.mxu0 %v2264_v8  ;;  %v351_v8 = vld [vmem:[#allocation2] sm:$0xff] }
  0x99   : > { %1409 = vmatpush1.bf16.msra.mxu1 %v2259_v9 }
  0x9a   : > { %1515 = vmatpush1.bf16.msra.mxu0 %v2262_v10  ;;  %1410 = vmatprep.subr.bf16.mxu1 %v2267_v11  ;;  %v355_v10 = vld [vmem:[#allocation2 + $0x20] sm:$0xff] }
  0x9b   : > { %1516 = vmatprep.subr.bf16.mxu0 %v2270_v12 }
  0x9d   : > { %1411 = vmatpush1.bf16.msra.mxu1 %v2265_v13 }
  0x9e   : > { %1517 = vmatpush1.bf16.msra.mxu0 %v2268_v14  ;;  %1412 = vmatprep.subr.bf16.mxu1 %v2273_v15  ;;  %v352_v14 = vld [vmem:[#allocation2 + $0x8] sm:$0xff] }
  0x9f   : > { %1518 = vmatprep.subr.bf16.mxu0 %v2276_v16  ;;  %v356_v16 = vld [vmem:[#allocation2 + $0x28] sm:$0xff] }
  0xa1   : > { %1413 = vmatpush1.bf16.msra.mxu1 %v2271_v17 }
  0xa2   : > { %1519 = vmatpush1.bf16.msra.mxu0 %v2274_v18  ;;  %1414 = vmatprep.subr.bf16.mxu1 %v2279_v19 }
  0xa3   : > { %1520 = vmatprep.subr.bf16.mxu0 %v2282_v20  ;;  %v353_v20 = vld [vmem:[#allocation2 + $0x10] sm:$0xff] }
  0xa5   : > { %1415 = vmatpush1.bf16.msra.mxu1 %v2277_v21 }
  0xa6   : > { %1521 = vmatpush1.bf16.msra.mxu0 %v2280_v22  ;;  %1416 = vmatprep.subr.bf16.mxu1 %v2290_v23  ;;  %v357_v22 = vld [vmem:[#allocation2 + $0x30] sm:$0xff] }
  0xa7   : > { %1522 = vmatprep.subr.bf16.mxu0 %v2294_v24 }
  0xa9   : > { %1417 = vmatpush1.bf16.msra.mxu1 %v2288_v25 }
  0xaa   : > { %1523 = vmatpush1.bf16.msra.mxu0 %v2292_v26  ;;  %1418 = vmatprep.subr.bf16.mxu1 %v2297_v27 }
  0xab   : > { %1524 = vmatprep.subr.bf16.mxu0 %v2300_v28  ;;  %v354_v28 = vld [vmem:[#allocation2 + $0x18] sm:$0xff] }
  0xad   : > { %1419 = vmatpush1.bf16.msra.mxu1 %v2295_v29 }
  0xae   : > { %1525 = vmatpush1.bf16.msra.mxu0 %v2298_v30  ;;  %2005 = vmatprep.subr.bf16.mxu1 %v2309_v31  ;;  %v358_v30 = vld [vmem:[#allocation2 + $0x38] sm:$0xff] }
  0xaf   : > { %1547 = vmatprep.subr.bf16.mxu0 %v2309_v31 }
  0xb0   : > { %1421 = vmatmul.mubr.bf16.vlgmr.msra.gmra.mrb[0].mxu1 %v2301_v32 }
  0xb1   : > { %1527 = vmatmul.mubr.bf16.vlgmr.msra.gmra.mrb[0].mxu0 %v2304_v33  ;;  %2013 = vmatpush1.bf16.msra.mxu1 %v2307_v34 }
  0xb2   : > { %1548 = vmatpush1.bf16.msra.mxu0 %v2307_v34  ;;  %2006 = vmatprep.subr.bf16.mxu1 %v2312_v35 }
  0xb3   : > { %1549 = vmatprep.subr.bf16.mxu0 %v2312_v35  ;;  %1430 = vmatprep.mubr.bf16.mxu1 %v2313_v36 }
  0xb4   : > { %1536 = vmatprep.mubr.bf16.mxu0 %v2315_v37 }
  0xb5   : > { %2014 = vmatpush1.bf16.msra.mxu1 %v2310_v38 }
  0xb6   : > { %1550 = vmatpush1.bf16.msra.mxu0 %v2310_v38  ;;  %2007 = vmatprep.subr.bf16.mxu1 %v2321_v39 }
  0xb7   : > { %1551 = vmatprep.subr.bf16.mxu0 %v2321_v39 }
  0xb8   : > { %1431 = vmatmul.mubr.bf16.gmra.mrb[4].mxu1 %v2317_v40  ;;  %v1630_v40 = vlaneseq (!%p1990_p11) }
  0xb9   : > { %1537 = vmatmul.mubr.bf16.gmra.mrb[4].mxu0 %v2318_v41  ;;  %2015 = vmatpush1.bf16.msra.mxu1 %v2319_v42 }
  0xba   : > { %1552 = vmatpush1.bf16.msra.mxu0 %v2319_v42  ;;  %2008 = vmatprep.subr.bf16.mxu1 %v2324_v43  ;;  %v1631_v41 = vshrl.u32 (!%p1990_p11), %v1630_v40, 7  ;;  %v1628_v42 = vld [vmem:[%s2695_s2] sm:$0x3] (!%p1990_p11) }
  0xbb   : > { %1553 = vmatprep.subr.bf16.mxu0 %v2324_v43  ;;  %1579 = vmatprep.mubr.bf16.mxu0 %v2380_v46 }
  0xbc   : > { %1589 = vmatprep.mubr.bf16.mxu1 %v2380_v46  ;;  %v1636_v46 = vsub.s32 (!%p1990_p11), 1, %v1631_v41 }
  0xbd   : > { %2016 = vmatpush1.bf16.msra.mxu1 %v2322_v44 }
  0xbe   : > { %1554 = vmatpush1.bf16.msra.mxu0 %v2322_v44  ;;  %2009 = vmatprep.subr.bf16.mxu1 %v2327_v45 }
  0xbf   : > { %1555 = vmatprep.subr.bf16.mxu0 %v2327_v45  ;;  %v1632_v45 = vsub.s32 (!%p1990_p11), 0, %v1631_v41 }
  0xc1   : > { %2017 = vmatpush1.bf16.msra.mxu1 %v2325_v47 }
  0xc2   : > { %1556 = vmatpush1.bf16.msra.mxu0 %v2325_v47  ;;  %2010 = vmatprep.subr.bf16.mxu1 %v2330_v48 }
  0xc3   : > { %1557 = vmatprep.subr.bf16.mxu0 %v2330_v48 }
  0xc5   : > { %2018 = vmatpush1.bf16.msra.mxu1 %v2328_v49 }
  0xc6   : > { %1558 = vmatpush1.bf16.msra.mxu0 %v2328_v49  ;;  %2011 = vmatprep.subr.bf16.mxu1 %v2333_v50 }
  0xc7   : > { %1559 = vmatprep.subr.bf16.mxu0 %v2333_v50  ;;  %v1633_v50 = vrot.slane (!%p1990_p11), %v1628_v42, %v1632_v45 }
  0xc9   : > { %2019 = vmatpush1.bf16.msra.mxu1 %v2331_v51 }
  0xca   : > { %1560 = vmatpush1.bf16.msra.mxu0 %v2331_v51  ;;  %2012 = vmatprep.subr.bf16.mxu1 %v2336_v52  ;;  %v1637_v51 = vrot.slane (!%p1990_p11), %v1628_v42, %v1636_v46 }
  0xcb   : > { %1561 = vmatprep.subr.bf16.mxu0 %v2336_v52 }
  0xcd   : > { %2020 = vmatpush1.bf16.msra.mxu1 %v2334_v53 }
  0xce   : > { %1562 = vmatpush1.bf16.msra.mxu0 %v2334_v53 }
  0xd0   : > { %1590 = vmatmul.mubr.bf16.vlgmr.msra.gmra.mrb[8].mxu1 %v2338_v55 }
  0xd1   : > { %1580 = vmatmul.mubr.bf16.vlgmr.msra.gmra.mrb[0].mxu0 %v2337_v54 }
 0x183   : > { %v1422_v56 = vpop.f32.mrb[0].mxu1 }
 0x184   : > { %v1424_v57 = vpop.f32.mrb[1].mxu1 }
 0x185   : > { %v1426_v58 = vpop.f32.mrb[2].mxu1 }
 0x186   : > { %v1428_v59 = vpop.f32.mrb[3].mxu1 }
 0x18b   : > { %v1432_v60 = vpop.f32.mrb[4].mxu1 }
 0x18c   : > { %v1538_v61 = vpop.f32.mrb[4].mxu0  ;;  %v1434_v63 = vpop.f32.mrb[5].mxu1 }
 0x18d   : > { %v2025_v62 = vadd.f32 %v1538_v61, %v1432_v60  ;;  %v1540_v0 = vpop.f32.mrb[5].mxu0  ;;  %v1436_v2 = vpop.f32.mrb[6].mxu1 }
 0x18e   : > { %v2027_v1 = vadd.f32 %v1540_v0, %v1434_v63  ;;  %v1542_v3 = vpop.f32.mrb[6].mxu0  ;;  %v1438_v5 = vpop.f32.mrb[7].mxu1 }
 0x18f   : > { %v2029_v4 = vadd.f32 %v1542_v3, %v1436_v2  ;;  %v1544_v6 = vpop.f32.mrb[7].mxu0 }
 0x190   : > { %v2031_v7 = vadd.f32 %v1544_v6, %v1438_v5 }
 0x1a3   : > { %v1591_v11 = vpop.f32.mrb[8].mxu1 }
 0x1a4   : > { %v1581_v9 = vpop.f32.mrb[0].mxu0  ;;  %v2026_v13 = vadd.f32 %v2025_v62, %v1591_v11  ;;  %v1593_v17 = vpop.f32.mrb[9].mxu1 }
 0x1a5   : > { %v2021_v12 = vadd.f32 %v1581_v9, %v1422_v56  ;;  %v1583_v15 = vpop.f32.mrb[1].mxu0  ;;  %v2028_v19 = vadd.f32 %v2027_v1, %v1593_v17  ;;  %v1595_v23 = vpop.f32.mrb[10].mxu1 }
 0x1a6   : > { %v2022_v18 = vadd.f32 %v1583_v15, %v1424_v57  ;;  %v1585_v21 = vpop.f32.mrb[2].mxu0  ;;  %v1604_v25 = vadd.f32 %v2026_v13, %v355_v10  ;;  %v2030_v27 = vadd.f32 %v2029_v4, %v1595_v23  ;;  %v1597_v31 = vpop.f32.mrb[11].mxu1  ;;  %1619 = sbr.rel (%p1990_p11) target bundleno = 443 (0x1bb), region = 66 }
 0x1a7   : > { %v1600_v24 = vadd.f32 %v2021_v12, %v351_v8  ;;  %v2023_v26 = vadd.f32 %v1585_v21, %v1426_v58  ;;  %v1587_v29 = vpop.f32.mrb[3].mxu0  ;;  %v1605_v33 = vadd.f32 %v2028_v19, %v356_v16  ;;  %v2032_v35 = vadd.f32 %v2031_v7, %v1597_v31 }
 0x1a8   : > { %v1601_v32 = vadd.f32 %v2022_v18, %v352_v14  ;;  %v2024_v34 = vadd.f32 %v1587_v29, %v1428_v59  ;;  %1612 = vst [vmem:[#allocation2 + $0x20] sm:$0xff] %v1604_v25  ;;  %v1606_v37 = vadd.f32 %v2030_v27, %v357_v22 }
 0x1a9   : > { %1608 = vst [vmem:[#allocation2] sm:$0xff] %v1600_v24  ;;  %v1602_v36 = vadd.f32 %v2023_v26, %v353_v20  ;;  %1613 = vst [vmem:[#allocation2 + $0x28] sm:$0xff] %v1605_v33  ;;  %v1607_v39 = vadd.f32 %v2032_v35, %v358_v30 }
 0x1aa   : > { %1609 = vst [vmem:[#allocation2 + $0x8] sm:$0xff] %v1601_v32  ;;  %v1603_v38 = vadd.f32 %v2024_v34, %v354_v28  ;;  %1614 = vst [vmem:[#allocation2 + $0x30] sm:$0xff] %v1606_v37 }
 0x1ab   : > { %1610 = vst [vmem:[#allocation2 + $0x10] sm:$0xff] %v1602_v36  ;;  %1615 = vst [vmem:[#allocation2 + $0x38] sm:$0xff] %v1607_v39 }
 0x1ac   : > { %1611 = vst [vmem:[#allocation2 + $0x18] sm:$0xff] %v1603_v38 }
 0x1af   : > { %v1624_v49 = vld [vmem:[#allocation2 + $0x20] sm:$0xff] }
 0x1b0   : > { %v1620_v43 = vld [vmem:[#allocation2] sm:$0xff]  ;;  %v1625_v52 = vld [vmem:[#allocation2 + $0x28] sm:$0xff]  ;;  %v1644_v59 = vadd.f32 %v1633_v50, %v1624_v49 }
 0x1b1   : > { %v1621_v44 = vld [vmem:[#allocation2 + $0x8] sm:$0xff]  ;;  %v1626_v53 = vld [vmem:[#allocation2 + $0x30] sm:$0xff]  ;;  %v1640_v55 = vadd.f32 %v1633_v50, %v1620_v43  ;;  %v1645_v60 = vadd.f32 %v1637_v51, %v1625_v52 }
 0x1b2   : > { %v1622_v47 = vld [vmem:[#allocation2 + $0x10] sm:$0xff]  ;;  %v1627_v54 = vld [vmem:[#allocation2 + $0x38] sm:$0xff]  ;;  %v1641_v56 = vadd.f32 %v1637_v51, %v1621_v44  ;;  %v1646_v61 = vadd.f32 %v1633_v50, %v1626_v53  ;;  %v1652_v3 = vmax.f32 %v1644_v59, 0.0 }
 0x1b3   : > { %v1623_v48 = vld [vmem:[#allocation2 + $0x18] sm:$0xff]  ;;  %v1642_v57 = vadd.f32 %v1633_v50, %v1622_v47  ;;  %v1647_v62 = vadd.f32 %v1637_v51, %v1627_v54  ;;  %v1648_v63 = vmax.f32 %v1640_v55, 0.0  ;;  %v1653_v4 = vmax.f32 %v1645_v60, 0.0 }
 0x1b4   : > { %v1643_v58 = vadd.f32 %v1637_v51, %v1623_v48  ;;  %v1649_v0 = vmax.f32 %v1641_v56, 0.0  ;;  %v1654_v5 = vmax.f32 %v1646_v61, 0.0 }
 0x1b5   : > { %v1650_v1 = vmax.f32 %v1642_v57, 0.0  ;;  %v1655_v6 = vmax.f32 %v1647_v62, 0.0  ;;  %v2003_v9 = vpack.c.bf16 %v1653_v4, %v1652_v3 }
 0x1b6   : > { %v1651_v2 = vmax.f32 %v1643_v58, 0.0  ;;  %v2001_v7 = vpack.c.bf16 %v1649_v0, %v1648_v63 }
 0x1b7   : > { %v2004_v10 = vpack.c.bf16 %v1655_v6, %v1654_v5  ;;  %1682 = vst [vmem:[%s2696_s3 + $0x10] sm:$0xff] %v2003_v9 }
 0x1b8   : > { %v2002_v8 = vpack.c.bf16 %v1651_v2, %v1650_v1  ;;  %1680 = vst [vmem:[%s2696_s3] sm:$0xff] %v2001_v7 }
 0x1b9   : > { %1683 = vst [vmem:[%s2696_s3 + $0x18] sm:$0xff] %v2004_v10 }
 0x1ba   : > { %1681 = vst [vmem:[%s2696_s3 + $0x8] sm:$0xff] %v2002_v8 }
 0x1bb PF: > { %s13_s16 = sadd.s32 1, %s2377_s16   ;;  %s2697_s12 = smov %s2365_s13 }
 0x1bc   : > { %p10_p12 = scmp.ge.s32.totalorder %s13_s16, 4   ;;  %s2698_s13 = smov %s2436_s20 }
 0x1bd   : > { %s2699_s14 = smov %s2373_s15  ;;  %s2700_s15 = smov %s2702_s17 }
 0x1be   :  { %12 = sbr.rel (!%p10_p12) target bundleno = 3 (0x3), region = 113 }

// kernel: my_alexnet_forward.15
= control target key start
LH: loop header
LB: loop body
LE: loop exit
PB: predicated region body
PF: predicated region fallthrough
CT: control target
= control target key end

     0   :  { %s2461_s12 = smov 0   ;;  %s2463_s13 = smov 0   ;;  %s2703_s0 = inlined_call_operand.vmem [shape: bf16[16,4096], index: 0, kind: input, shape index: {}]   ;;  %s2704_s1 = inlined_call_operand.vmem [shape: bf16[4096,128], index: 1, kind: input, shape index: {}]   ;;  %s2705_s2 = inlined_call_operand.vmem [shape: f32[1,128], index: 2, kind: input, shape index: {}]   ;;  %s2706_s3 = inlined_call_operand.vmem [shape: f32[16,128], index: 3, kind: output, shape index: {}]  }
   0x1   :  { %s2465_s14 = smov 0   ;;  %s2467_s15 = smov 0  }
   0x2   :  { %s2469_s16 = smov 0  }
   0x3 LB: > { %s25_s17 = sadd.s32 1, %s2434_s15  ;;  %p48_p1 = scmp.ne.s32.totalorder %s2426_s13, %s2422_s12  ;;  %s2438_s16 = sphi %s2469_s16, %s13_s16   ;;  %s2434_s15 = sphi %s2467_s15, %s2710_s15   ;;  %s2430_s14 = sphi %s2465_s14, %s2709_s14   ;;  %s2426_s13 = sphi %s2463_s13, %s2708_s13   ;;  %s2422_s12 = sphi %s2461_s12, %s2707_s12  }
   0x4   : > { %p26_p0 = scmp.ge.s32.totalorder %s25_s17, 2  ;;  %p49_p2 = scmp.eq.s32.totalorder %s2438_s16, 0 }
   0x5   : > { %s41_s19 = sadd.s32 1, %s2426_s13  ;;  %p1895_p5 = scmp.ge.s32.totalorder %s2438_s16, 2 }
   0x6   : > { %s2712_s17 = smov (%p26_p0, %s25_s17), 0  ;;  %p50_p3 = por %p49_p2, %p48_p1 }
   0x7   : > { %s37_s18 = ssub.s32 %s2434_s15, %s2712_s17  ;;  %162 = sbr.rel (%p1895_p5) target bundleno = 26 (0x1a), region = 20 }
   0x8   : > { %p39_p4 = scmp.eq.s32.totalorder %s37_s18, 0 }
   0xa   : > { %s2496_s20 = scalar_select %p39_p4, %s2426_s13, %s41_s19  }
   0xe   : > { %165 = sbr.rel (!%p50_p3) target bundleno = 26 (0x1a), region = 24  ;;  %s167_s21 = sand.u32 (%p50_p3), 1, %s2426_s13  }
   0xf   : > { %s2054_s22 = sshll.u32 (%p50_p3), %s2434_s15, 6  ;;  %s1896_s23 = sshll.u32 (%p50_p3), %s167_s21, 7 }
  0x10   : > { %s2504_s26 = scalar_lea.vmem (%p50_p3), %s2703_s0, %s2054_s22  ;;  %s169_s27 = scalar_lea.vmem (%p50_p3), [#allocation3], %s1896_s23 }
  0x11   : > { %v188_v0 = vld [vmem:[%s2504_s26] sm:$0xff] (%p50_p3)  ;;  %v190_v1 = vld [vmem:[%s2504_s26 + $0x8] sm:$0xff] (%p50_p3)  ;;  %v192_v2 = vld [vmem:[%s2504_s26 + $0x10] sm:$0xff] (%p50_p3) }
  0x12   : > { %189 = vst [vmem:[%s169_s27] sm:$0xff] (%p50_p3), %v188_v0  ;;  %191 = vst [vmem:[%s169_s27 + $0x8] sm:$0xff] (%p50_p3), %v190_v1  ;;  %v194_v3 = vld [vmem:[%s2504_s26 + $0x18] sm:$0xff] (%p50_p3)  ;;  %v196_v4 = vld [vmem:[%s2504_s26 + $0x20] sm:$0xff] (%p50_p3) }
  0x13   : > { %193 = vst [vmem:[%s169_s27 + $0x10] sm:$0xff] (%p50_p3), %v192_v2  ;;  %v198_v5 = vld [vmem:[%s2504_s26 + $0x28] sm:$0xff] (%p50_p3)  ;;  %195 = vst [vmem:[%s169_s27 + $0x18] sm:$0xff] (%p50_p3), %v194_v3  ;;  %v200_v6 = vld [vmem:[%s2504_s26 + $0x30] sm:$0xff] (%p50_p3) }
  0x14   : > { %197 = vst [vmem:[%s169_s27 + $0x20] sm:$0xff] (%p50_p3), %v196_v4  ;;  %199 = vst [vmem:[%s169_s27 + $0x28] sm:$0xff] (%p50_p3), %v198_v5  ;;  %v202_v7 = vld [vmem:[%s2504_s26 + $0x38] sm:$0xff] (%p50_p3)  ;;  %v204_v8 = vld [vmem:[%s2504_s26 + $0x80] sm:$0xff] (%p50_p3) }
  0x15   : > { %201 = vst [vmem:[%s169_s27 + $0x30] sm:$0xff] %v200_v6  ;;  %203 = vst [vmem:[%s169_s27 + $0x38] sm:$0xff] %v202_v7  ;;  %v206_v9 = vld [vmem:[%s2504_s26 + $0x88] sm:$0xff]  ;;  %v208_v10 = vld [vmem:[%s2504_s26 + $0x90] sm:$0xff] }
  0x16   : > { %205 = vst [vmem:[%s169_s27 + $0x40] sm:$0xff] %v204_v8  ;;  %v210_v11 = vld [vmem:[%s2504_s26 + $0x98] sm:$0xff]  ;;  %207 = vst [vmem:[%s169_s27 + $0x48] sm:$0xff] %v206_v9  ;;  %v212_v12 = vld [vmem:[%s2504_s26 + $0xa0] sm:$0xff] }
  0x17   : > { %209 = vst [vmem:[%s169_s27 + $0x50] sm:$0xff] %v208_v10  ;;  %211 = vst [vmem:[%s169_s27 + $0x58] sm:$0xff] %v210_v11  ;;  %v214_v13 = vld [vmem:[%s2504_s26 + $0xa8] sm:$0xff]  ;;  %v216_v14 = vld [vmem:[%s2504_s26 + $0xb0] sm:$0xff] }
  0x18   : > { %213 = vst [vmem:[%s169_s27 + $0x60] sm:$0xff] %v212_v12  ;;  %215 = vst [vmem:[%s169_s27 + $0x68] sm:$0xff] %v214_v13  ;;  %v218_v15 = vld [vmem:[%s2504_s26 + $0xb8] sm:$0xff] }
  0x19   : > { %217 = vst [vmem:[%s169_s27 + $0x70] sm:$0xff] %v216_v14  ;;  %219 = vst [vmem:[%s169_s27 + $0x78] sm:$0xff] %v218_v15 }
  0x1a PF: > { %p1899_p6 = scmp.ge.s32.totalorder %s2438_s16, 1  ;;  %p236_p7 = scmp.lt.s32.totalorder %s2438_s16, 3 }
  0x1c   : > { %p237_p8 = pnand %p1899_p6, %p236_p7 }
  0x1d   : > { %s243_s28 = sand.u32 (!%p237_p8), 1, %s2422_s12   ;;  %s1901_s29 = sshll.u32 (!%p237_p8), %s2430_s14, 8 }
  0x1e   : > { %240 = sbr.rel (%p237_p8) target bundleno = 408 (0x198), region = 51  ;;  %s1900_s30 = sshll.u32 (!%p237_p8), %s243_s28, 7 }
  0x1f   : > { %p283_p9 = scmp.lt.s32.totalorder (!%p237_p8), %s1901_s29, 511  ;;  %s2531_s8 = scalar_lea.vmem (!%p237_p8), [#allocation3], %s1900_s30 }
  0x20   : > { %p1903_p10 = scmp.ne.s32.totalorder (!%p237_p8), %s2430_s14, 0 }
  0x25   : > { %s2714_s29 = smov (!%p283_p9, %s1901_s29), 511  ;;  %307 = sbr.rel (%p1903_p10) target bundleno = 44 (0x2c), region = 59 }
  0x26   : > { %s1902_s4 = sshll.u32 %s2714_s29, 2  ;;  %v2440_v16 = vmov (!%p1903_p10), 0.0  }
  0x27   : > { %s2529_s7 = scalar_lea.vmem %s2704_s1, %s1902_s4  ;;  %308 = vst [vmem:[#allocation2] sm:$0xff] (!%p1903_p10), %v2440_v16  ;;  %309 = vst [vmem:[#allocation2 + $0x8] sm:$0xff] (!%p1903_p10), %v2440_v16 }
  0x2c PF: > { %v2272_v17 = vld [vmem:[%s2529_s7 + $0x40] sm:$0xff]   ;;  %v2276_v21 = vld [vmem:[%s2529_s7 + $0x48] sm:$0xff]   ;;  %v2280_v25 = vld [vmem:[%s2529_s7 + $0x50] sm:$0xff]   ;;  %p2048_p11 = scmp.ne.s32.totalorder %s2430_s14, 1 }
  0x2d   : > { %v2273_v18 = vld [vmem:[%s2529_s7 + $0xc0] sm:$0xff]   ;;  %2055 = vmatprep.subr.bf16.mxu0 %v2272_v17  ;;  %v2277_v22 = vld [vmem:[%s2529_s7 + $0xc8] sm:$0xff]   ;;  %v2281_v26 = vld [vmem:[%s2529_s7 + $0xd0] sm:$0xff]  }
  0x2e   : > { %v2274_v19 = vld [vmem:[%s2529_s7] sm:$0xff]   ;;  %2077 = vmatprep.subr.bf16.mxu1 %v2273_v18  ;;  %v2278_v23 = vld [vmem:[%s2529_s7 + $0x8] sm:$0xff]   ;;  %v2282_v27 = vld [vmem:[%s2529_s7 + $0x10] sm:$0xff]  }
  0x2f   : > { %v2275_v20 = vld [vmem:[%s2529_s7 + $0x80] sm:$0xff]   ;;  %2056 = vmatpush3.bf16.msra.mxu0 %v2274_v19  ;;  %v2279_v24 = vld [vmem:[%s2529_s7 + $0x88] sm:$0xff]   ;;  %v2283_v28 = vld [vmem:[%s2529_s7 + $0x90] sm:$0xff]  }
  0x30   : > { %2078 = vmatpush3.bf16.msra.mxu1 %v2275_v20  ;;  %2057 = vmatprep.subr.bf16.mxu0 %v2276_v21  ;;  %v2284_v29 = vld [vmem:[%s2529_s7 + $0x58] sm:$0xff]   ;;  %v2288_v33 = vld [vmem:[%s2529_s7 + $0x60] sm:$0xff]   ;;  %v2292_v37 = vld [vmem:[%s2529_s7 + $0x68] sm:$0xff]  }
  0x31   : > { %2079 = vmatprep.subr.bf16.mxu1 %v2277_v22  ;;  %v2285_v30 = vld [vmem:[%s2529_s7 + $0xd8] sm:$0xff]   ;;  %v2289_v34 = vld [vmem:[%s2529_s7 + $0xe0] sm:$0xff]   ;;  %v2293_v38 = vld [vmem:[%s2529_s7 + $0xe8] sm:$0xff]  }
  0x32   : > { %v2286_v31 = vld [vmem:[%s2529_s7 + $0x18] sm:$0xff]   ;;  %v2290_v35 = vld [vmem:[%s2529_s7 + $0x20] sm:$0xff]   ;;  %v2294_v39 = vld [vmem:[%s2529_s7 + $0x28] sm:$0xff]  }
  0x33   : > { %2058 = vmatpush3.bf16.msra.mxu0 %v2278_v23  ;;  %v2287_v32 = vld [vmem:[%s2529_s7 + $0x98] sm:$0xff]   ;;  %v2291_v36 = vld [vmem:[%s2529_s7 + $0xa0] sm:$0xff]   ;;  %v2295_v40 = vld [vmem:[%s2529_s7 + $0xa8] sm:$0xff]  }
  0x34   : > { %2080 = vmatpush3.bf16.msra.mxu1 %v2279_v24  ;;  %2059 = vmatprep.subr.bf16.mxu0 %v2280_v25  ;;  %v2296_v41 = vld [vmem:[%s2529_s7 + $0x70] sm:$0xff]   ;;  %v2300_v45 = vld [vmem:[%s2529_s7 + $0x78] sm:$0xff]   ;;  %v2304_v57 = vld [vmem:[%s2529_s7 + $0x140] sm:$0xff]  }
  0x35   : > { %2081 = vmatprep.subr.bf16.mxu1 %v2281_v26  ;;  %v2297_v42 = vld [vmem:[%s2529_s7 + $0xf0] sm:$0xff]   ;;  %v2301_v46 = vld [vmem:[%s2529_s7 + $0xf8] sm:$0xff]   ;;  %v2305_v58 = vld [vmem:[%s2529_s7 + $0x1c0] sm:$0xff]  }
  0x36   : > { %v2298_v43 = vld [vmem:[%s2529_s7 + $0x30] sm:$0xff]   ;;  %v2302_v47 = vld [vmem:[%s2529_s7 + $0x38] sm:$0xff]   ;;  %v2306_v59 = vld [vmem:[%s2529_s7 + $0x100] sm:$0xff]  }
  0x37   : > { %2060 = vmatpush3.bf16.msra.mxu0 %v2282_v27  ;;  %v2299_v44 = vld [vmem:[%s2529_s7 + $0xb0] sm:$0xff]   ;;  %v2303_v48 = vld [vmem:[%s2529_s7 + $0xb8] sm:$0xff]   ;;  %v2307_v60 = vld [vmem:[%s2529_s7 + $0x180] sm:$0xff]  }
  0x38   : > { %2082 = vmatpush3.bf16.msra.mxu1 %v2283_v28  ;;  %2061 = vmatprep.subr.bf16.mxu0 %v2284_v29  ;;  %v312_v49 = vld [vmem:[%s2531_s8] sm:$0xff]  ;;  %v313_v51 = vld [vmem:[%s2531_s8 + $0x8] sm:$0xff]  ;;  %v2308_v61 = vld [vmem:[%s2529_s7 + $0x148] sm:$0xff]  }
  0x39   : > { %2083 = vmatprep.subr.bf16.mxu1 %v2285_v30  ;;  %v320_v50 = vld [vmem:[%s2531_s8 + $0x40] sm:$0xff]  ;;  %v321_v54 = vld [vmem:[%s2531_s8 + $0x48] sm:$0xff]  ;;  %v2309_v62 = vld [vmem:[%s2529_s7 + $0x1c8] sm:$0xff]  }
  0x3a   : > { %v1904_v52 = vcombine.low %v312_v49, %v320_v50  ;;  %v1905_v53 = vcombine.high %v312_v49, %v320_v50  ;;  %v1906_v55 = vcombine.low %v313_v51, %v321_v54  ;;  %v1907_v56 = vcombine.high %v313_v51, %v321_v54  ;;  %v2310_v63 = vld [vmem:[%s2529_s7 + $0x108] sm:$0xff]   ;;  %v2312_v1 = vld [vmem:[%s2529_s7 + $0x150] sm:$0xff]   ;;  %v2316_v5 = vld [vmem:[%s2529_s7 + $0x158] sm:$0xff]  }
  0x3b   : > { %2062 = vmatpush3.bf16.msra.mxu0 %v2286_v31  ;;  %v2311_v0 = vld [vmem:[%s2529_s7 + $0x188] sm:$0xff]   ;;  %v2313_v2 = vld [vmem:[%s2529_s7 + $0x1d0] sm:$0xff]   ;;  %v2317_v6 = vld [vmem:[%s2529_s7 + $0x1d8] sm:$0xff]  }
  0x3c   : > { %2084 = vmatpush3.bf16.msra.mxu1 %v2287_v32  ;;  %2063 = vmatprep.subr.bf16.mxu0 %v2288_v33  ;;  %v2314_v3 = vld [vmem:[%s2529_s7 + $0x110] sm:$0xff]   ;;  %v2318_v7 = vld [vmem:[%s2529_s7 + $0x118] sm:$0xff]   ;;  %v2320_v9 = vld [vmem:[%s2529_s7 + $0x160] sm:$0xff]  }
  0x3d   : > { %2085 = vmatprep.subr.bf16.mxu1 %v2289_v34  ;;  %1464 = vmatprep.mubr.bf16.mxu0 %v1905_v53  ;;  %v2315_v4 = vld [vmem:[%s2529_s7 + $0x190] sm:$0xff]   ;;  %v2319_v8 = vld [vmem:[%s2529_s7 + $0x198] sm:$0xff]   ;;  %v2321_v10 = vld [vmem:[%s2529_s7 + $0x1e0] sm:$0xff]  }
  0x3e   : > { %1505 = vmatprep.mubr.bf16.mxu1 %v1907_v56  ;;  %v2322_v11 = vld [vmem:[%s2529_s7 + $0x120] sm:$0xff]   ;;  %v2324_v13 = vld [vmem:[%s2529_s7 + $0x168] sm:$0xff]   ;;  %v2328_v17 = vld [vmem:[%s2529_s7 + $0x170] sm:$0xff]  }
  0x3f   : > { %2064 = vmatpush3.bf16.msra.mxu0 %v2290_v35  ;;  %v2323_v12 = vld [vmem:[%s2529_s7 + $0x1a0] sm:$0xff]   ;;  %v2325_v14 = vld [vmem:[%s2529_s7 + $0x1e8] sm:$0xff]   ;;  %v2329_v18 = vld [vmem:[%s2529_s7 + $0x1f0] sm:$0xff]  }
  0x40   : > { %2086 = vmatpush3.bf16.msra.mxu1 %v2291_v36  ;;  %2065 = vmatprep.subr.bf16.mxu0 %v2292_v37  ;;  %v2326_v15 = vld [vmem:[%s2529_s7 + $0x128] sm:$0xff]   ;;  %v2330_v19 = vld [vmem:[%s2529_s7 + $0x130] sm:$0xff]   ;;  %v2332_v21 = vld [vmem:[%s2529_s7 + $0x178] sm:$0xff]  }
  0x41   : > { %2087 = vmatprep.subr.bf16.mxu1 %v2293_v38  ;;  %v2327_v16 = vld [vmem:[%s2529_s7 + $0x1a8] sm:$0xff]   ;;  %v2331_v20 = vld [vmem:[%s2529_s7 + $0x1b0] sm:$0xff]   ;;  %v2333_v22 = vld [vmem:[%s2529_s7 + $0x1f8] sm:$0xff]  }
  0x42   : > { %v2334_v23 = vld [vmem:[%s2529_s7 + $0x138] sm:$0xff]   ;;  %v314_v25 = vld [vmem:[%s2531_s8 + $0x10] sm:$0xff]  ;;  %v315_v29 = vld [vmem:[%s2531_s8 + $0x18] sm:$0xff] }
  0x43   : > { %2066 = vmatpush3.bf16.msra.mxu0 %v2294_v39  ;;  %v2335_v24 = vld [vmem:[%s2529_s7 + $0x1b8] sm:$0xff]   ;;  %v322_v26 = vld [vmem:[%s2531_s8 + $0x50] sm:$0xff]  ;;  %v323_v30 = vld [vmem:[%s2531_s8 + $0x58] sm:$0xff] }
  0x44   : > { %2088 = vmatpush3.bf16.msra.mxu1 %v2295_v40  ;;  %2067 = vmatprep.subr.bf16.mxu0 %v2296_v41  ;;  %v1908_v27 = vcombine.low %v314_v25, %v322_v26  ;;  %v1909_v28 = vcombine.high %v314_v25, %v322_v26  ;;  %v1910_v31 = vcombine.low %v315_v29, %v323_v30  ;;  %v2336_v33 = vld [vmem:[%s2529_s7 + $0x240] sm:$0xff]   ;;  %v2340_v37 = vld [vmem:[%s2529_s7 + $0x248] sm:$0xff]   ;;  %v2344_v41 = vld [vmem:[%s2529_s7 + $0x250] sm:$0xff]  }
  0x45   : > { %2089 = vmatprep.subr.bf16.mxu1 %v2297_v42  ;;  %v1911_v32 = vcombine.high %v315_v29, %v323_v30  ;;  %v2337_v34 = vld [vmem:[%s2529_s7 + $0x2c0] sm:$0xff]   ;;  %v2341_v38 = vld [vmem:[%s2529_s7 + $0x2c8] sm:$0xff]   ;;  %v2345_v42 = vld [vmem:[%s2529_s7 + $0x2d0] sm:$0xff]  }
  0x46   : > { %v2338_v35 = vld [vmem:[%s2529_s7 + $0x200] sm:$0xff]   ;;  %v2342_v39 = vld [vmem:[%s2529_s7 + $0x208] sm:$0xff]  }
  0x47   : > { %2068 = vmatpush3.bf16.msra.mxu0 %v2298_v43  ;;  %v2339_v36 = vld [vmem:[%s2529_s7 + $0x280] sm:$0xff]   ;;  %v2343_v40 = vld [vmem:[%s2529_s7 + $0x288] sm:$0xff]   ;;  %v2346_v43 = vld [vmem:[%s2529_s7 + $0x210] sm:$0xff]  }
  0x48   : > { %2090 = vmatpush3.bf16.msra.mxu1 %v2299_v44  ;;  %2069 = vmatprep.subr.bf16.mxu0 %v2300_v45  ;;  %v2347_v44 = vld [vmem:[%s2529_s7 + $0x290] sm:$0xff]   ;;  %v2348_v45 = vld [vmem:[%s2529_s7 + $0x258] sm:$0xff]   ;;  %v2352_v49 = vld [vmem:[%s2529_s7 + $0x260] sm:$0xff]  }
  0x49   : > { %2091 = vmatprep.subr.bf16.mxu1 %v2301_v46  ;;  %v2349_v46 = vld [vmem:[%s2529_s7 + $0x2d8] sm:$0xff]   ;;  %v2353_v50 = vld [vmem:[%s2529_s7 + $0x2e0] sm:$0xff]   ;;  %v2356_v53 = vld [vmem:[%s2529_s7 + $0x268] sm:$0xff]  }
  0x4a   : > { %v2354_v51 = vld [vmem:[%s2529_s7 + $0x220] sm:$0xff]   ;;  %v2357_v54 = vld [vmem:[%s2529_s7 + $0x2e8] sm:$0xff]  }
  0x4b   : > { %2070 = vmatpush3.bf16.msra.mxu0 %v2302_v47  ;;  %v2350_v47 = vld [vmem:[%s2529_s7 + $0x218] sm:$0xff]   ;;  %v2359_v56 = vld [vmem:[%s2529_s7 + $0x2a8] sm:$0xff]   ;;  %v2384_v25 = vld [vmem:[%s2529_s7 + $0x360] sm:$0xff]  }
  0x4c   : > { %2092 = vmatpush3.bf16.msra.mxu1 %v2303_v48  ;;  %2099 = vmatprep.subr.bf16.mxu0 %v2304_v57  ;;  %v2351_v48 = vld [vmem:[%s2529_s7 + $0x298] sm:$0xff]   ;;  %v2360_v57 = vld [vmem:[%s2529_s7 + $0x270] sm:$0xff]   ;;  %v2385_v26 = vld [vmem:[%s2529_s7 + $0x3e0] sm:$0xff]  }
  0x4d   : > { %2121 = vmatprep.subr.bf16.mxu1 %v2305_v58  ;;  %v2361_v58 = vld [vmem:[%s2529_s7 + $0x2f0] sm:$0xff]   ;;  %v2388_v29 = vld [vmem:[%s2529_s7 + $0x368] sm:$0xff]  }
  0x4e   : > { %1465 = vmatmul.mubr.bf16.vlgmr.msra.gmra.mrb[0].mxu0 %v1904_v52  ;;  %v2355_v52 = vld [vmem:[%s2529_s7 + $0x2a0] sm:$0xff]   ;;  %v2389_v30 = vld [vmem:[%s2529_s7 + $0x3e8] sm:$0xff]  }
  0x4f   : > { %1506 = vmatmul.mubr.bf16.vlgmr.msra.gmra.mrb[0].mxu1 %v1906_v55  ;;  %2100 = vmatpush3.bf16.msra.mxu0 %v2306_v59  ;;  %v2358_v55 = vld [vmem:[%s2529_s7 + $0x228] sm:$0xff]   ;;  %v2362_v59 = vld [vmem:[%s2529_s7 + $0x230] sm:$0xff]  }
  0x50   : > { %2122 = vmatpush3.bf16.msra.mxu1 %v2307_v60  ;;  %2101 = vmatprep.subr.bf16.mxu0 %v2308_v61  ;;  %v2363_v60 = vld [vmem:[%s2529_s7 + $0x2b0] sm:$0xff]   ;;  %v2364_v61 = vld [vmem:[%s2529_s7 + $0x278] sm:$0xff]  }
  0x51   : > { %2123 = vmatprep.subr.bf16.mxu1 %v2309_v62  ;;  %1546 = vmatprep.mubr.bf16.mxu0 %v1909_v28  ;;  %v2365_v62 = vld [vmem:[%s2529_s7 + $0x2f8] sm:$0xff]   ;;  %v2387_v28 = vld [vmem:[%s2529_s7 + $0x3a0] sm:$0xff]  }
  0x52   : > { %1587 = vmatprep.mubr.bf16.mxu1 %v1911_v32  ;;  %v2391_v32 = vld [vmem:[%s2529_s7 + $0x3a8] sm:$0xff]  }
  0x53   : > { %2102 = vmatpush3.bf16.msra.mxu0 %v2310_v63  ;;  %v2366_v63 = vld [vmem:[%s2529_s7 + $0x238] sm:$0xff]  }
  0x54   : > { %2124 = vmatpush3.bf16.msra.mxu1 %v2311_v0  ;;  %2103 = vmatprep.subr.bf16.mxu0 %v2312_v1  ;;  %v2367_v0 = vld [vmem:[%s2529_s7 + $0x2b8] sm:$0xff]   ;;  %v316_v1 = vld [vmem:[%s2531_s8 + $0x20] sm:$0xff] }
  0x55   : > { %2125 = vmatprep.subr.bf16.mxu1 %v2313_v2  ;;  %v324_v2 = vld [vmem:[%s2531_s8 + $0x60] sm:$0xff] }
  0x57   : > { %2104 = vmatpush3.bf16.msra.mxu0 %v2314_v3  ;;  %v317_v3 = vld [vmem:[%s2531_s8 + $0x28] sm:$0xff] }
  0x58   : > { %2126 = vmatpush3.bf16.msra.mxu1 %v2315_v4  ;;  %2105 = vmatprep.subr.bf16.mxu0 %v2316_v5  ;;  %v325_v4 = vld [vmem:[%s2531_s8 + $0x68] sm:$0xff]  ;;  %v1912_v5 = vcombine.low %v316_v1, %v324_v2 }
  0x59   : > { %2127 = vmatprep.subr.bf16.mxu1 %v2317_v6  ;;  %v1913_v6 = vcombine.high %v316_v1, %v324_v2 }
  0x5b   : > { %2106 = vmatpush3.bf16.msra.mxu0 %v2318_v7  ;;  %v1914_v7 = vcombine.low %v317_v3, %v325_v4 }
  0x5c   : > { %2128 = vmatpush3.bf16.msra.mxu1 %v2319_v8  ;;  %2107 = vmatprep.subr.bf16.mxu0 %v2320_v9  ;;  %v1915_v8 = vcombine.high %v317_v3, %v325_v4  ;;  %v2368_v9 = vld [vmem:[%s2529_s7 + $0x340] sm:$0xff]  }
  0x5d   : > { %2129 = vmatprep.subr.bf16.mxu1 %v2321_v10  ;;  %v2369_v10 = vld [vmem:[%s2529_s7 + $0x3c0] sm:$0xff]  }
  0x5f   : > { %2108 = vmatpush3.bf16.msra.mxu0 %v2322_v11  ;;  %v2370_v11 = vld [vmem:[%s2529_s7 + $0x300] sm:$0xff]  }
  0x60   : > { %2130 = vmatpush3.bf16.msra.mxu1 %v2323_v12  ;;  %2109 = vmatprep.subr.bf16.mxu0 %v2324_v13  ;;  %v2371_v12 = vld [vmem:[%s2529_s7 + $0x380] sm:$0xff]   ;;  %v2372_v13 = vld [vmem:[%s2529_s7 + $0x348] sm:$0xff]  }
  0x61   : > { %2131 = vmatprep.subr.bf16.mxu1 %v2325_v14  ;;  %v2373_v14 = vld [vmem:[%s2529_s7 + $0x3c8] sm:$0xff]  }
  0x63   : > { %2110 = vmatpush3.bf16.msra.mxu0 %v2326_v15  ;;  %v2374_v15 = vld [vmem:[%s2529_s7 + $0x308] sm:$0xff]  }
  0x64   : > { %2132 = vmatpush3.bf16.msra.mxu1 %v2327_v16  ;;  %2111 = vmatprep.subr.bf16.mxu0 %v2328_v17  ;;  %v2375_v16 = vld [vmem:[%s2529_s7 + $0x388] sm:$0xff]   ;;  %v2376_v17 = vld [vmem:[%s2529_s7 + $0x350] sm:$0xff]  }
  0x65   : > { %2133 = vmatprep.subr.bf16.mxu1 %v2329_v18  ;;  %v2377_v18 = vld [vmem:[%s2529_s7 + $0x3d0] sm:$0xff]  }
  0x67   : > { %2112 = vmatpush3.bf16.msra.mxu0 %v2330_v19  ;;  %v2378_v19 = vld [vmem:[%s2529_s7 + $0x310] sm:$0xff]  }
  0x68   : > { %2134 = vmatpush3.bf16.msra.mxu1 %v2331_v20  ;;  %2113 = vmatprep.subr.bf16.mxu0 %v2332_v21  ;;  %v2379_v20 = vld [vmem:[%s2529_s7 + $0x390] sm:$0xff]   ;;  %v2380_v21 = vld [vmem:[%s2529_s7 + $0x358] sm:$0xff]  }
  0x69   : > { %2135 = vmatprep.subr.bf16.mxu1 %v2333_v22  ;;  %v2381_v22 = vld [vmem:[%s2529_s7 + $0x3d8] sm:$0xff]  }
  0x6b   : > { %2114 = vmatpush3.bf16.msra.mxu0 %v2334_v23  ;;  %v2382_v23 = vld [vmem:[%s2529_s7 + $0x318] sm:$0xff]  }
  0x6c   : > { %2136 = vmatpush3.bf16.msra.mxu1 %v2335_v24  ;;  %2143 = vmatprep.subr.bf16.mxu0 %v2336_v33  ;;  %v2383_v24 = vld [vmem:[%s2529_s7 + $0x398] sm:$0xff]   ;;  %v2392_v33 = vld [vmem:[%s2529_s7 + $0x370] sm:$0xff]  }
  0x6d   : > { %2165 = vmatprep.subr.bf16.mxu1 %v2337_v34  ;;  %v2393_v34 = vld [vmem:[%s2529_s7 + $0x3f0] sm:$0xff]  }
  0x6e   : > { %1547 = vmatmul.mubr.bf16.vlgmr.msra.gmra.mrb[4].mxu0 %v1908_v27  ;;  %v2386_v27 = vld [vmem:[%s2529_s7 + $0x320] sm:$0xff]  }
  0x6f   : > { %1588 = vmatmul.mubr.bf16.vlgmr.msra.gmra.mrb[4].mxu1 %v1910_v31  ;;  %2144 = vmatpush3.bf16.msra.mxu0 %v2338_v35  ;;  %v2390_v31 = vld [vmem:[%s2529_s7 + $0x328] sm:$0xff]   ;;  %v2394_v35 = vld [vmem:[%s2529_s7 + $0x330] sm:$0xff]  }
  0x70   : > { %2166 = vmatpush3.bf16.msra.mxu1 %v2339_v36  ;;  %2145 = vmatprep.subr.bf16.mxu0 %v2340_v37  ;;  %v2395_v36 = vld [vmem:[%s2529_s7 + $0x3b0] sm:$0xff]   ;;  %v2396_v37 = vld [vmem:[%s2529_s7 + $0x378] sm:$0xff]  }
  0x71   : > { %2167 = vmatprep.subr.bf16.mxu1 %v2341_v38  ;;  %1628 = vmatprep.mubr.bf16.mxu0 %v1913_v6  ;;  %v2397_v38 = vld [vmem:[%s2529_s7 + $0x3f8] sm:$0xff]  }
  0x72   : > { %1669 = vmatprep.mubr.bf16.mxu1 %v1915_v8 }
  0x73   : > { %2146 = vmatpush3.bf16.msra.mxu0 %v2342_v39  ;;  %v2398_v39 = vld [vmem:[%s2529_s7 + $0x338] sm:$0xff]  }
  0x74   : > { %2168 = vmatpush3.bf16.msra.mxu1 %v2343_v40  ;;  %2147 = vmatprep.subr.bf16.mxu0 %v2344_v41  ;;  %v2399_v40 = vld [vmem:[%s2529_s7 + $0x3b8] sm:$0xff]   ;;  %v318_v41 = vld [vmem:[%s2531_s8 + $0x30] sm:$0xff] }
  0x75   : > { %2169 = vmatprep.subr.bf16.mxu1 %v2345_v42  ;;  %v326_v42 = vld [vmem:[%s2531_s8 + $0x70] sm:$0xff] }
  0x77   : > { %2148 = vmatpush3.bf16.msra.mxu0 %v2346_v43  ;;  %v319_v43 = vld [vmem:[%s2531_s8 + $0x38] sm:$0xff] }
  0x78   : > { %2170 = vmatpush3.bf16.msra.mxu1 %v2347_v44  ;;  %2149 = vmatprep.subr.bf16.mxu0 %v2348_v45  ;;  %v1916_v44 = vcombine.low %v318_v41, %v326_v42  ;;  %v1917_v45 = vcombine.high %v318_v41, %v326_v42 }
  0x79   : > { %2171 = vmatprep.subr.bf16.mxu1 %v2349_v46  ;;  %v327_v46 = vld [vmem:[%s2531_s8 + $0x78] sm:$0xff] }
  0x7b   : > { %2150 = vmatpush3.bf16.msra.mxu0 %v2350_v47  ;;  %v1918_v47 = vcombine.low %v319_v43, %v327_v46 }
  0x7c   : > { %2172 = vmatpush3.bf16.msra.mxu1 %v2351_v48  ;;  %2151 = vmatprep.subr.bf16.mxu0 %v2352_v49  ;;  %v1919_v48 = vcombine.high %v319_v43, %v327_v46  ;;  %v310_v43 = vld [vmem:[#allocation2] sm:$0xff] }
  0x7d   : > { %2173 = vmatprep.subr.bf16.mxu1 %v2353_v50 }
  0x7f   : > { %2152 = vmatpush3.bf16.msra.mxu0 %v2354_v51 }
  0x80   : > { %2174 = vmatpush3.bf16.msra.mxu1 %v2355_v52  ;;  %2153 = vmatprep.subr.bf16.mxu0 %v2356_v53 }
  0x81   : > { %2175 = vmatprep.subr.bf16.mxu1 %v2357_v54 }
  0x83   : > { %2154 = vmatpush3.bf16.msra.mxu0 %v2358_v55 }
  0x84   : > { %2176 = vmatpush3.bf16.msra.mxu1 %v2359_v56  ;;  %2155 = vmatprep.subr.bf16.mxu0 %v2360_v57 }
  0x85   : > { %2177 = vmatprep.subr.bf16.mxu1 %v2361_v58 }
  0x87   : > { %2156 = vmatpush3.bf16.msra.mxu0 %v2362_v59 }
  0x88   : > { %2178 = vmatpush3.bf16.msra.mxu1 %v2363_v60  ;;  %2157 = vmatprep.subr.bf16.mxu0 %v2364_v61 }
  0x89   : > { %2179 = vmatprep.subr.bf16.mxu1 %v2365_v62 }
  0x8b   : > { %2158 = vmatpush3.bf16.msra.mxu0 %v2366_v63 }
  0x8c   : > { %2180 = vmatpush3.bf16.msra.mxu1 %v2367_v0  ;;  %2187 = vmatprep.subr.bf16.mxu0 %v2368_v9 }
  0x8d   : > { %2209 = vmatprep.subr.bf16.mxu1 %v2369_v10 }
  0x8e   : > { %1629 = vmatmul.mubr.bf16.vlgmr.msra.gmra.mrb[8].mxu0 %v1912_v5 }
  0x8f   : > { %1670 = vmatmul.mubr.bf16.vlgmr.msra.gmra.mrb[8].mxu1 %v1914_v7  ;;  %2188 = vmatpush3.bf16.msra.mxu0 %v2370_v11 }
  0x90   : > { %2210 = vmatpush3.bf16.msra.mxu1 %v2371_v12  ;;  %2189 = vmatprep.subr.bf16.mxu0 %v2372_v13 }
  0x91   : > { %2211 = vmatprep.subr.bf16.mxu1 %v2373_v14  ;;  %1710 = vmatprep.mubr.bf16.mxu0 %v1917_v45 }
  0x92   : > { %1751 = vmatprep.mubr.bf16.mxu1 %v1919_v48 }
  0x93   : > { %2190 = vmatpush3.bf16.msra.mxu0 %v2374_v15 }
  0x94   : > { %2212 = vmatpush3.bf16.msra.mxu1 %v2375_v16  ;;  %2191 = vmatprep.subr.bf16.mxu0 %v2376_v17 }
  0x95   : > { %2213 = vmatprep.subr.bf16.mxu1 %v2377_v18 }
  0x97   : > { %2192 = vmatpush3.bf16.msra.mxu0 %v2378_v19 }
  0x98   : > { %2214 = vmatpush3.bf16.msra.mxu1 %v2379_v20  ;;  %2193 = vmatprep.subr.bf16.mxu0 %v2380_v21 }
  0x99   : > { %2215 = vmatprep.subr.bf16.mxu1 %v2381_v22 }
  0x9b   : > { %2194 = vmatpush3.bf16.msra.mxu0 %v2382_v23 }
  0x9c   : > { %2216 = vmatpush3.bf16.msra.mxu1 %v2383_v24  ;;  %2195 = vmatprep.subr.bf16.mxu0 %v2384_v25 }
  0x9d   : > { %2217 = vmatprep.subr.bf16.mxu1 %v2385_v26 }
  0x9f   : > { %2196 = vmatpush3.bf16.msra.mxu0 %v2386_v27 }
  0xa0   : > { %2218 = vmatpush3.bf16.msra.mxu1 %v2387_v28  ;;  %2197 = vmatprep.subr.bf16.mxu0 %v2388_v29 }
  0xa1   : > { %2219 = vmatprep.subr.bf16.mxu1 %v2389_v30 }
  0xa3   : > { %2198 = vmatpush3.bf16.msra.mxu0 %v2390_v31 }
  0xa4   : > { %2220 = vmatpush3.bf16.msra.mxu1 %v2391_v32  ;;  %2199 = vmatprep.subr.bf16.mxu0 %v2392_v33 }
  0xa5   : > { %2221 = vmatprep.subr.bf16.mxu1 %v2393_v34 }
  0xa7   : > { %2200 = vmatpush3.bf16.msra.mxu0 %v2394_v35 }
  0xa8   : > { %2222 = vmatpush3.bf16.msra.mxu1 %v2395_v36  ;;  %2201 = vmatprep.subr.bf16.mxu0 %v2396_v37 }
  0xa9   : > { %2223 = vmatprep.subr.bf16.mxu1 %v2397_v38 }
  0xab   : > { %2202 = vmatpush3.bf16.msra.mxu0 %v2398_v39 }
  0xac   : > { %2224 = vmatpush3.bf16.msra.mxu1 %v2399_v40 }
  0xae   : > { %1711 = vmatmul.mubr.bf16.vlgmr.msra.gmra.mrb[12].mxu0 %v1916_v44 }
  0xaf   : > { %1752 = vmatmul.mubr.bf16.vlgmr.msra.gmra.mrb[12].mxu1 %v1918_v47  ;;  %v311_v47 = vld [vmem:[#allocation2 + $0x8] sm:$0xff] }
 0x121   : > { %v2071_v49 = vpop.f32.mrb[0].mxu0 }
 0x122   : > { %v2093_v50 = vpop.f32.mrb[0].mxu1  ;;  %v2072_v51 = vpop.f32.mrb[1].mxu0 }
 0x123   : > { %v2073_v52 = vadd.f32 %v2072_v51, %v2071_v49  ;;  %v2094_v53 = vpop.f32.mrb[1].mxu1  ;;  %v2074_v54 = vpop.f32.mrb[2].mxu0 }
 0x124   : > { %v2095_v55 = vadd.f32 %v2094_v53, %v2093_v50  ;;  %v2096_v56 = vpop.f32.mrb[2].mxu1  ;;  %v2075_v57 = vpop.f32.mrb[3].mxu0 }
 0x125   : > { %v2076_v58 = vadd.f32 %v2075_v57, %v2074_v54  ;;  %v2097_v59 = vpop.f32.mrb[3].mxu1 }
 0x126   : > { %v1508_v60 = vadd.f32 %v2095_v55, %v2073_v52  ;;  %v2098_v61 = vadd.f32 %v2097_v59, %v2096_v56  ;;  %v2049_v52 = vld [vmem:[%s2705_s2] ss:$0 sm:$0xff] (!%p2048_p11) }
 0x128   : > { %v1511_v62 = vadd.f32 %v2098_v61, %v2076_v58 }
 0x141   : > { %v2115_v63 = vpop.f32.mrb[4].mxu0 }
 0x142   : > { %v2137_v0 = vpop.f32.mrb[4].mxu1  ;;  %v2116_v1 = vpop.f32.mrb[5].mxu0 }
 0x143   : > { %v2117_v2 = vadd.f32 %v2116_v1, %v2115_v63  ;;  %v2138_v3 = vpop.f32.mrb[5].mxu1  ;;  %v2118_v4 = vpop.f32.mrb[6].mxu0 }
 0x144   : > { %v2139_v5 = vadd.f32 %v2138_v3, %v2137_v0  ;;  %v2140_v6 = vpop.f32.mrb[6].mxu1  ;;  %v2119_v7 = vpop.f32.mrb[7].mxu0 }
 0x145   : > { %v1549_v8 = vadd.f32 %v2117_v2, %v1508_v60  ;;  %v2120_v9 = vadd.f32 %v2119_v7, %v2118_v4  ;;  %v2141_v10 = vpop.f32.mrb[7].mxu1 }
 0x146   : > { %v2142_v11 = vadd.f32 %v2141_v10, %v2140_v6 }
 0x147   : > { %v1590_v12 = vadd.f32 %v2139_v5, %v1549_v8  ;;  %v1552_v13 = vadd.f32 %v2120_v9, %v1511_v62 }
 0x149   : > { %v1593_v14 = vadd.f32 %v2142_v11, %v1552_v13 }
 0x161   : > { %v2159_v15 = vpop.f32.mrb[8].mxu0 }
 0x162   : > { %v2181_v16 = vpop.f32.mrb[8].mxu1  ;;  %v2160_v17 = vpop.f32.mrb[9].mxu0 }
 0x163   : > { %v2182_v18 = vpop.f32.mrb[9].mxu1  ;;  %v2161_v19 = vadd.f32 %v2160_v17, %v2159_v15  ;;  %v2162_v21 = vpop.f32.mrb[10].mxu0 }
 0x164   : > { %v2183_v20 = vadd.f32 %v2182_v18, %v2181_v16  ;;  %v2184_v22 = vpop.f32.mrb[10].mxu1  ;;  %v2163_v23 = vpop.f32.mrb[11].mxu0 }
 0x165   : > { %v2185_v24 = vpop.f32.mrb[11].mxu1  ;;  %v1631_v25 = vadd.f32 %v2161_v19, %v1590_v12  ;;  %v2164_v26 = vadd.f32 %v2163_v23, %v2162_v21 }
 0x166   : > { %v2186_v27 = vadd.f32 %v2185_v24, %v2184_v22 }
 0x167   : > { %v1672_v28 = vadd.f32 %v2183_v20, %v1631_v25  ;;  %v1634_v29 = vadd.f32 %v2164_v26, %v1593_v14 }
 0x169   : > { %v1675_v30 = vadd.f32 %v2186_v27, %v1634_v29 }
 0x181   : > { %v2203_v31 = vpop.f32.mrb[12].mxu0 }
 0x182   : > { %v2225_v32 = vpop.f32.mrb[12].mxu1  ;;  %v2204_v33 = vpop.f32.mrb[13].mxu0 }
 0x183   : > { %v2205_v34 = vadd.f32 %v2204_v33, %v2203_v31  ;;  %v2226_v35 = vpop.f32.mrb[13].mxu1  ;;  %v2206_v36 = vpop.f32.mrb[14].mxu0 }
 0x184   : > { %v2227_v37 = vadd.f32 %v2226_v35, %v2225_v32  ;;  %v2228_v38 = vpop.f32.mrb[14].mxu1  ;;  %v2207_v39 = vpop.f32.mrb[15].mxu0 }
 0x185   : > { %v1713_v40 = vadd.f32 %v2205_v34, %v1672_v28  ;;  %v2208_v41 = vadd.f32 %v2207_v39, %v2206_v36  ;;  %v2229_v42 = vpop.f32.mrb[15].mxu1 }
 0x186   : > { %v2230_v44 = vadd.f32 %v2229_v42, %v2228_v38 }
 0x187   : > { %v1754_v45 = vadd.f32 %v2227_v37, %v1713_v40  ;;  %v1716_v46 = vadd.f32 %v2208_v41, %v1675_v30  ;;  %1767 = sbr.rel (%p2048_p11) target bundleno = 408 (0x198), region = 63 }
 0x189   : > { %v1760_v48 = vadd.f32 %v1754_v45, %v310_v43  ;;  %v1757_v49 = vadd.f32 %v2230_v44, %v1716_v46 }
 0x18b   : > { %1762 = vst [vmem:[#allocation2] sm:$0xff] %v1760_v48  ;;  %v1761_v50 = vadd.f32 %v1757_v49, %v311_v47 }
 0x18d   : > { %1763 = vst [vmem:[#allocation2 + $0x8] sm:$0xff] %v1761_v50 }
 0x192   : > { %v1768_v51 = vld [vmem:[#allocation2] sm:$0xff] }
 0x193   : > { %v1777_v54 = vadd.f32 %v2049_v52, %v1768_v51 }
 0x194   : > { %v1769_v53 = vld [vmem:[#allocation2 + $0x8] sm:$0xff] }
 0x195   : > { %v1778_v55 = vadd.f32 %v2049_v52, %v1769_v53  ;;  %1779 = vst [vmem:[%s2706_s3] sm:$0xff] %v1777_v54 }
 0x197   : > { %1780 = vst [vmem:[%s2706_s3 + $0x8] sm:$0xff] %v1778_v55 }
 0x198 PF: > { %s13_s16 = sadd.s32 1, %s2438_s16   ;;  %s2707_s12 = smov %s2426_s13 }
 0x199   : > { %p10_p12 = scmp.ge.s32.totalorder %s13_s16, 4   ;;  %s2708_s13 = smov %s2496_s20 }
 0x19a   : > { %s2709_s14 = smov %s2434_s15  ;;  %s2710_s15 = smov %s2712_s17 }
 0x19b   :  { %12 = sbr.rel (!%p10_p12) target bundleno = 3 (0x3), region = 104 }

// kernel: my_alexnet_forward.13
= control target key start
LH: loop header
LB: loop body
LE: loop exit
PB: predicated region body
PF: predicated region fallthrough
CT: control target
= control target key end

     0   :  { %s5405_s0 = inlined_call_operand.vmem [shape: bf16[16,9216], index: 0, kind: input, shape index: {}]   ;;  %s5406_s1 = inlined_call_operand.hbm [shape: bf16[9216,4096], index: 1, kind: input, shape index: {}]   ;;  %s5407_s2 = inlined_call_operand.vmem [shape: f32[1,4096], index: 2, kind: input, shape index: {}]   ;;  %s5408_s3 = inlined_call_operand.vmem [shape: bf16[16,4096], index: 3, kind: output, shape index: {}]  }
   0x1   :  { %5412 = sst [smem:[#allocation12_spill]] %s5405_s0 }
   0x2   :  { %8 = vsyncpa [#allocation5], 0 }
   0x3   :  { %10 = vsyncpa [#allocation5 + $0x1], 0  ;;  %s4775_s12 = smov 0   ;;  %s4777_s13 = smov 0  }
   0x4   :  { %s4779_s14 = smov 0   ;;  %s4781_s15 = smov 0  }
   0x5   :  { %s4783_s16 = smov 0   ;;  %s4785_s17 = smov 0  }
   0x6   :  { %s4787_s18 = smov 0   ;;  %s4789_s19 = smov 0  }
   0x7   :  { %s4791_s20 = smov 0   ;;  %s4793_s21 = smov 0  }
   0x8   :  { %s4795_s22 = smov 0   ;;  %s4797_s23 = smov 0  }
   0x9 LB: > { %5413 = sst [smem:[#allocation8_spill]] %s4744_s22  ;;  %s3457_s24 = sadd.s32 4294967295, %s4748_s23   ;;  %s4748_s23 = sphi %s4797_s23, %s16_s23   ;;  %s4744_s22 = sphi %s4795_s22, %s5426_s22   ;;  %s4740_s21 = sphi %s4793_s21, %s5436_s21   ;;  %s4736_s20 = sphi %s4791_s20, %s5435_s20   ;;  %s4732_s19 = sphi %s4789_s19, %s5434_s19   ;;  %s4728_s18 = sphi %s4787_s18, %s5433_s18   ;;  %s4724_s17 = sphi %s4785_s17, %s5432_s17   ;;  %s4720_s16 = sphi %s4783_s16, %s5431_s16   ;;  %s4716_s15 = sphi %s4781_s15, %s5430_s15   ;;  %s4712_s14 = sphi %s4779_s14, %s5429_s14   ;;  %s4708_s13 = sphi %s4777_s13, %s5428_s13   ;;  %s4704_s12 = sphi %s4775_s12, %s5427_s12  }
   0xa   : > { %s28_s25 = sadd.s32 1, %s4740_s21  ;;  %s31_s26 = sadd.s32 1, %s4744_s22 }
   0xb   : > { %p29_p0 = scmp.ge.s32.totalorder %s28_s25, 6  ;;  %s44_s27 = sadd.s32 1, %s4728_s18 }
   0xc   : > { %p51_p1 = scmp.ne.s32.totalorder %s4728_s18, %s4724_s17  ;;  %p52_p2 = scmp.eq.s32.totalorder %s4748_s23, 0 }
   0xd   : > { %s5438_s25 = smov (%p29_p0, %s28_s25), 0  ;;  %s5440_s26 = smov (!%p29_p0, %s31_s26), %s4744_s22 }
   0xe   : > { %5414 = sst [smem:[#allocation9_spill]] %s5438_s25  ;;  %s40_s28 = ssub.s32 %s4740_s21, %s5438_s25 }
   0xf   : > { %p33_p3 = scmp.ge.s32.totalorder %s5440_s26, 8  ;;  %p42_p4 = scmp.eq.s32.totalorder %s40_s28, 0 }
  0x10   : > { %p4847_p5 = por %p52_p2, %p51_p1  ;;  %s72_s30 = sadd.s32 1, %s4720_s16 }
  0x11   : > { %s5442_s26 = smov (%p33_p3, %s5440_s26), 0  ;;  %p79_p6 = scmp.ne.s32.totalorder %s4720_s16, %s4716_s15 }
  0x12   : > { %5416 = sst [smem:[#allocation10_spill]] %s5442_s26  ;;  %s68_s5 = ssub.s32 %s4744_s22, %s5442_s26 }
  0x13   : > { %s4855_s4 = scalar_select %p42_p4, %s4728_s18, %s44_s27  }
  0x14   : > { %s69_s6 = sor.u32 %s68_s5, %s40_s28  ;;  %p85_p7 = scmp.ne.s32.totalorder %s4716_s15, %s4712_s14 }
  0x15   : > { %5417 = sst [smem:[#allocation11_spill]] %s4855_s4  ;;  %p70_p8 = scmp.eq.s32.totalorder %s69_s6, 0 }
  0x16   : > { %p4863_p9 = por %p79_p6, %p52_p2  ;;  %p86_p10 = scmp.eq.s32.totalorder %s3457_s24, 0 }
  0x17   : > { %p124_p11 = scmp.eq.s32.totalorder %s68_s5, 0  ;;  %s126_s10 = sadd.s32 1, %s4708_s13 }
  0x18   : > { %s4870_s8 = scalar_select %p70_p8, %s4720_s16, %s72_s30  }
  0x19   : > { %p4872_p12 = por %p86_p10, %p85_p7  ;;  %p136_p13 = scmp.ne.s32.totalorder %s4708_s13, %s4704_s12 }
  0x1a   : > { %s4878_s11 = scalar_select %p124_p11, %s4708_s13, %s126_s10  }
  0x1b   : > { %p137_p0 = scmp.eq.s32.totalorder %s3457_s24, 47  ;;  %p3460_p2 = scmp.ge.s32.totalorder %s4748_s23, 48 }
  0x1d   : > { %p4884_p1 = por %p137_p0, %p136_p13  ;;  %159 = sbr.rel (%p3460_p2) target bundleno = 81 (0x51), region = 16 }
  0x1f   : > { %s5420_s14 = scalar_select %p4884_p1, 1, 0 }
  0x24   : > { %162 = sbr.rel (!%p4847_p5) target bundleno = 51 (0x33), region = 20  ;;  %s164_s27 = sand.u32 (%p4847_p5), 1, %s4728_s18  }
  0x25   : > { %s3875_s28 = smul.u32 (%p4847_p5), 48, %s4740_s21  ;;  %s5421_s0 = sld [smem:[#allocation12_spill]] (%p4847_p5) }
  0x26   : > { %s3922_s30 = smul.u32 (%p4847_p5), 96, %s164_s27 }
  0x28   : > { %s166_s24 = scalar_lea.vmem (%p4847_p5), [#allocation3], %s3922_s30 }
  0x2b   : > { %s172_s10 = scalar_lea.vmem %s5421_s0, %s3875_s28 }
  0x2c   : > { %v185_v0 = vld [vmem:[%s172_s10] sm:$0xff]  ;;  %v187_v1 = vld [vmem:[%s172_s10 + $0x8] sm:$0xff]  ;;  %v189_v2 = vld [vmem:[%s172_s10 + $0x10] sm:$0xff] }
  0x2d   : > { %186 = vst [vmem:[%s166_s24] sm:$0xff] %v185_v0  ;;  %188 = vst [vmem:[%s166_s24 + $0x8] sm:$0xff] %v187_v1  ;;  %v191_v3 = vld [vmem:[%s172_s10 + $0x18] sm:$0xff]  ;;  %v193_v4 = vld [vmem:[%s172_s10 + $0x20] sm:$0xff] }
  0x2e   : > { %190 = vst [vmem:[%s166_s24 + $0x10] sm:$0xff] %v189_v2  ;;  %v195_v5 = vld [vmem:[%s172_s10 + $0x28] sm:$0xff]  ;;  %192 = vst [vmem:[%s166_s24 + $0x18] sm:$0xff] %v191_v3  ;;  %v197_v6 = vld [vmem:[%s172_s10 + $0x120] sm:$0xff] }
  0x2f   : > { %194 = vst [vmem:[%s166_s24 + $0x20] sm:$0xff] %v193_v4  ;;  %196 = vst [vmem:[%s166_s24 + $0x28] sm:$0xff] %v195_v5  ;;  %v199_v7 = vld [vmem:[%s172_s10 + $0x128] sm:$0xff]  ;;  %v201_v8 = vld [vmem:[%s172_s10 + $0x130] sm:$0xff] }
  0x30   : > { %198 = vst [vmem:[%s166_s24 + $0x30] sm:$0xff] %v197_v6  ;;  %200 = vst [vmem:[%s166_s24 + $0x38] sm:$0xff] %v199_v7  ;;  %v203_v9 = vld [vmem:[%s172_s10 + $0x138] sm:$0xff]  ;;  %v205_v10 = vld [vmem:[%s172_s10 + $0x140] sm:$0xff] }
  0x31   : > { %202 = vst [vmem:[%s166_s24 + $0x40] sm:$0xff] %v201_v8  ;;  %v207_v11 = vld [vmem:[%s172_s10 + $0x148] sm:$0xff]  ;;  %204 = vst [vmem:[%s166_s24 + $0x48] sm:$0xff] %v203_v9 }
  0x32   : > { %206 = vst [vmem:[%s166_s24 + $0x50] sm:$0xff] %v205_v10  ;;  %208 = vst [vmem:[%s166_s24 + $0x58] sm:$0xff] %v207_v11 }
  0x33 PF: > { %s215_s29 = sand.u32 1, %s4720_s16   ;;  %s3462_s27 = sshll.u32 %s4744_s22, 2 }
  0x34   : > { %s3923_s28 = smul.u32 3072, %s215_s29  ;;  %s4906_s24 = scalar_lea.sflag [#allocation5], %s215_s29 }
  0x35   : > { %s3876_s30 = smul.u32 6144, %s4740_s21 }
  0x36   : > { %s219_s6 = scalar_lea.vmem [#allocation4], %s3923_s28 }
  0x37   : > { %s226_s5 = sadd.s32 %s3876_s30, %s3462_s27  ;;  %s229_s0 = sshll.u32 %s219_s6, 4  ;;  %s4899_s0 = int_to_ptr.vmem [resolvable:$true] %s229_s0 }
  0x38   : > { %s3464_s26 = sshll.u32 %s226_s5, 6  ;;  %s4626_s30 = scalar_lea.hbm %s5406_s1, 2359296 }
  0x39   : > { %s4904_s4 = scalar_lea.hbm %s5406_s1, %s3464_s26 }
  0x3a   : > { %s4622_s22 = scalar_lea.hbm %s4904_s4, 49152  ;;  %p4627_p6 = scmp.lt.u32.totalorder %s4904_s4, %s5406_s1 }
  0x3b   : > { %p4623_p3 = scmp.ne.s32.totalorder %s4904_s4, %s4622_s22  ;;  %p4628_p7 = scmp.lt.u32.totalorder %s4626_s30, %s4622_s22 }
  0x3c   : > { %p4630_p10 = scmp.lt.u32.totalorder %s4622_s22, %s4904_s4 }
  0x3d   : > { %p4624_p4 = pnand %p4623_p3, %p4863_p9  ;;  %p4629_p8 = por %p4628_p7, %p4627_p6 }
  0x3f   : > { %p4625_p5 = pneg %p4624_p4  ;;  %p4631_p11 = por %p4630_p10, %p4629_p8 }
  0x41   : > { %p4632_p13 = pnand %p4631_p11, %p4625_p5 }
  0x43   : > { %4635 = shalt.err (!%p4632_p13)
}
  0x44   : > { %s4636_s25 = scalar_lea.vmem %s4899_s0, 49152  ;;  %s4750_s26 = smov [#allocation4]  }
  0x45   : > { %p4637_p0 = scmp.ne.s32.totalorder %s4899_s0, %s4636_s25  ;;  %s4640_s29 = sshll.u32 %s4750_s26, 4  ;;  %s4641_s29 = int_to_ptr.vmem [resolvable:$false] %s4640_s29 }
  0x46   : > { %s4642_s10 = scalar_lea.vmem %s4641_s29, 98304  ;;  %p4643_p4 = scmp.lt.s32.totalorder %s4899_s0, %s4641_s29 }
  0x47   : > { %p4638_p2 = pnand %p4637_p0, %p4863_p9  ;;  %p4644_p1 = scmp.lt.s32.totalorder %s4642_s10, %s4636_s25 }
  0x49   : > { %p4639_p3 = pneg %p4638_p2  ;;  %p4645_p6 = por %p4644_p1, %p4643_p4 }
  0x4b   : > { %p4646_p7 = pnand %p4645_p6, %p4639_p3 }
  0x4d   : > { %4649 = shalt.err (!%p4646_p7)
}
  0x4e   : > { %s4751_s22 = smov 2048   ;;  %s4752_s27 = smov 256  }
  0x4f   : > { %s4753_s28 = smov 16  }
  0x50   : > { %3926 = dma.hbm_to_vmem [thread:$0]  (%p4863_p9), %s4904_s4, 49152, %s4899_s0, %s4906_s24, %s4751_s22, %s4752_s27, %s4753_s28  }
  0x51 PF: > { %p3465_p5 = scmp.ge.s32.totalorder %s4748_s23, 1  ;;  %p245_p8 = scmp.lt.s32.totalorder %s4748_s23, 49 }
  0x53   : > { %p246_p10 = pnand %p3465_p5, %p245_p8 }
  0x54   : > { %s252_s30 = sand.u32 (!%p246_p10), 1, %s4724_s17   ;;  %s258_s5 = sand.u32 (!%p246_p10), 1, %s4716_s15  }
  0x55   : > { %249 = sbr.rel (%p246_p10) target bundleno = 730 (0x2da), region = 51  ;;  %s259_s29 = scalar_lea.sflag (!%p246_p10), [#allocation5], %s258_s5 }
  0x56   : > { %s3924_s6 = smul.u32 (!%p246_p10), 96, %s252_s30 }
  0x57   : > { %s3925_s25 = smul.u32 (!%p246_p10), 3072, %s258_s5 }
  0x58   : > { %s4934_s26 = scalar_lea.vmem (!%p246_p10), [#allocation3], %s3924_s6 }
  0x59   : > { %s4936_s10 = scalar_lea.vmem (!%p246_p10), [#allocation4], %s3925_s25 }
  0x5c   : > { %4699 = dma.done.wait (%p4872_p12), %s259_s29, 49152  }
  0x5d   : > { %4701 = vsyncadd (%p4872_p12), %s259_s29, 4294918144  ;;  %s289_s0 = sand.u32 1, %s4704_s12   ;;  %s3467_s4 = sshll.u32 %s4736_s20, 2 }
  0x5e   : > { %s3466_s7 = sshll.u32 %s289_s0, 5  ;;  %p297_p9 = scmp.lt.s32.totalorder %s3467_s4, 31 }
  0x5f   : > { %s4950_s27 = scalar_lea.vmem [#allocation6], %s3466_s7  ;;  %p3468_p1 = scmp.ne.s32.totalorder %s4732_s19, 0 }
  0x60   : > { %s5444_s4 = smov (!%p297_p9, %s3467_s4), 31  ;;  %v4754_v12 = vmov (!%p3468_p1), 0.0  }
  0x61   : > { %s299_s22 = scalar_lea.vmem %s5407_s2, %s5444_s4  ;;  %306 = sbr.rel (%p3468_p1) target bundleno = 104 (0x68), region = 63  ;;  %307 = vst [vmem:[#allocation2] sm:$0xff] (!%p3468_p1), %v4754_v12  ;;  %308 = vst [vmem:[#allocation2 + $0x8] sm:$0xff] (!%p3468_p1), %v4754_v12 }
  0x62   : > { %309 = vst [vmem:[#allocation2 + $0x10] sm:$0xff] (!%p3468_p1), %v4754_v12  ;;  %310 = vst [vmem:[#allocation2 + $0x18] sm:$0xff] (!%p3468_p1), %v4754_v12 }
  0x63   : > { %311 = vst [vmem:[#allocation2 + $0x20] sm:$0xff] (!%p3468_p1), %v4754_v12  ;;  %312 = vst [vmem:[#allocation2 + $0x28] sm:$0xff] (!%p3468_p1), %v4754_v12 }
  0x64   : > { %313 = vst [vmem:[#allocation2 + $0x30] sm:$0xff] (!%p3468_p1), %v4754_v12  ;;  %314 = vst [vmem:[#allocation2 + $0x38] sm:$0xff] (!%p3468_p1), %v4754_v12 }
  0x68 PF: > { %v4028_v13 = vld [vmem:[%s4936_s10 + $0x4] ss:$16 sps:$4 sm:$0xff]   ;;  %v4030_v14 = vld [vmem:[%s4936_s10 + $0xc] ss:$16 sps:$4 sm:$0xff]   ;;  %v4032_v15 = vld [vmem:[%s4936_s10] ss:$16 sps:$4 sm:$0xff]  }
  0x69   : > { %2699 = vmatprep.subr.bf16.mxu0 %v4028_v13  ;;  %v4033_v16 = vld [vmem:[%s4936_s10 + $0x8] ss:$16 sps:$4 sm:$0xff]   ;;  %2957 = vmatprep.subr.bf16.mxu1 %v4030_v14  ;;  %v4034_v17 = vld [vmem:[%s4936_s10 + $0x24] ss:$16 sps:$4 sm:$0xff]   ;;  %v4036_v18 = vld [vmem:[%s4936_s10 + $0x2c] ss:$16 sps:$4 sm:$0xff]  }
  0x6a   : > { %2700 = vmatpush1.bf16.msra.mxu0 %v4032_v15  ;;  %2958 = vmatpush1.bf16.msra.mxu1 %v4033_v16  ;;  %v4038_v19 = vld [vmem:[%s4936_s10 + $0x20] ss:$16 sps:$4 sm:$0xff]   ;;  %v4039_v20 = vld [vmem:[%s4936_s10 + $0x28] ss:$16 sps:$4 sm:$0xff]   ;;  %v4040_v21 = vld [vmem:[%s4936_s10 + $0x44] ss:$16 sps:$4 sm:$0xff]  }
  0x6b   : > { %2701 = vmatprep.subr.bf16.mxu0 %v4034_v17  ;;  %2959 = vmatprep.subr.bf16.mxu1 %v4036_v18  ;;  %v4042_v22 = vld [vmem:[%s4936_s10 + $0x4c] ss:$16 sps:$4 sm:$0xff]   ;;  %v4044_v23 = vld [vmem:[%s4936_s10 + $0x40] ss:$16 sps:$4 sm:$0xff]   ;;  %v4045_v24 = vld [vmem:[%s4936_s10 + $0x48] ss:$16 sps:$4 sm:$0xff]  }
  0x6c   : > { %v4046_v25 = vld [vmem:[%s4936_s10 + $0x64] ss:$16 sps:$4 sm:$0xff]   ;;  %v4048_v26 = vld [vmem:[%s4936_s10 + $0x6c] ss:$16 sps:$4 sm:$0xff]   ;;  %v4050_v27 = vld [vmem:[%s4936_s10 + $0x60] ss:$16 sps:$4 sm:$0xff]  }
  0x6d   : > { %v4051_v28 = vld [vmem:[%s4936_s10 + $0x68] ss:$16 sps:$4 sm:$0xff]   ;;  %v4052_v29 = vld [vmem:[%s4936_s10 + $0x84] ss:$16 sps:$4 sm:$0xff]   ;;  %v4054_v30 = vld [vmem:[%s4936_s10 + $0x8c] ss:$16 sps:$4 sm:$0xff]  }
  0x6e   : > { %2702 = vmatpush1.bf16.msra.mxu0 %v4038_v19  ;;  %2960 = vmatpush1.bf16.msra.mxu1 %v4039_v20  ;;  %v4056_v31 = vld [vmem:[%s4936_s10 + $0x80] ss:$16 sps:$4 sm:$0xff]   ;;  %v4057_v32 = vld [vmem:[%s4936_s10 + $0x88] ss:$16 sps:$4 sm:$0xff]   ;;  %v4058_v33 = vld [vmem:[%s4936_s10 + $0xa4] ss:$16 sps:$4 sm:$0xff]  }
  0x6f   : > { %2703 = vmatprep.subr.bf16.mxu0 %v4040_v21  ;;  %2961 = vmatprep.subr.bf16.mxu1 %v4042_v22  ;;  %v4060_v34 = vld [vmem:[%s4936_s10 + $0xac] ss:$16 sps:$4 sm:$0xff]   ;;  %v4062_v35 = vld [vmem:[%s4936_s10 + $0xa0] ss:$16 sps:$4 sm:$0xff]   ;;  %v4063_v36 = vld [vmem:[%s4936_s10 + $0xa8] ss:$16 sps:$4 sm:$0xff]  }
  0x70   : > { %v4064_v37 = vld [vmem:[%s4936_s10 + $0xc4] ss:$16 sps:$4 sm:$0xff]   ;;  %v4066_v38 = vld [vmem:[%s4936_s10 + $0xcc] ss:$16 sps:$4 sm:$0xff]   ;;  %v4068_v39 = vld [vmem:[%s4936_s10 + $0xc0] ss:$16 sps:$4 sm:$0xff]  }
  0x71   : > { %v4069_v40 = vld [vmem:[%s4936_s10 + $0xc8] ss:$16 sps:$4 sm:$0xff]   ;;  %v4070_v41 = vld [vmem:[%s4936_s10 + $0xe4] ss:$16 sps:$4 sm:$0xff]   ;;  %v4072_v42 = vld [vmem:[%s4936_s10 + $0xec] ss:$16 sps:$4 sm:$0xff]  }
  0x72   : > { %2704 = vmatpush1.bf16.msra.mxu0 %v4044_v23  ;;  %2962 = vmatpush1.bf16.msra.mxu1 %v4045_v24  ;;  %v4074_v43 = vld [vmem:[%s4936_s10 + $0xe0] ss:$16 sps:$4 sm:$0xff]   ;;  %v4075_v44 = vld [vmem:[%s4936_s10 + $0xe8] ss:$16 sps:$4 sm:$0xff]   ;;  %v4076_v45 = vld [vmem:[%s4936_s10 + $0x104] ss:$16 sps:$4 sm:$0xff]  }
  0x73   : > { %2705 = vmatprep.subr.bf16.mxu0 %v4046_v25  ;;  %2963 = vmatprep.subr.bf16.mxu1 %v4048_v26  ;;  %v4078_v46 = vld [vmem:[%s4936_s10 + $0x10c] ss:$16 sps:$4 sm:$0xff]   ;;  %v4080_v47 = vld [vmem:[%s4936_s10 + $0x100] ss:$16 sps:$4 sm:$0xff]   ;;  %v4081_v48 = vld [vmem:[%s4936_s10 + $0x108] ss:$16 sps:$4 sm:$0xff]  }
  0x74   : > { %v4082_v49 = vld [vmem:[%s4936_s10 + $0x124] ss:$16 sps:$4 sm:$0xff]   ;;  %v4084_v50 = vld [vmem:[%s4936_s10 + $0x12c] ss:$16 sps:$4 sm:$0xff]   ;;  %v4086_v51 = vld [vmem:[%s4936_s10 + $0x120] ss:$16 sps:$4 sm:$0xff]  }
  0x75   : > { %v4087_v52 = vld [vmem:[%s4936_s10 + $0x128] ss:$16 sps:$4 sm:$0xff]   ;;  %v4088_v53 = vld [vmem:[%s4936_s10 + $0x144] ss:$16 sps:$4 sm:$0xff]   ;;  %v4090_v54 = vld [vmem:[%s4936_s10 + $0x14c] ss:$16 sps:$4 sm:$0xff]  }
  0x76   : > { %2706 = vmatpush1.bf16.msra.mxu0 %v4050_v27  ;;  %2964 = vmatpush1.bf16.msra.mxu1 %v4051_v28  ;;  %v4092_v55 = vld [vmem:[%s4936_s10 + $0x140] ss:$16 sps:$4 sm:$0xff]   ;;  %v4093_v56 = vld [vmem:[%s4936_s10 + $0x148] ss:$16 sps:$4 sm:$0xff]   ;;  %v4094_v57 = vld [vmem:[%s4936_s10 + $0x164] ss:$16 sps:$4 sm:$0xff]  }
  0x77   : > { %2707 = vmatprep.subr.bf16.mxu0 %v4052_v29  ;;  %2965 = vmatprep.subr.bf16.mxu1 %v4054_v30  ;;  %v4096_v58 = vld [vmem:[%s4936_s10 + $0x16c] ss:$16 sps:$4 sm:$0xff]   ;;  %v4098_v59 = vld [vmem:[%s4936_s10 + $0x160] ss:$16 sps:$4 sm:$0xff]   ;;  %v4099_v60 = vld [vmem:[%s4936_s10 + $0x168] ss:$16 sps:$4 sm:$0xff]  }
  0x78   : > { %v4126_v61 = vld [vmem:[%s4934_s26 + $0x4] ss:$48 sps:$4 sm:$0xff]   ;;  %v4102_v63 = vld [vmem:[%s4936_s10 + $0x18c] ss:$16 sps:$4 sm:$0xff]   ;;  %v4104_v0 = vld [vmem:[%s4936_s10 + $0x180] ss:$16 sps:$4 sm:$0xff]  }
  0x79   : > { %v4100_v62 = vld [vmem:[%s4936_s10 + $0x184] ss:$16 sps:$4 sm:$0xff]   ;;  %2731 = vmatprep.mubr.bf16.mxu0 %v4126_v61  ;;  %2989 = vmatprep.mubr.bf16.mxu1 %v4126_v61  ;;  %v4105_v1 = vld [vmem:[%s4936_s10 + $0x188] ss:$16 sps:$4 sm:$0xff]   ;;  %v4108_v3 = vld [vmem:[%s4936_s10 + $0x1ac] ss:$16 sps:$4 sm:$0xff]  }
  0x7a   : > { %2708 = vmatpush1.bf16.msra.mxu0 %v4056_v31  ;;  %2966 = vmatpush1.bf16.msra.mxu1 %v4057_v32  ;;  %v4106_v2 = vld [vmem:[%s4936_s10 + $0x1a4] ss:$16 sps:$4 sm:$0xff]   ;;  %v4110_v4 = vld [vmem:[%s4936_s10 + $0x1a0] ss:$16 sps:$4 sm:$0xff]   ;;  %v4111_v5 = vld [vmem:[%s4936_s10 + $0x1a8] ss:$16 sps:$4 sm:$0xff]  }
  0x7b   : > { %2709 = vmatprep.subr.bf16.mxu0 %v4058_v33  ;;  %2967 = vmatprep.subr.bf16.mxu1 %v4060_v34  ;;  %v4112_v6 = vld [vmem:[%s4936_s10 + $0x1c4] ss:$16 sps:$4 sm:$0xff]   ;;  %v4114_v7 = vld [vmem:[%s4936_s10 + $0x1cc] ss:$16 sps:$4 sm:$0xff]   ;;  %v4116_v8 = vld [vmem:[%s4936_s10 + $0x1c0] ss:$16 sps:$4 sm:$0xff]  }
  0x7c   : > { %v4117_v9 = vld [vmem:[%s4936_s10 + $0x1c8] ss:$16 sps:$4 sm:$0xff]   ;;  %v4118_v10 = vld [vmem:[%s4936_s10 + $0x1e4] ss:$16 sps:$4 sm:$0xff]   ;;  %v4120_v11 = vld [vmem:[%s4936_s10 + $0x1ec] ss:$16 sps:$4 sm:$0xff]  }
  0x7d   : > { %v4122_v12 = vld [vmem:[%s4936_s10 + $0x1e0] ss:$16 sps:$4 sm:$0xff]   ;;  %v4123_v13 = vld [vmem:[%s4936_s10 + $0x1e8] ss:$16 sps:$4 sm:$0xff]   ;;  %v4129_v14 = vld [vmem:[%s4936_s10 + $0x204] ss:$16 sps:$4 sm:$0xff]  }
  0x7e   : > { %2710 = vmatpush1.bf16.msra.mxu0 %v4062_v35  ;;  %2968 = vmatpush1.bf16.msra.mxu1 %v4063_v36  ;;  %v4132_v15 = vld [vmem:[%s4936_s10 + $0x20c] ss:$16 sps:$4 sm:$0xff]   ;;  %v4124_v16 = vld [vmem:[%s4934_s26] ss:$48 sps:$4 sm:$0xff]   ;;  %v4130_v18 = vld [vmem:[%s4936_s10 + $0x208] ss:$16 sps:$4 sm:$0xff]  }
  0x7f   : > { %2711 = vmatprep.subr.bf16.mxu0 %v4064_v37  ;;  %2969 = vmatprep.subr.bf16.mxu1 %v4066_v38  ;;  %v4127_v17 = vld [vmem:[%s4936_s10 + $0x200] ss:$16 sps:$4 sm:$0xff]   ;;  %v4135_v19 = vld [vmem:[%s4936_s10 + $0x224] ss:$16 sps:$4 sm:$0xff]   ;;  %v4138_v20 = vld [vmem:[%s4936_s10 + $0x22c] ss:$16 sps:$4 sm:$0xff]  }
  0x80   : > { %v4133_v21 = vld [vmem:[%s4936_s10 + $0x220] ss:$16 sps:$4 sm:$0xff]   ;;  %v4136_v22 = vld [vmem:[%s4936_s10 + $0x228] ss:$16 sps:$4 sm:$0xff]   ;;  %v4141_v23 = vld [vmem:[%s4936_s10 + $0x244] ss:$16 sps:$4 sm:$0xff]  }
  0x81   : > { %v4144_v24 = vld [vmem:[%s4936_s10 + $0x24c] ss:$16 sps:$4 sm:$0xff]   ;;  %v4139_v25 = vld [vmem:[%s4936_s10 + $0x240] ss:$16 sps:$4 sm:$0xff]   ;;  %v4142_v26 = vld [vmem:[%s4936_s10 + $0x248] ss:$16 sps:$4 sm:$0xff]  }
  0x82   : > { %2712 = vmatpush1.bf16.msra.mxu0 %v4068_v39  ;;  %2970 = vmatpush1.bf16.msra.mxu1 %v4069_v40  ;;  %v4147_v27 = vld [vmem:[%s4936_s10 + $0x264] ss:$16 sps:$4 sm:$0xff]   ;;  %v4150_v28 = vld [vmem:[%s4936_s10 + $0x26c] ss:$16 sps:$4 sm:$0xff]   ;;  %v4145_v29 = vld [vmem:[%s4936_s10 + $0x260] ss:$16 sps:$4 sm:$0xff]  }
  0x83   : > { %2713 = vmatprep.subr.bf16.mxu0 %v4070_v41  ;;  %2971 = vmatprep.subr.bf16.mxu1 %v4072_v42  ;;  %v4148_v30 = vld [vmem:[%s4936_s10 + $0x268] ss:$16 sps:$4 sm:$0xff]   ;;  %v4153_v31 = vld [vmem:[%s4936_s10 + $0x284] ss:$16 sps:$4 sm:$0xff]   ;;  %v4156_v32 = vld [vmem:[%s4936_s10 + $0x28c] ss:$16 sps:$4 sm:$0xff]  }
  0x84   : > { %v4151_v33 = vld [vmem:[%s4936_s10 + $0x280] ss:$16 sps:$4 sm:$0xff]   ;;  %v4154_v34 = vld [vmem:[%s4936_s10 + $0x288] ss:$16 sps:$4 sm:$0xff]   ;;  %v4159_v35 = vld [vmem:[%s4936_s10 + $0x2a4] ss:$16 sps:$4 sm:$0xff]  }
  0x85   : > { %v4162_v36 = vld [vmem:[%s4936_s10 + $0x2ac] ss:$16 sps:$4 sm:$0xff]   ;;  %v4157_v37 = vld [vmem:[%s4936_s10 + $0x2a0] ss:$16 sps:$4 sm:$0xff]   ;;  %v4160_v38 = vld [vmem:[%s4936_s10 + $0x2a8] ss:$16 sps:$4 sm:$0xff]  }
  0x86   : > { %2714 = vmatpush1.bf16.msra.mxu0 %v4074_v43  ;;  %2972 = vmatpush1.bf16.msra.mxu1 %v4075_v44  ;;  %v4165_v39 = vld [vmem:[%s4936_s10 + $0x2c4] ss:$16 sps:$4 sm:$0xff]   ;;  %v4168_v40 = vld [vmem:[%s4936_s10 + $0x2cc] ss:$16 sps:$4 sm:$0xff]   ;;  %v4163_v41 = vld [vmem:[%s4936_s10 + $0x2c0] ss:$16 sps:$4 sm:$0xff]  }
  0x87   : > { %2715 = vmatprep.subr.bf16.mxu0 %v4076_v45  ;;  %2973 = vmatprep.subr.bf16.mxu1 %v4078_v46  ;;  %v4166_v42 = vld [vmem:[%s4936_s10 + $0x2c8] ss:$16 sps:$4 sm:$0xff]   ;;  %v4225_v43 = vld [vmem:[%s4934_s26 + $0xc] ss:$48 sps:$4 sm:$0xff]   ;;  %v4171_v44 = vld [vmem:[%s4936_s10 + $0x2e4] ss:$16 sps:$4 sm:$0xff]  }
  0x88   : > { %v4174_v45 = vld [vmem:[%s4936_s10 + $0x2ec] ss:$16 sps:$4 sm:$0xff]   ;;  %v4169_v46 = vld [vmem:[%s4936_s10 + $0x2e0] ss:$16 sps:$4 sm:$0xff]   ;;  %p3865_p12 = scmp.ne.s32.totalorder %s4732_s19, 5 }
  0x89   : > { %v4198_v61 = vld [vmem:[%s4936_s10 + $0x36c] ss:$16 sps:$4 sm:$0xff]  }
  0x8a   : > { %2716 = vmatpush1.bf16.msra.mxu0 %v4080_v47  ;;  %2974 = vmatpush1.bf16.msra.mxu1 %v4081_v48  ;;  %v4172_v47 = vld [vmem:[%s4936_s10 + $0x2e8] ss:$16 sps:$4 sm:$0xff]   ;;  %v4177_v48 = vld [vmem:[%s4936_s10 + $0x304] ss:$16 sps:$4 sm:$0xff]  }
  0x8b   : > { %2717 = vmatprep.subr.bf16.mxu0 %v4082_v49  ;;  %2975 = vmatprep.subr.bf16.mxu1 %v4084_v50  ;;  %v4180_v49 = vld [vmem:[%s4936_s10 + $0x30c] ss:$16 sps:$4 sm:$0xff]   ;;  %v4175_v50 = vld [vmem:[%s4936_s10 + $0x300] ss:$16 sps:$4 sm:$0xff]  }
  0x8e   : > { %2718 = vmatpush1.bf16.msra.mxu0 %v4086_v51  ;;  %2976 = vmatpush1.bf16.msra.mxu1 %v4087_v52  ;;  %v4178_v51 = vld [vmem:[%s4936_s10 + $0x308] ss:$16 sps:$4 sm:$0xff]   ;;  %v4183_v52 = vld [vmem:[%s4936_s10 + $0x324] ss:$16 sps:$4 sm:$0xff]  }
  0x8f   : > { %2719 = vmatprep.subr.bf16.mxu0 %v4088_v53  ;;  %2977 = vmatprep.subr.bf16.mxu1 %v4090_v54  ;;  %v4186_v53 = vld [vmem:[%s4936_s10 + $0x32c] ss:$16 sps:$4 sm:$0xff]   ;;  %v4181_v54 = vld [vmem:[%s4936_s10 + $0x320] ss:$16 sps:$4 sm:$0xff]  }
  0x92   : > { %2720 = vmatpush1.bf16.msra.mxu0 %v4092_v55  ;;  %2978 = vmatpush1.bf16.msra.mxu1 %v4093_v56  ;;  %v4184_v55 = vld [vmem:[%s4936_s10 + $0x328] ss:$16 sps:$4 sm:$0xff]   ;;  %v4189_v56 = vld [vmem:[%s4936_s10 + $0x344] ss:$16 sps:$4 sm:$0xff]  }
  0x93   : > { %2721 = vmatprep.subr.bf16.mxu0 %v4094_v57  ;;  %2979 = vmatprep.subr.bf16.mxu1 %v4096_v58  ;;  %v4192_v57 = vld [vmem:[%s4936_s10 + $0x34c] ss:$16 sps:$4 sm:$0xff]   ;;  %v4187_v58 = vld [vmem:[%s4936_s10 + $0x340] ss:$16 sps:$4 sm:$0xff]  }
  0x96   : > { %2722 = vmatpush1.bf16.msra.mxu0 %v4098_v59  ;;  %2980 = vmatpush1.bf16.msra.mxu1 %v4099_v60  ;;  %v4190_v59 = vld [vmem:[%s4936_s10 + $0x348] ss:$16 sps:$4 sm:$0xff]   ;;  %v4195_v60 = vld [vmem:[%s4936_s10 + $0x364] ss:$16 sps:$4 sm:$0xff]  }
  0x97   : > { %2723 = vmatprep.subr.bf16.mxu0 %v4100_v62  ;;  %2981 = vmatprep.subr.bf16.mxu1 %v4102_v63  ;;  %v4193_v62 = vld [vmem:[%s4936_s10 + $0x360] ss:$16 sps:$4 sm:$0xff]   ;;  %v4196_v63 = vld [vmem:[%s4936_s10 + $0x368] ss:$16 sps:$4 sm:$0xff]  }
  0x9a   : > { %2724 = vmatpush1.bf16.msra.mxu0 %v4104_v0  ;;  %2982 = vmatpush1.bf16.msra.mxu1 %v4105_v1  ;;  %v4201_v0 = vld [vmem:[%s4936_s10 + $0x384] ss:$16 sps:$4 sm:$0xff]   ;;  %v4204_v1 = vld [vmem:[%s4936_s10 + $0x38c] ss:$16 sps:$4 sm:$0xff]  }
  0x9b   : > { %2725 = vmatprep.subr.bf16.mxu0 %v4106_v2  ;;  %2983 = vmatprep.subr.bf16.mxu1 %v4108_v3  ;;  %v4199_v2 = vld [vmem:[%s4936_s10 + $0x380] ss:$16 sps:$4 sm:$0xff]   ;;  %v4202_v3 = vld [vmem:[%s4936_s10 + $0x388] ss:$16 sps:$4 sm:$0xff]  }
  0x9e   : > { %2726 = vmatpush1.bf16.msra.mxu0 %v4110_v4  ;;  %2984 = vmatpush1.bf16.msra.mxu1 %v4111_v5  ;;  %v4207_v4 = vld [vmem:[%s4936_s10 + $0x3a4] ss:$16 sps:$4 sm:$0xff]   ;;  %v4210_v5 = vld [vmem:[%s4936_s10 + $0x3ac] ss:$16 sps:$4 sm:$0xff]  }
  0x9f   : > { %2727 = vmatprep.subr.bf16.mxu0 %v4112_v6  ;;  %2985 = vmatprep.subr.bf16.mxu1 %v4114_v7  ;;  %v4205_v6 = vld [vmem:[%s4936_s10 + $0x3a0] ss:$16 sps:$4 sm:$0xff]   ;;  %v4208_v7 = vld [vmem:[%s4936_s10 + $0x3a8] ss:$16 sps:$4 sm:$0xff]  }
  0xa2   : > { %2728 = vmatpush1.bf16.msra.mxu0 %v4116_v8  ;;  %2986 = vmatpush1.bf16.msra.mxu1 %v4117_v9  ;;  %v4213_v8 = vld [vmem:[%s4936_s10 + $0x3c4] ss:$16 sps:$4 sm:$0xff]   ;;  %v4216_v9 = vld [vmem:[%s4936_s10 + $0x3cc] ss:$16 sps:$4 sm:$0xff]  }
  0xa3   : > { %2729 = vmatprep.subr.bf16.mxu0 %v4118_v10  ;;  %2987 = vmatprep.subr.bf16.mxu1 %v4120_v11  ;;  %v4211_v10 = vld [vmem:[%s4936_s10 + $0x3c0] ss:$16 sps:$4 sm:$0xff]   ;;  %v4214_v11 = vld [vmem:[%s4936_s10 + $0x3c8] ss:$16 sps:$4 sm:$0xff]  }
  0xa6   : > { %2730 = vmatpush1.bf16.msra.mxu0 %v4122_v12  ;;  %2988 = vmatpush1.bf16.msra.mxu1 %v4123_v13  ;;  %v4219_v12 = vld [vmem:[%s4936_s10 + $0x3e4] ss:$16 sps:$4 sm:$0xff]   ;;  %v4222_v13 = vld [vmem:[%s4936_s10 + $0x3ec] ss:$16 sps:$4 sm:$0xff]  }
  0xa7   : > { %2742 = vmatprep.subr.bf16.mxu0 %v4129_v14  ;;  %3000 = vmatprep.subr.bf16.mxu1 %v4132_v15  ;;  %v4217_v14 = vld [vmem:[%s4936_s10 + $0x3e0] ss:$16 sps:$4 sm:$0xff]   ;;  %v4220_v15 = vld [vmem:[%s4936_s10 + $0x3e8] ss:$16 sps:$4 sm:$0xff]  }
  0xa9   : > { %2732 = vmatmul.mubr.bf16.vlgmr.msra.gmra.mrb[0].mxu0 %v4124_v16  ;;  %2990 = vmatmul.mubr.bf16.vlgmr.msra.gmra.mrb[0].mxu1 %v4124_v16  ;;  %v4228_v16 = vld [vmem:[%s4936_s10 + $0x404] ss:$16 sps:$4 sm:$0xff]  }
  0xaa   : > { %2743 = vmatpush1.bf16.msra.mxu0 %v4127_v17  ;;  %3001 = vmatpush1.bf16.msra.mxu1 %v4130_v18  ;;  %v4231_v17 = vld [vmem:[%s4936_s10 + $0x40c] ss:$16 sps:$4 sm:$0xff]   ;;  %v4223_v18 = vld [vmem:[%s4934_s26 + $0x8] ss:$48 sps:$4 sm:$0xff]  }
  0xab   : > { %2744 = vmatprep.subr.bf16.mxu0 %v4135_v19  ;;  %3002 = vmatprep.subr.bf16.mxu1 %v4138_v20  ;;  %v4226_v19 = vld [vmem:[%s4936_s10 + $0x400] ss:$16 sps:$4 sm:$0xff]   ;;  %v4229_v20 = vld [vmem:[%s4936_s10 + $0x408] ss:$16 sps:$4 sm:$0xff]  }
  0xac   : > { %2774 = vmatprep.mubr.bf16.mxu0 %v4225_v43  ;;  %3032 = vmatprep.mubr.bf16.mxu1 %v4225_v43  ;;  %v4267_v43 = vld [vmem:[%s4936_s10 + $0x4cc] ss:$16 sps:$4 sm:$0xff]  }
  0xae   : > { %2745 = vmatpush1.bf16.msra.mxu0 %v4133_v21  ;;  %3003 = vmatpush1.bf16.msra.mxu1 %v4136_v22  ;;  %v4234_v21 = vld [vmem:[%s4936_s10 + $0x424] ss:$16 sps:$4 sm:$0xff]   ;;  %v4237_v22 = vld [vmem:[%s4936_s10 + $0x42c] ss:$16 sps:$4 sm:$0xff]  }
  0xaf   : > { %2746 = vmatprep.subr.bf16.mxu0 %v4141_v23  ;;  %3004 = vmatprep.subr.bf16.mxu1 %v4144_v24  ;;  %v4232_v23 = vld [vmem:[%s4936_s10 + $0x420] ss:$16 sps:$4 sm:$0xff]   ;;  %v4235_v24 = vld [vmem:[%s4936_s10 + $0x428] ss:$16 sps:$4 sm:$0xff]  }
  0xb2   : > { %2747 = vmatpush1.bf16.msra.mxu0 %v4139_v25  ;;  %3005 = vmatpush1.bf16.msra.mxu1 %v4142_v26  ;;  %v4324_v25 = vld [vmem:[%s4934_s26 + $0x14] ss:$48 sps:$4 sm:$0xff]  }
  0xb3   : > { %2748 = vmatprep.subr.bf16.mxu0 %v4147_v27  ;;  %3006 = vmatprep.subr.bf16.mxu1 %v4150_v28  ;;  %v4240_v26 = vld [vmem:[%s4936_s10 + $0x444] ss:$16 sps:$4 sm:$0xff]   ;;  %v4243_v27 = vld [vmem:[%s4936_s10 + $0x44c] ss:$16 sps:$4 sm:$0xff]   ;;  %v4238_v28 = vld [vmem:[%s4936_s10 + $0x440] ss:$16 sps:$4 sm:$0xff]  }
  0xb6   : > { %2749 = vmatpush1.bf16.msra.mxu0 %v4145_v29  ;;  %3007 = vmatpush1.bf16.msra.mxu1 %v4148_v30  ;;  %v4241_v29 = vld [vmem:[%s4936_s10 + $0x448] ss:$16 sps:$4 sm:$0xff]   ;;  %v4246_v30 = vld [vmem:[%s4936_s10 + $0x464] ss:$16 sps:$4 sm:$0xff]  }
  0xb7   : > { %2750 = vmatprep.subr.bf16.mxu0 %v4153_v31  ;;  %3008 = vmatprep.subr.bf16.mxu1 %v4156_v32  ;;  %v4249_v31 = vld [vmem:[%s4936_s10 + $0x46c] ss:$16 sps:$4 sm:$0xff]   ;;  %v4244_v32 = vld [vmem:[%s4936_s10 + $0x460] ss:$16 sps:$4 sm:$0xff]  }
  0xba   : > { %2751 = vmatpush1.bf16.msra.mxu0 %v4151_v33  ;;  %3009 = vmatpush1.bf16.msra.mxu1 %v4154_v34  ;;  %v4247_v33 = vld [vmem:[%s4936_s10 + $0x468] ss:$16 sps:$4 sm:$0xff]   ;;  %v4252_v34 = vld [vmem:[%s4936_s10 + $0x484] ss:$16 sps:$4 sm:$0xff]  }
  0xbb   : > { %2752 = vmatprep.subr.bf16.mxu0 %v4159_v35  ;;  %3010 = vmatprep.subr.bf16.mxu1 %v4162_v36  ;;  %v4255_v35 = vld [vmem:[%s4936_s10 + $0x48c] ss:$16 sps:$4 sm:$0xff]   ;;  %v4250_v36 = vld [vmem:[%s4936_s10 + $0x480] ss:$16 sps:$4 sm:$0xff]  }
  0xbe   : > { %2753 = vmatpush1.bf16.msra.mxu0 %v4157_v37  ;;  %3011 = vmatpush1.bf16.msra.mxu1 %v4160_v38  ;;  %v4253_v37 = vld [vmem:[%s4936_s10 + $0x488] ss:$16 sps:$4 sm:$0xff]   ;;  %v4258_v38 = vld [vmem:[%s4936_s10 + $0x4a4] ss:$16 sps:$4 sm:$0xff]  }
  0xbf   : > { %2754 = vmatprep.subr.bf16.mxu0 %v4165_v39  ;;  %3012 = vmatprep.subr.bf16.mxu1 %v4168_v40  ;;  %v4261_v39 = vld [vmem:[%s4936_s10 + $0x4ac] ss:$16 sps:$4 sm:$0xff]   ;;  %v4256_v40 = vld [vmem:[%s4936_s10 + $0x4a0] ss:$16 sps:$4 sm:$0xff]  }
  0xc2   : > { %2755 = vmatpush1.bf16.msra.mxu0 %v4163_v41  ;;  %3013 = vmatpush1.bf16.msra.mxu1 %v4166_v42  ;;  %v4259_v41 = vld [vmem:[%s4936_s10 + $0x4a8] ss:$16 sps:$4 sm:$0xff]   ;;  %v4264_v42 = vld [vmem:[%s4936_s10 + $0x4c4] ss:$16 sps:$4 sm:$0xff]  }
  0xc3   : > { %2756 = vmatprep.subr.bf16.mxu0 %v4171_v44  ;;  %3014 = vmatprep.subr.bf16.mxu1 %v4174_v45  ;;  %v4262_v44 = vld [vmem:[%s4936_s10 + $0x4c0] ss:$16 sps:$4 sm:$0xff]   ;;  %v4265_v45 = vld [vmem:[%s4936_s10 + $0x4c8] ss:$16 sps:$4 sm:$0xff]  }
  0xc6   : > { %2757 = vmatpush1.bf16.msra.mxu0 %v4169_v46  ;;  %3015 = vmatpush1.bf16.msra.mxu1 %v4172_v47  ;;  %v4270_v46 = vld [vmem:[%s4936_s10 + $0x4e4] ss:$16 sps:$4 sm:$0xff]   ;;  %v4273_v47 = vld [vmem:[%s4936_s10 + $0x4ec] ss:$16 sps:$4 sm:$0xff]  }
  0xc7   : > { %2758 = vmatprep.subr.bf16.mxu0 %v4177_v48  ;;  %3016 = vmatprep.subr.bf16.mxu1 %v4180_v49  ;;  %v4268_v48 = vld [vmem:[%s4936_s10 + $0x4e0] ss:$16 sps:$4 sm:$0xff]   ;;  %v4271_v49 = vld [vmem:[%s4936_s10 + $0x4e8] ss:$16 sps:$4 sm:$0xff]  }
  0xca   : > { %2759 = vmatpush1.bf16.msra.mxu0 %v4175_v50  ;;  %3017 = vmatpush1.bf16.msra.mxu1 %v4178_v51  ;;  %v4276_v50 = vld [vmem:[%s4936_s10 + $0x504] ss:$16 sps:$4 sm:$0xff]   ;;  %v4279_v51 = vld [vmem:[%s4936_s10 + $0x50c] ss:$16 sps:$4 sm:$0xff]  }
  0xcb   : > { %2760 = vmatprep.subr.bf16.mxu0 %v4183_v52  ;;  %3018 = vmatprep.subr.bf16.mxu1 %v4186_v53  ;;  %v4274_v52 = vld [vmem:[%s4936_s10 + $0x500] ss:$16 sps:$4 sm:$0xff]   ;;  %v4277_v53 = vld [vmem:[%s4936_s10 + $0x508] ss:$16 sps:$4 sm:$0xff]  }
  0xce   : > { %2761 = vmatpush1.bf16.msra.mxu0 %v4181_v54  ;;  %3019 = vmatpush1.bf16.msra.mxu1 %v4184_v55  ;;  %v4282_v54 = vld [vmem:[%s4936_s10 + $0x524] ss:$16 sps:$4 sm:$0xff]   ;;  %v4285_v55 = vld [vmem:[%s4936_s10 + $0x52c] ss:$16 sps:$4 sm:$0xff]  }
  0xcf   : > { %2762 = vmatprep.subr.bf16.mxu0 %v4189_v56  ;;  %3020 = vmatprep.subr.bf16.mxu1 %v4192_v57  ;;  %v4280_v56 = vld [vmem:[%s4936_s10 + $0x520] ss:$16 sps:$4 sm:$0xff]   ;;  %v4283_v57 = vld [vmem:[%s4936_s10 + $0x528] ss:$16 sps:$4 sm:$0xff]  }
  0xd2   : > { %2763 = vmatpush1.bf16.msra.mxu0 %v4187_v58  ;;  %3021 = vmatpush1.bf16.msra.mxu1 %v4190_v59  ;;  %v4288_v58 = vld [vmem:[%s4936_s10 + $0x544] ss:$16 sps:$4 sm:$0xff]   ;;  %v4291_v59 = vld [vmem:[%s4936_s10 + $0x54c] ss:$16 sps:$4 sm:$0xff]  }
  0xd3   : > { %2764 = vmatprep.subr.bf16.mxu0 %v4195_v60  ;;  %3022 = vmatprep.subr.bf16.mxu1 %v4198_v61  ;;  %v4286_v60 = vld [vmem:[%s4936_s10 + $0x540] ss:$16 sps:$4 sm:$0xff]   ;;  %v4289_v61 = vld [vmem:[%s4936_s10 + $0x548] ss:$16 sps:$4 sm:$0xff]  }
  0xd6   : > { %2765 = vmatpush1.bf16.msra.mxu0 %v4193_v62  ;;  %3023 = vmatpush1.bf16.msra.mxu1 %v4196_v63  ;;  %v4294_v62 = vld [vmem:[%s4936_s10 + $0x564] ss:$16 sps:$4 sm:$0xff]   ;;  %v4297_v63 = vld [vmem:[%s4936_s10 + $0x56c] ss:$16 sps:$4 sm:$0xff]  }
  0xd7   : > { %2766 = vmatprep.subr.bf16.mxu0 %v4201_v0  ;;  %3024 = vmatprep.subr.bf16.mxu1 %v4204_v1  ;;  %v4292_v0 = vld [vmem:[%s4936_s10 + $0x560] ss:$16 sps:$4 sm:$0xff]   ;;  %v4295_v1 = vld [vmem:[%s4936_s10 + $0x568] ss:$16 sps:$4 sm:$0xff]  }
  0xda   : > { %2767 = vmatpush1.bf16.msra.mxu0 %v4199_v2  ;;  %3025 = vmatpush1.bf16.msra.mxu1 %v4202_v3  ;;  %v4300_v2 = vld [vmem:[%s4936_s10 + $0x584] ss:$16 sps:$4 sm:$0xff]   ;;  %v4303_v3 = vld [vmem:[%s4936_s10 + $0x58c] ss:$16 sps:$4 sm:$0xff]  }
  0xdb   : > { %2768 = vmatprep.subr.bf16.mxu0 %v4207_v4  ;;  %3026 = vmatprep.subr.bf16.mxu1 %v4210_v5  ;;  %v4298_v4 = vld [vmem:[%s4936_s10 + $0x580] ss:$16 sps:$4 sm:$0xff]   ;;  %v4301_v5 = vld [vmem:[%s4936_s10 + $0x588] ss:$16 sps:$4 sm:$0xff]  }
  0xde   : > { %2769 = vmatpush1.bf16.msra.mxu0 %v4205_v6  ;;  %3027 = vmatpush1.bf16.msra.mxu1 %v4208_v7  ;;  %v4306_v6 = vld [vmem:[%s4936_s10 + $0x5a4] ss:$16 sps:$4 sm:$0xff]   ;;  %v4309_v7 = vld [vmem:[%s4936_s10 + $0x5ac] ss:$16 sps:$4 sm:$0xff]  }
  0xdf   : > { %2770 = vmatprep.subr.bf16.mxu0 %v4213_v8  ;;  %3028 = vmatprep.subr.bf16.mxu1 %v4216_v9  ;;  %v4304_v8 = vld [vmem:[%s4936_s10 + $0x5a0] ss:$16 sps:$4 sm:$0xff]   ;;  %v4307_v9 = vld [vmem:[%s4936_s10 + $0x5a8] ss:$16 sps:$4 sm:$0xff]  }
  0xe2   : > { %2771 = vmatpush1.bf16.msra.mxu0 %v4211_v10  ;;  %3029 = vmatpush1.bf16.msra.mxu1 %v4214_v11  ;;  %v4312_v10 = vld [vmem:[%s4936_s10 + $0x5c4] ss:$16 sps:$4 sm:$0xff]   ;;  %v4315_v11 = vld [vmem:[%s4936_s10 + $0x5cc] ss:$16 sps:$4 sm:$0xff]  }
  0xe3   : > { %2772 = vmatprep.subr.bf16.mxu0 %v4219_v12  ;;  %3030 = vmatprep.subr.bf16.mxu1 %v4222_v13  ;;  %v4310_v12 = vld [vmem:[%s4936_s10 + $0x5c0] ss:$16 sps:$4 sm:$0xff]   ;;  %v4313_v13 = vld [vmem:[%s4936_s10 + $0x5c8] ss:$16 sps:$4 sm:$0xff]  }
  0xe6   : > { %2773 = vmatpush1.bf16.msra.mxu0 %v4217_v14  ;;  %3031 = vmatpush1.bf16.msra.mxu1 %v4220_v15  ;;  %v4318_v14 = vld [vmem:[%s4936_s10 + $0x5e4] ss:$16 sps:$4 sm:$0xff]   ;;  %v4321_v15 = vld [vmem:[%s4936_s10 + $0x5ec] ss:$16 sps:$4 sm:$0xff]  }
  0xe7   : > { %2785 = vmatprep.subr.bf16.mxu0 %v4228_v16  ;;  %3043 = vmatprep.subr.bf16.mxu1 %v4231_v17  ;;  %v4316_v16 = vld [vmem:[%s4936_s10 + $0x5e0] ss:$16 sps:$4 sm:$0xff]   ;;  %v4319_v17 = vld [vmem:[%s4936_s10 + $0x5e8] ss:$16 sps:$4 sm:$0xff]  }
  0xe9   : > { %2775 = vmatmul.mubr.bf16.vlgmr.msra.gmra.mrb[0].mxu0 %v4223_v18  ;;  %3033 = vmatmul.mubr.bf16.vlgmr.msra.gmra.mrb[0].mxu1 %v4223_v18  ;;  %v4327_v18 = vld [vmem:[%s4936_s10 + $0x604] ss:$16 sps:$4 sm:$0xff]  }
  0xea   : > { %2786 = vmatpush1.bf16.msra.mxu0 %v4226_v19  ;;  %3044 = vmatpush1.bf16.msra.mxu1 %v4229_v20  ;;  %v4330_v19 = vld [vmem:[%s4936_s10 + $0x60c] ss:$16 sps:$4 sm:$0xff]   ;;  %v4322_v20 = vld [vmem:[%s4934_s26 + $0x10] ss:$48 sps:$4 sm:$0xff]  }
  0xeb   : > { %2787 = vmatprep.subr.bf16.mxu0 %v4234_v21  ;;  %3045 = vmatprep.subr.bf16.mxu1 %v4237_v22  ;;  %v4325_v21 = vld [vmem:[%s4936_s10 + $0x600] ss:$16 sps:$4 sm:$0xff]   ;;  %v4328_v22 = vld [vmem:[%s4936_s10 + $0x608] ss:$16 sps:$4 sm:$0xff]  }
  0xec   : > { %2817 = vmatprep.mubr.bf16.mxu0 %v4324_v25  ;;  %3075 = vmatprep.mubr.bf16.mxu1 %v4324_v25  ;;  %v4423_v25 = vld [vmem:[%s4934_s26 + $0x1c] ss:$48 sps:$4 sm:$0xff]  }
  0xee   : > { %2788 = vmatpush1.bf16.msra.mxu0 %v4232_v23  ;;  %3046 = vmatpush1.bf16.msra.mxu1 %v4235_v24  ;;  %v4333_v23 = vld [vmem:[%s4936_s10 + $0x624] ss:$16 sps:$4 sm:$0xff]   ;;  %v4336_v24 = vld [vmem:[%s4936_s10 + $0x62c] ss:$16 sps:$4 sm:$0xff]  }
  0xef   : > { %2789 = vmatprep.subr.bf16.mxu0 %v4240_v26  ;;  %3047 = vmatprep.subr.bf16.mxu1 %v4243_v27  ;;  %v4331_v26 = vld [vmem:[%s4936_s10 + $0x620] ss:$16 sps:$4 sm:$0xff]   ;;  %v4334_v27 = vld [vmem:[%s4936_s10 + $0x628] ss:$16 sps:$4 sm:$0xff]  }
  0xf2   : > { %2790 = vmatpush1.bf16.msra.mxu0 %v4238_v28  ;;  %3048 = vmatpush1.bf16.msra.mxu1 %v4241_v29  ;;  %v4339_v28 = vld [vmem:[%s4936_s10 + $0x644] ss:$16 sps:$4 sm:$0xff]   ;;  %v4342_v29 = vld [vmem:[%s4936_s10 + $0x64c] ss:$16 sps:$4 sm:$0xff]  }
  0xf3   : > { %2791 = vmatprep.subr.bf16.mxu0 %v4246_v30  ;;  %3049 = vmatprep.subr.bf16.mxu1 %v4249_v31  ;;  %v4337_v30 = vld [vmem:[%s4936_s10 + $0x640] ss:$16 sps:$4 sm:$0xff]   ;;  %v4340_v31 = vld [vmem:[%s4936_s10 + $0x648] ss:$16 sps:$4 sm:$0xff]  }
  0xf6   : > { %2792 = vmatpush1.bf16.msra.mxu0 %v4244_v32  ;;  %3050 = vmatpush1.bf16.msra.mxu1 %v4247_v33  ;;  %v4345_v32 = vld [vmem:[%s4936_s10 + $0x664] ss:$16 sps:$4 sm:$0xff]   ;;  %v4348_v33 = vld [vmem:[%s4936_s10 + $0x66c] ss:$16 sps:$4 sm:$0xff]  }
  0xf7   : > { %2793 = vmatprep.subr.bf16.mxu0 %v4252_v34  ;;  %3051 = vmatprep.subr.bf16.mxu1 %v4255_v35  ;;  %v4343_v34 = vld [vmem:[%s4936_s10 + $0x660] ss:$16 sps:$4 sm:$0xff]   ;;  %v4346_v35 = vld [vmem:[%s4936_s10 + $0x668] ss:$16 sps:$4 sm:$0xff]  }
  0xfa   : > { %2794 = vmatpush1.bf16.msra.mxu0 %v4250_v36  ;;  %3052 = vmatpush1.bf16.msra.mxu1 %v4253_v37  ;;  %v4351_v36 = vld [vmem:[%s4936_s10 + $0x684] ss:$16 sps:$4 sm:$0xff]   ;;  %v4354_v37 = vld [vmem:[%s4936_s10 + $0x68c] ss:$16 sps:$4 sm:$0xff]  }
  0xfb   : > { %2795 = vmatprep.subr.bf16.mxu0 %v4258_v38  ;;  %3053 = vmatprep.subr.bf16.mxu1 %v4261_v39  ;;  %v4349_v38 = vld [vmem:[%s4936_s10 + $0x680] ss:$16 sps:$4 sm:$0xff]   ;;  %v4352_v39 = vld [vmem:[%s4936_s10 + $0x688] ss:$16 sps:$4 sm:$0xff]  }
  0xfe   : > { %2796 = vmatpush1.bf16.msra.mxu0 %v4256_v40  ;;  %3054 = vmatpush1.bf16.msra.mxu1 %v4259_v41  ;;  %v4357_v40 = vld [vmem:[%s4936_s10 + $0x6a4] ss:$16 sps:$4 sm:$0xff]   ;;  %v4360_v41 = vld [vmem:[%s4936_s10 + $0x6ac] ss:$16 sps:$4 sm:$0xff]  }
  0xff   : > { %2797 = vmatprep.subr.bf16.mxu0 %v4264_v42  ;;  %3055 = vmatprep.subr.bf16.mxu1 %v4267_v43  ;;  %v4355_v42 = vld [vmem:[%s4936_s10 + $0x6a0] ss:$16 sps:$4 sm:$0xff]   ;;  %v4358_v43 = vld [vmem:[%s4936_s10 + $0x6a8] ss:$16 sps:$4 sm:$0xff]  }
 0x102   : > { %2798 = vmatpush1.bf16.msra.mxu0 %v4262_v44  ;;  %3056 = vmatpush1.bf16.msra.mxu1 %v4265_v45  ;;  %v4363_v44 = vld [vmem:[%s4936_s10 + $0x6c4] ss:$16 sps:$4 sm:$0xff]   ;;  %v4366_v45 = vld [vmem:[%s4936_s10 + $0x6cc] ss:$16 sps:$4 sm:$0xff]  }
 0x103   : > { %2799 = vmatprep.subr.bf16.mxu0 %v4270_v46  ;;  %3057 = vmatprep.subr.bf16.mxu1 %v4273_v47  ;;  %v4361_v46 = vld [vmem:[%s4936_s10 + $0x6c0] ss:$16 sps:$4 sm:$0xff]   ;;  %v4364_v47 = vld [vmem:[%s4936_s10 + $0x6c8] ss:$16 sps:$4 sm:$0xff]  }
 0x106   : > { %2800 = vmatpush1.bf16.msra.mxu0 %v4268_v48  ;;  %3058 = vmatpush1.bf16.msra.mxu1 %v4271_v49  ;;  %v4369_v48 = vld [vmem:[%s4936_s10 + $0x6e4] ss:$16 sps:$4 sm:$0xff]   ;;  %v4372_v49 = vld [vmem:[%s4936_s10 + $0x6ec] ss:$16 sps:$4 sm:$0xff]  }
 0x107   : > { %2801 = vmatprep.subr.bf16.mxu0 %v4276_v50  ;;  %3059 = vmatprep.subr.bf16.mxu1 %v4279_v51  ;;  %v4367_v50 = vld [vmem:[%s4936_s10 + $0x6e0] ss:$16 sps:$4 sm:$0xff]   ;;  %v4370_v51 = vld [vmem:[%s4936_s10 + $0x6e8] ss:$16 sps:$4 sm:$0xff]  }
 0x10a   : > { %2802 = vmatpush1.bf16.msra.mxu0 %v4274_v52  ;;  %3060 = vmatpush1.bf16.msra.mxu1 %v4277_v53  ;;  %v4375_v52 = vld [vmem:[%s4936_s10 + $0x704] ss:$16 sps:$4 sm:$0xff]   ;;  %v4378_v53 = vld [vmem:[%s4936_s10 + $0x70c] ss:$16 sps:$4 sm:$0xff]  }
 0x10b   : > { %2803 = vmatprep.subr.bf16.mxu0 %v4282_v54  ;;  %3061 = vmatprep.subr.bf16.mxu1 %v4285_v55  ;;  %v4373_v54 = vld [vmem:[%s4936_s10 + $0x700] ss:$16 sps:$4 sm:$0xff]   ;;  %v4376_v55 = vld [vmem:[%s4936_s10 + $0x708] ss:$16 sps:$4 sm:$0xff]  }
 0x10e   : > { %2804 = vmatpush1.bf16.msra.mxu0 %v4280_v56  ;;  %3062 = vmatpush1.bf16.msra.mxu1 %v4283_v57  ;;  %v4381_v56 = vld [vmem:[%s4936_s10 + $0x724] ss:$16 sps:$4 sm:$0xff]   ;;  %v4384_v57 = vld [vmem:[%s4936_s10 + $0x72c] ss:$16 sps:$4 sm:$0xff]  }
 0x10f   : > { %2805 = vmatprep.subr.bf16.mxu0 %v4288_v58  ;;  %3063 = vmatprep.subr.bf16.mxu1 %v4291_v59  ;;  %v4379_v58 = vld [vmem:[%s4936_s10 + $0x720] ss:$16 sps:$4 sm:$0xff]   ;;  %v4382_v59 = vld [vmem:[%s4936_s10 + $0x728] ss:$16 sps:$4 sm:$0xff]  }
 0x112   : > { %2806 = vmatpush1.bf16.msra.mxu0 %v4286_v60  ;;  %3064 = vmatpush1.bf16.msra.mxu1 %v4289_v61  ;;  %v4387_v60 = vld [vmem:[%s4936_s10 + $0x744] ss:$16 sps:$4 sm:$0xff]   ;;  %v4390_v61 = vld [vmem:[%s4936_s10 + $0x74c] ss:$16 sps:$4 sm:$0xff]  }
 0x113   : > { %2807 = vmatprep.subr.bf16.mxu0 %v4294_v62  ;;  %3065 = vmatprep.subr.bf16.mxu1 %v4297_v63  ;;  %v4385_v62 = vld [vmem:[%s4936_s10 + $0x740] ss:$16 sps:$4 sm:$0xff]   ;;  %v4388_v63 = vld [vmem:[%s4936_s10 + $0x748] ss:$16 sps:$4 sm:$0xff]  }
 0x116   : > { %2808 = vmatpush1.bf16.msra.mxu0 %v4292_v0  ;;  %3066 = vmatpush1.bf16.msra.mxu1 %v4295_v1  ;;  %v4393_v0 = vld [vmem:[%s4936_s10 + $0x764] ss:$16 sps:$4 sm:$0xff]   ;;  %v4396_v1 = vld [vmem:[%s4936_s10 + $0x76c] ss:$16 sps:$4 sm:$0xff]  }
 0x117   : > { %2809 = vmatprep.subr.bf16.mxu0 %v4300_v2  ;;  %3067 = vmatprep.subr.bf16.mxu1 %v4303_v3  ;;  %v4391_v2 = vld [vmem:[%s4936_s10 + $0x760] ss:$16 sps:$4 sm:$0xff]   ;;  %v4394_v3 = vld [vmem:[%s4936_s10 + $0x768] ss:$16 sps:$4 sm:$0xff]  }
 0x11a   : > { %2810 = vmatpush1.bf16.msra.mxu0 %v4298_v4  ;;  %3068 = vmatpush1.bf16.msra.mxu1 %v4301_v5  ;;  %v4399_v4 = vld [vmem:[%s4936_s10 + $0x784] ss:$16 sps:$4 sm:$0xff]   ;;  %v4402_v5 = vld [vmem:[%s4936_s10 + $0x78c] ss:$16 sps:$4 sm:$0xff]  }
 0x11b   : > { %2811 = vmatprep.subr.bf16.mxu0 %v4306_v6  ;;  %3069 = vmatprep.subr.bf16.mxu1 %v4309_v7  ;;  %v4397_v6 = vld [vmem:[%s4936_s10 + $0x780] ss:$16 sps:$4 sm:$0xff]   ;;  %v4400_v7 = vld [vmem:[%s4936_s10 + $0x788] ss:$16 sps:$4 sm:$0xff]  }
 0x11e   : > { %2812 = vmatpush1.bf16.msra.mxu0 %v4304_v8  ;;  %3070 = vmatpush1.bf16.msra.mxu1 %v4307_v9  ;;  %v4405_v8 = vld [vmem:[%s4936_s10 + $0x7a4] ss:$16 sps:$4 sm:$0xff]   ;;  %v4408_v9 = vld [vmem:[%s4936_s10 + $0x7ac] ss:$16 sps:$4 sm:$0xff]  }
 0x11f   : > { %2813 = vmatprep.subr.bf16.mxu0 %v4312_v10  ;;  %3071 = vmatprep.subr.bf16.mxu1 %v4315_v11  ;;  %v4403_v10 = vld [vmem:[%s4936_s10 + $0x7a0] ss:$16 sps:$4 sm:$0xff]   ;;  %v4406_v11 = vld [vmem:[%s4936_s10 + $0x7a8] ss:$16 sps:$4 sm:$0xff]  }
 0x122   : > { %2814 = vmatpush1.bf16.msra.mxu0 %v4310_v12  ;;  %3072 = vmatpush1.bf16.msra.mxu1 %v4313_v13  ;;  %v4411_v12 = vld [vmem:[%s4936_s10 + $0x7c4] ss:$16 sps:$4 sm:$0xff]   ;;  %v4414_v13 = vld [vmem:[%s4936_s10 + $0x7cc] ss:$16 sps:$4 sm:$0xff]  }
 0x123   : > { %2815 = vmatprep.subr.bf16.mxu0 %v4318_v14  ;;  %3073 = vmatprep.subr.bf16.mxu1 %v4321_v15  ;;  %v4409_v14 = vld [vmem:[%s4936_s10 + $0x7c0] ss:$16 sps:$4 sm:$0xff]   ;;  %v4412_v15 = vld [vmem:[%s4936_s10 + $0x7c8] ss:$16 sps:$4 sm:$0xff]  }
 0x126   : > { %2816 = vmatpush1.bf16.msra.mxu0 %v4316_v16  ;;  %3074 = vmatpush1.bf16.msra.mxu1 %v4319_v17  ;;  %v4417_v16 = vld [vmem:[%s4936_s10 + $0x7e4] ss:$16 sps:$4 sm:$0xff]   ;;  %v4420_v17 = vld [vmem:[%s4936_s10 + $0x7ec] ss:$16 sps:$4 sm:$0xff]  }
 0x127   : > { %2828 = vmatprep.subr.bf16.mxu0 %v4327_v18  ;;  %3086 = vmatprep.subr.bf16.mxu1 %v4330_v19  ;;  %v4415_v18 = vld [vmem:[%s4936_s10 + $0x7e0] ss:$16 sps:$4 sm:$0xff]   ;;  %v4418_v19 = vld [vmem:[%s4936_s10 + $0x7e8] ss:$16 sps:$4 sm:$0xff]  }
 0x129   : > { %2818 = vmatmul.mubr.bf16.vlgmr.msra.gmra.mrb[0].mxu0 %v4322_v20  ;;  %3076 = vmatmul.mubr.bf16.vlgmr.msra.gmra.mrb[0].mxu1 %v4322_v20  ;;  %v4426_v20 = vld [vmem:[%s4936_s10 + $0x804] ss:$16 sps:$4 sm:$0xff]  }
 0x12a   : > { %2829 = vmatpush1.bf16.msra.mxu0 %v4325_v21  ;;  %3087 = vmatpush1.bf16.msra.mxu1 %v4328_v22  ;;  %v4429_v21 = vld [vmem:[%s4936_s10 + $0x80c] ss:$16 sps:$4 sm:$0xff]   ;;  %v4421_v22 = vld [vmem:[%s4934_s26 + $0x18] ss:$48 sps:$4 sm:$0xff]  }
 0x12b   : > { %2830 = vmatprep.subr.bf16.mxu0 %v4333_v23  ;;  %3088 = vmatprep.subr.bf16.mxu1 %v4336_v24  ;;  %v4424_v23 = vld [vmem:[%s4936_s10 + $0x800] ss:$16 sps:$4 sm:$0xff]   ;;  %v4427_v24 = vld [vmem:[%s4936_s10 + $0x808] ss:$16 sps:$4 sm:$0xff]  }
 0x12c   : > { %2860 = vmatprep.mubr.bf16.mxu0 %v4423_v25  ;;  %3118 = vmatprep.mubr.bf16.mxu1 %v4423_v25  ;;  %v4432_v25 = vld [vmem:[%s4936_s10 + $0x824] ss:$16 sps:$4 sm:$0xff]  }
 0x12e   : > { %2831 = vmatpush1.bf16.msra.mxu0 %v4331_v26  ;;  %3089 = vmatpush1.bf16.msra.mxu1 %v4334_v27  ;;  %v4435_v26 = vld [vmem:[%s4936_s10 + $0x82c] ss:$16 sps:$4 sm:$0xff]   ;;  %v4522_v27 = vld [vmem:[%s4934_s26 + $0x24] ss:$48 sps:$4 sm:$0xff]  }
 0x12f   : > { %2832 = vmatprep.subr.bf16.mxu0 %v4339_v28  ;;  %3090 = vmatprep.subr.bf16.mxu1 %v4342_v29  ;;  %v4430_v28 = vld [vmem:[%s4936_s10 + $0x820] ss:$16 sps:$4 sm:$0xff]   ;;  %v4433_v29 = vld [vmem:[%s4936_s10 + $0x828] ss:$16 sps:$4 sm:$0xff]  }
 0x132   : > { %2833 = vmatpush1.bf16.msra.mxu0 %v4337_v30  ;;  %3091 = vmatpush1.bf16.msra.mxu1 %v4340_v31  ;;  %v4438_v30 = vld [vmem:[%s4936_s10 + $0x844] ss:$16 sps:$4 sm:$0xff]   ;;  %v4441_v31 = vld [vmem:[%s4936_s10 + $0x84c] ss:$16 sps:$4 sm:$0xff]  }
 0x133   : > { %2834 = vmatprep.subr.bf16.mxu0 %v4345_v32  ;;  %3092 = vmatprep.subr.bf16.mxu1 %v4348_v33  ;;  %v4436_v32 = vld [vmem:[%s4936_s10 + $0x840] ss:$16 sps:$4 sm:$0xff]   ;;  %v4439_v33 = vld [vmem:[%s4936_s10 + $0x848] ss:$16 sps:$4 sm:$0xff]  }
 0x136   : > { %2835 = vmatpush1.bf16.msra.mxu0 %v4343_v34  ;;  %3093 = vmatpush1.bf16.msra.mxu1 %v4346_v35  ;;  %v4444_v34 = vld [vmem:[%s4936_s10 + $0x864] ss:$16 sps:$4 sm:$0xff]   ;;  %v4447_v35 = vld [vmem:[%s4936_s10 + $0x86c] ss:$16 sps:$4 sm:$0xff]  }
 0x137   : > { %2836 = vmatprep.subr.bf16.mxu0 %v4351_v36  ;;  %3094 = vmatprep.subr.bf16.mxu1 %v4354_v37  ;;  %v4442_v36 = vld [vmem:[%s4936_s10 + $0x860] ss:$16 sps:$4 sm:$0xff]   ;;  %v4445_v37 = vld [vmem:[%s4936_s10 + $0x868] ss:$16 sps:$4 sm:$0xff]  }
 0x13a   : > { %2837 = vmatpush1.bf16.msra.mxu0 %v4349_v38  ;;  %3095 = vmatpush1.bf16.msra.mxu1 %v4352_v39  ;;  %v4450_v38 = vld [vmem:[%s4936_s10 + $0x884] ss:$16 sps:$4 sm:$0xff]   ;;  %v4453_v39 = vld [vmem:[%s4936_s10 + $0x88c] ss:$16 sps:$4 sm:$0xff]  }
 0x13b   : > { %2838 = vmatprep.subr.bf16.mxu0 %v4357_v40  ;;  %3096 = vmatprep.subr.bf16.mxu1 %v4360_v41  ;;  %v4448_v40 = vld [vmem:[%s4936_s10 + $0x880] ss:$16 sps:$4 sm:$0xff]   ;;  %v4451_v41 = vld [vmem:[%s4936_s10 + $0x888] ss:$16 sps:$4 sm:$0xff]  }
 0x13e   : > { %2839 = vmatpush1.bf16.msra.mxu0 %v4355_v42  ;;  %3097 = vmatpush1.bf16.msra.mxu1 %v4358_v43  ;;  %v4456_v42 = vld [vmem:[%s4936_s10 + $0x8a4] ss:$16 sps:$4 sm:$0xff]   ;;  %v4459_v43 = vld [vmem:[%s4936_s10 + $0x8ac] ss:$16 sps:$4 sm:$0xff]  }
 0x13f   : > { %2840 = vmatprep.subr.bf16.mxu0 %v4363_v44  ;;  %3098 = vmatprep.subr.bf16.mxu1 %v4366_v45  ;;  %v4454_v44 = vld [vmem:[%s4936_s10 + $0x8a0] ss:$16 sps:$4 sm:$0xff]   ;;  %v4457_v45 = vld [vmem:[%s4936_s10 + $0x8a8] ss:$16 sps:$4 sm:$0xff]  }
 0x142   : > { %2841 = vmatpush1.bf16.msra.mxu0 %v4361_v46  ;;  %3099 = vmatpush1.bf16.msra.mxu1 %v4364_v47  ;;  %v4462_v46 = vld [vmem:[%s4936_s10 + $0x8c4] ss:$16 sps:$4 sm:$0xff]   ;;  %v4465_v47 = vld [vmem:[%s4936_s10 + $0x8cc] ss:$16 sps:$4 sm:$0xff]  }
 0x143   : > { %2842 = vmatprep.subr.bf16.mxu0 %v4369_v48  ;;  %3100 = vmatprep.subr.bf16.mxu1 %v4372_v49  ;;  %v4460_v48 = vld [vmem:[%s4936_s10 + $0x8c0] ss:$16 sps:$4 sm:$0xff]   ;;  %v4463_v49 = vld [vmem:[%s4936_s10 + $0x8c8] ss:$16 sps:$4 sm:$0xff]  }
 0x146   : > { %2843 = vmatpush1.bf16.msra.mxu0 %v4367_v50  ;;  %3101 = vmatpush1.bf16.msra.mxu1 %v4370_v51  ;;  %v4468_v50 = vld [vmem:[%s4936_s10 + $0x8e4] ss:$16 sps:$4 sm:$0xff]   ;;  %v4471_v51 = vld [vmem:[%s4936_s10 + $0x8ec] ss:$16 sps:$4 sm:$0xff]  }
 0x147   : > { %2844 = vmatprep.subr.bf16.mxu0 %v4375_v52  ;;  %3102 = vmatprep.subr.bf16.mxu1 %v4378_v53  ;;  %v4466_v52 = vld [vmem:[%s4936_s10 + $0x8e0] ss:$16 sps:$4 sm:$0xff]   ;;  %v4469_v53 = vld [vmem:[%s4936_s10 + $0x8e8] ss:$16 sps:$4 sm:$0xff]  }
 0x14a   : > { %2845 = vmatpush1.bf16.msra.mxu0 %v4373_v54  ;;  %3103 = vmatpush1.bf16.msra.mxu1 %v4376_v55  ;;  %v4474_v54 = vld [vmem:[%s4936_s10 + $0x904] ss:$16 sps:$4 sm:$0xff]   ;;  %v4477_v55 = vld [vmem:[%s4936_s10 + $0x90c] ss:$16 sps:$4 sm:$0xff]  }
 0x14b   : > { %2846 = vmatprep.subr.bf16.mxu0 %v4381_v56  ;;  %3104 = vmatprep.subr.bf16.mxu1 %v4384_v57  ;;  %v4472_v56 = vld [vmem:[%s4936_s10 + $0x900] ss:$16 sps:$4 sm:$0xff]   ;;  %v4475_v57 = vld [vmem:[%s4936_s10 + $0x908] ss:$16 sps:$4 sm:$0xff]  }
 0x14e   : > { %2847 = vmatpush1.bf16.msra.mxu0 %v4379_v58  ;;  %3105 = vmatpush1.bf16.msra.mxu1 %v4382_v59  ;;  %v4480_v58 = vld [vmem:[%s4936_s10 + $0x924] ss:$16 sps:$4 sm:$0xff]   ;;  %v4483_v59 = vld [vmem:[%s4936_s10 + $0x92c] ss:$16 sps:$4 sm:$0xff]  }
 0x14f   : > { %2848 = vmatprep.subr.bf16.mxu0 %v4387_v60  ;;  %3106 = vmatprep.subr.bf16.mxu1 %v4390_v61  ;;  %v4478_v60 = vld [vmem:[%s4936_s10 + $0x920] ss:$16 sps:$4 sm:$0xff]   ;;  %v4481_v61 = vld [vmem:[%s4936_s10 + $0x928] ss:$16 sps:$4 sm:$0xff]  }
 0x152   : > { %2849 = vmatpush1.bf16.msra.mxu0 %v4385_v62  ;;  %3107 = vmatpush1.bf16.msra.mxu1 %v4388_v63  ;;  %v4486_v62 = vld [vmem:[%s4936_s10 + $0x944] ss:$16 sps:$4 sm:$0xff]   ;;  %v4489_v63 = vld [vmem:[%s4936_s10 + $0x94c] ss:$16 sps:$4 sm:$0xff]  }
 0x153   : > { %2850 = vmatprep.subr.bf16.mxu0 %v4393_v0  ;;  %3108 = vmatprep.subr.bf16.mxu1 %v4396_v1  ;;  %v4484_v0 = vld [vmem:[%s4936_s10 + $0x940] ss:$16 sps:$4 sm:$0xff]   ;;  %v4487_v1 = vld [vmem:[%s4936_s10 + $0x948] ss:$16 sps:$4 sm:$0xff]  }
 0x156   : > { %2851 = vmatpush1.bf16.msra.mxu0 %v4391_v2  ;;  %3109 = vmatpush1.bf16.msra.mxu1 %v4394_v3  ;;  %v4492_v2 = vld [vmem:[%s4936_s10 + $0x964] ss:$16 sps:$4 sm:$0xff]   ;;  %v4495_v3 = vld [vmem:[%s4936_s10 + $0x96c] ss:$16 sps:$4 sm:$0xff]  }
 0x157   : > { %2852 = vmatprep.subr.bf16.mxu0 %v4399_v4  ;;  %3110 = vmatprep.subr.bf16.mxu1 %v4402_v5  ;;  %v4490_v4 = vld [vmem:[%s4936_s10 + $0x960] ss:$16 sps:$4 sm:$0xff]   ;;  %v4493_v5 = vld [vmem:[%s4936_s10 + $0x968] ss:$16 sps:$4 sm:$0xff]  }
 0x15a   : > { %2853 = vmatpush1.bf16.msra.mxu0 %v4397_v6  ;;  %3111 = vmatpush1.bf16.msra.mxu1 %v4400_v7  ;;  %v4498_v6 = vld [vmem:[%s4936_s10 + $0x984] ss:$16 sps:$4 sm:$0xff]   ;;  %v4501_v7 = vld [vmem:[%s4936_s10 + $0x98c] ss:$16 sps:$4 sm:$0xff]  }
 0x15b   : > { %2854 = vmatprep.subr.bf16.mxu0 %v4405_v8  ;;  %3112 = vmatprep.subr.bf16.mxu1 %v4408_v9  ;;  %v4496_v8 = vld [vmem:[%s4936_s10 + $0x980] ss:$16 sps:$4 sm:$0xff]   ;;  %v4499_v9 = vld [vmem:[%s4936_s10 + $0x988] ss:$16 sps:$4 sm:$0xff]  }
 0x15e   : > { %2855 = vmatpush1.bf16.msra.mxu0 %v4403_v10  ;;  %3113 = vmatpush1.bf16.msra.mxu1 %v4406_v11  ;;  %v4504_v10 = vld [vmem:[%s4936_s10 + $0x9a4] ss:$16 sps:$4 sm:$0xff]   ;;  %v4507_v11 = vld [vmem:[%s4936_s10 + $0x9ac] ss:$16 sps:$4 sm:$0xff]  }
 0x15f   : > { %2856 = vmatprep.subr.bf16.mxu0 %v4411_v12  ;;  %3114 = vmatprep.subr.bf16.mxu1 %v4414_v13  ;;  %v4502_v12 = vld [vmem:[%s4936_s10 + $0x9a0] ss:$16 sps:$4 sm:$0xff]   ;;  %v4505_v13 = vld [vmem:[%s4936_s10 + $0x9a8] ss:$16 sps:$4 sm:$0xff]  }
 0x162   : > { %2857 = vmatpush1.bf16.msra.mxu0 %v4409_v14  ;;  %3115 = vmatpush1.bf16.msra.mxu1 %v4412_v15  ;;  %v4510_v14 = vld [vmem:[%s4936_s10 + $0x9c4] ss:$16 sps:$4 sm:$0xff]   ;;  %v4513_v15 = vld [vmem:[%s4936_s10 + $0x9cc] ss:$16 sps:$4 sm:$0xff]  }
 0x163   : > { %2858 = vmatprep.subr.bf16.mxu0 %v4417_v16  ;;  %3116 = vmatprep.subr.bf16.mxu1 %v4420_v17  ;;  %v4508_v16 = vld [vmem:[%s4936_s10 + $0x9c0] ss:$16 sps:$4 sm:$0xff]   ;;  %v4511_v17 = vld [vmem:[%s4936_s10 + $0x9c8] ss:$16 sps:$4 sm:$0xff]  }
 0x166   : > { %2859 = vmatpush1.bf16.msra.mxu0 %v4415_v18  ;;  %3117 = vmatpush1.bf16.msra.mxu1 %v4418_v19  ;;  %v4516_v18 = vld [vmem:[%s4936_s10 + $0x9e4] ss:$16 sps:$4 sm:$0xff]   ;;  %v4519_v19 = vld [vmem:[%s4936_s10 + $0x9ec] ss:$16 sps:$4 sm:$0xff]  }
 0x167   : > { %2871 = vmatprep.subr.bf16.mxu0 %v4426_v20  ;;  %3129 = vmatprep.subr.bf16.mxu1 %v4429_v21  ;;  %v4514_v20 = vld [vmem:[%s4936_s10 + $0x9e0] ss:$16 sps:$4 sm:$0xff]   ;;  %v4517_v21 = vld [vmem:[%s4936_s10 + $0x9e8] ss:$16 sps:$4 sm:$0xff]  }
 0x169   : > { %2861 = vmatmul.mubr.bf16.vlgmr.msra.gmra.mrb[0].mxu0 %v4421_v22  ;;  %3119 = vmatmul.mubr.bf16.vlgmr.msra.gmra.mrb[0].mxu1 %v4421_v22  ;;  %v4525_v22 = vld [vmem:[%s4936_s10 + $0xa04] ss:$16 sps:$4 sm:$0xff]  }
 0x16a   : > { %2872 = vmatpush1.bf16.msra.mxu0 %v4424_v23  ;;  %3130 = vmatpush1.bf16.msra.mxu1 %v4427_v24  ;;  %v4528_v23 = vld [vmem:[%s4936_s10 + $0xa0c] ss:$16 sps:$4 sm:$0xff]   ;;  %v4520_v24 = vld [vmem:[%s4934_s26 + $0x20] ss:$48 sps:$4 sm:$0xff]  }
 0x16b   : > { %2873 = vmatprep.subr.bf16.mxu0 %v4432_v25  ;;  %3131 = vmatprep.subr.bf16.mxu1 %v4435_v26  ;;  %v4523_v25 = vld [vmem:[%s4936_s10 + $0xa00] ss:$16 sps:$4 sm:$0xff]   ;;  %v4526_v26 = vld [vmem:[%s4936_s10 + $0xa08] ss:$16 sps:$4 sm:$0xff]  }
 0x16c   : > { %2903 = vmatprep.mubr.bf16.mxu0 %v4522_v27  ;;  %3161 = vmatprep.mubr.bf16.mxu1 %v4522_v27  ;;  %v4531_v27 = vld [vmem:[%s4936_s10 + $0xa24] ss:$16 sps:$4 sm:$0xff]  }
 0x16e   : > { %2874 = vmatpush1.bf16.msra.mxu0 %v4430_v28  ;;  %3132 = vmatpush1.bf16.msra.mxu1 %v4433_v29  ;;  %v4534_v28 = vld [vmem:[%s4936_s10 + $0xa2c] ss:$16 sps:$4 sm:$0xff]  }
 0x16f   : > { %2875 = vmatprep.subr.bf16.mxu0 %v4438_v30  ;;  %3133 = vmatprep.subr.bf16.mxu1 %v4441_v31  ;;  %v4621_v29 = vld [vmem:[%s4934_s26 + $0x2c] ss:$48 sps:$4 sm:$0xff]   ;;  %v4529_v30 = vld [vmem:[%s4936_s10 + $0xa20] ss:$16 sps:$4 sm:$0xff]   ;;  %v4532_v31 = vld [vmem:[%s4936_s10 + $0xa28] ss:$16 sps:$4 sm:$0xff]  }
 0x172   : > { %2876 = vmatpush1.bf16.msra.mxu0 %v4436_v32  ;;  %3134 = vmatpush1.bf16.msra.mxu1 %v4439_v33  ;;  %v4537_v32 = vld [vmem:[%s4936_s10 + $0xa44] ss:$16 sps:$4 sm:$0xff]   ;;  %v4540_v33 = vld [vmem:[%s4936_s10 + $0xa4c] ss:$16 sps:$4 sm:$0xff]  }
 0x173   : > { %2877 = vmatprep.subr.bf16.mxu0 %v4444_v34  ;;  %3135 = vmatprep.subr.bf16.mxu1 %v4447_v35  ;;  %v4535_v34 = vld [vmem:[%s4936_s10 + $0xa40] ss:$16 sps:$4 sm:$0xff]   ;;  %v4538_v35 = vld [vmem:[%s4936_s10 + $0xa48] ss:$16 sps:$4 sm:$0xff]  }
 0x176   : > { %2878 = vmatpush1.bf16.msra.mxu0 %v4442_v36  ;;  %3136 = vmatpush1.bf16.msra.mxu1 %v4445_v37  ;;  %v4543_v36 = vld [vmem:[%s4936_s10 + $0xa64] ss:$16 sps:$4 sm:$0xff]   ;;  %v4546_v37 = vld [vmem:[%s4936_s10 + $0xa6c] ss:$16 sps:$4 sm:$0xff]  }
 0x177   : > { %2879 = vmatprep.subr.bf16.mxu0 %v4450_v38  ;;  %3137 = vmatprep.subr.bf16.mxu1 %v4453_v39  ;;  %v4541_v38 = vld [vmem:[%s4936_s10 + $0xa60] ss:$16 sps:$4 sm:$0xff]   ;;  %v4544_v39 = vld [vmem:[%s4936_s10 + $0xa68] ss:$16 sps:$4 sm:$0xff]  }
 0x17a   : > { %2880 = vmatpush1.bf16.msra.mxu0 %v4448_v40  ;;  %3138 = vmatpush1.bf16.msra.mxu1 %v4451_v41  ;;  %v4549_v40 = vld [vmem:[%s4936_s10 + $0xa84] ss:$16 sps:$4 sm:$0xff]   ;;  %v4552_v41 = vld [vmem:[%s4936_s10 + $0xa8c] ss:$16 sps:$4 sm:$0xff]  }
 0x17b   : > { %2881 = vmatprep.subr.bf16.mxu0 %v4456_v42  ;;  %3139 = vmatprep.subr.bf16.mxu1 %v4459_v43  ;;  %v4547_v42 = vld [vmem:[%s4936_s10 + $0xa80] ss:$16 sps:$4 sm:$0xff]   ;;  %v4550_v43 = vld [vmem:[%s4936_s10 + $0xa88] ss:$16 sps:$4 sm:$0xff]  }
 0x17e   : > { %2882 = vmatpush1.bf16.msra.mxu0 %v4454_v44  ;;  %3140 = vmatpush1.bf16.msra.mxu1 %v4457_v45  ;;  %v4555_v44 = vld [vmem:[%s4936_s10 + $0xaa4] ss:$16 sps:$4 sm:$0xff]   ;;  %v4558_v45 = vld [vmem:[%s4936_s10 + $0xaac] ss:$16 sps:$4 sm:$0xff]  }
 0x17f   : > { %2883 = vmatprep.subr.bf16.mxu0 %v4462_v46  ;;  %3141 = vmatprep.subr.bf16.mxu1 %v4465_v47  ;;  %v4553_v46 = vld [vmem:[%s4936_s10 + $0xaa0] ss:$16 sps:$4 sm:$0xff]   ;;  %v4556_v47 = vld [vmem:[%s4936_s10 + $0xaa8] ss:$16 sps:$4 sm:$0xff]  }
 0x182   : > { %2884 = vmatpush1.bf16.msra.mxu0 %v4460_v48  ;;  %3142 = vmatpush1.bf16.msra.mxu1 %v4463_v49  ;;  %v4561_v48 = vld [vmem:[%s4936_s10 + $0xac4] ss:$16 sps:$4 sm:$0xff]   ;;  %v4564_v49 = vld [vmem:[%s4936_s10 + $0xacc] ss:$16 sps:$4 sm:$0xff]  }
 0x183   : > { %2885 = vmatprep.subr.bf16.mxu0 %v4468_v50  ;;  %3143 = vmatprep.subr.bf16.mxu1 %v4471_v51  ;;  %v4559_v50 = vld [vmem:[%s4936_s10 + $0xac0] ss:$16 sps:$4 sm:$0xff]   ;;  %v4562_v51 = vld [vmem:[%s4936_s10 + $0xac8] ss:$16 sps:$4 sm:$0xff]  }
 0x186   : > { %2886 = vmatpush1.bf16.msra.mxu0 %v4466_v52  ;;  %3144 = vmatpush1.bf16.msra.mxu1 %v4469_v53  ;;  %v4567_v52 = vld [vmem:[%s4936_s10 + $0xae4] ss:$16 sps:$4 sm:$0xff]   ;;  %v4570_v53 = vld [vmem:[%s4936_s10 + $0xaec] ss:$16 sps:$4 sm:$0xff]  }
 0x187   : > { %2887 = vmatprep.subr.bf16.mxu0 %v4474_v54  ;;  %3145 = vmatprep.subr.bf16.mxu1 %v4477_v55  ;;  %v4565_v54 = vld [vmem:[%s4936_s10 + $0xae0] ss:$16 sps:$4 sm:$0xff]   ;;  %v4568_v55 = vld [vmem:[%s4936_s10 + $0xae8] ss:$16 sps:$4 sm:$0xff]  }
 0x18a   : > { %2888 = vmatpush1.bf16.msra.mxu0 %v4472_v56  ;;  %3146 = vmatpush1.bf16.msra.mxu1 %v4475_v57  ;;  %v4573_v56 = vld [vmem:[%s4936_s10 + $0xb04] ss:$16 sps:$4 sm:$0xff]   ;;  %v4576_v57 = vld [vmem:[%s4936_s10 + $0xb0c] ss:$16 sps:$4 sm:$0xff]  }
 0x18b   : > { %2889 = vmatprep.subr.bf16.mxu0 %v4480_v58  ;;  %3147 = vmatprep.subr.bf16.mxu1 %v4483_v59  ;;  %v4571_v58 = vld [vmem:[%s4936_s10 + $0xb00] ss:$16 sps:$4 sm:$0xff]   ;;  %v4574_v59 = vld [vmem:[%s4936_s10 + $0xb08] ss:$16 sps:$4 sm:$0xff]  }
 0x18e   : > { %2890 = vmatpush1.bf16.msra.mxu0 %v4478_v60  ;;  %3148 = vmatpush1.bf16.msra.mxu1 %v4481_v61  ;;  %v4579_v60 = vld [vmem:[%s4936_s10 + $0xb24] ss:$16 sps:$4 sm:$0xff]   ;;  %v4582_v61 = vld [vmem:[%s4936_s10 + $0xb2c] ss:$16 sps:$4 sm:$0xff]  }
 0x18f   : > { %2891 = vmatprep.subr.bf16.mxu0 %v4486_v62  ;;  %3149 = vmatprep.subr.bf16.mxu1 %v4489_v63  ;;  %v4577_v62 = vld [vmem:[%s4936_s10 + $0xb20] ss:$16 sps:$4 sm:$0xff]   ;;  %v4580_v63 = vld [vmem:[%s4936_s10 + $0xb28] ss:$16 sps:$4 sm:$0xff]  }
 0x192   : > { %2892 = vmatpush1.bf16.msra.mxu0 %v4484_v0  ;;  %3150 = vmatpush1.bf16.msra.mxu1 %v4487_v1  ;;  %v4585_v0 = vld [vmem:[%s4936_s10 + $0xb44] ss:$16 sps:$4 sm:$0xff]   ;;  %v4588_v1 = vld [vmem:[%s4936_s10 + $0xb4c] ss:$16 sps:$4 sm:$0xff]  }
 0x193   : > { %2893 = vmatprep.subr.bf16.mxu0 %v4492_v2  ;;  %3151 = vmatprep.subr.bf16.mxu1 %v4495_v3  ;;  %v4583_v2 = vld [vmem:[%s4936_s10 + $0xb40] ss:$16 sps:$4 sm:$0xff]   ;;  %v4586_v3 = vld [vmem:[%s4936_s10 + $0xb48] ss:$16 sps:$4 sm:$0xff]  }
 0x196   : > { %2894 = vmatpush1.bf16.msra.mxu0 %v4490_v4  ;;  %3152 = vmatpush1.bf16.msra.mxu1 %v4493_v5  ;;  %v4591_v4 = vld [vmem:[%s4936_s10 + $0xb64] ss:$16 sps:$4 sm:$0xff]   ;;  %v4594_v5 = vld [vmem:[%s4936_s10 + $0xb6c] ss:$16 sps:$4 sm:$0xff]  }
 0x197   : > { %2895 = vmatprep.subr.bf16.mxu0 %v4498_v6  ;;  %3153 = vmatprep.subr.bf16.mxu1 %v4501_v7  ;;  %v4589_v6 = vld [vmem:[%s4936_s10 + $0xb60] ss:$16 sps:$4 sm:$0xff]   ;;  %v4592_v7 = vld [vmem:[%s4936_s10 + $0xb68] ss:$16 sps:$4 sm:$0xff]  }
 0x19a   : > { %2896 = vmatpush1.bf16.msra.mxu0 %v4496_v8  ;;  %3154 = vmatpush1.bf16.msra.mxu1 %v4499_v9  ;;  %v4597_v8 = vld [vmem:[%s4936_s10 + $0xb84] ss:$16 sps:$4 sm:$0xff]   ;;  %v4600_v9 = vld [vmem:[%s4936_s10 + $0xb8c] ss:$16 sps:$4 sm:$0xff]  }
 0x19b   : > { %2897 = vmatprep.subr.bf16.mxu0 %v4504_v10  ;;  %3155 = vmatprep.subr.bf16.mxu1 %v4507_v11  ;;  %v4595_v10 = vld [vmem:[%s4936_s10 + $0xb80] ss:$16 sps:$4 sm:$0xff]   ;;  %v4598_v11 = vld [vmem:[%s4936_s10 + $0xb88] ss:$16 sps:$4 sm:$0xff]  }
 0x19e   : > { %2898 = vmatpush1.bf16.msra.mxu0 %v4502_v12  ;;  %3156 = vmatpush1.bf16.msra.mxu1 %v4505_v13  ;;  %v4603_v12 = vld [vmem:[%s4936_s10 + $0xba4] ss:$16 sps:$4 sm:$0xff]   ;;  %v4606_v13 = vld [vmem:[%s4936_s10 + $0xbac] ss:$16 sps:$4 sm:$0xff]  }
 0x19f   : > { %2899 = vmatprep.subr.bf16.mxu0 %v4510_v14  ;;  %3157 = vmatprep.subr.bf16.mxu1 %v4513_v15  ;;  %v4601_v14 = vld [vmem:[%s4936_s10 + $0xba0] ss:$16 sps:$4 sm:$0xff]   ;;  %v4604_v15 = vld [vmem:[%s4936_s10 + $0xba8] ss:$16 sps:$4 sm:$0xff]  }
 0x1a2   : > { %2900 = vmatpush1.bf16.msra.mxu0 %v4508_v16  ;;  %3158 = vmatpush1.bf16.msra.mxu1 %v4511_v17  ;;  %v4609_v16 = vld [vmem:[%s4936_s10 + $0xbc4] ss:$16 sps:$4 sm:$0xff]   ;;  %v4612_v17 = vld [vmem:[%s4936_s10 + $0xbcc] ss:$16 sps:$4 sm:$0xff]  }
 0x1a3   : > { %2901 = vmatprep.subr.bf16.mxu0 %v4516_v18  ;;  %3159 = vmatprep.subr.bf16.mxu1 %v4519_v19  ;;  %v4607_v18 = vld [vmem:[%s4936_s10 + $0xbc0] ss:$16 sps:$4 sm:$0xff]   ;;  %v4610_v19 = vld [vmem:[%s4936_s10 + $0xbc8] ss:$16 sps:$4 sm:$0xff]  }
 0x1a6   : > { %2902 = vmatpush1.bf16.msra.mxu0 %v4514_v20  ;;  %3160 = vmatpush1.bf16.msra.mxu1 %v4517_v21  ;;  %v4615_v20 = vld [vmem:[%s4936_s10 + $0xbe4] ss:$16 sps:$4 sm:$0xff]   ;;  %v4618_v21 = vld [vmem:[%s4936_s10 + $0xbec] ss:$16 sps:$4 sm:$0xff]  }
 0x1a7   : > { %2914 = vmatprep.subr.bf16.mxu0 %v4525_v22  ;;  %3172 = vmatprep.subr.bf16.mxu1 %v4528_v23  ;;  %v4613_v22 = vld [vmem:[%s4936_s10 + $0xbe0] ss:$16 sps:$4 sm:$0xff]   ;;  %v4616_v23 = vld [vmem:[%s4936_s10 + $0xbe8] ss:$16 sps:$4 sm:$0xff]  }
 0x1a9   : > { %2904 = vmatmul.mubr.bf16.vlgmr.msra.gmra.mrb[0].mxu0 %v4520_v24  ;;  %3162 = vmatmul.mubr.bf16.vlgmr.msra.gmra.mrb[0].mxu1 %v4520_v24  ;;  %v4619_v24 = vld [vmem:[%s4934_s26 + $0x28] ss:$48 sps:$4 sm:$0xff]  }
 0x1aa   : > { %2915 = vmatpush1.bf16.msra.mxu0 %v4523_v25  ;;  %3173 = vmatpush1.bf16.msra.mxu1 %v4526_v26  ;;  %v315_v25 = vld [vmem:[#allocation2] sm:$0xff]  ;;  %v317_v26 = vld [vmem:[#allocation2 + $0x10] sm:$0xff] }
 0x1ab   : > { %2916 = vmatprep.subr.bf16.mxu0 %v4531_v27  ;;  %3174 = vmatprep.subr.bf16.mxu1 %v4534_v28  ;;  %v316_v27 = vld [vmem:[#allocation2 + $0x8] sm:$0xff]  ;;  %v318_v28 = vld [vmem:[#allocation2 + $0x18] sm:$0xff] }
 0x1ac   : > { %2946 = vmatprep.mubr.bf16.mxu0 %v4621_v29  ;;  %3204 = vmatprep.mubr.bf16.mxu1 %v4621_v29 }
 0x1ae   : > { %2917 = vmatpush1.bf16.msra.mxu0 %v4529_v30  ;;  %3175 = vmatpush1.bf16.msra.mxu1 %v4532_v31  ;;  %v319_v31 = vld [vmem:[#allocation2 + $0x20] sm:$0xff] }
 0x1af   : > { %2918 = vmatprep.subr.bf16.mxu0 %v4537_v32  ;;  %3176 = vmatprep.subr.bf16.mxu1 %v4540_v33  ;;  %v321_v32 = vld [vmem:[#allocation2 + $0x30] sm:$0xff] }
 0x1b2   : > { %2919 = vmatpush1.bf16.msra.mxu0 %v4535_v34  ;;  %3177 = vmatpush1.bf16.msra.mxu1 %v4538_v35 }
 0x1b3   : > { %2920 = vmatprep.subr.bf16.mxu0 %v4543_v36  ;;  %3178 = vmatprep.subr.bf16.mxu1 %v4546_v37  ;;  %v320_v37 = vld [vmem:[#allocation2 + $0x28] sm:$0xff] }
 0x1b6   : > { %2921 = vmatpush1.bf16.msra.mxu0 %v4541_v38  ;;  %3179 = vmatpush1.bf16.msra.mxu1 %v4544_v39  ;;  %v322_v38 = vld [vmem:[#allocation2 + $0x38] sm:$0xff] }
 0x1b7   : > { %2922 = vmatprep.subr.bf16.mxu0 %v4549_v40  ;;  %3180 = vmatprep.subr.bf16.mxu1 %v4552_v41 }
 0x1ba   : > { %2923 = vmatpush1.bf16.msra.mxu0 %v4547_v42  ;;  %3181 = vmatpush1.bf16.msra.mxu1 %v4550_v43 }
 0x1bb   : > { %2924 = vmatprep.subr.bf16.mxu0 %v4555_v44  ;;  %3182 = vmatprep.subr.bf16.mxu1 %v4558_v45 }
 0x1be   : > { %2925 = vmatpush1.bf16.msra.mxu0 %v4553_v46  ;;  %3183 = vmatpush1.bf16.msra.mxu1 %v4556_v47 }
 0x1bf   : > { %2926 = vmatprep.subr.bf16.mxu0 %v4561_v48  ;;  %3184 = vmatprep.subr.bf16.mxu1 %v4564_v49  ;;  %v3245_v49 = vlaneseq (!%p3865_p12) }
 0x1c2   : > { %2927 = vmatpush1.bf16.msra.mxu0 %v4559_v50  ;;  %3185 = vmatpush1.bf16.msra.mxu1 %v4562_v51  ;;  %v3246_v50 = vshrl.u32 (!%p3865_p12), %v3245_v49, 7  ;;  %v3243_v51 = vld [vmem:[%s299_s22] sm:$0xf] (!%p3865_p12) }
 0x1c3   : > { %2928 = vmatprep.subr.bf16.mxu0 %v4567_v52  ;;  %3186 = vmatprep.subr.bf16.mxu1 %v4570_v53 }
 0x1c6   : > { %2929 = vmatpush1.bf16.msra.mxu0 %v4565_v54  ;;  %3187 = vmatpush1.bf16.msra.mxu1 %v4568_v55  ;;  %v3247_v54 = vsub.s32 (!%p3865_p12), 0, %v3246_v50  ;;  %v3251_v55 = vsub.s32 (!%p3865_p12), 1, %v3246_v50 }
 0x1c7   : > { %2930 = vmatprep.subr.bf16.mxu0 %v4573_v56  ;;  %3188 = vmatprep.subr.bf16.mxu1 %v4576_v57  ;;  %v3255_v56 = vsub.s32 (!%p3865_p12), 2, %v3246_v50  ;;  %v3259_v57 = vsub.s32 (!%p3865_p12), 3, %v3246_v50 }
 0x1ca   : > { %2931 = vmatpush1.bf16.msra.mxu0 %v4571_v58  ;;  %3189 = vmatpush1.bf16.msra.mxu1 %v4574_v59 }
 0x1cb   : > { %2932 = vmatprep.subr.bf16.mxu0 %v4579_v60  ;;  %3190 = vmatprep.subr.bf16.mxu1 %v4582_v61  ;;  %v3248_v61 = vrot.slane (!%p3865_p12), %v3243_v51, %v3247_v54 }
 0x1ce   : > { %2933 = vmatpush1.bf16.msra.mxu0 %v4577_v62  ;;  %3191 = vmatpush1.bf16.msra.mxu1 %v4580_v63  ;;  %v3252_v62 = vrot.slane (!%p3865_p12), %v3243_v51, %v3251_v55  ;;  %v3256_v63 = vrot.slane (!%p3865_p12), %v3243_v51, %v3255_v56 }
 0x1cf   : > { %2934 = vmatprep.subr.bf16.mxu0 %v4585_v0  ;;  %3192 = vmatprep.subr.bf16.mxu1 %v4588_v1  ;;  %v3260_v0 = vrot.slane (!%p3865_p12), %v3243_v51, %v3259_v57 }
 0x1d2   : > { %2935 = vmatpush1.bf16.msra.mxu0 %v4583_v2  ;;  %3193 = vmatpush1.bf16.msra.mxu1 %v4586_v3 }
 0x1d3   : > { %2936 = vmatprep.subr.bf16.mxu0 %v4591_v4  ;;  %3194 = vmatprep.subr.bf16.mxu1 %v4594_v5 }
 0x1d6   : > { %2937 = vmatpush1.bf16.msra.mxu0 %v4589_v6  ;;  %3195 = vmatpush1.bf16.msra.mxu1 %v4592_v7 }
 0x1d7   : > { %2938 = vmatprep.subr.bf16.mxu0 %v4597_v8  ;;  %3196 = vmatprep.subr.bf16.mxu1 %v4600_v9 }
 0x1da   : > { %2939 = vmatpush1.bf16.msra.mxu0 %v4595_v10  ;;  %3197 = vmatpush1.bf16.msra.mxu1 %v4598_v11 }
 0x1db   : > { %2940 = vmatprep.subr.bf16.mxu0 %v4603_v12  ;;  %3198 = vmatprep.subr.bf16.mxu1 %v4606_v13 }
 0x1de   : > { %2941 = vmatpush1.bf16.msra.mxu0 %v4601_v14  ;;  %3199 = vmatpush1.bf16.msra.mxu1 %v4604_v15 }
 0x1df   : > { %2942 = vmatprep.subr.bf16.mxu0 %v4609_v16  ;;  %3200 = vmatprep.subr.bf16.mxu1 %v4612_v17 }
 0x1e2   : > { %2943 = vmatpush1.bf16.msra.mxu0 %v4607_v18  ;;  %3201 = vmatpush1.bf16.msra.mxu1 %v4610_v19 }
 0x1e3   : > { %2944 = vmatprep.subr.bf16.mxu0 %v4615_v20  ;;  %3202 = vmatprep.subr.bf16.mxu1 %v4618_v21 }
 0x1e6   : > { %2945 = vmatpush1.bf16.msra.mxu0 %v4613_v22  ;;  %3203 = vmatpush1.bf16.msra.mxu1 %v4616_v23 }
 0x1e9   : > { %2947 = vmatmul.mubr.bf16.vlgmr.msra.gmra.mrb[0].mxu0 %v4619_v24  ;;  %3205 = vmatmul.mubr.bf16.vlgmr.msra.gmra.mrb[0].mxu1 %v4619_v24 }
 0x2bc   : > { %v2948_v29 = vpop.f32.mrb[0].mxu0  ;;  %v3206_v30 = vpop.f32.mrb[0].mxu1  ;;  %3234 = sbr.rel (%p3865_p12) target bundleno = 721 (0x2d1), region = 67 }
 0x2bd   : > { %v3215_v33 = vadd.f32 %v2948_v29, %v315_v25  ;;  %v3217_v34 = vadd.f32 %v3206_v30, %v317_v26  ;;  %v2950_v35 = vpop.f32.mrb[1].mxu0  ;;  %v3208_v36 = vpop.f32.mrb[1].mxu1 }
 0x2be   : > { %v3216_v39 = vadd.f32 %v2950_v35, %v316_v27  ;;  %v3218_v40 = vadd.f32 %v3208_v36, %v318_v28  ;;  %v2952_v41 = vpop.f32.mrb[2].mxu0  ;;  %v3210_v42 = vpop.f32.mrb[2].mxu1 }
 0x2bf   : > { %3223 = vst [vmem:[#allocation2] sm:$0xff] %v3215_v33  ;;  %3225 = vst [vmem:[#allocation2 + $0x10] sm:$0xff] %v3217_v34  ;;  %v3219_v43 = vadd.f32 %v2952_v41, %v319_v31  ;;  %v3221_v44 = vadd.f32 %v3210_v42, %v321_v32  ;;  %v2954_v45 = vpop.f32.mrb[3].mxu0  ;;  %v3212_v46 = vpop.f32.mrb[3].mxu1 }
 0x2c0   : > { %3224 = vst [vmem:[#allocation2 + $0x8] sm:$0xff] %v3216_v39  ;;  %3226 = vst [vmem:[#allocation2 + $0x18] sm:$0xff] %v3218_v40  ;;  %v3220_v47 = vadd.f32 %v2954_v45, %v320_v37  ;;  %v3222_v48 = vadd.f32 %v3212_v46, %v322_v38 }
 0x2c1   : > { %3227 = vst [vmem:[#allocation2 + $0x20] sm:$0xff] %v3219_v43  ;;  %3229 = vst [vmem:[#allocation2 + $0x30] sm:$0xff] %v3221_v44 }
 0x2c2   : > { %3228 = vst [vmem:[#allocation2 + $0x28] sm:$0xff] %v3220_v47  ;;  %3230 = vst [vmem:[#allocation2 + $0x38] sm:$0xff] %v3222_v48 }
 0x2c6   : > { %v3235_v52 = vld [vmem:[#allocation2] sm:$0xff]  ;;  %v3237_v58 = vld [vmem:[#allocation2 + $0x10] sm:$0xff] }
 0x2c7   : > { %v3236_v53 = vld [vmem:[#allocation2 + $0x8] sm:$0xff]  ;;  %v3238_v59 = vld [vmem:[#allocation2 + $0x18] sm:$0xff]  ;;  %v3265_v4 = vadd.f32 %v3248_v61, %v3235_v52  ;;  %v3267_v6 = vadd.f32 %v3256_v63, %v3237_v58 }
 0x2c8   : > { %v3239_v60 = vld [vmem:[#allocation2 + $0x20] sm:$0xff]  ;;  %v3241_v2 = vld [vmem:[#allocation2 + $0x30] sm:$0xff]  ;;  %v3266_v5 = vadd.f32 %v3252_v62, %v3236_v53  ;;  %v3268_v7 = vadd.f32 %v3260_v0, %v3238_v59 }
 0x2c9   : > { %v3240_v1 = vld [vmem:[#allocation2 + $0x28] sm:$0xff]  ;;  %v3242_v3 = vld [vmem:[#allocation2 + $0x38] sm:$0xff]  ;;  %v3269_v8 = vadd.f32 %v3248_v61, %v3239_v60  ;;  %v3271_v10 = vadd.f32 %v3256_v63, %v3241_v2  ;;  %v3273_v12 = vmax.f32 %v3265_v4, 0.0  ;;  %v3275_v14 = vmax.f32 %v3267_v6, 0.0 }
 0x2ca   : > { %v3270_v9 = vadd.f32 %v3252_v62, %v3240_v1  ;;  %v3272_v11 = vadd.f32 %v3260_v0, %v3242_v3  ;;  %v3274_v13 = vmax.f32 %v3266_v5, 0.0  ;;  %v3276_v15 = vmax.f32 %v3268_v7, 0.0 }
 0x2cb   : > { %v3277_v16 = vmax.f32 %v3269_v8, 0.0  ;;  %v3279_v18 = vmax.f32 %v3271_v10, 0.0 }
 0x2cc   : > { %v3278_v17 = vmax.f32 %v3270_v9, 0.0  ;;  %v3280_v19 = vmax.f32 %v3272_v11, 0.0  ;;  %v3877_v20 = vpack.c.bf16 %v3274_v13, %v3273_v12  ;;  %v3878_v21 = vpack.c.bf16 %v3276_v15, %v3275_v14 }
 0x2ce   : > { %v3879_v22 = vpack.c.bf16 %v3278_v17, %v3277_v16  ;;  %v3880_v23 = vpack.c.bf16 %v3280_v19, %v3279_v18  ;;  %3305 = vst [vmem:[%s4950_s27] sm:$0xff] %v3877_v20  ;;  %3306 = vst [vmem:[%s4950_s27 + $0x8] sm:$0xff] %v3878_v21 }
 0x2d0   : > { %3307 = vst [vmem:[%s4950_s27 + $0x10] sm:$0xff] %v3879_v22  ;;  %3308 = vst [vmem:[%s4950_s27 + $0x18] sm:$0xff] %v3880_v23 }
 0x2d1 PF: > { %p5422_p11 = scmp.ne.s32.totalorder %s5420_s14, 0 }
 0x2d2   : > { %s3881_s19 = sshll.u32 (%p5422_p11), %s4736_s20, 4 }
 0x2d3   : > { %3315 = sbr.rel (!%p5422_p11) target bundleno = 730 (0x2da), region = 71  ;;  %s3321_s5 = scalar_lea.vmem (%p5422_p11), %s5408_s3, %s3881_s19 }
 0x2d5   : > { %v3334_v24 = vld [vmem:[%s4950_s27] sm:$0xff] (%p5422_p11)  ;;  %v3336_v25 = vld [vmem:[%s4950_s27 + $0x8] sm:$0xff] (%p5422_p11) }
 0x2d6   : > { %3335 = vst [vmem:[%s3321_s5] sm:$0xff] (%p5422_p11), %v3334_v24  ;;  %3337 = vst [vmem:[%s3321_s5 + $0x8] sm:$0xff] (%p5422_p11), %v3336_v25 }
 0x2d7   : > { %v3338_v26 = vld [vmem:[%s4950_s27 + $0x10] sm:$0xff] (%p5422_p11)  ;;  %v3340_v27 = vld [vmem:[%s4950_s27 + $0x18] sm:$0xff] (%p5422_p11) }
 0x2d8   : > { %3339 = vst [vmem:[%s3321_s5 + $0x80] sm:$0xff] (%p5422_p11), %v3338_v26  ;;  %3341 = vst [vmem:[%s3321_s5 + $0x88] sm:$0xff] (%p5422_p11), %v3340_v27 }
 0x2da PF: > { %s16_s23 = sadd.s32 1, %s4748_s23   ;;  %s5423_s20 = sld [smem:[#allocation11_spill]] }
 0x2db   : > { %p13_p13 = scmp.ge.s32.totalorder %s16_s23, 50   ;;  %s5424_s6 = sld [smem:[#allocation8_spill]] }
 0x2dc   : > { %s5425_s25 = sld [smem:[#allocation9_spill]]  ;;  %s5426_s22 = sld [smem:[#allocation10_spill]] }
 0x2dd   : > { %s5427_s12 = smov %s4708_s13  ;;  %s5428_s13 = smov %s4878_s11 }
 0x2de   : > { %s5429_s14 = smov %s4716_s15  ;;  %s5430_s15 = smov %s4720_s16 }
 0x2df   : > { %s5431_s16 = smov %s4870_s8  ;;  %s5432_s17 = smov %s4728_s18 }
 0x2e0   : > { %s5433_s18 = smov %s5423_s20  ;;  %s5434_s19 = smov %s4740_s21 }
 0x2e1   : > { %s5435_s20 = smov %s5424_s6  ;;  %15 = sbr.rel (!%p13_p13) target bundleno = 9 (0x9), region = 137 }
 0x2e2   : > { %s5436_s21 = smov %s5425_s25 }
 0x2e8   :  { %3357 = vsyncpa [#allocation5], 1 }
 0x2e9   :  { %3359 = vsyncpa [#allocation5 + $0x1], 1 }

// kernel: my_alexnet_forward.14
= control target key start
LH: loop header
LB: loop body
LE: loop exit
PB: predicated region body
PF: predicated region fallthrough
CT: control target
= control target key end

     0   :  { %s6907_s0 = inlined_call_operand.vmem [shape: bf16[16,4096], index: 0, kind: input, shape index: {}]   ;;  %s6908_s1 = inlined_call_operand.hbm [shape: bf16[4096,4096], index: 1, kind: input, shape index: {}]   ;;  %s6909_s2 = inlined_call_operand.vmem [shape: f32[1,4096], index: 2, kind: input, shape index: {}]   ;;  %s6910_s3 = inlined_call_operand.vmem [shape: bf16[16,4096], index: 3, kind: output, shape index: {}]  }
   0x1   :  { %6914 = sst [smem:[#allocation12_spill]] %s6907_s0 }
   0x2   :  { %8 = vsyncpa [#allocation5], 0 }
   0x3   :  { %10 = vsyncpa [#allocation5 + $0x1], 0  ;;  %s6071_s12 = smov 0   ;;  %s6073_s13 = smov 0  }
   0x4   :  { %s6075_s14 = smov 0   ;;  %s6077_s15 = smov 0  }
   0x5   :  { %s6079_s16 = smov 0   ;;  %s6081_s17 = smov 0  }
   0x6   :  { %s6083_s18 = smov 0   ;;  %s6085_s19 = smov 0  }
   0x7   :  { %s6087_s20 = smov 0   ;;  %s6089_s21 = smov 0  }
   0x8   :  { %s6091_s22 = smov 0   ;;  %s6093_s23 = smov 0  }
   0x9 LB: > { %6915 = sst [smem:[#allocation8_spill]] %s6040_s22  ;;  %s4429_s24 = sadd.s32 4294967295, %s6044_s23   ;;  %s6044_s23 = sphi %s6093_s23, %s16_s23   ;;  %s6040_s22 = sphi %s6091_s22, %s6928_s22   ;;  %s6036_s21 = sphi %s6089_s21, %s6938_s21   ;;  %s6032_s20 = sphi %s6087_s20, %s6937_s20   ;;  %s6028_s19 = sphi %s6085_s19, %s6936_s19   ;;  %s6024_s18 = sphi %s6083_s18, %s6935_s18   ;;  %s6020_s17 = sphi %s6081_s17, %s6934_s17   ;;  %s6016_s16 = sphi %s6079_s16, %s6933_s16   ;;  %s6012_s15 = sphi %s6077_s15, %s6932_s15   ;;  %s6008_s14 = sphi %s6075_s14, %s6931_s14   ;;  %s6004_s13 = sphi %s6073_s13, %s6930_s13   ;;  %s6000_s12 = sphi %s6071_s12, %s6929_s12  }
   0xa   : > { %s28_s25 = sadd.s32 1, %s6036_s21  ;;  %s31_s26 = sadd.s32 1, %s6040_s22 }
   0xb   : > { %p29_p0 = scmp.ge.s32.totalorder %s28_s25, 2  ;;  %s44_s27 = sadd.s32 1, %s6024_s18 }
   0xc   : > { %p51_p1 = scmp.ne.s32.totalorder %s6024_s18, %s6020_s17  ;;  %p52_p2 = scmp.eq.s32.totalorder %s6044_s23, 0 }
   0xd   : > { %s6940_s25 = smov (%p29_p0, %s28_s25), 0  ;;  %s6942_s26 = smov (!%p29_p0, %s31_s26), %s6040_s22 }
   0xe   : > { %6916 = sst [smem:[#allocation9_spill]] %s6940_s25  ;;  %s40_s28 = ssub.s32 %s6036_s21, %s6940_s25 }
   0xf   : > { %p33_p3 = scmp.ge.s32.totalorder %s6942_s26, 8  ;;  %p42_p4 = scmp.eq.s32.totalorder %s40_s28, 0 }
  0x10   : > { %p6143_p5 = por %p52_p2, %p51_p1  ;;  %s72_s30 = sadd.s32 1, %s6016_s16 }
  0x11   : > { %s6944_s26 = smov (%p33_p3, %s6942_s26), 0  ;;  %p79_p6 = scmp.ne.s32.totalorder %s6016_s16, %s6012_s15 }
  0x12   : > { %6918 = sst [smem:[#allocation10_spill]] %s6944_s26  ;;  %s68_s5 = ssub.s32 %s6040_s22, %s6944_s26 }
  0x13   : > { %s6151_s4 = scalar_select %p42_p4, %s6024_s18, %s44_s27  }
  0x14   : > { %s69_s6 = sor.u32 %s68_s5, %s40_s28  ;;  %p85_p7 = scmp.ne.s32.totalorder %s6012_s15, %s6008_s14 }
  0x15   : > { %6919 = sst [smem:[#allocation11_spill]] %s6151_s4  ;;  %p70_p8 = scmp.eq.s32.totalorder %s69_s6, 0 }
  0x16   : > { %p6159_p9 = por %p79_p6, %p52_p2  ;;  %p86_p10 = scmp.eq.s32.totalorder %s4429_s24, 0 }
  0x17   : > { %p124_p11 = scmp.eq.s32.totalorder %s68_s5, 0  ;;  %s126_s10 = sadd.s32 1, %s6004_s13 }
  0x18   : > { %s6166_s8 = scalar_select %p70_p8, %s6016_s16, %s72_s30  }
  0x19   : > { %p6168_p12 = por %p86_p10, %p85_p7  ;;  %p136_p13 = scmp.ne.s32.totalorder %s6004_s13, %s6000_s12 }
  0x1a   : > { %s6174_s11 = scalar_select %p124_p11, %s6004_s13, %s126_s10  }
  0x1b   : > { %p137_p0 = scmp.eq.s32.totalorder %s4429_s24, 15  ;;  %p4432_p2 = scmp.ge.s32.totalorder %s6044_s23, 16 }
  0x1d   : > { %p6180_p1 = por %p137_p0, %p136_p13  ;;  %159 = sbr.rel (%p4432_p2) target bundleno = 83 (0x53), region = 16 }
  0x1f   : > { %s6922_s14 = scalar_select %p6180_p1, 1, 0 }
  0x24   : > { %162 = sbr.rel (!%p6143_p5) target bundleno = 54 (0x36), region = 20  ;;  %s164_s27 = sand.u32 (%p6143_p5), 1, %s6024_s18  }
  0x25   : > { %s4985_s28 = sshll.u32 (%p6143_p5), %s6036_s21, 6  ;;  %s4433_s30 = sshll.u32 (%p6143_p5), %s164_s27, 7 }
  0x26   : > { %s6923_s0 = sld [smem:[#allocation12_spill]] (%p6143_p5)  ;;  %s166_s24 = scalar_lea.vmem (%p6143_p5), [#allocation3], %s4433_s30 }
  0x2c   : > { %s6192_s10 = scalar_lea.vmem %s6923_s0, %s4985_s28 }
  0x2d   : > { %v185_v0 = vld [vmem:[%s6192_s10] sm:$0xff]  ;;  %v187_v1 = vld [vmem:[%s6192_s10 + $0x8] sm:$0xff]  ;;  %v189_v2 = vld [vmem:[%s6192_s10 + $0x10] sm:$0xff] }
  0x2e   : > { %186 = vst [vmem:[%s166_s24] sm:$0xff] %v185_v0  ;;  %188 = vst [vmem:[%s166_s24 + $0x8] sm:$0xff] %v187_v1  ;;  %v191_v3 = vld [vmem:[%s6192_s10 + $0x18] sm:$0xff]  ;;  %v193_v4 = vld [vmem:[%s6192_s10 + $0x20] sm:$0xff] }
  0x2f   : > { %190 = vst [vmem:[%s166_s24 + $0x10] sm:$0xff] %v189_v2  ;;  %v195_v5 = vld [vmem:[%s6192_s10 + $0x28] sm:$0xff]  ;;  %192 = vst [vmem:[%s166_s24 + $0x18] sm:$0xff] %v191_v3  ;;  %v197_v6 = vld [vmem:[%s6192_s10 + $0x30] sm:$0xff] }
  0x30   : > { %194 = vst [vmem:[%s166_s24 + $0x20] sm:$0xff] %v193_v4  ;;  %196 = vst [vmem:[%s166_s24 + $0x28] sm:$0xff] %v195_v5  ;;  %v199_v7 = vld [vmem:[%s6192_s10 + $0x38] sm:$0xff]  ;;  %v201_v8 = vld [vmem:[%s6192_s10 + $0x80] sm:$0xff] }
  0x31   : > { %198 = vst [vmem:[%s166_s24 + $0x30] sm:$0xff] %v197_v6  ;;  %200 = vst [vmem:[%s166_s24 + $0x38] sm:$0xff] %v199_v7  ;;  %v203_v9 = vld [vmem:[%s6192_s10 + $0x88] sm:$0xff]  ;;  %v205_v10 = vld [vmem:[%s6192_s10 + $0x90] sm:$0xff] }
  0x32   : > { %202 = vst [vmem:[%s166_s24 + $0x40] sm:$0xff] %v201_v8  ;;  %v207_v11 = vld [vmem:[%s6192_s10 + $0x98] sm:$0xff]  ;;  %204 = vst [vmem:[%s166_s24 + $0x48] sm:$0xff] %v203_v9  ;;  %v209_v12 = vld [vmem:[%s6192_s10 + $0xa0] sm:$0xff] }
  0x33   : > { %206 = vst [vmem:[%s166_s24 + $0x50] sm:$0xff] %v205_v10  ;;  %208 = vst [vmem:[%s166_s24 + $0x58] sm:$0xff] %v207_v11  ;;  %v211_v13 = vld [vmem:[%s6192_s10 + $0xa8] sm:$0xff]  ;;  %v213_v14 = vld [vmem:[%s6192_s10 + $0xb0] sm:$0xff] }
  0x34   : > { %210 = vst [vmem:[%s166_s24 + $0x60] sm:$0xff] %v209_v12  ;;  %212 = vst [vmem:[%s166_s24 + $0x68] sm:$0xff] %v211_v13  ;;  %v215_v15 = vld [vmem:[%s6192_s10 + $0xb8] sm:$0xff] }
  0x35   : > { %214 = vst [vmem:[%s166_s24 + $0x70] sm:$0xff] %v213_v14  ;;  %216 = vst [vmem:[%s166_s24 + $0x78] sm:$0xff] %v215_v15 }
  0x36 PF: > { %s223_s29 = sand.u32 1, %s6016_s16   ;;  %s4438_s27 = sshll.u32 %s6040_s22, 2 }
  0x37   : > { %s4436_s28 = sshll.u32 %s223_s29, 12  ;;  %s4986_s30 = sshll.u32 %s6036_s21, 13 }
  0x38   : > { %s234_s5 = sadd.s32 %s4986_s30, %s4438_s27  ;;  %s227_s6 = scalar_lea.vmem [#allocation4], %s4436_s28 }
  0x39   : > { %s237_s0 = sshll.u32 %s227_s6, 4  ;;  %s4440_s26 = sshll.u32 %s234_s5, 6  ;;  %s6213_s0 = int_to_ptr.vmem [resolvable:$true] %s237_s0 }
  0x3a   : > { %s6218_s10 = scalar_lea.hbm %s6908_s1, %s4440_s26  ;;  %s6220_s24 = scalar_lea.sflag [#allocation5], %s223_s29 }
  0x3b   : > { %s5918_s22 = scalar_lea.hbm %s6218_s10, 65536  ;;  %s5922_s30 = scalar_lea.hbm %s6908_s1, 1048576 }
  0x3c   : > { %p5919_p3 = scmp.ne.s32.totalorder %s6218_s10, %s5918_s22  ;;  %p5923_p6 = scmp.lt.u32.totalorder %s6218_s10, %s6908_s1 }
  0x3d   : > { %p5924_p7 = scmp.lt.u32.totalorder %s5922_s30, %s5918_s22  ;;  %p5926_p10 = scmp.lt.u32.totalorder %s5918_s22, %s6218_s10 }
  0x3e   : > { %p5920_p4 = pnand %p5919_p3, %p6159_p9 }
  0x3f   : > { %p5925_p8 = por %p5924_p7, %p5923_p6 }
  0x40   : > { %p5921_p5 = pneg %p5920_p4 }
  0x41   : > { %p5927_p11 = por %p5926_p10, %p5925_p8 }
  0x43   : > { %p5928_p13 = pnand %p5927_p11, %p5921_p5 }
  0x45   : > { %5931 = shalt.err (!%p5928_p13)
}
  0x46   : > { %s5932_s25 = scalar_lea.vmem %s6213_s0, 65536  ;;  %s6046_s26 = smov [#allocation4]  }
  0x47   : > { %p5933_p0 = scmp.ne.s32.totalorder %s6213_s0, %s5932_s25  ;;  %s5936_s4 = sshll.u32 %s6046_s26, 4  ;;  %s5937_s4 = int_to_ptr.vmem [resolvable:$false] %s5936_s4 }
  0x48   : > { %s5938_s29 = scalar_lea.vmem %s5937_s4, 131072  ;;  %p5939_p4 = scmp.lt.s32.totalorder %s6213_s0, %s5937_s4 }
  0x49   : > { %p5934_p2 = pnand %p5933_p0, %p6159_p9  ;;  %p5940_p1 = scmp.lt.s32.totalorder %s5938_s29, %s5932_s25 }
  0x4b   : > { %p5935_p3 = pneg %p5934_p2  ;;  %p5941_p6 = por %p5940_p1, %p5939_p4 }
  0x4d   : > { %p5942_p7 = pnand %p5941_p6, %p5935_p3 }
  0x4f   : > { %5945 = shalt.err (!%p5942_p7)
}
  0x50   : > { %s6047_s22 = smov 2048   ;;  %s6048_s27 = smov 256  }
  0x51   : > { %s6049_s28 = smov 16  }
  0x52   : > { %5048 = dma.hbm_to_vmem [thread:$0]  (%p6159_p9), %s6218_s10, 65536, %s6213_s0, %s6220_s24, %s6047_s22, %s6048_s27, %s6049_s28  }
  0x53 PF: > { %p4441_p5 = scmp.ge.s32.totalorder %s6044_s23, 1  ;;  %p253_p8 = scmp.lt.s32.totalorder %s6044_s23, 17 }
  0x55   : > { %p254_p10 = pnand %p4441_p5, %p253_p8 }
  0x56   : > { %s260_s30 = sand.u32 (!%p254_p10), 1, %s6020_s17   ;;  %s266_s5 = sand.u32 (!%p254_p10), 1, %s6012_s15  }
  0x57   : > { %257 = sbr.rel (%p254_p10) target bundleno = 860 (0x35c), region = 51  ;;  %s4442_s6 = sshll.u32 (!%p254_p10), %s260_s30, 7 }
  0x58   : > { %s4443_s25 = sshll.u32 (!%p254_p10), %s266_s5, 12  ;;  %s6248_s26 = scalar_lea.vmem (!%p254_p10), [#allocation3], %s4442_s6 }
  0x59   : > { %s267_s4 = scalar_lea.sflag (!%p254_p10), [#allocation5], %s266_s5  ;;  %s6250_s29 = scalar_lea.vmem (!%p254_p10), [#allocation4], %s4443_s25 }
  0x5e   : > { %5995 = dma.done.wait (%p6168_p12), %s267_s4, 65536  }
  0x5f   : > { %5997 = vsyncadd (%p6168_p12), %s267_s4, 4294901760  ;;  %s297_s0 = sand.u32 1, %s6000_s12   ;;  %s4445_s7 = sshll.u32 %s6032_s20, 2 }
  0x60   : > { %s4444_s10 = sshll.u32 %s297_s0, 5  ;;  %p305_p9 = scmp.lt.s32.totalorder %s4445_s7, 31 }
  0x61   : > { %s6264_s27 = scalar_lea.vmem [#allocation6], %s4444_s10  ;;  %p4446_p1 = scmp.ne.s32.totalorder %s6028_s19, 0 }
  0x62   : > { %s6946_s7 = smov (!%p305_p9, %s4445_s7), 31  ;;  %v6050_v16 = vmov (!%p4446_p1), 0.0  }
  0x63   : > { %s307_s22 = scalar_lea.vmem %s6909_s2, %s6946_s7  ;;  %314 = sbr.rel (%p4446_p1) target bundleno = 106 (0x6a), region = 63  ;;  %315 = vst [vmem:[#allocation2] sm:$0xff] (!%p4446_p1), %v6050_v16  ;;  %316 = vst [vmem:[#allocation2 + $0x8] sm:$0xff] (!%p4446_p1), %v6050_v16 }
  0x64   : > { %317 = vst [vmem:[#allocation2 + $0x10] sm:$0xff] (!%p4446_p1), %v6050_v16  ;;  %318 = vst [vmem:[#allocation2 + $0x18] sm:$0xff] (!%p4446_p1), %v6050_v16 }
  0x65   : > { %319 = vst [vmem:[#allocation2 + $0x20] sm:$0xff] (!%p4446_p1), %v6050_v16  ;;  %320 = vst [vmem:[#allocation2 + $0x28] sm:$0xff] (!%p4446_p1), %v6050_v16 }
  0x66   : > { %321 = vst [vmem:[#allocation2 + $0x30] sm:$0xff] (!%p4446_p1), %v6050_v16  ;;  %322 = vst [vmem:[#allocation2 + $0x38] sm:$0xff] (!%p4446_p1), %v6050_v16 }
  0x6a PF: > { %v5150_v17 = vld [vmem:[%s6250_s29 + $0x4] ss:$16 sps:$4 sm:$0xff]   ;;  %v5152_v18 = vld [vmem:[%s6250_s29 + $0xc] ss:$16 sps:$4 sm:$0xff]   ;;  %v5154_v19 = vld [vmem:[%s6250_s29] ss:$16 sps:$4 sm:$0xff]  }
  0x6b   : > { %3499 = vmatprep.subr.bf16.mxu0 %v5150_v17  ;;  %v5155_v20 = vld [vmem:[%s6250_s29 + $0x8] ss:$16 sps:$4 sm:$0xff]   ;;  %3843 = vmatprep.subr.bf16.mxu1 %v5152_v18  ;;  %v5156_v21 = vld [vmem:[%s6250_s29 + $0x24] ss:$16 sps:$4 sm:$0xff]   ;;  %v5158_v22 = vld [vmem:[%s6250_s29 + $0x2c] ss:$16 sps:$4 sm:$0xff]  }
  0x6c   : > { %3500 = vmatpush1.bf16.msra.mxu0 %v5154_v19  ;;  %3844 = vmatpush1.bf16.msra.mxu1 %v5155_v20  ;;  %v5160_v23 = vld [vmem:[%s6250_s29 + $0x20] ss:$16 sps:$4 sm:$0xff]   ;;  %v5161_v24 = vld [vmem:[%s6250_s29 + $0x28] ss:$16 sps:$4 sm:$0xff]   ;;  %v5162_v25 = vld [vmem:[%s6250_s29 + $0x44] ss:$16 sps:$4 sm:$0xff]  }
  0x6d   : > { %3501 = vmatprep.subr.bf16.mxu0 %v5156_v21  ;;  %3845 = vmatprep.subr.bf16.mxu1 %v5158_v22  ;;  %v5164_v26 = vld [vmem:[%s6250_s29 + $0x4c] ss:$16 sps:$4 sm:$0xff]   ;;  %v5166_v27 = vld [vmem:[%s6250_s29 + $0x40] ss:$16 sps:$4 sm:$0xff]   ;;  %v5167_v28 = vld [vmem:[%s6250_s29 + $0x48] ss:$16 sps:$4 sm:$0xff]  }
  0x6e   : > { %v5168_v29 = vld [vmem:[%s6250_s29 + $0x64] ss:$16 sps:$4 sm:$0xff]   ;;  %v5170_v30 = vld [vmem:[%s6250_s29 + $0x6c] ss:$16 sps:$4 sm:$0xff]   ;;  %v5172_v31 = vld [vmem:[%s6250_s29 + $0x60] ss:$16 sps:$4 sm:$0xff]  }
  0x6f   : > { %v5173_v32 = vld [vmem:[%s6250_s29 + $0x68] ss:$16 sps:$4 sm:$0xff]   ;;  %v5174_v33 = vld [vmem:[%s6250_s29 + $0x84] ss:$16 sps:$4 sm:$0xff]   ;;  %v5176_v34 = vld [vmem:[%s6250_s29 + $0x8c] ss:$16 sps:$4 sm:$0xff]  }
  0x70   : > { %3502 = vmatpush1.bf16.msra.mxu0 %v5160_v23  ;;  %3846 = vmatpush1.bf16.msra.mxu1 %v5161_v24  ;;  %v5178_v35 = vld [vmem:[%s6250_s29 + $0x80] ss:$16 sps:$4 sm:$0xff]   ;;  %v5179_v36 = vld [vmem:[%s6250_s29 + $0x88] ss:$16 sps:$4 sm:$0xff]   ;;  %v5180_v37 = vld [vmem:[%s6250_s29 + $0xa4] ss:$16 sps:$4 sm:$0xff]  }
  0x71   : > { %3503 = vmatprep.subr.bf16.mxu0 %v5162_v25  ;;  %3847 = vmatprep.subr.bf16.mxu1 %v5164_v26  ;;  %v5182_v38 = vld [vmem:[%s6250_s29 + $0xac] ss:$16 sps:$4 sm:$0xff]   ;;  %v5184_v39 = vld [vmem:[%s6250_s29 + $0xa0] ss:$16 sps:$4 sm:$0xff]   ;;  %v5185_v40 = vld [vmem:[%s6250_s29 + $0xa8] ss:$16 sps:$4 sm:$0xff]  }
  0x72   : > { %v5186_v41 = vld [vmem:[%s6250_s29 + $0xc4] ss:$16 sps:$4 sm:$0xff]   ;;  %v5188_v42 = vld [vmem:[%s6250_s29 + $0xcc] ss:$16 sps:$4 sm:$0xff]   ;;  %v5190_v43 = vld [vmem:[%s6250_s29 + $0xc0] ss:$16 sps:$4 sm:$0xff]  }
  0x73   : > { %v5191_v44 = vld [vmem:[%s6250_s29 + $0xc8] ss:$16 sps:$4 sm:$0xff]   ;;  %v5192_v45 = vld [vmem:[%s6250_s29 + $0xe4] ss:$16 sps:$4 sm:$0xff]   ;;  %v5194_v46 = vld [vmem:[%s6250_s29 + $0xec] ss:$16 sps:$4 sm:$0xff]  }
  0x74   : > { %3504 = vmatpush1.bf16.msra.mxu0 %v5166_v27  ;;  %3848 = vmatpush1.bf16.msra.mxu1 %v5167_v28  ;;  %v5196_v47 = vld [vmem:[%s6250_s29 + $0xe0] ss:$16 sps:$4 sm:$0xff]   ;;  %v5197_v48 = vld [vmem:[%s6250_s29 + $0xe8] ss:$16 sps:$4 sm:$0xff]   ;;  %v5198_v49 = vld [vmem:[%s6250_s29 + $0x104] ss:$16 sps:$4 sm:$0xff]  }
  0x75   : > { %3505 = vmatprep.subr.bf16.mxu0 %v5168_v29  ;;  %3849 = vmatprep.subr.bf16.mxu1 %v5170_v30  ;;  %v5200_v50 = vld [vmem:[%s6250_s29 + $0x10c] ss:$16 sps:$4 sm:$0xff]   ;;  %v5202_v51 = vld [vmem:[%s6250_s29 + $0x100] ss:$16 sps:$4 sm:$0xff]   ;;  %v5203_v52 = vld [vmem:[%s6250_s29 + $0x108] ss:$16 sps:$4 sm:$0xff]  }
  0x76   : > { %v5204_v53 = vld [vmem:[%s6250_s29 + $0x124] ss:$16 sps:$4 sm:$0xff]   ;;  %v5206_v54 = vld [vmem:[%s6250_s29 + $0x12c] ss:$16 sps:$4 sm:$0xff]   ;;  %v5208_v55 = vld [vmem:[%s6250_s29 + $0x120] ss:$16 sps:$4 sm:$0xff]  }
  0x77   : > { %v5209_v56 = vld [vmem:[%s6250_s29 + $0x128] ss:$16 sps:$4 sm:$0xff]   ;;  %v5210_v57 = vld [vmem:[%s6250_s29 + $0x144] ss:$16 sps:$4 sm:$0xff]   ;;  %v5212_v58 = vld [vmem:[%s6250_s29 + $0x14c] ss:$16 sps:$4 sm:$0xff]  }
  0x78   : > { %3506 = vmatpush1.bf16.msra.mxu0 %v5172_v31  ;;  %3850 = vmatpush1.bf16.msra.mxu1 %v5173_v32  ;;  %v5214_v59 = vld [vmem:[%s6250_s29 + $0x140] ss:$16 sps:$4 sm:$0xff]   ;;  %v5215_v60 = vld [vmem:[%s6250_s29 + $0x148] ss:$16 sps:$4 sm:$0xff]   ;;  %v5216_v61 = vld [vmem:[%s6250_s29 + $0x164] ss:$16 sps:$4 sm:$0xff]  }
  0x79   : > { %3507 = vmatprep.subr.bf16.mxu0 %v5174_v33  ;;  %3851 = vmatprep.subr.bf16.mxu1 %v5176_v34  ;;  %v5218_v62 = vld [vmem:[%s6250_s29 + $0x16c] ss:$16 sps:$4 sm:$0xff]   ;;  %v331_v63 = vld [vmem:[%s6248_s26] sm:$0xff]  ;;  %v5221_v2 = vld [vmem:[%s6250_s29 + $0x168] ss:$16 sps:$4 sm:$0xff]   ;;  %p4975_p12 = scmp.ne.s32.totalorder %s6028_s19, 1 }
  0x7a   : > { %v339_v0 = vld [vmem:[%s6248_s26 + $0x40] sm:$0xff]  ;;  %v5224_v5 = vld [vmem:[%s6250_s29 + $0x18c] ss:$16 sps:$4 sm:$0xff]   ;;  %v5227_v7 = vld [vmem:[%s6250_s29 + $0x188] ss:$16 sps:$4 sm:$0xff]  }
  0x7b   : > { %v5220_v1 = vld [vmem:[%s6250_s29 + $0x160] ss:$16 sps:$4 sm:$0xff]   ;;  %v4448_v3 = vcombine.high %v331_v63, %v339_v0  ;;  %v5222_v4 = vld [vmem:[%s6250_s29 + $0x184] ss:$16 sps:$4 sm:$0xff]   ;;  %v5230_v9 = vld [vmem:[%s6250_s29 + $0x1ac] ss:$16 sps:$4 sm:$0xff]   ;;  %v4447_v22 = vcombine.low %v331_v63, %v339_v0 }
  0x7c   : > { %3508 = vmatpush1.bf16.msra.mxu0 %v5178_v35  ;;  %3852 = vmatpush1.bf16.msra.mxu1 %v5179_v36  ;;  %v5226_v6 = vld [vmem:[%s6250_s29 + $0x180] ss:$16 sps:$4 sm:$0xff]   ;;  %v5228_v8 = vld [vmem:[%s6250_s29 + $0x1a4] ss:$16 sps:$4 sm:$0xff]   ;;  %v5233_v11 = vld [vmem:[%s6250_s29 + $0x1a8] ss:$16 sps:$4 sm:$0xff]  }
  0x7d   : > { %3509 = vmatprep.subr.bf16.mxu0 %v5180_v37  ;;  %3853 = vmatprep.subr.bf16.mxu1 %v5182_v38  ;;  %v5232_v10 = vld [vmem:[%s6250_s29 + $0x1a0] ss:$16 sps:$4 sm:$0xff]   ;;  %v5234_v12 = vld [vmem:[%s6250_s29 + $0x1c4] ss:$16 sps:$4 sm:$0xff]   ;;  %v5236_v13 = vld [vmem:[%s6250_s29 + $0x1cc] ss:$16 sps:$4 sm:$0xff]  }
  0x7e   : > { %3531 = vmatprep.mubr.bf16.mxu0 %v4448_v3  ;;  %3875 = vmatprep.mubr.bf16.mxu1 %v4448_v3  ;;  %v5238_v14 = vld [vmem:[%s6250_s29 + $0x1c0] ss:$16 sps:$4 sm:$0xff]   ;;  %v5239_v15 = vld [vmem:[%s6250_s29 + $0x1c8] ss:$16 sps:$4 sm:$0xff]   ;;  %v5240_v16 = vld [vmem:[%s6250_s29 + $0x1e4] ss:$16 sps:$4 sm:$0xff]  }
  0x7f   : > { %v5242_v17 = vld [vmem:[%s6250_s29 + $0x1ec] ss:$16 sps:$4 sm:$0xff]   ;;  %v5244_v18 = vld [vmem:[%s6250_s29 + $0x1e0] ss:$16 sps:$4 sm:$0xff]   ;;  %v5245_v19 = vld [vmem:[%s6250_s29 + $0x1e8] ss:$16 sps:$4 sm:$0xff]  }
  0x80   : > { %3510 = vmatpush1.bf16.msra.mxu0 %v5184_v39  ;;  %3854 = vmatpush1.bf16.msra.mxu1 %v5185_v40  ;;  %v5248_v20 = vld [vmem:[%s6250_s29 + $0x204] ss:$16 sps:$4 sm:$0xff]   ;;  %v5251_v21 = vld [vmem:[%s6250_s29 + $0x20c] ss:$16 sps:$4 sm:$0xff]   ;;  %v5246_v23 = vld [vmem:[%s6250_s29 + $0x200] ss:$16 sps:$4 sm:$0xff]  }
  0x81   : > { %3511 = vmatprep.subr.bf16.mxu0 %v5186_v41  ;;  %3855 = vmatprep.subr.bf16.mxu1 %v5188_v42  ;;  %v5249_v24 = vld [vmem:[%s6250_s29 + $0x208] ss:$16 sps:$4 sm:$0xff]   ;;  %v5254_v25 = vld [vmem:[%s6250_s29 + $0x224] ss:$16 sps:$4 sm:$0xff]   ;;  %v5257_v26 = vld [vmem:[%s6250_s29 + $0x22c] ss:$16 sps:$4 sm:$0xff]  }
  0x82   : > { %v5252_v27 = vld [vmem:[%s6250_s29 + $0x220] ss:$16 sps:$4 sm:$0xff]   ;;  %v5255_v28 = vld [vmem:[%s6250_s29 + $0x228] ss:$16 sps:$4 sm:$0xff]   ;;  %v5260_v29 = vld [vmem:[%s6250_s29 + $0x244] ss:$16 sps:$4 sm:$0xff]  }
  0x83   : > { %v5263_v30 = vld [vmem:[%s6250_s29 + $0x24c] ss:$16 sps:$4 sm:$0xff]   ;;  %v5258_v31 = vld [vmem:[%s6250_s29 + $0x240] ss:$16 sps:$4 sm:$0xff]   ;;  %v5261_v32 = vld [vmem:[%s6250_s29 + $0x248] ss:$16 sps:$4 sm:$0xff]  }
  0x84   : > { %3512 = vmatpush1.bf16.msra.mxu0 %v5190_v43  ;;  %3856 = vmatpush1.bf16.msra.mxu1 %v5191_v44  ;;  %v5266_v33 = vld [vmem:[%s6250_s29 + $0x264] ss:$16 sps:$4 sm:$0xff]   ;;  %v5269_v34 = vld [vmem:[%s6250_s29 + $0x26c] ss:$16 sps:$4 sm:$0xff]   ;;  %v5264_v35 = vld [vmem:[%s6250_s29 + $0x260] ss:$16 sps:$4 sm:$0xff]  }
  0x85   : > { %3513 = vmatprep.subr.bf16.mxu0 %v5192_v45  ;;  %3857 = vmatprep.subr.bf16.mxu1 %v5194_v46  ;;  %v5267_v36 = vld [vmem:[%s6250_s29 + $0x268] ss:$16 sps:$4 sm:$0xff]   ;;  %v5272_v37 = vld [vmem:[%s6250_s29 + $0x284] ss:$16 sps:$4 sm:$0xff]   ;;  %v5275_v38 = vld [vmem:[%s6250_s29 + $0x28c] ss:$16 sps:$4 sm:$0xff]  }
  0x86   : > { %v5270_v39 = vld [vmem:[%s6250_s29 + $0x280] ss:$16 sps:$4 sm:$0xff]   ;;  %v5273_v40 = vld [vmem:[%s6250_s29 + $0x288] ss:$16 sps:$4 sm:$0xff]   ;;  %v5278_v41 = vld [vmem:[%s6250_s29 + $0x2a4] ss:$16 sps:$4 sm:$0xff]  }
  0x87   : > { %v5281_v42 = vld [vmem:[%s6250_s29 + $0x2ac] ss:$16 sps:$4 sm:$0xff]   ;;  %v5276_v43 = vld [vmem:[%s6250_s29 + $0x2a0] ss:$16 sps:$4 sm:$0xff]   ;;  %v5279_v44 = vld [vmem:[%s6250_s29 + $0x2a8] ss:$16 sps:$4 sm:$0xff]  }
  0x88   : > { %3514 = vmatpush1.bf16.msra.mxu0 %v5196_v47  ;;  %3858 = vmatpush1.bf16.msra.mxu1 %v5197_v48  ;;  %v5284_v45 = vld [vmem:[%s6250_s29 + $0x2c4] ss:$16 sps:$4 sm:$0xff]   ;;  %v5287_v46 = vld [vmem:[%s6250_s29 + $0x2cc] ss:$16 sps:$4 sm:$0xff]   ;;  %v5303_v63 = vld [vmem:[%s6250_s29 + $0x328] ss:$16 sps:$4 sm:$0xff]  }
  0x89   : > { %3515 = vmatprep.subr.bf16.mxu0 %v5198_v49  ;;  %3859 = vmatprep.subr.bf16.mxu1 %v5200_v50  ;;  %v6360_v47 = vld [vmem:[%s6248_s26 + $0x8] sm:$0xff]  ;;  %v5282_v49 = vld [vmem:[%s6250_s29 + $0x2c0] ss:$16 sps:$4 sm:$0xff]   ;;  %v5308_v0 = vld [vmem:[%s6250_s29 + $0x344] ss:$16 sps:$4 sm:$0xff]  }
  0x8a   : > { %v6363_v48 = vld [vmem:[%s6248_s26 + $0x48] sm:$0xff] }
  0x8b   : > { %v5285_v50 = vld [vmem:[%s6250_s29 + $0x2c8] ss:$16 sps:$4 sm:$0xff]  }
  0x8c   : > { %3516 = vmatpush1.bf16.msra.mxu0 %v5202_v51  ;;  %3860 = vmatpush1.bf16.msra.mxu1 %v5203_v52  ;;  %v4450_v51 = vcombine.high %v6360_v47, %v6363_v48  ;;  %v5290_v52 = vld [vmem:[%s6250_s29 + $0x2e4] ss:$16 sps:$4 sm:$0xff]   ;;  %v5309_v3 = vld [vmem:[%s6250_s29 + $0x348] ss:$16 sps:$4 sm:$0xff]  }
  0x8d   : > { %3517 = vmatprep.subr.bf16.mxu0 %v5204_v53  ;;  %3861 = vmatprep.subr.bf16.mxu1 %v5206_v54  ;;  %v5293_v53 = vld [vmem:[%s6250_s29 + $0x2ec] ss:$16 sps:$4 sm:$0xff]   ;;  %v5288_v54 = vld [vmem:[%s6250_s29 + $0x2e0] ss:$16 sps:$4 sm:$0xff]  }
  0x90   : > { %3518 = vmatpush1.bf16.msra.mxu0 %v5208_v55  ;;  %3862 = vmatpush1.bf16.msra.mxu1 %v5209_v56  ;;  %v5291_v55 = vld [vmem:[%s6250_s29 + $0x2e8] ss:$16 sps:$4 sm:$0xff]   ;;  %v5296_v56 = vld [vmem:[%s6250_s29 + $0x304] ss:$16 sps:$4 sm:$0xff]  }
  0x91   : > { %3519 = vmatprep.subr.bf16.mxu0 %v5210_v57  ;;  %3863 = vmatprep.subr.bf16.mxu1 %v5212_v58  ;;  %v5299_v57 = vld [vmem:[%s6250_s29 + $0x30c] ss:$16 sps:$4 sm:$0xff]   ;;  %v5294_v58 = vld [vmem:[%s6250_s29 + $0x300] ss:$16 sps:$4 sm:$0xff]  }
  0x94   : > { %3520 = vmatpush1.bf16.msra.mxu0 %v5214_v59  ;;  %3864 = vmatpush1.bf16.msra.mxu1 %v5215_v60  ;;  %v5297_v59 = vld [vmem:[%s6250_s29 + $0x308] ss:$16 sps:$4 sm:$0xff]   ;;  %v5302_v60 = vld [vmem:[%s6250_s29 + $0x324] ss:$16 sps:$4 sm:$0xff]  }
  0x95   : > { %3521 = vmatprep.subr.bf16.mxu0 %v5216_v61  ;;  %3865 = vmatprep.subr.bf16.mxu1 %v5218_v62  ;;  %v5305_v61 = vld [vmem:[%s6250_s29 + $0x32c] ss:$16 sps:$4 sm:$0xff]   ;;  %v5300_v62 = vld [vmem:[%s6250_s29 + $0x320] ss:$16 sps:$4 sm:$0xff]  }
  0x98   : > { %3522 = vmatpush1.bf16.msra.mxu0 %v5220_v1  ;;  %3866 = vmatpush1.bf16.msra.mxu1 %v5221_v2  ;;  %v5311_v1 = vld [vmem:[%s6250_s29 + $0x34c] ss:$16 sps:$4 sm:$0xff]   ;;  %v5306_v2 = vld [vmem:[%s6250_s29 + $0x340] ss:$16 sps:$4 sm:$0xff]  }
  0x99   : > { %3523 = vmatprep.subr.bf16.mxu0 %v5222_v4  ;;  %3867 = vmatprep.subr.bf16.mxu1 %v5224_v5  ;;  %v5314_v4 = vld [vmem:[%s6250_s29 + $0x364] ss:$16 sps:$4 sm:$0xff]   ;;  %v5317_v5 = vld [vmem:[%s6250_s29 + $0x36c] ss:$16 sps:$4 sm:$0xff]  }
  0x9c   : > { %3524 = vmatpush1.bf16.msra.mxu0 %v5226_v6  ;;  %3868 = vmatpush1.bf16.msra.mxu1 %v5227_v7  ;;  %v5312_v6 = vld [vmem:[%s6250_s29 + $0x360] ss:$16 sps:$4 sm:$0xff]   ;;  %v5315_v7 = vld [vmem:[%s6250_s29 + $0x368] ss:$16 sps:$4 sm:$0xff]  }
  0x9d   : > { %3525 = vmatprep.subr.bf16.mxu0 %v5228_v8  ;;  %3869 = vmatprep.subr.bf16.mxu1 %v5230_v9  ;;  %v5320_v8 = vld [vmem:[%s6250_s29 + $0x384] ss:$16 sps:$4 sm:$0xff]   ;;  %v5323_v9 = vld [vmem:[%s6250_s29 + $0x38c] ss:$16 sps:$4 sm:$0xff]  }
  0xa0   : > { %3526 = vmatpush1.bf16.msra.mxu0 %v5232_v10  ;;  %3870 = vmatpush1.bf16.msra.mxu1 %v5233_v11  ;;  %v5318_v10 = vld [vmem:[%s6250_s29 + $0x380] ss:$16 sps:$4 sm:$0xff]   ;;  %v5321_v11 = vld [vmem:[%s6250_s29 + $0x388] ss:$16 sps:$4 sm:$0xff]  }
  0xa1   : > { %3527 = vmatprep.subr.bf16.mxu0 %v5234_v12  ;;  %3871 = vmatprep.subr.bf16.mxu1 %v5236_v13  ;;  %v5326_v12 = vld [vmem:[%s6250_s29 + $0x3a4] ss:$16 sps:$4 sm:$0xff]   ;;  %v5329_v13 = vld [vmem:[%s6250_s29 + $0x3ac] ss:$16 sps:$4 sm:$0xff]  }
  0xa4   : > { %3528 = vmatpush1.bf16.msra.mxu0 %v5238_v14  ;;  %3872 = vmatpush1.bf16.msra.mxu1 %v5239_v15  ;;  %v5324_v14 = vld [vmem:[%s6250_s29 + $0x3a0] ss:$16 sps:$4 sm:$0xff]   ;;  %v5327_v15 = vld [vmem:[%s6250_s29 + $0x3a8] ss:$16 sps:$4 sm:$0xff]  }
  0xa5   : > { %3529 = vmatprep.subr.bf16.mxu0 %v5240_v16  ;;  %3873 = vmatprep.subr.bf16.mxu1 %v5242_v17  ;;  %v5332_v16 = vld [vmem:[%s6250_s29 + $0x3c4] ss:$16 sps:$4 sm:$0xff]   ;;  %v5335_v17 = vld [vmem:[%s6250_s29 + $0x3cc] ss:$16 sps:$4 sm:$0xff]  }
  0xa8   : > { %3530 = vmatpush1.bf16.msra.mxu0 %v5244_v18  ;;  %3874 = vmatpush1.bf16.msra.mxu1 %v5245_v19  ;;  %v5330_v18 = vld [vmem:[%s6250_s29 + $0x3c0] ss:$16 sps:$4 sm:$0xff]   ;;  %v5333_v19 = vld [vmem:[%s6250_s29 + $0x3c8] ss:$16 sps:$4 sm:$0xff]  }
  0xa9   : > { %3542 = vmatprep.subr.bf16.mxu0 %v5248_v20  ;;  %3886 = vmatprep.subr.bf16.mxu1 %v5251_v21  ;;  %v5338_v20 = vld [vmem:[%s6250_s29 + $0x3e4] ss:$16 sps:$4 sm:$0xff]   ;;  %v5341_v21 = vld [vmem:[%s6250_s29 + $0x3ec] ss:$16 sps:$4 sm:$0xff]  }
  0xab   : > { %3532 = vmatmul.mubr.bf16.vlgmr.msra.gmra.mrb[0].mxu0 %v4447_v22  ;;  %3876 = vmatmul.mubr.bf16.vlgmr.msra.gmra.mrb[0].mxu1 %v4447_v22  ;;  %v5336_v22 = vld [vmem:[%s6250_s29 + $0x3e0] ss:$16 sps:$4 sm:$0xff]  }
  0xac   : > { %3543 = vmatpush1.bf16.msra.mxu0 %v5246_v23  ;;  %3887 = vmatpush1.bf16.msra.mxu1 %v5249_v24  ;;  %v5339_v23 = vld [vmem:[%s6250_s29 + $0x3e8] ss:$16 sps:$4 sm:$0xff]   ;;  %v5344_v24 = vld [vmem:[%s6250_s29 + $0x404] ss:$16 sps:$4 sm:$0xff]  }
  0xad   : > { %3544 = vmatprep.subr.bf16.mxu0 %v5254_v25  ;;  %3888 = vmatprep.subr.bf16.mxu1 %v5257_v26  ;;  %v5347_v25 = vld [vmem:[%s6250_s29 + $0x40c] ss:$16 sps:$4 sm:$0xff]   ;;  %v4449_v26 = vcombine.low %v6360_v47, %v6363_v48  ;;  %v5369_v47 = vld [vmem:[%s6250_s29 + $0x488] ss:$16 sps:$4 sm:$0xff]   ;;  %v5374_v48 = vld [vmem:[%s6250_s29 + $0x4a4] ss:$16 sps:$4 sm:$0xff]  }
  0xae   : > { %3574 = vmatprep.mubr.bf16.mxu0 %v4450_v51  ;;  %3918 = vmatprep.mubr.bf16.mxu1 %v4450_v51  ;;  %v5375_v51 = vld [vmem:[%s6250_s29 + $0x4a8] ss:$16 sps:$4 sm:$0xff]  }
  0xb0   : > { %3545 = vmatpush1.bf16.msra.mxu0 %v5252_v27  ;;  %3889 = vmatpush1.bf16.msra.mxu1 %v5255_v28  ;;  %v5342_v27 = vld [vmem:[%s6250_s29 + $0x400] ss:$16 sps:$4 sm:$0xff]   ;;  %v5345_v28 = vld [vmem:[%s6250_s29 + $0x408] ss:$16 sps:$4 sm:$0xff]  }
  0xb1   : > { %3546 = vmatprep.subr.bf16.mxu0 %v5260_v29  ;;  %3890 = vmatprep.subr.bf16.mxu1 %v5263_v30  ;;  %v5350_v29 = vld [vmem:[%s6250_s29 + $0x424] ss:$16 sps:$4 sm:$0xff]   ;;  %v5353_v30 = vld [vmem:[%s6250_s29 + $0x42c] ss:$16 sps:$4 sm:$0xff]  }
  0xb4   : > { %3547 = vmatpush1.bf16.msra.mxu0 %v5258_v31  ;;  %3891 = vmatpush1.bf16.msra.mxu1 %v5261_v32  ;;  %v6414_v31 = vld [vmem:[%s6248_s26 + $0x10] sm:$0xff] }
  0xb5   : > { %3548 = vmatprep.subr.bf16.mxu0 %v5266_v33  ;;  %3892 = vmatprep.subr.bf16.mxu1 %v5269_v34  ;;  %v6417_v32 = vld [vmem:[%s6248_s26 + $0x50] sm:$0xff] }
  0xb6   : > { %v4452_v33 = vcombine.high %v6414_v31, %v6417_v32  ;;  %v5348_v34 = vld [vmem:[%s6250_s29 + $0x420] ss:$16 sps:$4 sm:$0xff]  }
  0xb8   : > { %3549 = vmatpush1.bf16.msra.mxu0 %v5264_v35  ;;  %3893 = vmatpush1.bf16.msra.mxu1 %v5267_v36  ;;  %v5351_v35 = vld [vmem:[%s6250_s29 + $0x428] ss:$16 sps:$4 sm:$0xff]   ;;  %v5356_v36 = vld [vmem:[%s6250_s29 + $0x444] ss:$16 sps:$4 sm:$0xff]  }
  0xb9   : > { %3550 = vmatprep.subr.bf16.mxu0 %v5272_v37  ;;  %3894 = vmatprep.subr.bf16.mxu1 %v5275_v38  ;;  %v5359_v37 = vld [vmem:[%s6250_s29 + $0x44c] ss:$16 sps:$4 sm:$0xff]   ;;  %v5354_v38 = vld [vmem:[%s6250_s29 + $0x440] ss:$16 sps:$4 sm:$0xff]  }
  0xbc   : > { %3551 = vmatpush1.bf16.msra.mxu0 %v5270_v39  ;;  %3895 = vmatpush1.bf16.msra.mxu1 %v5273_v40  ;;  %v5357_v39 = vld [vmem:[%s6250_s29 + $0x448] ss:$16 sps:$4 sm:$0xff]   ;;  %v5362_v40 = vld [vmem:[%s6250_s29 + $0x464] ss:$16 sps:$4 sm:$0xff]  }
  0xbd   : > { %3552 = vmatprep.subr.bf16.mxu0 %v5278_v41  ;;  %3896 = vmatprep.subr.bf16.mxu1 %v5281_v42  ;;  %v5365_v41 = vld [vmem:[%s6250_s29 + $0x46c] ss:$16 sps:$4 sm:$0xff]   ;;  %v5360_v42 = vld [vmem:[%s6250_s29 + $0x460] ss:$16 sps:$4 sm:$0xff]  }
  0xc0   : > { %3553 = vmatpush1.bf16.msra.mxu0 %v5276_v43  ;;  %3897 = vmatpush1.bf16.msra.mxu1 %v5279_v44  ;;  %v5363_v43 = vld [vmem:[%s6250_s29 + $0x468] ss:$16 sps:$4 sm:$0xff]   ;;  %v5368_v44 = vld [vmem:[%s6250_s29 + $0x484] ss:$16 sps:$4 sm:$0xff]  }
  0xc1   : > { %3554 = vmatprep.subr.bf16.mxu0 %v5284_v45  ;;  %3898 = vmatprep.subr.bf16.mxu1 %v5287_v46  ;;  %v5371_v45 = vld [vmem:[%s6250_s29 + $0x48c] ss:$16 sps:$4 sm:$0xff]   ;;  %v5366_v46 = vld [vmem:[%s6250_s29 + $0x480] ss:$16 sps:$4 sm:$0xff]  }
  0xc4   : > { %3555 = vmatpush1.bf16.msra.mxu0 %v5282_v49  ;;  %3899 = vmatpush1.bf16.msra.mxu1 %v5285_v50  ;;  %v5377_v49 = vld [vmem:[%s6250_s29 + $0x4ac] ss:$16 sps:$4 sm:$0xff]   ;;  %v5372_v50 = vld [vmem:[%s6250_s29 + $0x4a0] ss:$16 sps:$4 sm:$0xff]  }
  0xc5   : > { %3556 = vmatprep.subr.bf16.mxu0 %v5290_v52  ;;  %3900 = vmatprep.subr.bf16.mxu1 %v5293_v53  ;;  %v5380_v52 = vld [vmem:[%s6250_s29 + $0x4c4] ss:$16 sps:$4 sm:$0xff]   ;;  %v5383_v53 = vld [vmem:[%s6250_s29 + $0x4cc] ss:$16 sps:$4 sm:$0xff]  }
  0xc8   : > { %3557 = vmatpush1.bf16.msra.mxu0 %v5288_v54  ;;  %3901 = vmatpush1.bf16.msra.mxu1 %v5291_v55  ;;  %v5378_v54 = vld [vmem:[%s6250_s29 + $0x4c0] ss:$16 sps:$4 sm:$0xff]   ;;  %v5381_v55 = vld [vmem:[%s6250_s29 + $0x4c8] ss:$16 sps:$4 sm:$0xff]  }
  0xc9   : > { %3558 = vmatprep.subr.bf16.mxu0 %v5296_v56  ;;  %3902 = vmatprep.subr.bf16.mxu1 %v5299_v57  ;;  %v5386_v56 = vld [vmem:[%s6250_s29 + $0x4e4] ss:$16 sps:$4 sm:$0xff]   ;;  %v5389_v57 = vld [vmem:[%s6250_s29 + $0x4ec] ss:$16 sps:$4 sm:$0xff]  }
  0xcc   : > { %3559 = vmatpush1.bf16.msra.mxu0 %v5294_v58  ;;  %3903 = vmatpush1.bf16.msra.mxu1 %v5297_v59  ;;  %v5384_v58 = vld [vmem:[%s6250_s29 + $0x4e0] ss:$16 sps:$4 sm:$0xff]   ;;  %v5387_v59 = vld [vmem:[%s6250_s29 + $0x4e8] ss:$16 sps:$4 sm:$0xff]  }
  0xcd   : > { %3560 = vmatprep.subr.bf16.mxu0 %v5302_v60  ;;  %3904 = vmatprep.subr.bf16.mxu1 %v5305_v61  ;;  %v5392_v60 = vld [vmem:[%s6250_s29 + $0x504] ss:$16 sps:$4 sm:$0xff]   ;;  %v5395_v61 = vld [vmem:[%s6250_s29 + $0x50c] ss:$16 sps:$4 sm:$0xff]  }
  0xd0   : > { %3561 = vmatpush1.bf16.msra.mxu0 %v5300_v62  ;;  %3905 = vmatpush1.bf16.msra.mxu1 %v5303_v63  ;;  %v5390_v62 = vld [vmem:[%s6250_s29 + $0x500] ss:$16 sps:$4 sm:$0xff]   ;;  %v5393_v63 = vld [vmem:[%s6250_s29 + $0x508] ss:$16 sps:$4 sm:$0xff]  }
  0xd1   : > { %3562 = vmatprep.subr.bf16.mxu0 %v5308_v0  ;;  %3906 = vmatprep.subr.bf16.mxu1 %v5311_v1  ;;  %v5398_v0 = vld [vmem:[%s6250_s29 + $0x524] ss:$16 sps:$4 sm:$0xff]   ;;  %v5401_v1 = vld [vmem:[%s6250_s29 + $0x52c] ss:$16 sps:$4 sm:$0xff]  }
  0xd4   : > { %3563 = vmatpush1.bf16.msra.mxu0 %v5306_v2  ;;  %3907 = vmatpush1.bf16.msra.mxu1 %v5309_v3  ;;  %v5396_v2 = vld [vmem:[%s6250_s29 + $0x520] ss:$16 sps:$4 sm:$0xff]   ;;  %v5399_v3 = vld [vmem:[%s6250_s29 + $0x528] ss:$16 sps:$4 sm:$0xff]  }
  0xd5   : > { %3564 = vmatprep.subr.bf16.mxu0 %v5314_v4  ;;  %3908 = vmatprep.subr.bf16.mxu1 %v5317_v5  ;;  %v5404_v4 = vld [vmem:[%s6250_s29 + $0x544] ss:$16 sps:$4 sm:$0xff]   ;;  %v5407_v5 = vld [vmem:[%s6250_s29 + $0x54c] ss:$16 sps:$4 sm:$0xff]  }
  0xd8   : > { %3565 = vmatpush1.bf16.msra.mxu0 %v5312_v6  ;;  %3909 = vmatpush1.bf16.msra.mxu1 %v5315_v7  ;;  %v5402_v6 = vld [vmem:[%s6250_s29 + $0x540] ss:$16 sps:$4 sm:$0xff]   ;;  %v5405_v7 = vld [vmem:[%s6250_s29 + $0x548] ss:$16 sps:$4 sm:$0xff]  }
  0xd9   : > { %3566 = vmatprep.subr.bf16.mxu0 %v5320_v8  ;;  %3910 = vmatprep.subr.bf16.mxu1 %v5323_v9  ;;  %v5410_v8 = vld [vmem:[%s6250_s29 + $0x564] ss:$16 sps:$4 sm:$0xff]   ;;  %v5413_v9 = vld [vmem:[%s6250_s29 + $0x56c] ss:$16 sps:$4 sm:$0xff]  }
  0xdc   : > { %3567 = vmatpush1.bf16.msra.mxu0 %v5318_v10  ;;  %3911 = vmatpush1.bf16.msra.mxu1 %v5321_v11  ;;  %v5408_v10 = vld [vmem:[%s6250_s29 + $0x560] ss:$16 sps:$4 sm:$0xff]   ;;  %v5411_v11 = vld [vmem:[%s6250_s29 + $0x568] ss:$16 sps:$4 sm:$0xff]  }
  0xdd   : > { %3568 = vmatprep.subr.bf16.mxu0 %v5326_v12  ;;  %3912 = vmatprep.subr.bf16.mxu1 %v5329_v13  ;;  %v5416_v12 = vld [vmem:[%s6250_s29 + $0x584] ss:$16 sps:$4 sm:$0xff]   ;;  %v5419_v13 = vld [vmem:[%s6250_s29 + $0x58c] ss:$16 sps:$4 sm:$0xff]  }
  0xe0   : > { %3569 = vmatpush1.bf16.msra.mxu0 %v5324_v14  ;;  %3913 = vmatpush1.bf16.msra.mxu1 %v5327_v15  ;;  %v5414_v14 = vld [vmem:[%s6250_s29 + $0x580] ss:$16 sps:$4 sm:$0xff]   ;;  %v5417_v15 = vld [vmem:[%s6250_s29 + $0x588] ss:$16 sps:$4 sm:$0xff]  }
  0xe1   : > { %3570 = vmatprep.subr.bf16.mxu0 %v5332_v16  ;;  %3914 = vmatprep.subr.bf16.mxu1 %v5335_v17  ;;  %v5422_v16 = vld [vmem:[%s6250_s29 + $0x5a4] ss:$16 sps:$4 sm:$0xff]   ;;  %v5425_v17 = vld [vmem:[%s6250_s29 + $0x5ac] ss:$16 sps:$4 sm:$0xff]  }
  0xe4   : > { %3571 = vmatpush1.bf16.msra.mxu0 %v5330_v18  ;;  %3915 = vmatpush1.bf16.msra.mxu1 %v5333_v19  ;;  %v5420_v18 = vld [vmem:[%s6250_s29 + $0x5a0] ss:$16 sps:$4 sm:$0xff]   ;;  %v5423_v19 = vld [vmem:[%s6250_s29 + $0x5a8] ss:$16 sps:$4 sm:$0xff]  }
  0xe5   : > { %3572 = vmatprep.subr.bf16.mxu0 %v5338_v20  ;;  %3916 = vmatprep.subr.bf16.mxu1 %v5341_v21  ;;  %v5428_v20 = vld [vmem:[%s6250_s29 + $0x5c4] ss:$16 sps:$4 sm:$0xff]   ;;  %v5431_v21 = vld [vmem:[%s6250_s29 + $0x5cc] ss:$16 sps:$4 sm:$0xff]  }
  0xe8   : > { %3573 = vmatpush1.bf16.msra.mxu0 %v5336_v22  ;;  %3917 = vmatpush1.bf16.msra.mxu1 %v5339_v23  ;;  %v5426_v22 = vld [vmem:[%s6250_s29 + $0x5c0] ss:$16 sps:$4 sm:$0xff]   ;;  %v5429_v23 = vld [vmem:[%s6250_s29 + $0x5c8] ss:$16 sps:$4 sm:$0xff]  }
  0xe9   : > { %3585 = vmatprep.subr.bf16.mxu0 %v5344_v24  ;;  %3929 = vmatprep.subr.bf16.mxu1 %v5347_v25  ;;  %v5434_v24 = vld [vmem:[%s6250_s29 + $0x5e4] ss:$16 sps:$4 sm:$0xff]   ;;  %v5437_v25 = vld [vmem:[%s6250_s29 + $0x5ec] ss:$16 sps:$4 sm:$0xff]  }
  0xeb   : > { %3575 = vmatmul.mubr.bf16.vlgmr.msra.gmra.mrb[0].mxu0 %v4449_v26  ;;  %3919 = vmatmul.mubr.bf16.vlgmr.msra.gmra.mrb[0].mxu1 %v4449_v26  ;;  %v5432_v26 = vld [vmem:[%s6250_s29 + $0x5e0] ss:$16 sps:$4 sm:$0xff]  }
  0xec   : > { %3586 = vmatpush1.bf16.msra.mxu0 %v5342_v27  ;;  %3930 = vmatpush1.bf16.msra.mxu1 %v5345_v28  ;;  %v5435_v27 = vld [vmem:[%s6250_s29 + $0x5e8] ss:$16 sps:$4 sm:$0xff]   ;;  %v5440_v28 = vld [vmem:[%s6250_s29 + $0x604] ss:$16 sps:$4 sm:$0xff]  }
  0xed   : > { %3587 = vmatprep.subr.bf16.mxu0 %v5350_v29  ;;  %3931 = vmatprep.subr.bf16.mxu1 %v5353_v30  ;;  %v5443_v29 = vld [vmem:[%s6250_s29 + $0x60c] ss:$16 sps:$4 sm:$0xff]   ;;  %v5438_v30 = vld [vmem:[%s6250_s29 + $0x600] ss:$16 sps:$4 sm:$0xff]  }
  0xee   : > { %3617 = vmatprep.mubr.bf16.mxu0 %v4452_v33  ;;  %3961 = vmatprep.mubr.bf16.mxu1 %v4452_v33  ;;  %v5441_v33 = vld [vmem:[%s6250_s29 + $0x608] ss:$16 sps:$4 sm:$0xff]  }
  0xf0   : > { %3588 = vmatpush1.bf16.msra.mxu0 %v5348_v34  ;;  %3932 = vmatpush1.bf16.msra.mxu1 %v5351_v35  ;;  %v4451_v34 = vcombine.low %v6414_v31, %v6417_v32  ;;  %v6486_v35 = vld [vmem:[%s6248_s26 + $0x18] sm:$0xff]  ;;  %v5444_v31 = vld [vmem:[%s6250_s29 + $0x620] ss:$16 sps:$4 sm:$0xff]  }
  0xf1   : > { %3589 = vmatprep.subr.bf16.mxu0 %v5356_v36  ;;  %3933 = vmatprep.subr.bf16.mxu1 %v5359_v37  ;;  %v6489_v36 = vld [vmem:[%s6248_s26 + $0x58] sm:$0xff]  ;;  %v5446_v37 = vld [vmem:[%s6250_s29 + $0x624] ss:$16 sps:$4 sm:$0xff]  }
  0xf2   : > { %v5447_v32 = vld [vmem:[%s6250_s29 + $0x628] ss:$16 sps:$4 sm:$0xff]  }
  0xf4   : > { %3590 = vmatpush1.bf16.msra.mxu0 %v5354_v38  ;;  %3934 = vmatpush1.bf16.msra.mxu1 %v5357_v39  ;;  %v5449_v38 = vld [vmem:[%s6250_s29 + $0x62c] ss:$16 sps:$4 sm:$0xff]   ;;  %v4454_v39 = vcombine.high %v6486_v35, %v6489_v36 }
  0xf5   : > { %3591 = vmatprep.subr.bf16.mxu0 %v5362_v40  ;;  %3935 = vmatprep.subr.bf16.mxu1 %v5365_v41  ;;  %v5452_v40 = vld [vmem:[%s6250_s29 + $0x644] ss:$16 sps:$4 sm:$0xff]   ;;  %v5455_v41 = vld [vmem:[%s6250_s29 + $0x64c] ss:$16 sps:$4 sm:$0xff]  }
  0xf8   : > { %3592 = vmatpush1.bf16.msra.mxu0 %v5360_v42  ;;  %3936 = vmatpush1.bf16.msra.mxu1 %v5363_v43  ;;  %v5450_v42 = vld [vmem:[%s6250_s29 + $0x640] ss:$16 sps:$4 sm:$0xff]   ;;  %v5453_v43 = vld [vmem:[%s6250_s29 + $0x648] ss:$16 sps:$4 sm:$0xff]  }
  0xf9   : > { %3593 = vmatprep.subr.bf16.mxu0 %v5368_v44  ;;  %3937 = vmatprep.subr.bf16.mxu1 %v5371_v45  ;;  %v5458_v44 = vld [vmem:[%s6250_s29 + $0x664] ss:$16 sps:$4 sm:$0xff]   ;;  %v5461_v45 = vld [vmem:[%s6250_s29 + $0x66c] ss:$16 sps:$4 sm:$0xff]  }
  0xfc   : > { %3594 = vmatpush1.bf16.msra.mxu0 %v5366_v46  ;;  %3938 = vmatpush1.bf16.msra.mxu1 %v5369_v47  ;;  %v5456_v46 = vld [vmem:[%s6250_s29 + $0x660] ss:$16 sps:$4 sm:$0xff]   ;;  %v5459_v47 = vld [vmem:[%s6250_s29 + $0x668] ss:$16 sps:$4 sm:$0xff]  }
  0xfd   : > { %3595 = vmatprep.subr.bf16.mxu0 %v5374_v48  ;;  %3939 = vmatprep.subr.bf16.mxu1 %v5377_v49  ;;  %v5464_v48 = vld [vmem:[%s6250_s29 + $0x684] ss:$16 sps:$4 sm:$0xff]   ;;  %v5467_v49 = vld [vmem:[%s6250_s29 + $0x68c] ss:$16 sps:$4 sm:$0xff]  }
 0x100   : > { %3596 = vmatpush1.bf16.msra.mxu0 %v5372_v50  ;;  %3940 = vmatpush1.bf16.msra.mxu1 %v5375_v51  ;;  %v5462_v50 = vld [vmem:[%s6250_s29 + $0x680] ss:$16 sps:$4 sm:$0xff]   ;;  %v5465_v51 = vld [vmem:[%s6250_s29 + $0x688] ss:$16 sps:$4 sm:$0xff]  }
 0x101   : > { %3597 = vmatprep.subr.bf16.mxu0 %v5380_v52  ;;  %3941 = vmatprep.subr.bf16.mxu1 %v5383_v53  ;;  %v5470_v52 = vld [vmem:[%s6250_s29 + $0x6a4] ss:$16 sps:$4 sm:$0xff]   ;;  %v5473_v53 = vld [vmem:[%s6250_s29 + $0x6ac] ss:$16 sps:$4 sm:$0xff]  }
 0x104   : > { %3598 = vmatpush1.bf16.msra.mxu0 %v5378_v54  ;;  %3942 = vmatpush1.bf16.msra.mxu1 %v5381_v55  ;;  %v5468_v54 = vld [vmem:[%s6250_s29 + $0x6a0] ss:$16 sps:$4 sm:$0xff]   ;;  %v5471_v55 = vld [vmem:[%s6250_s29 + $0x6a8] ss:$16 sps:$4 sm:$0xff]  }
 0x105   : > { %3599 = vmatprep.subr.bf16.mxu0 %v5386_v56  ;;  %3943 = vmatprep.subr.bf16.mxu1 %v5389_v57  ;;  %v5476_v56 = vld [vmem:[%s6250_s29 + $0x6c4] ss:$16 sps:$4 sm:$0xff]   ;;  %v5479_v57 = vld [vmem:[%s6250_s29 + $0x6cc] ss:$16 sps:$4 sm:$0xff]  }
 0x108   : > { %3600 = vmatpush1.bf16.msra.mxu0 %v5384_v58  ;;  %3944 = vmatpush1.bf16.msra.mxu1 %v5387_v59  ;;  %v5474_v58 = vld [vmem:[%s6250_s29 + $0x6c0] ss:$16 sps:$4 sm:$0xff]   ;;  %v5477_v59 = vld [vmem:[%s6250_s29 + $0x6c8] ss:$16 sps:$4 sm:$0xff]  }
 0x109   : > { %3601 = vmatprep.subr.bf16.mxu0 %v5392_v60  ;;  %3945 = vmatprep.subr.bf16.mxu1 %v5395_v61  ;;  %v5482_v60 = vld [vmem:[%s6250_s29 + $0x6e4] ss:$16 sps:$4 sm:$0xff]   ;;  %v5485_v61 = vld [vmem:[%s6250_s29 + $0x6ec] ss:$16 sps:$4 sm:$0xff]  }
 0x10c   : > { %3602 = vmatpush1.bf16.msra.mxu0 %v5390_v62  ;;  %3946 = vmatpush1.bf16.msra.mxu1 %v5393_v63  ;;  %v5480_v62 = vld [vmem:[%s6250_s29 + $0x6e0] ss:$16 sps:$4 sm:$0xff]   ;;  %v5483_v63 = vld [vmem:[%s6250_s29 + $0x6e8] ss:$16 sps:$4 sm:$0xff]  }
 0x10d   : > { %3603 = vmatprep.subr.bf16.mxu0 %v5398_v0  ;;  %3947 = vmatprep.subr.bf16.mxu1 %v5401_v1  ;;  %v5488_v0 = vld [vmem:[%s6250_s29 + $0x704] ss:$16 sps:$4 sm:$0xff]   ;;  %v5491_v1 = vld [vmem:[%s6250_s29 + $0x70c] ss:$16 sps:$4 sm:$0xff]  }
 0x110   : > { %3604 = vmatpush1.bf16.msra.mxu0 %v5396_v2  ;;  %3948 = vmatpush1.bf16.msra.mxu1 %v5399_v3  ;;  %v5486_v2 = vld [vmem:[%s6250_s29 + $0x700] ss:$16 sps:$4 sm:$0xff]   ;;  %v5489_v3 = vld [vmem:[%s6250_s29 + $0x708] ss:$16 sps:$4 sm:$0xff]  }
 0x111   : > { %3605 = vmatprep.subr.bf16.mxu0 %v5404_v4  ;;  %3949 = vmatprep.subr.bf16.mxu1 %v5407_v5  ;;  %v5494_v4 = vld [vmem:[%s6250_s29 + $0x724] ss:$16 sps:$4 sm:$0xff]   ;;  %v5497_v5 = vld [vmem:[%s6250_s29 + $0x72c] ss:$16 sps:$4 sm:$0xff]  }
 0x114   : > { %3606 = vmatpush1.bf16.msra.mxu0 %v5402_v6  ;;  %3950 = vmatpush1.bf16.msra.mxu1 %v5405_v7  ;;  %v5492_v6 = vld [vmem:[%s6250_s29 + $0x720] ss:$16 sps:$4 sm:$0xff]   ;;  %v5495_v7 = vld [vmem:[%s6250_s29 + $0x728] ss:$16 sps:$4 sm:$0xff]  }
 0x115   : > { %3607 = vmatprep.subr.bf16.mxu0 %v5410_v8  ;;  %3951 = vmatprep.subr.bf16.mxu1 %v5413_v9  ;;  %v5500_v8 = vld [vmem:[%s6250_s29 + $0x744] ss:$16 sps:$4 sm:$0xff]   ;;  %v5503_v9 = vld [vmem:[%s6250_s29 + $0x74c] ss:$16 sps:$4 sm:$0xff]  }
 0x118   : > { %3608 = vmatpush1.bf16.msra.mxu0 %v5408_v10  ;;  %3952 = vmatpush1.bf16.msra.mxu1 %v5411_v11  ;;  %v5498_v10 = vld [vmem:[%s6250_s29 + $0x740] ss:$16 sps:$4 sm:$0xff]   ;;  %v5501_v11 = vld [vmem:[%s6250_s29 + $0x748] ss:$16 sps:$4 sm:$0xff]  }
 0x119   : > { %3609 = vmatprep.subr.bf16.mxu0 %v5416_v12  ;;  %3953 = vmatprep.subr.bf16.mxu1 %v5419_v13  ;;  %v5506_v12 = vld [vmem:[%s6250_s29 + $0x764] ss:$16 sps:$4 sm:$0xff]   ;;  %v5509_v13 = vld [vmem:[%s6250_s29 + $0x76c] ss:$16 sps:$4 sm:$0xff]  }
 0x11c   : > { %3610 = vmatpush1.bf16.msra.mxu0 %v5414_v14  ;;  %3954 = vmatpush1.bf16.msra.mxu1 %v5417_v15  ;;  %v5504_v14 = vld [vmem:[%s6250_s29 + $0x760] ss:$16 sps:$4 sm:$0xff]   ;;  %v5507_v15 = vld [vmem:[%s6250_s29 + $0x768] ss:$16 sps:$4 sm:$0xff]  }
 0x11d   : > { %3611 = vmatprep.subr.bf16.mxu0 %v5422_v16  ;;  %3955 = vmatprep.subr.bf16.mxu1 %v5425_v17  ;;  %v5512_v16 = vld [vmem:[%s6250_s29 + $0x784] ss:$16 sps:$4 sm:$0xff]   ;;  %v5515_v17 = vld [vmem:[%s6250_s29 + $0x78c] ss:$16 sps:$4 sm:$0xff]  }
 0x120   : > { %3612 = vmatpush1.bf16.msra.mxu0 %v5420_v18  ;;  %3956 = vmatpush1.bf16.msra.mxu1 %v5423_v19  ;;  %v5510_v18 = vld [vmem:[%s6250_s29 + $0x780] ss:$16 sps:$4 sm:$0xff]   ;;  %v5513_v19 = vld [vmem:[%s6250_s29 + $0x788] ss:$16 sps:$4 sm:$0xff]  }
 0x121   : > { %3613 = vmatprep.subr.bf16.mxu0 %v5428_v20  ;;  %3957 = vmatprep.subr.bf16.mxu1 %v5431_v21  ;;  %v5518_v20 = vld [vmem:[%s6250_s29 + $0x7a4] ss:$16 sps:$4 sm:$0xff]   ;;  %v5521_v21 = vld [vmem:[%s6250_s29 + $0x7ac] ss:$16 sps:$4 sm:$0xff]  }
 0x124   : > { %3614 = vmatpush1.bf16.msra.mxu0 %v5426_v22  ;;  %3958 = vmatpush1.bf16.msra.mxu1 %v5429_v23  ;;  %v5516_v22 = vld [vmem:[%s6250_s29 + $0x7a0] ss:$16 sps:$4 sm:$0xff]   ;;  %v5519_v23 = vld [vmem:[%s6250_s29 + $0x7a8] ss:$16 sps:$4 sm:$0xff]  }
 0x125   : > { %3615 = vmatprep.subr.bf16.mxu0 %v5434_v24  ;;  %3959 = vmatprep.subr.bf16.mxu1 %v5437_v25  ;;  %v5524_v24 = vld [vmem:[%s6250_s29 + $0x7c4] ss:$16 sps:$4 sm:$0xff]   ;;  %v5527_v25 = vld [vmem:[%s6250_s29 + $0x7cc] ss:$16 sps:$4 sm:$0xff]  }
 0x128   : > { %3616 = vmatpush1.bf16.msra.mxu0 %v5432_v26  ;;  %3960 = vmatpush1.bf16.msra.mxu1 %v5435_v27  ;;  %v5522_v26 = vld [vmem:[%s6250_s29 + $0x7c0] ss:$16 sps:$4 sm:$0xff]   ;;  %v5525_v27 = vld [vmem:[%s6250_s29 + $0x7c8] ss:$16 sps:$4 sm:$0xff]  }
 0x129   : > { %3628 = vmatprep.subr.bf16.mxu0 %v5440_v28  ;;  %3972 = vmatprep.subr.bf16.mxu1 %v5443_v29  ;;  %v5530_v28 = vld [vmem:[%s6250_s29 + $0x7e4] ss:$16 sps:$4 sm:$0xff]   ;;  %v5533_v29 = vld [vmem:[%s6250_s29 + $0x7ec] ss:$16 sps:$4 sm:$0xff]  }
 0x12b   : > { %3618 = vmatmul.mubr.bf16.vlgmr.msra.gmra.mrb[0].mxu0 %v4451_v34  ;;  %3962 = vmatmul.mubr.bf16.vlgmr.msra.gmra.mrb[0].mxu1 %v4451_v34  ;;  %v5536_v34 = vld [vmem:[%s6250_s29 + $0x804] ss:$16 sps:$4 sm:$0xff]  }
 0x12c   : > { %3629 = vmatpush1.bf16.msra.mxu0 %v5438_v30  ;;  %3973 = vmatpush1.bf16.msra.mxu1 %v5441_v33  ;;  %v5528_v30 = vld [vmem:[%s6250_s29 + $0x7e0] ss:$16 sps:$4 sm:$0xff]   ;;  %v5531_v33 = vld [vmem:[%s6250_s29 + $0x7e8] ss:$16 sps:$4 sm:$0xff]  }
 0x12d   : > { %3630 = vmatprep.subr.bf16.mxu0 %v5446_v37  ;;  %3974 = vmatprep.subr.bf16.mxu1 %v5449_v38  ;;  %v5539_v37 = vld [vmem:[%s6250_s29 + $0x80c] ss:$16 sps:$4 sm:$0xff]   ;;  %v6556_v38 = vld [vmem:[%s6248_s26 + $0x20] sm:$0xff] }
 0x12e   : > { %3660 = vmatprep.mubr.bf16.mxu0 %v4454_v39  ;;  %4004 = vmatprep.mubr.bf16.mxu1 %v4454_v39  ;;  %v4453_v39 = vcombine.low %v6486_v35, %v6489_v36  ;;  %v5540_v35 = vld [vmem:[%s6250_s29 + $0x820] ss:$16 sps:$4 sm:$0xff]   ;;  %v5543_v36 = vld [vmem:[%s6250_s29 + $0x828] ss:$16 sps:$4 sm:$0xff]  }
 0x130   : > { %3631 = vmatpush1.bf16.msra.mxu0 %v5444_v31  ;;  %3975 = vmatpush1.bf16.msra.mxu1 %v5447_v32  ;;  %v6561_v31 = vld [vmem:[%s6248_s26 + $0x60] sm:$0xff] }
 0x131   : > { %3632 = vmatprep.subr.bf16.mxu0 %v5452_v40  ;;  %3976 = vmatprep.subr.bf16.mxu1 %v5455_v41  ;;  %v5534_v32 = vld [vmem:[%s6250_s29 + $0x800] ss:$16 sps:$4 sm:$0xff]   ;;  %v5537_v40 = vld [vmem:[%s6250_s29 + $0x808] ss:$16 sps:$4 sm:$0xff]   ;;  %v5542_v41 = vld [vmem:[%s6250_s29 + $0x824] ss:$16 sps:$4 sm:$0xff]  }
 0x134   : > { %3633 = vmatpush1.bf16.msra.mxu0 %v5450_v42  ;;  %3977 = vmatpush1.bf16.msra.mxu1 %v5453_v43  ;;  %v5545_v42 = vld [vmem:[%s6250_s29 + $0x82c] ss:$16 sps:$4 sm:$0xff]   ;;  %v4456_v43 = vcombine.high %v6556_v38, %v6561_v31 }
 0x135   : > { %3634 = vmatprep.subr.bf16.mxu0 %v5458_v44  ;;  %3978 = vmatprep.subr.bf16.mxu1 %v5461_v45  ;;  %v5548_v44 = vld [vmem:[%s6250_s29 + $0x844] ss:$16 sps:$4 sm:$0xff]   ;;  %v5551_v45 = vld [vmem:[%s6250_s29 + $0x84c] ss:$16 sps:$4 sm:$0xff]  }
 0x138   : > { %3635 = vmatpush1.bf16.msra.mxu0 %v5456_v46  ;;  %3979 = vmatpush1.bf16.msra.mxu1 %v5459_v47  ;;  %v5546_v46 = vld [vmem:[%s6250_s29 + $0x840] ss:$16 sps:$4 sm:$0xff]   ;;  %v5549_v47 = vld [vmem:[%s6250_s29 + $0x848] ss:$16 sps:$4 sm:$0xff]  }
 0x139   : > { %3636 = vmatprep.subr.bf16.mxu0 %v5464_v48  ;;  %3980 = vmatprep.subr.bf16.mxu1 %v5467_v49  ;;  %v5554_v48 = vld [vmem:[%s6250_s29 + $0x864] ss:$16 sps:$4 sm:$0xff]   ;;  %v5557_v49 = vld [vmem:[%s6250_s29 + $0x86c] ss:$16 sps:$4 sm:$0xff]  }
 0x13c   : > { %3637 = vmatpush1.bf16.msra.mxu0 %v5462_v50  ;;  %3981 = vmatpush1.bf16.msra.mxu1 %v5465_v51  ;;  %v5552_v50 = vld [vmem:[%s6250_s29 + $0x860] ss:$16 sps:$4 sm:$0xff]   ;;  %v5555_v51 = vld [vmem:[%s6250_s29 + $0x868] ss:$16 sps:$4 sm:$0xff]  }
 0x13d   : > { %3638 = vmatprep.subr.bf16.mxu0 %v5470_v52  ;;  %3982 = vmatprep.subr.bf16.mxu1 %v5473_v53  ;;  %v5560_v52 = vld [vmem:[%s6250_s29 + $0x884] ss:$16 sps:$4 sm:$0xff]   ;;  %v5563_v53 = vld [vmem:[%s6250_s29 + $0x88c] ss:$16 sps:$4 sm:$0xff]  }
 0x140   : > { %3639 = vmatpush1.bf16.msra.mxu0 %v5468_v54  ;;  %3983 = vmatpush1.bf16.msra.mxu1 %v5471_v55  ;;  %v5558_v54 = vld [vmem:[%s6250_s29 + $0x880] ss:$16 sps:$4 sm:$0xff]   ;;  %v5561_v55 = vld [vmem:[%s6250_s29 + $0x888] ss:$16 sps:$4 sm:$0xff]  }
 0x141   : > { %3640 = vmatprep.subr.bf16.mxu0 %v5476_v56  ;;  %3984 = vmatprep.subr.bf16.mxu1 %v5479_v57  ;;  %v5566_v56 = vld [vmem:[%s6250_s29 + $0x8a4] ss:$16 sps:$4 sm:$0xff]   ;;  %v5569_v57 = vld [vmem:[%s6250_s29 + $0x8ac] ss:$16 sps:$4 sm:$0xff]  }
 0x144   : > { %3641 = vmatpush1.bf16.msra.mxu0 %v5474_v58  ;;  %3985 = vmatpush1.bf16.msra.mxu1 %v5477_v59  ;;  %v5564_v58 = vld [vmem:[%s6250_s29 + $0x8a0] ss:$16 sps:$4 sm:$0xff]   ;;  %v5567_v59 = vld [vmem:[%s6250_s29 + $0x8a8] ss:$16 sps:$4 sm:$0xff]  }
 0x145   : > { %3642 = vmatprep.subr.bf16.mxu0 %v5482_v60  ;;  %3986 = vmatprep.subr.bf16.mxu1 %v5485_v61  ;;  %v5572_v60 = vld [vmem:[%s6250_s29 + $0x8c4] ss:$16 sps:$4 sm:$0xff]   ;;  %v5575_v61 = vld [vmem:[%s6250_s29 + $0x8cc] ss:$16 sps:$4 sm:$0xff]  }
 0x148   : > { %3643 = vmatpush1.bf16.msra.mxu0 %v5480_v62  ;;  %3987 = vmatpush1.bf16.msra.mxu1 %v5483_v63  ;;  %v5570_v62 = vld [vmem:[%s6250_s29 + $0x8c0] ss:$16 sps:$4 sm:$0xff]   ;;  %v5573_v63 = vld [vmem:[%s6250_s29 + $0x8c8] ss:$16 sps:$4 sm:$0xff]  }
 0x149   : > { %3644 = vmatprep.subr.bf16.mxu0 %v5488_v0  ;;  %3988 = vmatprep.subr.bf16.mxu1 %v5491_v1  ;;  %v5578_v0 = vld [vmem:[%s6250_s29 + $0x8e4] ss:$16 sps:$4 sm:$0xff]   ;;  %v5581_v1 = vld [vmem:[%s6250_s29 + $0x8ec] ss:$16 sps:$4 sm:$0xff]  }
 0x14c   : > { %3645 = vmatpush1.bf16.msra.mxu0 %v5486_v2  ;;  %3989 = vmatpush1.bf16.msra.mxu1 %v5489_v3  ;;  %v5576_v2 = vld [vmem:[%s6250_s29 + $0x8e0] ss:$16 sps:$4 sm:$0xff]   ;;  %v5579_v3 = vld [vmem:[%s6250_s29 + $0x8e8] ss:$16 sps:$4 sm:$0xff]  }
 0x14d   : > { %3646 = vmatprep.subr.bf16.mxu0 %v5494_v4  ;;  %3990 = vmatprep.subr.bf16.mxu1 %v5497_v5  ;;  %v5584_v4 = vld [vmem:[%s6250_s29 + $0x904] ss:$16 sps:$4 sm:$0xff]   ;;  %v5587_v5 = vld [vmem:[%s6250_s29 + $0x90c] ss:$16 sps:$4 sm:$0xff]  }
 0x150   : > { %3647 = vmatpush1.bf16.msra.mxu0 %v5492_v6  ;;  %3991 = vmatpush1.bf16.msra.mxu1 %v5495_v7  ;;  %v5582_v6 = vld [vmem:[%s6250_s29 + $0x900] ss:$16 sps:$4 sm:$0xff]   ;;  %v5585_v7 = vld [vmem:[%s6250_s29 + $0x908] ss:$16 sps:$4 sm:$0xff]  }
 0x151   : > { %3648 = vmatprep.subr.bf16.mxu0 %v5500_v8  ;;  %3992 = vmatprep.subr.bf16.mxu1 %v5503_v9  ;;  %v5590_v8 = vld [vmem:[%s6250_s29 + $0x924] ss:$16 sps:$4 sm:$0xff]   ;;  %v5593_v9 = vld [vmem:[%s6250_s29 + $0x92c] ss:$16 sps:$4 sm:$0xff]  }
 0x154   : > { %3649 = vmatpush1.bf16.msra.mxu0 %v5498_v10  ;;  %3993 = vmatpush1.bf16.msra.mxu1 %v5501_v11  ;;  %v5588_v10 = vld [vmem:[%s6250_s29 + $0x920] ss:$16 sps:$4 sm:$0xff]   ;;  %v5591_v11 = vld [vmem:[%s6250_s29 + $0x928] ss:$16 sps:$4 sm:$0xff]  }
 0x155   : > { %3650 = vmatprep.subr.bf16.mxu0 %v5506_v12  ;;  %3994 = vmatprep.subr.bf16.mxu1 %v5509_v13  ;;  %v5596_v12 = vld [vmem:[%s6250_s29 + $0x944] ss:$16 sps:$4 sm:$0xff]   ;;  %v5599_v13 = vld [vmem:[%s6250_s29 + $0x94c] ss:$16 sps:$4 sm:$0xff]  }
 0x158   : > { %3651 = vmatpush1.bf16.msra.mxu0 %v5504_v14  ;;  %3995 = vmatpush1.bf16.msra.mxu1 %v5507_v15  ;;  %v5594_v14 = vld [vmem:[%s6250_s29 + $0x940] ss:$16 sps:$4 sm:$0xff]   ;;  %v5597_v15 = vld [vmem:[%s6250_s29 + $0x948] ss:$16 sps:$4 sm:$0xff]  }
 0x159   : > { %3652 = vmatprep.subr.bf16.mxu0 %v5512_v16  ;;  %3996 = vmatprep.subr.bf16.mxu1 %v5515_v17  ;;  %v5602_v16 = vld [vmem:[%s6250_s29 + $0x964] ss:$16 sps:$4 sm:$0xff]   ;;  %v5605_v17 = vld [vmem:[%s6250_s29 + $0x96c] ss:$16 sps:$4 sm:$0xff]  }
 0x15c   : > { %3653 = vmatpush1.bf16.msra.mxu0 %v5510_v18  ;;  %3997 = vmatpush1.bf16.msra.mxu1 %v5513_v19  ;;  %v5600_v18 = vld [vmem:[%s6250_s29 + $0x960] ss:$16 sps:$4 sm:$0xff]   ;;  %v5603_v19 = vld [vmem:[%s6250_s29 + $0x968] ss:$16 sps:$4 sm:$0xff]  }
 0x15d   : > { %3654 = vmatprep.subr.bf16.mxu0 %v5518_v20  ;;  %3998 = vmatprep.subr.bf16.mxu1 %v5521_v21  ;;  %v5608_v20 = vld [vmem:[%s6250_s29 + $0x984] ss:$16 sps:$4 sm:$0xff]   ;;  %v5611_v21 = vld [vmem:[%s6250_s29 + $0x98c] ss:$16 sps:$4 sm:$0xff]  }
 0x160   : > { %3655 = vmatpush1.bf16.msra.mxu0 %v5516_v22  ;;  %3999 = vmatpush1.bf16.msra.mxu1 %v5519_v23  ;;  %v5606_v22 = vld [vmem:[%s6250_s29 + $0x980] ss:$16 sps:$4 sm:$0xff]   ;;  %v5609_v23 = vld [vmem:[%s6250_s29 + $0x988] ss:$16 sps:$4 sm:$0xff]  }
 0x161   : > { %3656 = vmatprep.subr.bf16.mxu0 %v5524_v24  ;;  %4000 = vmatprep.subr.bf16.mxu1 %v5527_v25  ;;  %v5614_v24 = vld [vmem:[%s6250_s29 + $0x9a4] ss:$16 sps:$4 sm:$0xff]   ;;  %v5617_v25 = vld [vmem:[%s6250_s29 + $0x9ac] ss:$16 sps:$4 sm:$0xff]  }
 0x164   : > { %3657 = vmatpush1.bf16.msra.mxu0 %v5522_v26  ;;  %4001 = vmatpush1.bf16.msra.mxu1 %v5525_v27  ;;  %v5612_v26 = vld [vmem:[%s6250_s29 + $0x9a0] ss:$16 sps:$4 sm:$0xff]   ;;  %v5615_v27 = vld [vmem:[%s6250_s29 + $0x9a8] ss:$16 sps:$4 sm:$0xff]  }
 0x165   : > { %3658 = vmatprep.subr.bf16.mxu0 %v5530_v28  ;;  %4002 = vmatprep.subr.bf16.mxu1 %v5533_v29  ;;  %v5620_v28 = vld [vmem:[%s6250_s29 + $0x9c4] ss:$16 sps:$4 sm:$0xff]   ;;  %v5623_v29 = vld [vmem:[%s6250_s29 + $0x9cc] ss:$16 sps:$4 sm:$0xff]  }
 0x168   : > { %3659 = vmatpush1.bf16.msra.mxu0 %v5528_v30  ;;  %4003 = vmatpush1.bf16.msra.mxu1 %v5531_v33  ;;  %v5618_v30 = vld [vmem:[%s6250_s29 + $0x9c0] ss:$16 sps:$4 sm:$0xff]   ;;  %v5621_v33 = vld [vmem:[%s6250_s29 + $0x9c8] ss:$16 sps:$4 sm:$0xff]  }
 0x169   : > { %3671 = vmatprep.subr.bf16.mxu0 %v5536_v34  ;;  %4015 = vmatprep.subr.bf16.mxu1 %v5539_v37  ;;  %v5626_v34 = vld [vmem:[%s6250_s29 + $0x9e4] ss:$16 sps:$4 sm:$0xff]   ;;  %v5629_v37 = vld [vmem:[%s6250_s29 + $0x9ec] ss:$16 sps:$4 sm:$0xff]  }
 0x16b   : > { %3661 = vmatmul.mubr.bf16.vlgmr.msra.gmra.mrb[0].mxu0 %v4453_v39  ;;  %4005 = vmatmul.mubr.bf16.vlgmr.msra.gmra.mrb[0].mxu1 %v4453_v39  ;;  %v5624_v39 = vld [vmem:[%s6250_s29 + $0x9e0] ss:$16 sps:$4 sm:$0xff]  }
 0x16c   : > { %3672 = vmatpush1.bf16.msra.mxu0 %v5534_v32  ;;  %4016 = vmatpush1.bf16.msra.mxu1 %v5537_v40  ;;  %v5627_v32 = vld [vmem:[%s6250_s29 + $0x9e8] ss:$16 sps:$4 sm:$0xff]   ;;  %v5632_v40 = vld [vmem:[%s6250_s29 + $0xa04] ss:$16 sps:$4 sm:$0xff]  }
 0x16d   : > { %3673 = vmatprep.subr.bf16.mxu0 %v5542_v41  ;;  %4017 = vmatprep.subr.bf16.mxu1 %v5545_v42  ;;  %v5635_v41 = vld [vmem:[%s6250_s29 + $0xa0c] ss:$16 sps:$4 sm:$0xff]  }
 0x16e   : > { %3703 = vmatprep.mubr.bf16.mxu0 %v4456_v43  ;;  %4047 = vmatprep.mubr.bf16.mxu1 %v4456_v43  ;;  %v6630_v42 = vld [vmem:[%s6248_s26 + $0x28] sm:$0xff] }
 0x16f   : > { %v6633_v43 = vld [vmem:[%s6248_s26 + $0x68] sm:$0xff] }
 0x170   : > { %3674 = vmatpush1.bf16.msra.mxu0 %v5540_v35  ;;  %4018 = vmatpush1.bf16.msra.mxu1 %v5543_v36  ;;  %v4455_v35 = vcombine.low %v6556_v38, %v6561_v31  ;;  %v5630_v36 = vld [vmem:[%s6250_s29 + $0xa00] ss:$16 sps:$4 sm:$0xff]   ;;  %v5639_v31 = vld [vmem:[%s6250_s29 + $0xa28] ss:$16 sps:$4 sm:$0xff]  }
 0x171   : > { %3675 = vmatprep.subr.bf16.mxu0 %v5548_v44  ;;  %4019 = vmatprep.subr.bf16.mxu1 %v5551_v45  ;;  %v5633_v44 = vld [vmem:[%s6250_s29 + $0xa08] ss:$16 sps:$4 sm:$0xff]   ;;  %v5638_v45 = vld [vmem:[%s6250_s29 + $0xa24] ss:$16 sps:$4 sm:$0xff]   ;;  %v5636_v38 = vld [vmem:[%s6250_s29 + $0xa20] ss:$16 sps:$4 sm:$0xff]  }
 0x174   : > { %3676 = vmatpush1.bf16.msra.mxu0 %v5546_v46  ;;  %4020 = vmatpush1.bf16.msra.mxu1 %v5549_v47  ;;  %v5641_v46 = vld [vmem:[%s6250_s29 + $0xa2c] ss:$16 sps:$4 sm:$0xff]   ;;  %v4458_v47 = vcombine.high %v6630_v42, %v6633_v43 }
 0x175   : > { %3677 = vmatprep.subr.bf16.mxu0 %v5554_v48  ;;  %4021 = vmatprep.subr.bf16.mxu1 %v5557_v49  ;;  %v5644_v48 = vld [vmem:[%s6250_s29 + $0xa44] ss:$16 sps:$4 sm:$0xff]   ;;  %v5647_v49 = vld [vmem:[%s6250_s29 + $0xa4c] ss:$16 sps:$4 sm:$0xff]  }
 0x178   : > { %3678 = vmatpush1.bf16.msra.mxu0 %v5552_v50  ;;  %4022 = vmatpush1.bf16.msra.mxu1 %v5555_v51  ;;  %v5642_v50 = vld [vmem:[%s6250_s29 + $0xa40] ss:$16 sps:$4 sm:$0xff]   ;;  %v5645_v51 = vld [vmem:[%s6250_s29 + $0xa48] ss:$16 sps:$4 sm:$0xff]  }
 0x179   : > { %3679 = vmatprep.subr.bf16.mxu0 %v5560_v52  ;;  %4023 = vmatprep.subr.bf16.mxu1 %v5563_v53  ;;  %v5650_v52 = vld [vmem:[%s6250_s29 + $0xa64] ss:$16 sps:$4 sm:$0xff]   ;;  %v5653_v53 = vld [vmem:[%s6250_s29 + $0xa6c] ss:$16 sps:$4 sm:$0xff]  }
 0x17c   : > { %3680 = vmatpush1.bf16.msra.mxu0 %v5558_v54  ;;  %4024 = vmatpush1.bf16.msra.mxu1 %v5561_v55  ;;  %v5648_v54 = vld [vmem:[%s6250_s29 + $0xa60] ss:$16 sps:$4 sm:$0xff]   ;;  %v5651_v55 = vld [vmem:[%s6250_s29 + $0xa68] ss:$16 sps:$4 sm:$0xff]  }
 0x17d   : > { %3681 = vmatprep.subr.bf16.mxu0 %v5566_v56  ;;  %4025 = vmatprep.subr.bf16.mxu1 %v5569_v57  ;;  %v5656_v56 = vld [vmem:[%s6250_s29 + $0xa84] ss:$16 sps:$4 sm:$0xff]   ;;  %v5659_v57 = vld [vmem:[%s6250_s29 + $0xa8c] ss:$16 sps:$4 sm:$0xff]  }
 0x180   : > { %3682 = vmatpush1.bf16.msra.mxu0 %v5564_v58  ;;  %4026 = vmatpush1.bf16.msra.mxu1 %v5567_v59  ;;  %v5654_v58 = vld [vmem:[%s6250_s29 + $0xa80] ss:$16 sps:$4 sm:$0xff]   ;;  %v5657_v59 = vld [vmem:[%s6250_s29 + $0xa88] ss:$16 sps:$4 sm:$0xff]  }
 0x181   : > { %3683 = vmatprep.subr.bf16.mxu0 %v5572_v60  ;;  %4027 = vmatprep.subr.bf16.mxu1 %v5575_v61  ;;  %v5662_v60 = vld [vmem:[%s6250_s29 + $0xaa4] ss:$16 sps:$4 sm:$0xff]   ;;  %v5665_v61 = vld [vmem:[%s6250_s29 + $0xaac] ss:$16 sps:$4 sm:$0xff]  }
 0x184   : > { %3684 = vmatpush1.bf16.msra.mxu0 %v5570_v62  ;;  %4028 = vmatpush1.bf16.msra.mxu1 %v5573_v63  ;;  %v5660_v62 = vld [vmem:[%s6250_s29 + $0xaa0] ss:$16 sps:$4 sm:$0xff]   ;;  %v5663_v63 = vld [vmem:[%s6250_s29 + $0xaa8] ss:$16 sps:$4 sm:$0xff]  }
 0x185   : > { %3685 = vmatprep.subr.bf16.mxu0 %v5578_v0  ;;  %4029 = vmatprep.subr.bf16.mxu1 %v5581_v1  ;;  %v5668_v0 = vld [vmem:[%s6250_s29 + $0xac4] ss:$16 sps:$4 sm:$0xff]   ;;  %v5671_v1 = vld [vmem:[%s6250_s29 + $0xacc] ss:$16 sps:$4 sm:$0xff]  }
 0x188   : > { %3686 = vmatpush1.bf16.msra.mxu0 %v5576_v2  ;;  %4030 = vmatpush1.bf16.msra.mxu1 %v5579_v3  ;;  %v5666_v2 = vld [vmem:[%s6250_s29 + $0xac0] ss:$16 sps:$4 sm:$0xff]   ;;  %v5669_v3 = vld [vmem:[%s6250_s29 + $0xac8] ss:$16 sps:$4 sm:$0xff]  }
 0x189   : > { %3687 = vmatprep.subr.bf16.mxu0 %v5584_v4  ;;  %4031 = vmatprep.subr.bf16.mxu1 %v5587_v5  ;;  %v5674_v4 = vld [vmem:[%s6250_s29 + $0xae4] ss:$16 sps:$4 sm:$0xff]   ;;  %v5677_v5 = vld [vmem:[%s6250_s29 + $0xaec] ss:$16 sps:$4 sm:$0xff]  }
 0x18c   : > { %3688 = vmatpush1.bf16.msra.mxu0 %v5582_v6  ;;  %4032 = vmatpush1.bf16.msra.mxu1 %v5585_v7  ;;  %v5672_v6 = vld [vmem:[%s6250_s29 + $0xae0] ss:$16 sps:$4 sm:$0xff]   ;;  %v5675_v7 = vld [vmem:[%s6250_s29 + $0xae8] ss:$16 sps:$4 sm:$0xff]  }
 0x18d   : > { %3689 = vmatprep.subr.bf16.mxu0 %v5590_v8  ;;  %4033 = vmatprep.subr.bf16.mxu1 %v5593_v9  ;;  %v5680_v8 = vld [vmem:[%s6250_s29 + $0xb04] ss:$16 sps:$4 sm:$0xff]   ;;  %v5683_v9 = vld [vmem:[%s6250_s29 + $0xb0c] ss:$16 sps:$4 sm:$0xff]  }
 0x190   : > { %3690 = vmatpush1.bf16.msra.mxu0 %v5588_v10  ;;  %4034 = vmatpush1.bf16.msra.mxu1 %v5591_v11  ;;  %v5678_v10 = vld [vmem:[%s6250_s29 + $0xb00] ss:$16 sps:$4 sm:$0xff]   ;;  %v5681_v11 = vld [vmem:[%s6250_s29 + $0xb08] ss:$16 sps:$4 sm:$0xff]  }
 0x191   : > { %3691 = vmatprep.subr.bf16.mxu0 %v5596_v12  ;;  %4035 = vmatprep.subr.bf16.mxu1 %v5599_v13  ;;  %v5686_v12 = vld [vmem:[%s6250_s29 + $0xb24] ss:$16 sps:$4 sm:$0xff]   ;;  %v5689_v13 = vld [vmem:[%s6250_s29 + $0xb2c] ss:$16 sps:$4 sm:$0xff]  }
 0x194   : > { %3692 = vmatpush1.bf16.msra.mxu0 %v5594_v14  ;;  %4036 = vmatpush1.bf16.msra.mxu1 %v5597_v15  ;;  %v5684_v14 = vld [vmem:[%s6250_s29 + $0xb20] ss:$16 sps:$4 sm:$0xff]   ;;  %v5687_v15 = vld [vmem:[%s6250_s29 + $0xb28] ss:$16 sps:$4 sm:$0xff]  }
 0x195   : > { %3693 = vmatprep.subr.bf16.mxu0 %v5602_v16  ;;  %4037 = vmatprep.subr.bf16.mxu1 %v5605_v17  ;;  %v5692_v16 = vld [vmem:[%s6250_s29 + $0xb44] ss:$16 sps:$4 sm:$0xff]   ;;  %v5695_v17 = vld [vmem:[%s6250_s29 + $0xb4c] ss:$16 sps:$4 sm:$0xff]  }
 0x198   : > { %3694 = vmatpush1.bf16.msra.mxu0 %v5600_v18  ;;  %4038 = vmatpush1.bf16.msra.mxu1 %v5603_v19  ;;  %v5690_v18 = vld [vmem:[%s6250_s29 + $0xb40] ss:$16 sps:$4 sm:$0xff]   ;;  %v5693_v19 = vld [vmem:[%s6250_s29 + $0xb48] ss:$16 sps:$4 sm:$0xff]  }
 0x199   : > { %3695 = vmatprep.subr.bf16.mxu0 %v5608_v20  ;;  %4039 = vmatprep.subr.bf16.mxu1 %v5611_v21  ;;  %v5698_v20 = vld [vmem:[%s6250_s29 + $0xb64] ss:$16 sps:$4 sm:$0xff]   ;;  %v5701_v21 = vld [vmem:[%s6250_s29 + $0xb6c] ss:$16 sps:$4 sm:$0xff]  }
 0x19c   : > { %3696 = vmatpush1.bf16.msra.mxu0 %v5606_v22  ;;  %4040 = vmatpush1.bf16.msra.mxu1 %v5609_v23  ;;  %v5696_v22 = vld [vmem:[%s6250_s29 + $0xb60] ss:$16 sps:$4 sm:$0xff]   ;;  %v5699_v23 = vld [vmem:[%s6250_s29 + $0xb68] ss:$16 sps:$4 sm:$0xff]  }
 0x19d   : > { %3697 = vmatprep.subr.bf16.mxu0 %v5614_v24  ;;  %4041 = vmatprep.subr.bf16.mxu1 %v5617_v25  ;;  %v5704_v24 = vld [vmem:[%s6250_s29 + $0xb84] ss:$16 sps:$4 sm:$0xff]   ;;  %v5707_v25 = vld [vmem:[%s6250_s29 + $0xb8c] ss:$16 sps:$4 sm:$0xff]  }
 0x1a0   : > { %3698 = vmatpush1.bf16.msra.mxu0 %v5612_v26  ;;  %4042 = vmatpush1.bf16.msra.mxu1 %v5615_v27  ;;  %v5702_v26 = vld [vmem:[%s6250_s29 + $0xb80] ss:$16 sps:$4 sm:$0xff]   ;;  %v5705_v27 = vld [vmem:[%s6250_s29 + $0xb88] ss:$16 sps:$4 sm:$0xff]  }
 0x1a1   : > { %3699 = vmatprep.subr.bf16.mxu0 %v5620_v28  ;;  %4043 = vmatprep.subr.bf16.mxu1 %v5623_v29  ;;  %v5710_v28 = vld [vmem:[%s6250_s29 + $0xba4] ss:$16 sps:$4 sm:$0xff]   ;;  %v5713_v29 = vld [vmem:[%s6250_s29 + $0xbac] ss:$16 sps:$4 sm:$0xff]  }
 0x1a4   : > { %3700 = vmatpush1.bf16.msra.mxu0 %v5618_v30  ;;  %4044 = vmatpush1.bf16.msra.mxu1 %v5621_v33  ;;  %v5708_v30 = vld [vmem:[%s6250_s29 + $0xba0] ss:$16 sps:$4 sm:$0xff]   ;;  %v5711_v33 = vld [vmem:[%s6250_s29 + $0xba8] ss:$16 sps:$4 sm:$0xff]  }
 0x1a5   : > { %3701 = vmatprep.subr.bf16.mxu0 %v5626_v34  ;;  %4045 = vmatprep.subr.bf16.mxu1 %v5629_v37  ;;  %v5716_v34 = vld [vmem:[%s6250_s29 + $0xbc4] ss:$16 sps:$4 sm:$0xff]   ;;  %v5719_v37 = vld [vmem:[%s6250_s29 + $0xbcc] ss:$16 sps:$4 sm:$0xff]  }
 0x1a8   : > { %3702 = vmatpush1.bf16.msra.mxu0 %v5624_v39  ;;  %4046 = vmatpush1.bf16.msra.mxu1 %v5627_v32  ;;  %v5714_v39 = vld [vmem:[%s6250_s29 + $0xbc0] ss:$16 sps:$4 sm:$0xff]   ;;  %v5717_v32 = vld [vmem:[%s6250_s29 + $0xbc8] ss:$16 sps:$4 sm:$0xff]  }
 0x1a9   : > { %3714 = vmatprep.subr.bf16.mxu0 %v5632_v40  ;;  %4058 = vmatprep.subr.bf16.mxu1 %v5635_v41  ;;  %v5722_v40 = vld [vmem:[%s6250_s29 + $0xbe4] ss:$16 sps:$4 sm:$0xff]   ;;  %v5725_v41 = vld [vmem:[%s6250_s29 + $0xbec] ss:$16 sps:$4 sm:$0xff]  }
 0x1ab   : > { %3704 = vmatmul.mubr.bf16.vlgmr.msra.gmra.mrb[0].mxu0 %v4455_v35  ;;  %4048 = vmatmul.mubr.bf16.vlgmr.msra.gmra.mrb[0].mxu1 %v4455_v35  ;;  %v5720_v35 = vld [vmem:[%s6250_s29 + $0xbe0] ss:$16 sps:$4 sm:$0xff]  }
 0x1ac   : > { %3715 = vmatpush1.bf16.msra.mxu0 %v5630_v36  ;;  %4059 = vmatpush1.bf16.msra.mxu1 %v5633_v44  ;;  %v5723_v36 = vld [vmem:[%s6250_s29 + $0xbe8] ss:$16 sps:$4 sm:$0xff]   ;;  %v5728_v44 = vld [vmem:[%s6250_s29 + $0xc04] ss:$16 sps:$4 sm:$0xff]  }
 0x1ad   : > { %3716 = vmatprep.subr.bf16.mxu0 %v5638_v45  ;;  %4060 = vmatprep.subr.bf16.mxu1 %v5641_v46  ;;  %v5731_v45 = vld [vmem:[%s6250_s29 + $0xc0c] ss:$16 sps:$4 sm:$0xff]   ;;  %v4457_v46 = vcombine.low %v6630_v42, %v6633_v43  ;;  %v5732_v43 = vld [vmem:[%s6250_s29 + $0xc20] ss:$16 sps:$4 sm:$0xff]  }
 0x1ae   : > { %3746 = vmatprep.mubr.bf16.mxu0 %v4458_v47  ;;  %4090 = vmatprep.mubr.bf16.mxu1 %v4458_v47  ;;  %v6706_v47 = vld [vmem:[%s6248_s26 + $0x30] sm:$0xff] }
 0x1b0   : > { %3717 = vmatpush1.bf16.msra.mxu0 %v5636_v38  ;;  %4061 = vmatpush1.bf16.msra.mxu1 %v5639_v31  ;;  %v6709_v38 = vld [vmem:[%s6248_s26 + $0x70] sm:$0xff] }
 0x1b1   : > { %3718 = vmatprep.subr.bf16.mxu0 %v5644_v48  ;;  %4062 = vmatprep.subr.bf16.mxu1 %v5647_v49  ;;  %v5726_v31 = vld [vmem:[%s6250_s29 + $0xc00] ss:$16 sps:$4 sm:$0xff]   ;;  %v5729_v48 = vld [vmem:[%s6250_s29 + $0xc08] ss:$16 sps:$4 sm:$0xff]   ;;  %v5734_v49 = vld [vmem:[%s6250_s29 + $0xc24] ss:$16 sps:$4 sm:$0xff]   ;;  %v4460_v42 = vcombine.high %v6706_v47, %v6709_v38 }
 0x1b4   : > { %3719 = vmatpush1.bf16.msra.mxu0 %v5642_v50  ;;  %4063 = vmatpush1.bf16.msra.mxu1 %v5645_v51  ;;  %v5737_v50 = vld [vmem:[%s6250_s29 + $0xc2c] ss:$16 sps:$4 sm:$0xff]   ;;  %v5735_v51 = vld [vmem:[%s6250_s29 + $0xc28] ss:$16 sps:$4 sm:$0xff]  }
 0x1b5   : > { %3720 = vmatprep.subr.bf16.mxu0 %v5650_v52  ;;  %4064 = vmatprep.subr.bf16.mxu1 %v5653_v53  ;;  %v5740_v52 = vld [vmem:[%s6250_s29 + $0xc44] ss:$16 sps:$4 sm:$0xff]   ;;  %v5743_v53 = vld [vmem:[%s6250_s29 + $0xc4c] ss:$16 sps:$4 sm:$0xff]  }
 0x1b8   : > { %3721 = vmatpush1.bf16.msra.mxu0 %v5648_v54  ;;  %4065 = vmatpush1.bf16.msra.mxu1 %v5651_v55  ;;  %v5738_v54 = vld [vmem:[%s6250_s29 + $0xc40] ss:$16 sps:$4 sm:$0xff]   ;;  %v5741_v55 = vld [vmem:[%s6250_s29 + $0xc48] ss:$16 sps:$4 sm:$0xff]  }
 0x1b9   : > { %3722 = vmatprep.subr.bf16.mxu0 %v5656_v56  ;;  %4066 = vmatprep.subr.bf16.mxu1 %v5659_v57  ;;  %v5746_v56 = vld [vmem:[%s6250_s29 + $0xc64] ss:$16 sps:$4 sm:$0xff]   ;;  %v5749_v57 = vld [vmem:[%s6250_s29 + $0xc6c] ss:$16 sps:$4 sm:$0xff]  }
 0x1bc   : > { %3723 = vmatpush1.bf16.msra.mxu0 %v5654_v58  ;;  %4067 = vmatpush1.bf16.msra.mxu1 %v5657_v59  ;;  %v5744_v58 = vld [vmem:[%s6250_s29 + $0xc60] ss:$16 sps:$4 sm:$0xff]   ;;  %v5747_v59 = vld [vmem:[%s6250_s29 + $0xc68] ss:$16 sps:$4 sm:$0xff]  }
 0x1bd   : > { %3724 = vmatprep.subr.bf16.mxu0 %v5662_v60  ;;  %4068 = vmatprep.subr.bf16.mxu1 %v5665_v61  ;;  %v5752_v60 = vld [vmem:[%s6250_s29 + $0xc84] ss:$16 sps:$4 sm:$0xff]   ;;  %v5755_v61 = vld [vmem:[%s6250_s29 + $0xc8c] ss:$16 sps:$4 sm:$0xff]  }
 0x1c0   : > { %3725 = vmatpush1.bf16.msra.mxu0 %v5660_v62  ;;  %4069 = vmatpush1.bf16.msra.mxu1 %v5663_v63  ;;  %v5750_v62 = vld [vmem:[%s6250_s29 + $0xc80] ss:$16 sps:$4 sm:$0xff]   ;;  %v5753_v63 = vld [vmem:[%s6250_s29 + $0xc88] ss:$16 sps:$4 sm:$0xff]  }
 0x1c1   : > { %3726 = vmatprep.subr.bf16.mxu0 %v5668_v0  ;;  %4070 = vmatprep.subr.bf16.mxu1 %v5671_v1  ;;  %v5758_v0 = vld [vmem:[%s6250_s29 + $0xca4] ss:$16 sps:$4 sm:$0xff]   ;;  %v5761_v1 = vld [vmem:[%s6250_s29 + $0xcac] ss:$16 sps:$4 sm:$0xff]  }
 0x1c4   : > { %3727 = vmatpush1.bf16.msra.mxu0 %v5666_v2  ;;  %4071 = vmatpush1.bf16.msra.mxu1 %v5669_v3  ;;  %v5756_v2 = vld [vmem:[%s6250_s29 + $0xca0] ss:$16 sps:$4 sm:$0xff]   ;;  %v5759_v3 = vld [vmem:[%s6250_s29 + $0xca8] ss:$16 sps:$4 sm:$0xff]  }
 0x1c5   : > { %3728 = vmatprep.subr.bf16.mxu0 %v5674_v4  ;;  %4072 = vmatprep.subr.bf16.mxu1 %v5677_v5  ;;  %v5764_v4 = vld [vmem:[%s6250_s29 + $0xcc4] ss:$16 sps:$4 sm:$0xff]   ;;  %v5767_v5 = vld [vmem:[%s6250_s29 + $0xccc] ss:$16 sps:$4 sm:$0xff]  }
 0x1c8   : > { %3729 = vmatpush1.bf16.msra.mxu0 %v5672_v6  ;;  %4073 = vmatpush1.bf16.msra.mxu1 %v5675_v7  ;;  %v5762_v6 = vld [vmem:[%s6250_s29 + $0xcc0] ss:$16 sps:$4 sm:$0xff]   ;;  %v5765_v7 = vld [vmem:[%s6250_s29 + $0xcc8] ss:$16 sps:$4 sm:$0xff]  }
 0x1c9   : > { %3730 = vmatprep.subr.bf16.mxu0 %v5680_v8  ;;  %4074 = vmatprep.subr.bf16.mxu1 %v5683_v9  ;;  %v5770_v8 = vld [vmem:[%s6250_s29 + $0xce4] ss:$16 sps:$4 sm:$0xff]   ;;  %v5773_v9 = vld [vmem:[%s6250_s29 + $0xcec] ss:$16 sps:$4 sm:$0xff]  }
 0x1cc   : > { %3731 = vmatpush1.bf16.msra.mxu0 %v5678_v10  ;;  %4075 = vmatpush1.bf16.msra.mxu1 %v5681_v11  ;;  %v5768_v10 = vld [vmem:[%s6250_s29 + $0xce0] ss:$16 sps:$4 sm:$0xff]   ;;  %v5771_v11 = vld [vmem:[%s6250_s29 + $0xce8] ss:$16 sps:$4 sm:$0xff]  }
 0x1cd   : > { %3732 = vmatprep.subr.bf16.mxu0 %v5686_v12  ;;  %4076 = vmatprep.subr.bf16.mxu1 %v5689_v13  ;;  %v5776_v12 = vld [vmem:[%s6250_s29 + $0xd04] ss:$16 sps:$4 sm:$0xff]   ;;  %v5779_v13 = vld [vmem:[%s6250_s29 + $0xd0c] ss:$16 sps:$4 sm:$0xff]  }
 0x1d0   : > { %3733 = vmatpush1.bf16.msra.mxu0 %v5684_v14  ;;  %4077 = vmatpush1.bf16.msra.mxu1 %v5687_v15  ;;  %v5774_v14 = vld [vmem:[%s6250_s29 + $0xd00] ss:$16 sps:$4 sm:$0xff]   ;;  %v5777_v15 = vld [vmem:[%s6250_s29 + $0xd08] ss:$16 sps:$4 sm:$0xff]  }
 0x1d1   : > { %3734 = vmatprep.subr.bf16.mxu0 %v5692_v16  ;;  %4078 = vmatprep.subr.bf16.mxu1 %v5695_v17  ;;  %v5782_v16 = vld [vmem:[%s6250_s29 + $0xd24] ss:$16 sps:$4 sm:$0xff]   ;;  %v5785_v17 = vld [vmem:[%s6250_s29 + $0xd2c] ss:$16 sps:$4 sm:$0xff]  }
 0x1d4   : > { %3735 = vmatpush1.bf16.msra.mxu0 %v5690_v18  ;;  %4079 = vmatpush1.bf16.msra.mxu1 %v5693_v19  ;;  %v5780_v18 = vld [vmem:[%s6250_s29 + $0xd20] ss:$16 sps:$4 sm:$0xff]   ;;  %v5783_v19 = vld [vmem:[%s6250_s29 + $0xd28] ss:$16 sps:$4 sm:$0xff]  }
 0x1d5   : > { %3736 = vmatprep.subr.bf16.mxu0 %v5698_v20  ;;  %4080 = vmatprep.subr.bf16.mxu1 %v5701_v21  ;;  %v5788_v20 = vld [vmem:[%s6250_s29 + $0xd44] ss:$16 sps:$4 sm:$0xff]   ;;  %v5791_v21 = vld [vmem:[%s6250_s29 + $0xd4c] ss:$16 sps:$4 sm:$0xff]  }
 0x1d8   : > { %3737 = vmatpush1.bf16.msra.mxu0 %v5696_v22  ;;  %4081 = vmatpush1.bf16.msra.mxu1 %v5699_v23  ;;  %v5786_v22 = vld [vmem:[%s6250_s29 + $0xd40] ss:$16 sps:$4 sm:$0xff]   ;;  %v5789_v23 = vld [vmem:[%s6250_s29 + $0xd48] ss:$16 sps:$4 sm:$0xff]  }
 0x1d9   : > { %3738 = vmatprep.subr.bf16.mxu0 %v5704_v24  ;;  %4082 = vmatprep.subr.bf16.mxu1 %v5707_v25  ;;  %v5794_v24 = vld [vmem:[%s6250_s29 + $0xd64] ss:$16 sps:$4 sm:$0xff]   ;;  %v5797_v25 = vld [vmem:[%s6250_s29 + $0xd6c] ss:$16 sps:$4 sm:$0xff]  }
 0x1dc   : > { %3739 = vmatpush1.bf16.msra.mxu0 %v5702_v26  ;;  %4083 = vmatpush1.bf16.msra.mxu1 %v5705_v27  ;;  %v5792_v26 = vld [vmem:[%s6250_s29 + $0xd60] ss:$16 sps:$4 sm:$0xff]   ;;  %v5795_v27 = vld [vmem:[%s6250_s29 + $0xd68] ss:$16 sps:$4 sm:$0xff]  }
 0x1dd   : > { %3740 = vmatprep.subr.bf16.mxu0 %v5710_v28  ;;  %4084 = vmatprep.subr.bf16.mxu1 %v5713_v29  ;;  %v5800_v28 = vld [vmem:[%s6250_s29 + $0xd84] ss:$16 sps:$4 sm:$0xff]   ;;  %v5803_v29 = vld [vmem:[%s6250_s29 + $0xd8c] ss:$16 sps:$4 sm:$0xff]  }
 0x1e0   : > { %3741 = vmatpush1.bf16.msra.mxu0 %v5708_v30  ;;  %4085 = vmatpush1.bf16.msra.mxu1 %v5711_v33  ;;  %v5798_v30 = vld [vmem:[%s6250_s29 + $0xd80] ss:$16 sps:$4 sm:$0xff]   ;;  %v5801_v33 = vld [vmem:[%s6250_s29 + $0xd88] ss:$16 sps:$4 sm:$0xff]  }
 0x1e1   : > { %3742 = vmatprep.subr.bf16.mxu0 %v5716_v34  ;;  %4086 = vmatprep.subr.bf16.mxu1 %v5719_v37  ;;  %v5806_v34 = vld [vmem:[%s6250_s29 + $0xda4] ss:$16 sps:$4 sm:$0xff]   ;;  %v5809_v37 = vld [vmem:[%s6250_s29 + $0xdac] ss:$16 sps:$4 sm:$0xff]  }
 0x1e4   : > { %3743 = vmatpush1.bf16.msra.mxu0 %v5714_v39  ;;  %4087 = vmatpush1.bf16.msra.mxu1 %v5717_v32  ;;  %v5804_v39 = vld [vmem:[%s6250_s29 + $0xda0] ss:$16 sps:$4 sm:$0xff]   ;;  %v5807_v32 = vld [vmem:[%s6250_s29 + $0xda8] ss:$16 sps:$4 sm:$0xff]  }
 0x1e5   : > { %3744 = vmatprep.subr.bf16.mxu0 %v5722_v40  ;;  %4088 = vmatprep.subr.bf16.mxu1 %v5725_v41  ;;  %v5812_v40 = vld [vmem:[%s6250_s29 + $0xdc4] ss:$16 sps:$4 sm:$0xff]   ;;  %v5815_v41 = vld [vmem:[%s6250_s29 + $0xdcc] ss:$16 sps:$4 sm:$0xff]  }
 0x1e8   : > { %3745 = vmatpush1.bf16.msra.mxu0 %v5720_v35  ;;  %4089 = vmatpush1.bf16.msra.mxu1 %v5723_v36  ;;  %v5810_v35 = vld [vmem:[%s6250_s29 + $0xdc0] ss:$16 sps:$4 sm:$0xff]   ;;  %v5813_v36 = vld [vmem:[%s6250_s29 + $0xdc8] ss:$16 sps:$4 sm:$0xff]  }
 0x1e9   : > { %3757 = vmatprep.subr.bf16.mxu0 %v5728_v44  ;;  %4101 = vmatprep.subr.bf16.mxu1 %v5731_v45  ;;  %v5818_v44 = vld [vmem:[%s6250_s29 + $0xde4] ss:$16 sps:$4 sm:$0xff]   ;;  %v5821_v45 = vld [vmem:[%s6250_s29 + $0xdec] ss:$16 sps:$4 sm:$0xff]  }
 0x1eb   : > { %3747 = vmatmul.mubr.bf16.vlgmr.msra.gmra.mrb[0].mxu0 %v4457_v46  ;;  %4091 = vmatmul.mubr.bf16.vlgmr.msra.gmra.mrb[0].mxu1 %v4457_v46  ;;  %v5816_v46 = vld [vmem:[%s6250_s29 + $0xde0] ss:$16 sps:$4 sm:$0xff]  }
 0x1ec   : > { %3758 = vmatpush1.bf16.msra.mxu0 %v5726_v31  ;;  %4102 = vmatpush1.bf16.msra.mxu1 %v5729_v48  ;;  %v5819_v31 = vld [vmem:[%s6250_s29 + $0xde8] ss:$16 sps:$4 sm:$0xff]   ;;  %v5824_v48 = vld [vmem:[%s6250_s29 + $0xe04] ss:$16 sps:$4 sm:$0xff]  }
 0x1ed   : > { %3759 = vmatprep.subr.bf16.mxu0 %v5734_v49  ;;  %4103 = vmatprep.subr.bf16.mxu1 %v5737_v50  ;;  %v5827_v49 = vld [vmem:[%s6250_s29 + $0xe0c] ss:$16 sps:$4 sm:$0xff]   ;;  %v4459_v50 = vcombine.low %v6706_v47, %v6709_v38  ;;  %v5828_v38 = vld [vmem:[%s6250_s29 + $0xe20] ss:$16 sps:$4 sm:$0xff]  }
 0x1ee   : > { %3789 = vmatprep.mubr.bf16.mxu0 %v4460_v42  ;;  %4133 = vmatprep.mubr.bf16.mxu1 %v4460_v42  ;;  %v6780_v42 = vld [vmem:[%s6248_s26 + $0x38] sm:$0xff] }
 0x1f0   : > { %3760 = vmatpush1.bf16.msra.mxu0 %v5732_v43  ;;  %4104 = vmatpush1.bf16.msra.mxu1 %v5735_v51  ;;  %v6783_v43 = vld [vmem:[%s6248_s26 + $0x78] sm:$0xff]  ;;  %v5822_v51 = vld [vmem:[%s6250_s29 + $0xe00] ss:$16 sps:$4 sm:$0xff]  }
 0x1f1   : > { %3761 = vmatprep.subr.bf16.mxu0 %v5740_v52  ;;  %4105 = vmatprep.subr.bf16.mxu1 %v5743_v53  ;;  %v5825_v52 = vld [vmem:[%s6250_s29 + $0xe08] ss:$16 sps:$4 sm:$0xff]   ;;  %v5830_v53 = vld [vmem:[%s6250_s29 + $0xe24] ss:$16 sps:$4 sm:$0xff]   ;;  %v4462_v47 = vcombine.high %v6780_v42, %v6783_v43 }
 0x1f4   : > { %3762 = vmatpush1.bf16.msra.mxu0 %v5738_v54  ;;  %4106 = vmatpush1.bf16.msra.mxu1 %v5741_v55  ;;  %v5833_v54 = vld [vmem:[%s6250_s29 + $0xe2c] ss:$16 sps:$4 sm:$0xff]   ;;  %v5831_v55 = vld [vmem:[%s6250_s29 + $0xe28] ss:$16 sps:$4 sm:$0xff]  }
 0x1f5   : > { %3763 = vmatprep.subr.bf16.mxu0 %v5746_v56  ;;  %4107 = vmatprep.subr.bf16.mxu1 %v5749_v57  ;;  %v5836_v56 = vld [vmem:[%s6250_s29 + $0xe44] ss:$16 sps:$4 sm:$0xff]   ;;  %v5839_v57 = vld [vmem:[%s6250_s29 + $0xe4c] ss:$16 sps:$4 sm:$0xff]  }
 0x1f8   : > { %3764 = vmatpush1.bf16.msra.mxu0 %v5744_v58  ;;  %4108 = vmatpush1.bf16.msra.mxu1 %v5747_v59  ;;  %v5834_v58 = vld [vmem:[%s6250_s29 + $0xe40] ss:$16 sps:$4 sm:$0xff]   ;;  %v5837_v59 = vld [vmem:[%s6250_s29 + $0xe48] ss:$16 sps:$4 sm:$0xff]  }
 0x1f9   : > { %3765 = vmatprep.subr.bf16.mxu0 %v5752_v60  ;;  %4109 = vmatprep.subr.bf16.mxu1 %v5755_v61  ;;  %v5842_v60 = vld [vmem:[%s6250_s29 + $0xe64] ss:$16 sps:$4 sm:$0xff]   ;;  %v5845_v61 = vld [vmem:[%s6250_s29 + $0xe6c] ss:$16 sps:$4 sm:$0xff]  }
 0x1fc   : > { %3766 = vmatpush1.bf16.msra.mxu0 %v5750_v62  ;;  %4110 = vmatpush1.bf16.msra.mxu1 %v5753_v63  ;;  %v5840_v62 = vld [vmem:[%s6250_s29 + $0xe60] ss:$16 sps:$4 sm:$0xff]   ;;  %v5843_v63 = vld [vmem:[%s6250_s29 + $0xe68] ss:$16 sps:$4 sm:$0xff]  }
 0x1fd   : > { %3767 = vmatprep.subr.bf16.mxu0 %v5758_v0  ;;  %4111 = vmatprep.subr.bf16.mxu1 %v5761_v1  ;;  %v5848_v0 = vld [vmem:[%s6250_s29 + $0xe84] ss:$16 sps:$4 sm:$0xff]   ;;  %v5851_v1 = vld [vmem:[%s6250_s29 + $0xe8c] ss:$16 sps:$4 sm:$0xff]  }
 0x200   : > { %3768 = vmatpush1.bf16.msra.mxu0 %v5756_v2  ;;  %4112 = vmatpush1.bf16.msra.mxu1 %v5759_v3  ;;  %v5846_v2 = vld [vmem:[%s6250_s29 + $0xe80] ss:$16 sps:$4 sm:$0xff]   ;;  %v5849_v3 = vld [vmem:[%s6250_s29 + $0xe88] ss:$16 sps:$4 sm:$0xff]  }
 0x201   : > { %3769 = vmatprep.subr.bf16.mxu0 %v5764_v4  ;;  %4113 = vmatprep.subr.bf16.mxu1 %v5767_v5  ;;  %v5854_v4 = vld [vmem:[%s6250_s29 + $0xea4] ss:$16 sps:$4 sm:$0xff]   ;;  %v5857_v5 = vld [vmem:[%s6250_s29 + $0xeac] ss:$16 sps:$4 sm:$0xff]  }
 0x204   : > { %3770 = vmatpush1.bf16.msra.mxu0 %v5762_v6  ;;  %4114 = vmatpush1.bf16.msra.mxu1 %v5765_v7  ;;  %v5852_v6 = vld [vmem:[%s6250_s29 + $0xea0] ss:$16 sps:$4 sm:$0xff]   ;;  %v5855_v7 = vld [vmem:[%s6250_s29 + $0xea8] ss:$16 sps:$4 sm:$0xff]  }
 0x205   : > { %3771 = vmatprep.subr.bf16.mxu0 %v5770_v8  ;;  %4115 = vmatprep.subr.bf16.mxu1 %v5773_v9  ;;  %v5860_v8 = vld [vmem:[%s6250_s29 + $0xec4] ss:$16 sps:$4 sm:$0xff]   ;;  %v5863_v9 = vld [vmem:[%s6250_s29 + $0xecc] ss:$16 sps:$4 sm:$0xff]  }
 0x208   : > { %3772 = vmatpush1.bf16.msra.mxu0 %v5768_v10  ;;  %4116 = vmatpush1.bf16.msra.mxu1 %v5771_v11  ;;  %v5858_v10 = vld [vmem:[%s6250_s29 + $0xec0] ss:$16 sps:$4 sm:$0xff]   ;;  %v5861_v11 = vld [vmem:[%s6250_s29 + $0xec8] ss:$16 sps:$4 sm:$0xff]  }
 0x209   : > { %3773 = vmatprep.subr.bf16.mxu0 %v5776_v12  ;;  %4117 = vmatprep.subr.bf16.mxu1 %v5779_v13  ;;  %v5866_v12 = vld [vmem:[%s6250_s29 + $0xee4] ss:$16 sps:$4 sm:$0xff]   ;;  %v5869_v13 = vld [vmem:[%s6250_s29 + $0xeec] ss:$16 sps:$4 sm:$0xff]  }
 0x20c   : > { %3774 = vmatpush1.bf16.msra.mxu0 %v5774_v14  ;;  %4118 = vmatpush1.bf16.msra.mxu1 %v5777_v15  ;;  %v5864_v14 = vld [vmem:[%s6250_s29 + $0xee0] ss:$16 sps:$4 sm:$0xff]   ;;  %v5867_v15 = vld [vmem:[%s6250_s29 + $0xee8] ss:$16 sps:$4 sm:$0xff]  }
 0x20d   : > { %3775 = vmatprep.subr.bf16.mxu0 %v5782_v16  ;;  %4119 = vmatprep.subr.bf16.mxu1 %v5785_v17  ;;  %v5872_v16 = vld [vmem:[%s6250_s29 + $0xf04] ss:$16 sps:$4 sm:$0xff]   ;;  %v5875_v17 = vld [vmem:[%s6250_s29 + $0xf0c] ss:$16 sps:$4 sm:$0xff]  }
 0x210   : > { %3776 = vmatpush1.bf16.msra.mxu0 %v5780_v18  ;;  %4120 = vmatpush1.bf16.msra.mxu1 %v5783_v19  ;;  %v5870_v18 = vld [vmem:[%s6250_s29 + $0xf00] ss:$16 sps:$4 sm:$0xff]   ;;  %v5873_v19 = vld [vmem:[%s6250_s29 + $0xf08] ss:$16 sps:$4 sm:$0xff]  }
 0x211   : > { %3777 = vmatprep.subr.bf16.mxu0 %v5788_v20  ;;  %4121 = vmatprep.subr.bf16.mxu1 %v5791_v21  ;;  %v5878_v20 = vld [vmem:[%s6250_s29 + $0xf24] ss:$16 sps:$4 sm:$0xff]   ;;  %v5881_v21 = vld [vmem:[%s6250_s29 + $0xf2c] ss:$16 sps:$4 sm:$0xff]  }
 0x214   : > { %3778 = vmatpush1.bf16.msra.mxu0 %v5786_v22  ;;  %4122 = vmatpush1.bf16.msra.mxu1 %v5789_v23  ;;  %v5876_v22 = vld [vmem:[%s6250_s29 + $0xf20] ss:$16 sps:$4 sm:$0xff]   ;;  %v5879_v23 = vld [vmem:[%s6250_s29 + $0xf28] ss:$16 sps:$4 sm:$0xff]  }
 0x215   : > { %3779 = vmatprep.subr.bf16.mxu0 %v5794_v24  ;;  %4123 = vmatprep.subr.bf16.mxu1 %v5797_v25  ;;  %v5884_v24 = vld [vmem:[%s6250_s29 + $0xf44] ss:$16 sps:$4 sm:$0xff]   ;;  %v5887_v25 = vld [vmem:[%s6250_s29 + $0xf4c] ss:$16 sps:$4 sm:$0xff]  }
 0x218   : > { %3780 = vmatpush1.bf16.msra.mxu0 %v5792_v26  ;;  %4124 = vmatpush1.bf16.msra.mxu1 %v5795_v27  ;;  %v5882_v26 = vld [vmem:[%s6250_s29 + $0xf40] ss:$16 sps:$4 sm:$0xff]   ;;  %v5885_v27 = vld [vmem:[%s6250_s29 + $0xf48] ss:$16 sps:$4 sm:$0xff]  }
 0x219   : > { %3781 = vmatprep.subr.bf16.mxu0 %v5800_v28  ;;  %4125 = vmatprep.subr.bf16.mxu1 %v5803_v29  ;;  %v5890_v28 = vld [vmem:[%s6250_s29 + $0xf64] ss:$16 sps:$4 sm:$0xff]   ;;  %v5893_v29 = vld [vmem:[%s6250_s29 + $0xf6c] ss:$16 sps:$4 sm:$0xff]  }
 0x21c   : > { %3782 = vmatpush1.bf16.msra.mxu0 %v5798_v30  ;;  %4126 = vmatpush1.bf16.msra.mxu1 %v5801_v33  ;;  %v5888_v30 = vld [vmem:[%s6250_s29 + $0xf60] ss:$16 sps:$4 sm:$0xff]   ;;  %v5891_v33 = vld [vmem:[%s6250_s29 + $0xf68] ss:$16 sps:$4 sm:$0xff]  }
 0x21d   : > { %3783 = vmatprep.subr.bf16.mxu0 %v5806_v34  ;;  %4127 = vmatprep.subr.bf16.mxu1 %v5809_v37  ;;  %v5896_v34 = vld [vmem:[%s6250_s29 + $0xf84] ss:$16 sps:$4 sm:$0xff]   ;;  %v5899_v37 = vld [vmem:[%s6250_s29 + $0xf8c] ss:$16 sps:$4 sm:$0xff]  }
 0x220   : > { %3784 = vmatpush1.bf16.msra.mxu0 %v5804_v39  ;;  %4128 = vmatpush1.bf16.msra.mxu1 %v5807_v32  ;;  %v5894_v39 = vld [vmem:[%s6250_s29 + $0xf80] ss:$16 sps:$4 sm:$0xff]   ;;  %v5897_v32 = vld [vmem:[%s6250_s29 + $0xf88] ss:$16 sps:$4 sm:$0xff]  }
 0x221   : > { %3785 = vmatprep.subr.bf16.mxu0 %v5812_v40  ;;  %4129 = vmatprep.subr.bf16.mxu1 %v5815_v41  ;;  %v5902_v40 = vld [vmem:[%s6250_s29 + $0xfa4] ss:$16 sps:$4 sm:$0xff]   ;;  %v5905_v41 = vld [vmem:[%s6250_s29 + $0xfac] ss:$16 sps:$4 sm:$0xff]  }
 0x224   : > { %3786 = vmatpush1.bf16.msra.mxu0 %v5810_v35  ;;  %4130 = vmatpush1.bf16.msra.mxu1 %v5813_v36  ;;  %v5900_v35 = vld [vmem:[%s6250_s29 + $0xfa0] ss:$16 sps:$4 sm:$0xff]   ;;  %v5903_v36 = vld [vmem:[%s6250_s29 + $0xfa8] ss:$16 sps:$4 sm:$0xff]  }
 0x225   : > { %3787 = vmatprep.subr.bf16.mxu0 %v5818_v44  ;;  %4131 = vmatprep.subr.bf16.mxu1 %v5821_v45  ;;  %v5908_v44 = vld [vmem:[%s6250_s29 + $0xfc4] ss:$16 sps:$4 sm:$0xff]   ;;  %v5911_v45 = vld [vmem:[%s6250_s29 + $0xfcc] ss:$16 sps:$4 sm:$0xff]  }
 0x228   : > { %3788 = vmatpush1.bf16.msra.mxu0 %v5816_v46  ;;  %4132 = vmatpush1.bf16.msra.mxu1 %v5819_v31  ;;  %v5906_v46 = vld [vmem:[%s6250_s29 + $0xfc0] ss:$16 sps:$4 sm:$0xff]   ;;  %v5909_v31 = vld [vmem:[%s6250_s29 + $0xfc8] ss:$16 sps:$4 sm:$0xff]  }
 0x229   : > { %3800 = vmatprep.subr.bf16.mxu0 %v5824_v48  ;;  %4144 = vmatprep.subr.bf16.mxu1 %v5827_v49  ;;  %v5914_v48 = vld [vmem:[%s6250_s29 + $0xfe4] ss:$16 sps:$4 sm:$0xff]   ;;  %v5917_v49 = vld [vmem:[%s6250_s29 + $0xfec] ss:$16 sps:$4 sm:$0xff]  }
 0x22b   : > { %3790 = vmatmul.mubr.bf16.vlgmr.msra.gmra.mrb[0].mxu0 %v4459_v50  ;;  %4134 = vmatmul.mubr.bf16.vlgmr.msra.gmra.mrb[0].mxu1 %v4459_v50  ;;  %v5912_v50 = vld [vmem:[%s6250_s29 + $0xfe0] ss:$16 sps:$4 sm:$0xff]  }
 0x22c   : > { %3801 = vmatpush1.bf16.msra.mxu0 %v5822_v51  ;;  %4145 = vmatpush1.bf16.msra.mxu1 %v5825_v52  ;;  %v5915_v51 = vld [vmem:[%s6250_s29 + $0xfe8] ss:$16 sps:$4 sm:$0xff]   ;;  %v4461_v52 = vcombine.low %v6780_v42, %v6783_v43 }
 0x22d   : > { %3802 = vmatprep.subr.bf16.mxu0 %v5830_v53  ;;  %4146 = vmatprep.subr.bf16.mxu1 %v5833_v54  ;;  %v323_v53 = vld [vmem:[#allocation2] sm:$0xff]  ;;  %v325_v54 = vld [vmem:[#allocation2 + $0x10] sm:$0xff] }
 0x22e   : > { %3832 = vmatprep.mubr.bf16.mxu0 %v4462_v47  ;;  %4176 = vmatprep.mubr.bf16.mxu1 %v4462_v47  ;;  %v324_v47 = vld [vmem:[#allocation2 + $0x8] sm:$0xff] }
 0x230   : > { %3803 = vmatpush1.bf16.msra.mxu0 %v5828_v38  ;;  %4147 = vmatpush1.bf16.msra.mxu1 %v5831_v55  ;;  %v326_v38 = vld [vmem:[#allocation2 + $0x18] sm:$0xff] }
 0x231   : > { %3804 = vmatprep.subr.bf16.mxu0 %v5836_v56  ;;  %4148 = vmatprep.subr.bf16.mxu1 %v5839_v57  ;;  %v327_v57 = vld [vmem:[#allocation2 + $0x20] sm:$0xff] }
 0x234   : > { %3805 = vmatpush1.bf16.msra.mxu0 %v5834_v58  ;;  %4149 = vmatpush1.bf16.msra.mxu1 %v5837_v59  ;;  %v329_v58 = vld [vmem:[#allocation2 + $0x30] sm:$0xff] }
 0x235   : > { %3806 = vmatprep.subr.bf16.mxu0 %v5842_v60  ;;  %4150 = vmatprep.subr.bf16.mxu1 %v5845_v61 }
 0x238   : > { %3807 = vmatpush1.bf16.msra.mxu0 %v5840_v62  ;;  %4151 = vmatpush1.bf16.msra.mxu1 %v5843_v63  ;;  %v328_v63 = vld [vmem:[#allocation2 + $0x28] sm:$0xff] }
 0x239   : > { %3808 = vmatprep.subr.bf16.mxu0 %v5848_v0  ;;  %4152 = vmatprep.subr.bf16.mxu1 %v5851_v1  ;;  %v330_v0 = vld [vmem:[#allocation2 + $0x38] sm:$0xff] }
 0x23c   : > { %3809 = vmatpush1.bf16.msra.mxu0 %v5846_v2  ;;  %4153 = vmatpush1.bf16.msra.mxu1 %v5849_v3 }
 0x23d   : > { %3810 = vmatprep.subr.bf16.mxu0 %v5854_v4  ;;  %4154 = vmatprep.subr.bf16.mxu1 %v5857_v5 }
 0x240   : > { %3811 = vmatpush1.bf16.msra.mxu0 %v5852_v6  ;;  %4155 = vmatpush1.bf16.msra.mxu1 %v5855_v7 }
 0x241   : > { %3812 = vmatprep.subr.bf16.mxu0 %v5860_v8  ;;  %4156 = vmatprep.subr.bf16.mxu1 %v5863_v9  ;;  %v4217_v9 = vlaneseq (!%p4975_p12) }
 0x244   : > { %3813 = vmatpush1.bf16.msra.mxu0 %v5858_v10  ;;  %4157 = vmatpush1.bf16.msra.mxu1 %v5861_v11  ;;  %v4218_v10 = vshrl.u32 (!%p4975_p12), %v4217_v9, 7  ;;  %v4215_v11 = vld [vmem:[%s307_s22] sm:$0xf] (!%p4975_p12) }
 0x245   : > { %3814 = vmatprep.subr.bf16.mxu0 %v5866_v12  ;;  %4158 = vmatprep.subr.bf16.mxu1 %v5869_v13 }
 0x248   : > { %3815 = vmatpush1.bf16.msra.mxu0 %v5864_v14  ;;  %4159 = vmatpush1.bf16.msra.mxu1 %v5867_v15  ;;  %v4219_v14 = vsub.s32 (!%p4975_p12), 0, %v4218_v10  ;;  %v4223_v15 = vsub.s32 (!%p4975_p12), 1, %v4218_v10 }
 0x249   : > { %3816 = vmatprep.subr.bf16.mxu0 %v5872_v16  ;;  %4160 = vmatprep.subr.bf16.mxu1 %v5875_v17  ;;  %v4227_v16 = vsub.s32 (!%p4975_p12), 2, %v4218_v10  ;;  %v4231_v17 = vsub.s32 (!%p4975_p12), 3, %v4218_v10 }
 0x24c   : > { %3817 = vmatpush1.bf16.msra.mxu0 %v5870_v18  ;;  %4161 = vmatpush1.bf16.msra.mxu1 %v5873_v19 }
 0x24d   : > { %3818 = vmatprep.subr.bf16.mxu0 %v5878_v20  ;;  %4162 = vmatprep.subr.bf16.mxu1 %v5881_v21  ;;  %v4220_v21 = vrot.slane (!%p4975_p12), %v4215_v11, %v4219_v14 }
 0x250   : > { %3819 = vmatpush1.bf16.msra.mxu0 %v5876_v22  ;;  %4163 = vmatpush1.bf16.msra.mxu1 %v5879_v23  ;;  %v4224_v22 = vrot.slane (!%p4975_p12), %v4215_v11, %v4223_v15  ;;  %v4228_v23 = vrot.slane (!%p4975_p12), %v4215_v11, %v4227_v16 }
 0x251   : > { %3820 = vmatprep.subr.bf16.mxu0 %v5884_v24  ;;  %4164 = vmatprep.subr.bf16.mxu1 %v5887_v25  ;;  %v4232_v24 = vrot.slane (!%p4975_p12), %v4215_v11, %v4231_v17 }
 0x254   : > { %3821 = vmatpush1.bf16.msra.mxu0 %v5882_v26  ;;  %4165 = vmatpush1.bf16.msra.mxu1 %v5885_v27 }
 0x255   : > { %3822 = vmatprep.subr.bf16.mxu0 %v5890_v28  ;;  %4166 = vmatprep.subr.bf16.mxu1 %v5893_v29 }
 0x258   : > { %3823 = vmatpush1.bf16.msra.mxu0 %v5888_v30  ;;  %4167 = vmatpush1.bf16.msra.mxu1 %v5891_v33 }
 0x259   : > { %3824 = vmatprep.subr.bf16.mxu0 %v5896_v34  ;;  %4168 = vmatprep.subr.bf16.mxu1 %v5899_v37 }
 0x25c   : > { %3825 = vmatpush1.bf16.msra.mxu0 %v5894_v39  ;;  %4169 = vmatpush1.bf16.msra.mxu1 %v5897_v32 }
 0x25d   : > { %3826 = vmatprep.subr.bf16.mxu0 %v5902_v40  ;;  %4170 = vmatprep.subr.bf16.mxu1 %v5905_v41 }
 0x260   : > { %3827 = vmatpush1.bf16.msra.mxu0 %v5900_v35  ;;  %4171 = vmatpush1.bf16.msra.mxu1 %v5903_v36 }
 0x261   : > { %3828 = vmatprep.subr.bf16.mxu0 %v5908_v44  ;;  %4172 = vmatprep.subr.bf16.mxu1 %v5911_v45 }
 0x264   : > { %3829 = vmatpush1.bf16.msra.mxu0 %v5906_v46  ;;  %4173 = vmatpush1.bf16.msra.mxu1 %v5909_v31 }
 0x265   : > { %3830 = vmatprep.subr.bf16.mxu0 %v5914_v48  ;;  %4174 = vmatprep.subr.bf16.mxu1 %v5917_v49 }
 0x268   : > { %3831 = vmatpush1.bf16.msra.mxu0 %v5912_v50  ;;  %4175 = vmatpush1.bf16.msra.mxu1 %v5915_v51 }
 0x26b   : > { %3833 = vmatmul.mubr.bf16.vlgmr.msra.gmra.mrb[0].mxu0 %v4461_v52  ;;  %4177 = vmatmul.mubr.bf16.vlgmr.msra.gmra.mrb[0].mxu1 %v4461_v52 }
 0x33e   : > { %v3834_v55 = vpop.f32.mrb[0].mxu0  ;;  %v4178_v56 = vpop.f32.mrb[0].mxu1  ;;  %4206 = sbr.rel (%p4975_p12) target bundleno = 851 (0x353), region = 67 }
 0x33f   : > { %v4187_v59 = vadd.f32 %v3834_v55, %v323_v53  ;;  %v4189_v60 = vadd.f32 %v4178_v56, %v325_v54  ;;  %v3836_v61 = vpop.f32.mrb[1].mxu0  ;;  %v4180_v62 = vpop.f32.mrb[1].mxu1 }
 0x340   : > { %v4188_v1 = vadd.f32 %v3836_v61, %v324_v47  ;;  %v4190_v42 = vadd.f32 %v4180_v62, %v326_v38  ;;  %v3838_v43 = vpop.f32.mrb[2].mxu0  ;;  %v4182_v2 = vpop.f32.mrb[2].mxu1 }
 0x341   : > { %4195 = vst [vmem:[#allocation2] sm:$0xff] %v4187_v59  ;;  %4197 = vst [vmem:[#allocation2 + $0x10] sm:$0xff] %v4189_v60  ;;  %v4191_v3 = vadd.f32 %v3838_v43, %v327_v57  ;;  %v4193_v4 = vadd.f32 %v4182_v2, %v329_v58  ;;  %v3840_v5 = vpop.f32.mrb[3].mxu0  ;;  %v4184_v6 = vpop.f32.mrb[3].mxu1 }
 0x342   : > { %4196 = vst [vmem:[#allocation2 + $0x8] sm:$0xff] %v4188_v1  ;;  %4198 = vst [vmem:[#allocation2 + $0x18] sm:$0xff] %v4190_v42  ;;  %v4192_v7 = vadd.f32 %v3840_v5, %v328_v63  ;;  %v4194_v8 = vadd.f32 %v4184_v6, %v330_v0 }
 0x343   : > { %4199 = vst [vmem:[#allocation2 + $0x20] sm:$0xff] %v4191_v3  ;;  %4201 = vst [vmem:[#allocation2 + $0x30] sm:$0xff] %v4193_v4 }
 0x344   : > { %4200 = vst [vmem:[#allocation2 + $0x28] sm:$0xff] %v4192_v7  ;;  %4202 = vst [vmem:[#allocation2 + $0x38] sm:$0xff] %v4194_v8 }
 0x348   : > { %v4207_v12 = vld [vmem:[#allocation2] sm:$0xff]  ;;  %v4209_v18 = vld [vmem:[#allocation2 + $0x10] sm:$0xff] }
 0x349   : > { %v4208_v13 = vld [vmem:[#allocation2 + $0x8] sm:$0xff]  ;;  %v4210_v19 = vld [vmem:[#allocation2 + $0x18] sm:$0xff]  ;;  %v4237_v28 = vadd.f32 %v4220_v21, %v4207_v12  ;;  %v4239_v30 = vadd.f32 %v4228_v23, %v4209_v18 }
 0x34a   : > { %v4211_v20 = vld [vmem:[#allocation2 + $0x20] sm:$0xff]  ;;  %v4213_v26 = vld [vmem:[#allocation2 + $0x30] sm:$0xff]  ;;  %v4238_v29 = vadd.f32 %v4224_v22, %v4208_v13  ;;  %v4240_v33 = vadd.f32 %v4232_v24, %v4210_v19 }
 0x34b   : > { %v4212_v25 = vld [vmem:[#allocation2 + $0x28] sm:$0xff]  ;;  %v4214_v27 = vld [vmem:[#allocation2 + $0x38] sm:$0xff]  ;;  %v4241_v34 = vadd.f32 %v4220_v21, %v4211_v20  ;;  %v4243_v39 = vadd.f32 %v4228_v23, %v4213_v26  ;;  %v4245_v40 = vmax.f32 %v4237_v28, 0.0  ;;  %v4247_v35 = vmax.f32 %v4239_v30, 0.0 }
 0x34c   : > { %v4242_v37 = vadd.f32 %v4224_v22, %v4212_v25  ;;  %v4244_v32 = vadd.f32 %v4232_v24, %v4214_v27  ;;  %v4246_v41 = vmax.f32 %v4238_v29, 0.0  ;;  %v4248_v36 = vmax.f32 %v4240_v33, 0.0 }
 0x34d   : > { %v4249_v44 = vmax.f32 %v4241_v34, 0.0  ;;  %v4251_v46 = vmax.f32 %v4243_v39, 0.0 }
 0x34e   : > { %v4250_v45 = vmax.f32 %v4242_v37, 0.0  ;;  %v4252_v31 = vmax.f32 %v4244_v32, 0.0  ;;  %v4987_v48 = vpack.c.bf16 %v4246_v41, %v4245_v40  ;;  %v4988_v49 = vpack.c.bf16 %v4248_v36, %v4247_v35 }
 0x350   : > { %v4989_v50 = vpack.c.bf16 %v4250_v45, %v4249_v44  ;;  %v4990_v51 = vpack.c.bf16 %v4252_v31, %v4251_v46  ;;  %4277 = vst [vmem:[%s6264_s27] sm:$0xff] %v4987_v48  ;;  %4278 = vst [vmem:[%s6264_s27 + $0x8] sm:$0xff] %v4988_v49 }
 0x352   : > { %4279 = vst [vmem:[%s6264_s27 + $0x10] sm:$0xff] %v4989_v50  ;;  %4280 = vst [vmem:[%s6264_s27 + $0x18] sm:$0xff] %v4990_v51 }
 0x353 PF: > { %p6924_p11 = scmp.ne.s32.totalorder %s6922_s14, 0 }
 0x354   : > { %s4991_s19 = sshll.u32 (%p6924_p11), %s6032_s20, 4 }
 0x355   : > { %4287 = sbr.rel (!%p6924_p11) target bundleno = 860 (0x35c), region = 71  ;;  %s4293_s5 = scalar_lea.vmem (%p6924_p11), %s6910_s3, %s4991_s19 }
 0x357   : > { %v4306_v52 = vld [vmem:[%s6264_s27] sm:$0xff] (%p6924_p11)  ;;  %v4308_v53 = vld [vmem:[%s6264_s27 + $0x8] sm:$0xff] (%p6924_p11) }
 0x358   : > { %4307 = vst [vmem:[%s4293_s5] sm:$0xff] (%p6924_p11), %v4306_v52  ;;  %4309 = vst [vmem:[%s4293_s5 + $0x8] sm:$0xff] (%p6924_p11), %v4308_v53 }
 0x359   : > { %v4310_v54 = vld [vmem:[%s6264_s27 + $0x10] sm:$0xff] (%p6924_p11)  ;;  %v4312_v47 = vld [vmem:[%s6264_s27 + $0x18] sm:$0xff] (%p6924_p11) }
 0x35a   : > { %4311 = vst [vmem:[%s4293_s5 + $0x80] sm:$0xff] (%p6924_p11), %v4310_v54  ;;  %4313 = vst [vmem:[%s4293_s5 + $0x88] sm:$0xff] (%p6924_p11), %v4312_v47 }
 0x35c PF: > { %s16_s23 = sadd.s32 1, %s6044_s23   ;;  %s6925_s20 = sld [smem:[#allocation11_spill]] }
 0x35d   : > { %p13_p13 = scmp.ge.s32.totalorder %s16_s23, 18   ;;  %s6926_s6 = sld [smem:[#allocation8_spill]] }
 0x35e   : > { %s6927_s25 = sld [smem:[#allocation9_spill]]  ;;  %s6928_s22 = sld [smem:[#allocation10_spill]] }
 0x35f   : > { %s6929_s12 = smov %s6004_s13  ;;  %s6930_s13 = smov %s6174_s11 }
 0x360   : > { %s6931_s14 = smov %s6012_s15  ;;  %s6932_s15 = smov %s6016_s16 }
 0x361   : > { %s6933_s16 = smov %s6166_s8  ;;  %s6934_s17 = smov %s6024_s18 }
 0x362   : > { %s6935_s18 = smov %s6925_s20  ;;  %s6936_s19 = smov %s6036_s21 }
 0x363   : > { %s6937_s20 = smov %s6926_s6  ;;  %15 = sbr.rel (!%p13_p13) target bundleno = 9 (0x9), region = 137 }
 0x364   : > { %s6938_s21 = smov %s6927_s25 }
 0x36a   :  { %4329 = vsyncpa [#allocation5], 1 }
 0x36b   :  { %4331 = vsyncpa [#allocation5 + $0x1], 1 }

</bundles_post_ra>
